<compile_context>
chip_gen: v7x
topology: tpu7x:2x2x1
jax: 0.10.0
libtpu: 0.0.40
codegen_flags: <defaults>
</compile_context>

<pallas_src>
import functools

import jax
import jax.numpy as jnp
from jax.experimental import pallas as pl
from jax.experimental.pallas import tpu as pltpu

N_HID1 = 16
N_HID2 = 72
N_HID3 = 32
GPAD = 128              # each LSTM gate padded to its own 128-lane block
G4 = 4 * GPAD           # 512: padded gate width for every cell
X_PAD = 8               # x features padded 2 -> 8 for the pre-pass matmul
B_SUB = 8               # batch padded to one sublane tile


def _lstm_cell_padded(gates, c):
    """LSTM update from gate-padded pre-activations (B, 512), PyTorch (i,f,g,o) order.

    Each gate occupies its own 128-lane block -> all slices are vreg-aligned.
    Padded lanes stay exactly zero (zero weights/bias -> gate preact 0 -> h_pad 0).
    """
    i = jax.nn.sigmoid(gates[:, 0 * GPAD:1 * GPAD])
    f = jax.nn.sigmoid(gates[:, 1 * GPAD:2 * GPAD])
    g = jnp.tanh(gates[:, 2 * GPAD:3 * GPAD])
    o = jax.nn.sigmoid(gates[:, 3 * GPAD:4 * GPAD])
    c_new = f * c + i * g
    h_new = o * jnp.tanh(c_new)
    return h_new, c_new


def lstm_predictor_kernel(
    x_ref, y_ref,
    w_ih1_ref, b1_ref, w_ih2_ref, b2_ref,
    w_hh1_ref, w_hh2_ref, w_ih3a_ref, w_ih3b_ref, w_hh3_ref, b3_ref,
    w_l1_ref, b_l1_ref, w_l2_ref, b_l2_ref,
    w_l3_ref, b_l3_ref, w_l4_ref, b_l4_ref,
    out_ref,
    gx_scr, gl_scr, h3_scr,
    *, B, T,
):
    f32 = jnp.float32
    bf16 = jnp.bfloat16

    # ---- batched non-recurrent pre-pass: all T*B rows at once ----
    # y path: linear1 -> ReLU -> linear2, folded straight into lstm2's input->gate
    # contribution (l2 itself is never needed again).
    l1 = jnp.maximum(
        jnp.dot(y_ref[...], w_l1_ref[...], preferred_element_type=f32)
        + b_l1_ref[...], 0.0)                                          # (T*B, 64)
    l2 = (jnp.dot(l1, w_l2_ref[...], preferred_element_type=f32)
          + b_l2_ref[...])                                             # (T*B, 72)

    # Input->gate contributions hoisted out of the recurrence (gate-padded columns).
    gx = (jnp.dot(x_ref[...], w_ih1_ref[...], preferred_element_type=f32)
          + b1_ref[...])                                               # (T*B, 512)
    gl = (jnp.dot(l2, w_ih2_ref[...], preferred_element_type=f32)
          + b2_ref[...])                                               # (T*B, 512)
    gx_scr[...] = gx.reshape(T, B, G4)
    gl_scr[...] = gl.reshape(T, B, G4)

    # ---- hoisted recurrence weights (bf16) & bias broadcast (JAX won't CSE it) ----
    w_hh1 = w_hh1_ref[...]          # (128, 512) bf16
    w_hh2 = w_hh2_ref[...]          # (128, 512) bf16
    w_ih3a = w_ih3a_ref[...]        # (128, 512) bf16
    w_ih3b = w_ih3b_ref[...]        # (128, 512) bf16
    w_hh3 = w_hh3_ref[...]          # (128, 512) bf16
    b3b = jnp.broadcast_to(b3_ref[...], (B, G4))

    h_t = jnp.zeros((B, GPAD), f32); c_t = jnp.zeros((B, GPAD), f32)
    h_t2 = jnp.zeros((B, GPAD), f32); c_t2 = jnp.zeros((B, GPAD), f32)
    h_t3 = jnp.zeros((B, GPAD), f32); c_t3 = jnp.zeros((B, GPAD), f32)

    # ---- serial recurrence: only h @ W_hh matmuls + cell elementwise per step ----
    # T is small & static -> fully unrolled Python loop.
    # TODO(synk): for large T switch to lax.fori_loop(..., unroll=2..4) carrying
    #             (h, c) state and indexing the (T, B, .) slabs with the loop index.
    for t in range(T):
        g1 = gx_scr[t] + jnp.dot(h_t.astype(bf16), w_hh1,
                                 preferred_element_type=f32)
        h_t, c_t = _lstm_cell_padded(g1, c_t)

        g2 = gl_scr[t] + jnp.dot(h_t2.astype(bf16), w_hh2,
                                 preferred_element_type=f32)
        h_t2, c_t2 = _lstm_cell_padded(g2, c_t2)

        # lstm3: torch.cat((h_t, h_t2), 1) replaced by split weights + summed dots.
        g3 = (b3b
              + jnp.dot(h_t.astype(bf16), w_ih3a, preferred_element_type=f32)
              + jnp.dot(h_t2.astype(bf16), w_ih3b, preferred_element_type=f32)
              + jnp.dot(h_t3.astype(bf16), w_hh3, preferred_element_type=f32))
        h_t3, c_t3 = _lstm_cell_padded(g3, c_t3)
        h3_scr[t] = h_t3                                    # (8,128)-aligned store

    # ---- batched non-recurrent output head: linear3 -> ReLU -> linear4 ----
    h3 = h3_scr[...].reshape(T * B, GPAD)
    l3 = jnp.maximum(
        jnp.dot(h3, w_l3_ref[...], preferred_element_type=f32) + b_l3_ref[...],
        0.0)                                                           # (T*B, 16)
    # TODO(synk): for large T*B pad w_l4 to 128 output columns so this store is
    #             lane-dense (unmasked vst); negligible at T*B = 64.
    out_ref[...] = (jnp.dot(l3, w_l4_ref[...], preferred_element_type=f32)
                    + b_l4_ref[...])                                   # (T*B, 2)


def _gate_pad_cols(w, hid):
    """(in, 4*hid) -> (in, 4*GPAD): each (i,f,g,o) gate block in its own 128-lane block."""
    out = jnp.zeros((w.shape[0], G4), jnp.float32)
    for g in range(4):
        out = out.at[:, g * GPAD:g * GPAD + hid].set(w[:, g * hid:(g + 1) * hid])
    return out


def _pad_rows(w, rows):
    """Zero-pad the contraction dim so padded h/c lanes meet zero weight rows."""
    return jnp.zeros((rows, w.shape[1]), w.dtype).at[: w.shape[0], :].set(w)


def prepare_params(params):
    """Build kernel-ready weights: gate-column-padded, contraction-padded, bf16 recurrence."""
    (w_ih1, w_hh1, b1, w_ih2, w_hh2, b2, w_ih3, w_hh3, b3,
     w_l1, b_l1, w_l2, b_l2, w_l3, b_l3, w_l4, b_l4) = params
    bf16 = jnp.bfloat16

    # Pre-pass (input->gate) weights stay f32: used once, off the critical path.
    w_ih1p = _pad_rows(_gate_pad_cols(w_ih1, N_HID1), X_PAD)   # (8,   512)
    b1p = _gate_pad_cols(b1, N_HID1)                           # (1,   512)
    w_ih2p = _gate_pad_cols(w_ih2, N_HID2)                     # (72,  512)
    b2p = _gate_pad_cols(b2, N_HID2)                           # (1,   512)

    # Recurrence weights: gate-padded cols, 128 contraction rows, bf16 MXU operands.
    w_hh1p = _pad_rows(_gate_pad_cols(w_hh1, N_HID1), GPAD).astype(bf16)           # (128, 512)
    w_hh2p = _pad_rows(_gate_pad_cols(w_hh2, N_HID2), GPAD).astype(bf16)           # (128, 512)
    w_ih3ap = _pad_rows(_gate_pad_cols(w_ih3[:N_HID1, :], N_HID3), GPAD).astype(bf16)
    w_ih3bp = _pad_rows(_gate_pad_cols(w_ih3[N_HID1:, :], N_HID3), GPAD).astype(bf16)
    w_hh3p = _pad_rows(_gate_pad_cols(w_hh3, N_HID3), GPAD).astype(bf16)
    b3p = _gate_pad_cols(b3, N_HID3)                           # (1, 512) f32

    # Output head: pad linear3's input dim to the 128-lane padded h_t3.
    w_l3p = _pad_rows(w_l3, GPAD)                              # (128, 16)

    return (w_ih1p, b1p, w_ih2p, b2p,
            w_hh1p, w_hh2p, w_ih3ap, w_ih3bp, w_hh3p, b3p,
            w_l1, b_l1, w_l2, b_l2, w_l3p, b_l3, w_l4, b_l4)


def lstm_predictor_forward(x, y, params):
    """x: (B, T, 2) f32, y: (B, T, 36) f32 -> (B, T*2) f32."""
    B, T, _ = x.shape
    Bp = ((B + B_SUB - 1) // B_SUB) * B_SUB      # pad batch to a full sublane tile
    kparams = prepare_params(params)

    # Time-major, batch- and feature-padded, flattened layout: every per-step slab
    # access in the kernel is a full (8,128)-tile-aligned row block.
    xp = jnp.zeros((Bp, T, X_PAD), jnp.float32).at[:B, :, :2].set(x)
    yp = jnp.zeros((Bp, T, 36), jnp.float32).at[:B].set(y)
    x_tm = jnp.transpose(xp, (1, 0, 2)).reshape(T * Bp, X_PAD)
    y_tm = jnp.transpose(yp, (1, 0, 2)).reshape(T * Bp, 36)
    args = (x_tm, y_tm) + kparams

    vmem = pl.BlockSpec(memory_space=pltpu.MemorySpace.VMEM)
    # TODO(synk): on v7x (2 TensorCores) add a batch grid axis with
    #             dimension_semantics=("parallel",) once Bp > 8 so each core runs an
    #             independent recurrence on half the batch.
    # TODO(synk): for large T*B (v7x has only 64 MiB VMEM) block the pre/post passes
    #             over T-chunks via a grid and set vmem_limit_bytes explicitly.
    out = pl.pallas_call(
        functools.partial(lstm_predictor_kernel, B=Bp, T=T),
        out_shape=jax.ShapeDtypeStruct((T * Bp, 2), jnp.float32),
        in_specs=[vmem] * len(args),
        out_specs=vmem,
        scratch_shapes=[pltpu.VMEM((T, Bp, G4), jnp.float32),    # gx: lstm1 input gates
                        pltpu.VMEM((T, Bp, G4), jnp.float32),    # gl: lstm2 input gates
                        pltpu.VMEM((T, Bp, GPAD), jnp.float32)],  # stacked h_t3
    )(*args)

    # (T*Bp, 2) time-major -> (B, T*2), matching torch.cat(outputs, dim=1).
    return out.reshape(T, Bp, 2)[:, :B].transpose(1, 0, 2).reshape(B, T * 2)


def init_params(key):
    """Deterministic parameter init; weights stored as (in, out), biases as (1, out)."""
    def uni(key, shape, scale):
        return jax.random.uniform(key, shape, jnp.float32, -scale, scale)

    keys = jax.random.split(key, 32)
    ki = iter(keys)

    def lstm_params(in_dim, hid):
        s = 1.0 / (hid ** 0.5)
        w_ih = uni(next(ki), (in_dim, 4 * hid), s)
        w_hh = uni(next(ki), (hid, 4 * hid), s)
        b_ih = uni(next(ki), (1, 4 * hid), s)
        b_hh = uni(next(ki), (1, 4 * hid), s)
        return w_ih, w_hh, b_ih + b_hh

    def linear_params(in_dim, out_dim):
        s = 1.0 / (in_dim ** 0.5)
        w = uni(next(ki), (in_dim, out_dim), s)
        b = uni(next(ki), (1, out_dim), s)
        return w, b

    p = []
    p += list(lstm_params(2, N_HID1))                       # lstm1
    p += list(lstm_params(N_HID2, N_HID2))                  # lstm2
    p += list(lstm_params(N_HID1 + N_HID2, N_HID3))         # lstm3
    p += list(linear_params(36, 64))                        # linear1
    p += list(linear_params(64, N_HID2))                    # linear2
    p += list(linear_params(N_HID3, 16))                    # linear3
    p += list(linear_params(16, 2))                         # linear4
    return tuple(p)


def reference_forward(x, y, params):
    """Pure-JAX f32 reference of the PyTorch forward for correctness checking."""
    (w_ih1, w_hh1, b1, w_ih2, w_hh2, b2, w_ih3, w_hh3, b3,
     w_l1, b_l1, w_l2, b_l2, w_l3, b_l3, w_l4, b_l4) = params
    B, T, _ = x.shape
    h_t = jnp.zeros((B, N_HID1)); c_t = jnp.zeros((B, N_HID1))
    h_t2 = jnp.zeros((B, N_HID2)); c_t2 = jnp.zeros((B, N_HID2))
    h_t3 = jnp.zeros((B, N_HID3)); c_t3 = jnp.zeros((B, N_HID3))

    def cell(xt, h, c, wih, whh, b):
        g = xt @ wih + h @ whh + b
        H = h.shape[1]
        i = jax.nn.sigmoid(g[:, :H]); f = jax.nn.sigmoid(g[:, H:2*H])
        gg = jnp.tanh(g[:, 2*H:3*H]); o = jax.nn.sigmoid(g[:, 3*H:])
        c2 = f * c + i * gg
        return o * jnp.tanh(c2), c2

    outs = []
    for t in range(T):
        h_t, c_t = cell(x[:, t, :], h_t, c_t, w_ih1, w_hh1, b1)
        l1 = jnp.maximum(y[:, t, :] @ w_l1 + b_l1, 0.0)
        l2 = l1 @ w_l2 + b_l2
        h_t2, c_t2 = cell(l2, h_t2, c_t2, w_ih2, w_hh2, b2)
        h_t3, c_t3 = cell(jnp.concatenate([h_t, h_t2], 1), h_t3, c_t3, w_ih3, w_hh3, b3)
        l3 = jnp.maximum(h_t3 @ w_l3 + b_l3, 0.0)
        outs.append(l3 @ w_l4 + b_l4)
    return jnp.concatenate(outs, axis=1)


if __name__ == "__main__":
    key = jax.random.PRNGKey(0)
    k_p, k_x, k_y = jax.random.split(key, 3)

    B, T = 2, 8
    params = init_params(k_p)
    x = jax.random.normal(k_x, (B, T, 2), jnp.float32)
    y = jax.random.normal(k_y, (B, T, 36), jnp.float32)

    out = lstm_predictor_forward(x, y, params)
    out = jax.block_until_ready(out)

    ref = reference_forward(x, y, params)
    assert out.shape == (B, T * 2), out.shape
    # bf16 recurrence-weight operands (MXU fast path) loosen agreement slightly vs
    # the f32 reference; 2e-2 still catches any structural / packing bug.
    assert jnp.allclose(out, ref, atol=2e-2, rtol=2e-2), float(jnp.max(jnp.abs(out - ref)))

    print("KERNEL_OK")
</pallas_src>

<mosaic_0001>
module attributes {stable_mosaic.version = 11 : i64} {
  func.func @lstm_predictor_kernel(%arg0: memref<64x8xf32, #tpu.memory_space<vmem>>, %arg1: memref<64x36xf32, #tpu.memory_space<vmem>>, %arg2: memref<8x512xf32, #tpu.memory_space<vmem>>, %arg3: memref<1x512xf32, #tpu.memory_space<vmem>>, %arg4: memref<72x512xf32, #tpu.memory_space<vmem>>, %arg5: memref<1x512xf32, #tpu.memory_space<vmem>>, %arg6: memref<128x512xbf16, #tpu.memory_space<vmem>>, %arg7: memref<128x512xbf16, #tpu.memory_space<vmem>>, %arg8: memref<128x512xbf16, #tpu.memory_space<vmem>>, %arg9: memref<128x512xbf16, #tpu.memory_space<vmem>>, %arg10: memref<128x512xbf16, #tpu.memory_space<vmem>>, %arg11: memref<1x512xf32, #tpu.memory_space<vmem>>, %arg12: memref<36x64xf32, #tpu.memory_space<vmem>>, %arg13: memref<1x64xf32, #tpu.memory_space<vmem>>, %arg14: memref<64x72xf32, #tpu.memory_space<vmem>>, %arg15: memref<1x72xf32, #tpu.memory_space<vmem>>, %arg16: memref<128x16xf32, #tpu.memory_space<vmem>>, %arg17: memref<1x16xf32, #tpu.memory_space<vmem>>, %arg18: memref<16x2xf32, #tpu.memory_space<vmem>>, %arg19: memref<1x2xf32, #tpu.memory_space<vmem>>, %arg20: memref<64x2xf32, #tpu.memory_space<vmem>>, %arg21: memref<8x8x512xf32, #tpu.memory_space<vmem>>, %arg22: memref<8x8x512xf32, #tpu.memory_space<vmem>>, %arg23: memref<8x8x128xf32, #tpu.memory_space<vmem>>) attributes {dimension_semantics = [], scalar_prefetch = 0 : i64, scratch_operands = 3 : i64, tpu.core_type = #tpu.core_type<tc>} {
    %c0 = arith.constant 0 : index
    %c0_0 = arith.constant 0 : index
    %0 = vector.load %arg1[%c0, %c0_0] : memref<64x36xf32, #tpu.memory_space<vmem>>, vector<64x36xf32>
    %c0_1 = arith.constant 0 : index
    %c0_2 = arith.constant 0 : index
    %1 = vector.load %arg12[%c0_1, %c0_2] : memref<36x64xf32, #tpu.memory_space<vmem>>, vector<36x64xf32>
    %cst = arith.constant dense<0.000000e+00> : vector<64x64xf32>
    %2 = tpu.matmul %0, %1, %cst {dimension_numbers = #tpu.dot_dimension_numbers<[1], [0], [0], [1], [0, 0, 1, 1], [], []>} : vector<64x36xf32>, vector<36x64xf32>, vector<64x64xf32> -> vector<64x64xf32>
    %c0_3 = arith.constant 0 : index
    %c0_4 = arith.constant 0 : index
    %3 = vector.load %arg13[%c0_3, %c0_4] : memref<1x64xf32, #tpu.memory_space<vmem>>, vector<1x64xf32>
    %4 = vector.broadcast %3 : vector<1x64xf32> to vector<64x64xf32>
    %5 = arith.addf %2, %4 : vector<64x64xf32>
    %cst_5 = arith.constant 0.000000e+00 : f32
    %6 = vector.broadcast %cst_5 : f32 to vector<64x64xf32>
    %7 = arith.maximumf %5, %6 : vector<64x64xf32>
    %c0_6 = arith.constant 0 : index
    %c0_7 = arith.constant 0 : index
    %8 = vector.load %arg14[%c0_6, %c0_7] : memref<64x72xf32, #tpu.memory_space<vmem>>, vector<64x72xf32>
    %cst_8 = arith.constant dense<0.000000e+00> : vector<64x72xf32>
    %9 = tpu.matmul %7, %8, %cst_8 {dimension_numbers = #tpu.dot_dimension_numbers<[1], [0], [0], [1], [0, 0, 1, 1], [], []>} : vector<64x64xf32>, vector<64x72xf32>, vector<64x72xf32> -> vector<64x72xf32>
    %c0_9 = arith.constant 0 : index
    %c0_10 = arith.constant 0 : index
    %10 = vector.load %arg15[%c0_9, %c0_10] : memref<1x72xf32, #tpu.memory_space<vmem>>, vector<1x72xf32>
    %11 = vector.broadcast %10 : vector<1x72xf32> to vector<64x72xf32>
    %12 = arith.addf %9, %11 : vector<64x72xf32>
    %c0_11 = arith.constant 0 : index
    %c0_12 = arith.constant 0 : index
    %13 = vector.load %arg0[%c0_11, %c0_12] : memref<64x8xf32, #tpu.memory_space<vmem>>, vector<64x8xf32>
    %c0_13 = arith.constant 0 : index
    %c0_14 = arith.constant 0 : index
    %14 = vector.load %arg2[%c0_13, %c0_14] : memref<8x512xf32, #tpu.memory_space<vmem>>, vector<8x512xf32>
    %cst_15 = arith.constant dense<0.000000e+00> : vector<64x512xf32>
    %15 = tpu.matmul %13, %14, %cst_15 {dimension_numbers = #tpu.dot_dimension_numbers<[1], [0], [0], [1], [0, 0, 1, 1], [], []>} : vector<64x8xf32>, vector<8x512xf32>, vector<64x512xf32> -> vector<64x512xf32>
    %c0_16 = arith.constant 0 : index
    %c0_17 = arith.constant 0 : index
    %16 = vector.load %arg3[%c0_16, %c0_17] : memref<1x512xf32, #tpu.memory_space<vmem>>, vector<1x512xf32>
    %17 = vector.broadcast %16 : vector<1x512xf32> to vector<64x512xf32>
    %18 = arith.addf %15, %17 : vector<64x512xf32>
    %c0_18 = arith.constant 0 : index
    %c0_19 = arith.constant 0 : index
    %19 = vector.load %arg4[%c0_18, %c0_19] : memref<72x512xf32, #tpu.memory_space<vmem>>, vector<72x512xf32>
    %cst_20 = arith.constant dense<0.000000e+00> : vector<64x512xf32>
    %20 = tpu.matmul %12, %19, %cst_20 {dimension_numbers = #tpu.dot_dimension_numbers<[1], [0], [0], [1], [0, 0, 1, 1], [], []>} : vector<64x72xf32>, vector<72x512xf32>, vector<64x512xf32> -> vector<64x512xf32>
    %c0_21 = arith.constant 0 : index
    %c0_22 = arith.constant 0 : index
    %21 = vector.load %arg5[%c0_21, %c0_22] : memref<1x512xf32, #tpu.memory_space<vmem>>, vector<1x512xf32>
    %22 = vector.broadcast %21 : vector<1x512xf32> to vector<64x512xf32>
    %23 = arith.addf %20, %22 : vector<64x512xf32>
    %24 = vector.shape_cast %18 : vector<64x512xf32> to vector<8x8x512xf32>
    %c0_23 = arith.constant 0 : index
    %c0_24 = arith.constant 0 : index
    %c0_25 = arith.constant 0 : index
    %25 = vector.load %arg21[%c0_23, %c0_24, %c0_25] : memref<8x8x512xf32, #tpu.memory_space<vmem>>, vector<8x8x512xf32>
    tpu.vector_store %arg21[%c0_23, %c0_24, %c0_25], %24 {strides = array<i32>} : memref<8x8x512xf32, #tpu.memory_space<vmem>>, vector<8x8x512xf32>,
    %26 = vector.shape_cast %23 : vector<64x512xf32> to vector<8x8x512xf32>
    %c0_26 = arith.constant 0 : index
    %c0_27 = arith.constant 0 : index
    %c0_28 = arith.constant 0 : index
    %27 = vector.load %arg22[%c0_26, %c0_27, %c0_28] : memref<8x8x512xf32, #tpu.memory_space<vmem>>, vector<8x8x512xf32>
    tpu.vector_store %arg22[%c0_26, %c0_27, %c0_28], %26 {strides = array<i32>} : memref<8x8x512xf32, #tpu.memory_space<vmem>>, vector<8x8x512xf32>,
    %c0_29 = arith.constant 0 : index
    %c0_30 = arith.constant 0 : index
    %28 = vector.load %arg6[%c0_29, %c0_30] : memref<128x512xbf16, #tpu.memory_space<vmem>>, vector<128x512xbf16>
    %c0_31 = arith.constant 0 : index
    %c0_32 = arith.constant 0 : index
    %29 = vector.load %arg7[%c0_31, %c0_32] : memref<128x512xbf16, #tpu.memory_space<vmem>>, vector<128x512xbf16>
    %c0_33 = arith.constant 0 : index
    %c0_34 = arith.constant 0 : index
    %30 = vector.load %arg8[%c0_33, %c0_34] : memref<128x512xbf16, #tpu.memory_space<vmem>>, vector<128x512xbf16>
    %c0_35 = arith.constant 0 : index
    %c0_36 = arith.constant 0 : index
    %31 = vector.load %arg9[%c0_35, %c0_36] : memref<128x512xbf16, #tpu.memory_space<vmem>>, vector<128x512xbf16>
    %c0_37 = arith.constant 0 : index
    %c0_38 = arith.constant 0 : index
    %32 = vector.load %arg10[%c0_37, %c0_38] : memref<128x512xbf16, #tpu.memory_space<vmem>>, vector<128x512xbf16>
    %c0_39 = arith.constant 0 : index
    %c0_40 = arith.constant 0 : index
    %33 = vector.load %arg11[%c0_39, %c0_40] : memref<1x512xf32, #tpu.memory_space<vmem>>, vector<1x512xf32>
    %34 = vector.shape_cast %33 : vector<1x512xf32> to vector<1x512xf32>
    %35 = vector.broadcast %34 : vector<1x512xf32> to vector<8x512xf32>
    %cst_41 = arith.constant 0.000000e+00 : f32
    %36 = vector.broadcast %cst_41 : f32 to vector<8x128xf32>
    %cst_42 = arith.constant 0.000000e+00 : f32
    %37 = vector.broadcast %cst_42 : f32 to vector<8x128xf32>
    %cst_43 = arith.constant 0.000000e+00 : f32
    %38 = vector.broadcast %cst_43 : f32 to vector<8x128xf32>
    %cst_44 = arith.constant 0.000000e+00 : f32
    %39 = vector.broadcast %cst_44 : f32 to vector<8x128xf32>
    %cst_45 = arith.constant 0.000000e+00 : f32
    %40 = vector.broadcast %cst_45 : f32 to vector<8x128xf32>
    %cst_46 = arith.constant 0.000000e+00 : f32
    %41 = vector.broadcast %cst_46 : f32 to vector<8x128xf32>
    %c0_47 = arith.constant 0 : index
    %c0_48 = arith.constant 0 : index
    %c0_49 = arith.constant 0 : index
    %42 = vector.load %arg21[%c0_47, %c0_48, %c0_49] : memref<8x8x512xf32, #tpu.memory_space<vmem>>, vector<1x8x512xf32>
    %43 = vector.shape_cast %42 : vector<1x8x512xf32> to vector<8x512xf32>
    %44 = arith.truncf %36 : vector<8x128xf32> to vector<8x128xbf16>
    %cst_50 = arith.constant dense<0.000000e+00> : vector<8x512xf32>
    %45 = tpu.matmul %44, %28, %cst_50 {dimension_numbers = #tpu.dot_dimension_numbers<[1], [0], [0], [1], [0, 0, 1, 1], [], []>} : vector<8x128xbf16>, vector<128x512xbf16>, vector<8x512xf32> -> vector<8x512xf32>
    %46 = arith.addf %43, %45 : vector<8x512xf32>
    %47 = vector.extract_strided_slice %46 {offsets = [0, 0], sizes = [8, 128], strides = [1, 1]} : vector<8x512xf32> to vector<8x128xf32>
    %48 = arith.negf %47 : vector<8x128xf32>
    %49 = math.exp %48 : vector<8x128xf32>
    %cst_51 = arith.constant 1.000000e+00 : f32
    %50 = vector.broadcast %cst_51 : f32 to vector<8x128xf32>
    %51 = arith.addf %50, %49 : vector<8x128xf32>
    %52 = arith.divf %50, %51 : vector<8x128xf32>
    %53 = vector.extract_strided_slice %46 {offsets = [0, 128], sizes = [8, 128], strides = [1, 1]} : vector<8x512xf32> to vector<8x128xf32>
    %54 = arith.negf %53 : vector<8x128xf32>
    %55 = math.exp %54 : vector<8x128xf32>
    %cst_52 = arith.constant 1.000000e+00 : f32
    %56 = vector.broadcast %cst_52 : f32 to vector<8x128xf32>
    %57 = arith.addf %56, %55 : vector<8x128xf32>
    %58 = arith.divf %56, %57 : vector<8x128xf32>
    %59 = vector.extract_strided_slice %46 {offsets = [0, 256], sizes = [8, 128], strides = [1, 1]} : vector<8x512xf32> to vector<8x128xf32>
    %60 = math.tanh %59 : vector<8x128xf32>
    %61 = vector.extract_strided_slice %46 {offsets = [0, 384], sizes = [8, 128], strides = [1, 1]} : vector<8x512xf32> to vector<8x128xf32>
    %62 = arith.negf %61 : vector<8x128xf32>
    %63 = math.exp %62 : vector<8x128xf32>
    %cst_53 = arith.constant 1.000000e+00 : f32
    %64 = vector.broadcast %cst_53 : f32 to vector<8x128xf32>
    %65 = arith.addf %64, %63 : vector<8x128xf32>
    %66 = arith.divf %64, %65 : vector<8x128xf32>
    %67 = arith.mulf %58, %37 : vector<8x128xf32>
    %68 = arith.mulf %52, %60 : vector<8x128xf32>
    %69 = arith.addf %67, %68 : vector<8x128xf32>
    %70 = math.tanh %69 : vector<8x128xf32>
    %71 = arith.mulf %66, %70 : vector<8x128xf32>
    %c0_54 = arith.constant 0 : index
    %c0_55 = arith.constant 0 : index
    %c0_56 = arith.constant 0 : index
    %72 = vector.load %arg22[%c0_54, %c0_55, %c0_56] : memref<8x8x512xf32, #tpu.memory_space<vmem>>, vector<1x8x512xf32>
    %73 = vector.shape_cast %72 : vector<1x8x512xf32> to vector<8x512xf32>
    %74 = arith.truncf %38 : vector<8x128xf32> to vector<8x128xbf16>
    %cst_57 = arith.constant dense<0.000000e+00> : vector<8x512xf32>
    %75 = tpu.matmul %74, %29, %cst_57 {dimension_numbers = #tpu.dot_dimension_numbers<[1], [0], [0], [1], [0, 0, 1, 1], [], []>} : vector<8x128xbf16>, vector<128x512xbf16>, vector<8x512xf32> -> vector<8x512xf32>
    %76 = arith.addf %73, %75 : vector<8x512xf32>
    %77 = vector.extract_strided_slice %76 {offsets = [0, 0], sizes = [8, 128], strides = [1, 1]} : vector<8x512xf32> to vector<8x128xf32>
    %78 = arith.negf %77 : vector<8x128xf32>
    %79 = math.exp %78 : vector<8x128xf32>
    %cst_58 = arith.constant 1.000000e+00 : f32
    %80 = vector.broadcast %cst_58 : f32 to vector<8x128xf32>
    %81 = arith.addf %80, %79 : vector<8x128xf32>
    %82 = arith.divf %80, %81 : vector<8x128xf32>
    %83 = vector.extract_strided_slice %76 {offsets = [0, 128], sizes = [8, 128], strides = [1, 1]} : vector<8x512xf32> to vector<8x128xf32>
    %84 = arith.negf %83 : vector<8x128xf32>
    %85 = math.exp %84 : vector<8x128xf32>
    %cst_59 = arith.constant 1.000000e+00 : f32
    %86 = vector.broadcast %cst_59 : f32 to vector<8x128xf32>
    %87 = arith.addf %86, %85 : vector<8x128xf32>
    %88 = arith.divf %86, %87 : vector<8x128xf32>
    %89 = vector.extract_strided_slice %76 {offsets = [0, 256], sizes = [8, 128], strides = [1, 1]} : vector<8x512xf32> to vector<8x128xf32>
    %90 = math.tanh %89 : vector<8x128xf32>
    %91 = vector.extract_strided_slice %76 {offsets = [0, 384], sizes = [8, 128], strides = [1, 1]} : vector<8x512xf32> to vector<8x128xf32>
    %92 = arith.negf %91 : vector<8x128xf32>
    %93 = math.exp %92 : vector<8x128xf32>
    %cst_60 = arith.constant 1.000000e+00 : f32
    %94 = vector.broadcast %cst_60 : f32 to vector<8x128xf32>
    %95 = arith.addf %94, %93 : vector<8x128xf32>
    %96 = arith.divf %94, %95 : vector<8x128xf32>
    %97 = arith.mulf %88, %39 : vector<8x128xf32>
    %98 = arith.mulf %82, %90 : vector<8x128xf32>
    %99 = arith.addf %97, %98 : vector<8x128xf32>
    %100 = math.tanh %99 : vector<8x128xf32>
    %101 = arith.mulf %96, %100 : vector<8x128xf32>
    %102 = arith.truncf %71 : vector<8x128xf32> to vector<8x128xbf16>
    %cst_61 = arith.constant dense<0.000000e+00> : vector<8x512xf32>
    %103 = tpu.matmul %102, %30, %cst_61 {dimension_numbers = #tpu.dot_dimension_numbers<[1], [0], [0], [1], [0, 0, 1, 1], [], []>} : vector<8x128xbf16>, vector<128x512xbf16>, vector<8x512xf32> -> vector<8x512xf32>
    %104 = arith.addf %35, %103 : vector<8x512xf32>
    %105 = arith.truncf %101 : vector<8x128xf32> to vector<8x128xbf16>
    %cst_62 = arith.constant dense<0.000000e+00> : vector<8x512xf32>
    %106 = tpu.matmul %105, %31, %cst_62 {dimension_numbers = #tpu.dot_dimension_numbers<[1], [0], [0], [1], [0, 0, 1, 1], [], []>} : vector<8x128xbf16>, vector<128x512xbf16>, vector<8x512xf32> -> vector<8x512xf32>
    %107 = arith.addf %104, %106 : vector<8x512xf32>
    %108 = arith.truncf %40 : vector<8x128xf32> to vector<8x128xbf16>
    %cst_63 = arith.constant dense<0.000000e+00> : vector<8x512xf32>
    %109 = tpu.matmul %108, %32, %cst_63 {dimension_numbers = #tpu.dot_dimension_numbers<[1], [0], [0], [1], [0, 0, 1, 1], [], []>} : vector<8x128xbf16>, vector<128x512xbf16>, vector<8x512xf32> -> vector<8x512xf32>
    %110 = arith.addf %107, %109 : vector<8x512xf32>
    %111 = vector.extract_strided_slice %110 {offsets = [0, 0], sizes = [8, 128], strides = [1, 1]} : vector<8x512xf32> to vector<8x128xf32>
    %112 = arith.negf %111 : vector<8x128xf32>
    %113 = math.exp %112 : vector<8x128xf32>
    %cst_64 = arith.constant 1.000000e+00 : f32
    %114 = vector.broadcast %cst_64 : f32 to vector<8x128xf32>
    %115 = arith.addf %114, %113 : vector<8x128xf32>
    %116 = arith.divf %114, %115 : vector<8x128xf32>
    %117 = vector.extract_strided_slice %110 {offsets = [0, 128], sizes = [8, 128], strides = [1, 1]} : vector<8x512xf32> to vector<8x128xf32>
    %118 = arith.negf %117 : vector<8x128xf32>
    %119 = math.exp %118 : vector<8x128xf32>
    %cst_65 = arith.constant 1.000000e+00 : f32
    %120 = vector.broadcast %cst_65 : f32 to vector<8x128xf32>
    %121 = arith.addf %120, %119 : vector<8x128xf32>
    %122 = arith.divf %120, %121 : vector<8x128xf32>
    %123 = vector.extract_strided_slice %110 {offsets = [0, 256], sizes = [8, 128], strides = [1, 1]} : vector<8x512xf32> to vector<8x128xf32>
    %124 = math.tanh %123 : vector<8x128xf32>
    %125 = vector.extract_strided_slice %110 {offsets = [0, 384], sizes = [8, 128], strides = [1, 1]} : vector<8x512xf32> to vector<8x128xf32>
    %126 = arith.negf %125 : vector<8x128xf32>
    %127 = math.exp %126 : vector<8x128xf32>
    %cst_66 = arith.constant 1.000000e+00 : f32
    %128 = vector.broadcast %cst_66 : f32 to vector<8x128xf32>
    %129 = arith.addf %128, %127 : vector<8x128xf32>
    %130 = arith.divf %128, %129 : vector<8x128xf32>
    %131 = arith.mulf %122, %41 : vector<8x128xf32>
    %132 = arith.mulf %116, %124 : vector<8x128xf32>
    %133 = arith.addf %131, %132 : vector<8x128xf32>
    %134 = math.tanh %133 : vector<8x128xf32>
    %135 = arith.mulf %130, %134 : vector<8x128xf32>
    %c0_67 = arith.constant 0 : index
    %c0_68 = arith.constant 0 : index
    %c0_69 = arith.constant 0 : index
    %136 = vector.load %arg23[%c0_67, %c0_68, %c0_69] : memref<8x8x128xf32, #tpu.memory_space<vmem>>, vector<1x8x128xf32>
    %137 = vector.shape_cast %136 : vector<1x8x128xf32> to vector<8x128xf32>
    %138 = vector.shape_cast %135 : vector<8x128xf32> to vector<1x8x128xf32>
    tpu.vector_store %arg23[%c0_67, %c0_68, %c0_69], %138 {strides = array<i32>} : memref<8x8x128xf32, #tpu.memory_space<vmem>>, vector<1x8x128xf32>,
    %c1 = arith.constant 1 : index
    %c0_70 = arith.constant 0 : index
    %c0_71 = arith.constant 0 : index
    %139 = vector.load %arg21[%c1, %c0_70, %c0_71] : memref<8x8x512xf32, #tpu.memory_space<vmem>>, vector<1x8x512xf32>
    %140 = vector.shape_cast %139 : vector<1x8x512xf32> to vector<8x512xf32>
    %141 = arith.truncf %71 : vector<8x128xf32> to vector<8x128xbf16>
    %cst_72 = arith.constant dense<0.000000e+00> : vector<8x512xf32>
    %142 = tpu.matmul %141, %28, %cst_72 {dimension_numbers = #tpu.dot_dimension_numbers<[1], [0], [0], [1], [0, 0, 1, 1], [], []>} : vector<8x128xbf16>, vector<128x512xbf16>, vector<8x512xf32> -> vector<8x512xf32>
    %143 = arith.addf %140, %142 : vector<8x512xf32>
    %144 = vector.extract_strided_slice %143 {offsets = [0, 0], sizes = [8, 128], strides = [1, 1]} : vector<8x512xf32> to vector<8x128xf32>
    %145 = arith.negf %144 : vector<8x128xf32>
    %146 = math.exp %145 : vector<8x128xf32>
    %cst_73 = arith.constant 1.000000e+00 : f32
    %147 = vector.broadcast %cst_73 : f32 to vector<8x128xf32>
    %148 = arith.addf %147, %146 : vector<8x128xf32>
    %149 = arith.divf %147, %148 : vector<8x128xf32>
    %150 = vector.extract_strided_slice %143 {offsets = [0, 128], sizes = [8, 128], strides = [1, 1]} : vector<8x512xf32> to vector<8x128xf32>
    %151 = arith.negf %150 : vector<8x128xf32>
    %152 = math.exp %151 : vector<8x128xf32>
    %cst_74 = arith.constant 1.000000e+00 : f32
    %153 = vector.broadcast %cst_74 : f32 to vector<8x128xf32>
    %154 = arith.addf %153, %152 : vector<8x128xf32>
    %155 = arith.divf %153, %154 : vector<8x128xf32>
    %156 = vector.extract_strided_slice %143 {offsets = [0, 256], sizes = [8, 128], strides = [1, 1]} : vector<8x512xf32> to vector<8x128xf32>
    %157 = math.tanh %156 : vector<8x128xf32>
    %158 = vector.extract_strided_slice %143 {offsets = [0, 384], sizes = [8, 128], strides = [1, 1]} : vector<8x512xf32> to vector<8x128xf32>
    %159 = arith.negf %158 : vector<8x128xf32>
    %160 = math.exp %159 : vector<8x128xf32>
    %cst_75 = arith.constant 1.000000e+00 : f32
    %161 = vector.broadcast %cst_75 : f32 to vector<8x128xf32>
    %162 = arith.addf %161, %160 : vector<8x128xf32>
    %163 = arith.divf %161, %162 : vector<8x128xf32>
    %164 = arith.mulf %155, %69 : vector<8x128xf32>
    %165 = arith.mulf %149, %157 : vector<8x128xf32>
    %166 = arith.addf %164, %165 : vector<8x128xf32>
    %167 = math.tanh %166 : vector<8x128xf32>
    %168 = arith.mulf %163, %167 : vector<8x128xf32>
    %c1_76 = arith.constant 1 : index
    %c0_77 = arith.constant 0 : index
    %c0_78 = arith.constant 0 : index
    %169 = vector.load %arg22[%c1_76, %c0_77, %c0_78] : memref<8x8x512xf32, #tpu.memory_space<vmem>>, vector<1x8x512xf32>
    %170 = vector.shape_cast %169 : vector<1x8x512xf32> to vector<8x512xf32>
    %171 = arith.truncf %101 : vector<8x128xf32> to vector<8x128xbf16>
    %cst_79 = arith.constant dense<0.000000e+00> : vector<8x512xf32>
    %172 = tpu.matmul %171, %29, %cst_79 {dimension_numbers = #tpu.dot_dimension_numbers<[1], [0], [0], [1], [0, 0, 1, 1], [], []>} : vector<8x128xbf16>, vector<128x512xbf16>, vector<8x512xf32> -> vector<8x512xf32>
    %173 = arith.addf %170, %172 : vector<8x512xf32>
    %174 = vector.extract_strided_slice %173 {offsets = [0, 0], sizes = [8, 128], strides = [1, 1]} : vector<8x512xf32> to vector<8x128xf32>
    %175 = arith.negf %174 : vector<8x128xf32>
    %176 = math.exp %175 : vector<8x128xf32>
    %cst_80 = arith.constant 1.000000e+00 : f32
    %177 = vector.broadcast %cst_80 : f32 to vector<8x128xf32>
    %178 = arith.addf %177, %176 : vector<8x128xf32>
    %179 = arith.divf %177, %178 : vector<8x128xf32>
    %180 = vector.extract_strided_slice %173 {offsets = [0, 128], sizes = [8, 128], strides = [1, 1]} : vector<8x512xf32> to vector<8x128xf32>
    %181 = arith.negf %180 : vector<8x128xf32>
    %182 = math.exp %181 : vector<8x128xf32>
    %cst_81 = arith.constant 1.000000e+00 : f32
    %183 = vector.broadcast %cst_81 : f32 to vector<8x128xf32>
    %184 = arith.addf %183, %182 : vector<8x128xf32>
    %185 = arith.divf %183, %184 : vector<8x128xf32>
    %186 = vector.extract_strided_slice %173 {offsets = [0, 256], sizes = [8, 128], strides = [1, 1]} : vector<8x512xf32> to vector<8x128xf32>
    %187 = math.tanh %186 : vector<8x128xf32>
    %188 = vector.extract_strided_slice %173 {offsets = [0, 384], sizes = [8, 128], strides = [1, 1]} : vector<8x512xf32> to vector<8x128xf32>
    %189 = arith.negf %188 : vector<8x128xf32>
    %190 = math.exp %189 : vector<8x128xf32>
    %cst_82 = arith.constant 1.000000e+00 : f32
    %191 = vector.broadcast %cst_82 : f32 to vector<8x128xf32>
    %192 = arith.addf %191, %190 : vector<8x128xf32>
    %193 = arith.divf %191, %192 : vector<8x128xf32>
    %194 = arith.mulf %185, %99 : vector<8x128xf32>
    %195 = arith.mulf %179, %187 : vector<8x128xf32>
    %196 = arith.addf %194, %195 : vector<8x128xf32>
    %197 = math.tanh %196 : vector<8x128xf32>
    %198 = arith.mulf %193, %197 : vector<8x128xf32>
    %199 = arith.truncf %168 : vector<8x128xf32> to vector<8x128xbf16>
    %cst_83 = arith.constant dense<0.000000e+00> : vector<8x512xf32>
    %200 = tpu.matmul %199, %30, %cst_83 {dimension_numbers = #tpu.dot_dimension_numbers<[1], [0], [0], [1], [0, 0, 1, 1], [], []>} : vector<8x128xbf16>, vector<128x512xbf16>, vector<8x512xf32> -> vector<8x512xf32>
    %201 = arith.addf %35, %200 : vector<8x512xf32>
    %202 = arith.truncf %198 : vector<8x128xf32> to vector<8x128xbf16>
    %cst_84 = arith.constant dense<0.000000e+00> : vector<8x512xf32>
    %203 = tpu.matmul %202, %31, %cst_84 {dimension_numbers = #tpu.dot_dimension_numbers<[1], [0], [0], [1], [0, 0, 1, 1], [], []>} : vector<8x128xbf16>, vector<128x512xbf16>, vector<8x512xf32> -> vector<8x512xf32>
    %204 = arith.addf %201, %203 : vector<8x512xf32>
    %205 = arith.truncf %135 : vector<8x128xf32> to vector<8x128xbf16>
    %cst_85 = arith.constant dense<0.000000e+00> : vector<8x512xf32>
    %206 = tpu.matmul %205, %32, %cst_85 {dimension_numbers = #tpu.dot_dimension_numbers<[1], [0], [0], [1], [0, 0, 1, 1], [], []>} : vector<8x128xbf16>, vector<128x512xbf16>, vector<8x512xf32> -> vector<8x512xf32>
    %207 = arith.addf %204, %206 : vector<8x512xf32>
    %208 = vector.extract_strided_slice %207 {offsets = [0, 0], sizes = [8, 128], strides = [1, 1]} : vector<8x512xf32> to vector<8x128xf32>
    %209 = arith.negf %208 : vector<8x128xf32>
    %210 = math.exp %209 : vector<8x128xf32>
    %cst_86 = arith.constant 1.000000e+00 : f32
    %211 = vector.broadcast %cst_86 : f32 to vector<8x128xf32>
    %212 = arith.addf %211, %210 : vector<8x128xf32>
    %213 = arith.divf %211, %212 : vector<8x128xf32>
    %214 = vector.extract_strided_slice %207 {offsets = [0, 128], sizes = [8, 128], strides = [1, 1]} : vector<8x512xf32> to vector<8x128xf32>
    %215 = arith.negf %214 : vector<8x128xf32>
    %216 = math.exp %215 : vector<8x128xf32>
    %cst_87 = arith.constant 1.000000e+00 : f32
    %217 = vector.broadcast %cst_87 : f32 to vector<8x128xf32>
    %218 = arith.addf %217, %216 : vector<8x128xf32>
    %219 = arith.divf %217, %218 : vector<8x128xf32>
    %220 = vector.extract_strided_slice %207 {offsets = [0, 256], sizes = [8, 128], strides = [1, 1]} : vector<8x512xf32> to vector<8x128xf32>
    %221 = math.tanh %220 : vector<8x128xf32>
    %222 = vector.extract_strided_slice %207 {offsets = [0, 384], sizes = [8, 128], strides = [1, 1]} : vector<8x512xf32> to vector<8x128xf32>
    %223 = arith.negf %222 : vector<8x128xf32>
    %224 = math.exp %223 : vector<8x128xf32>
    %cst_88 = arith.constant 1.000000e+00 : f32
    %225 = vector.broadcast %cst_88 : f32 to vector<8x128xf32>
    %226 = arith.addf %225, %224 : vector<8x128xf32>
    %227 = arith.divf %225, %226 : vector<8x128xf32>
    %228 = arith.mulf %219, %133 : vector<8x128xf32>
    %229 = arith.mulf %213, %221 : vector<8x128xf32>
    %230 = arith.addf %228, %229 : vector<8x128xf32>
    %231 = math.tanh %230 : vector<8x128xf32>
    %232 = arith.mulf %227, %231 : vector<8x128xf32>
    %c1_89 = arith.constant 1 : index
    %c0_90 = arith.constant 0 : index
    %c0_91 = arith.constant 0 : index
    %233 = vector.load %arg23[%c1_89, %c0_90, %c0_91] : memref<8x8x128xf32, #tpu.memory_space<vmem>>, vector<1x8x128xf32>
    %234 = vector.shape_cast %233 : vector<1x8x128xf32> to vector<8x128xf32>
    %235 = vector.shape_cast %232 : vector<8x128xf32> to vector<1x8x128xf32>
    tpu.vector_store %arg23[%c1_89, %c0_90, %c0_91], %235 {strides = array<i32>} : memref<8x8x128xf32, #tpu.memory_space<vmem>>, vector<1x8x128xf32>,
    %c2 = arith.constant 2 : index
    %c0_92 = arith.constant 0 : index
    %c0_93 = arith.constant 0 : index
    %236 = vector.load %arg21[%c2, %c0_92, %c0_93] : memref<8x8x512xf32, #tpu.memory_space<vmem>>, vector<1x8x512xf32>
    %237 = vector.shape_cast %236 : vector<1x8x512xf32> to vector<8x512xf32>
    %238 = arith.truncf %168 : vector<8x128xf32> to vector<8x128xbf16>
    %cst_94 = arith.constant dense<0.000000e+00> : vector<8x512xf32>
    %239 = tpu.matmul %238, %28, %cst_94 {dimension_numbers = #tpu.dot_dimension_numbers<[1], [0], [0], [1], [0, 0, 1, 1], [], []>} : vector<8x128xbf16>, vector<128x512xbf16>, vector<8x512xf32> -> vector<8x512xf32>
    %240 = arith.addf %237, %239 : vector<8x512xf32>
    %241 = vector.extract_strided_slice %240 {offsets = [0, 0], sizes = [8, 128], strides = [1, 1]} : vector<8x512xf32> to vector<8x128xf32>
    %242 = arith.negf %241 : vector<8x128xf32>
    %243 = math.exp %242 : vector<8x128xf32>
    %cst_95 = arith.constant 1.000000e+00 : f32
    %244 = vector.broadcast %cst_95 : f32 to vector<8x128xf32>
    %245 = arith.addf %244, %243 : vector<8x128xf32>
    %246 = arith.divf %244, %245 : vector<8x128xf32>
    %247 = vector.extract_strided_slice %240 {offsets = [0, 128], sizes = [8, 128], strides = [1, 1]} : vector<8x512xf32> to vector<8x128xf32>
    %248 = arith.negf %247 : vector<8x128xf32>
    %249 = math.exp %248 : vector<8x128xf32>
    %cst_96 = arith.constant 1.000000e+00 : f32
    %250 = vector.broadcast %cst_96 : f32 to vector<8x128xf32>
    %251 = arith.addf %250, %249 : vector<8x128xf32>
    %252 = arith.divf %250, %251 : vector<8x128xf32>
    %253 = vector.extract_strided_slice %240 {offsets = [0, 256], sizes = [8, 128], strides = [1, 1]} : vector<8x512xf32> to vector<8x128xf32>
    %254 = math.tanh %253 : vector<8x128xf32>
    %255 = vector.extract_strided_slice %240 {offsets = [0, 384], sizes = [8, 128], strides = [1, 1]} : vector<8x512xf32> to vector<8x128xf32>
    %256 = arith.negf %255 : vector<8x128xf32>
    %257 = math.exp %256 : vector<8x128xf32>
    %cst_97 = arith.constant 1.000000e+00 : f32
    %258 = vector.broadcast %cst_97 : f32 to vector<8x128xf32>
    %259 = arith.addf %258, %257 : vector<8x128xf32>
    %260 = arith.divf %258, %259 : vector<8x128xf32>
    %261 = arith.mulf %252, %166 : vector<8x128xf32>
    %262 = arith.mulf %246, %254 : vector<8x128xf32>
    %263 = arith.addf %261, %262 : vector<8x128xf32>
    %264 = math.tanh %263 : vector<8x128xf32>
    %265 = arith.mulf %260, %264 : vector<8x128xf32>
    %c2_98 = arith.constant 2 : index
    %c0_99 = arith.constant 0 : index
    %c0_100 = arith.constant 0 : index
    %266 = vector.load %arg22[%c2_98, %c0_99, %c0_100] : memref<8x8x512xf32, #tpu.memory_space<vmem>>, vector<1x8x512xf32>
    %267 = vector.shape_cast %266 : vector<1x8x512xf32> to vector<8x512xf32>
    %268 = arith.truncf %198 : vector<8x128xf32> to vector<8x128xbf16>
    %cst_101 = arith.constant dense<0.000000e+00> : vector<8x512xf32>
    %269 = tpu.matmul %268, %29, %cst_101 {dimension_numbers = #tpu.dot_dimension_numbers<[1], [0], [0], [1], [0, 0, 1, 1], [], []>} : vector<8x128xbf16>, vector<128x512xbf16>, vector<8x512xf32> -> vector<8x512xf32>
    %270 = arith.addf %267, %269 : vector<8x512xf32>
    %271 = vector.extract_strided_slice %270 {offsets = [0, 0], sizes = [8, 128], strides = [1, 1]} : vector<8x512xf32> to vector<8x128xf32>
    %272 = arith.negf %271 : vector<8x128xf32>
    %273 = math.exp %272 : vector<8x128xf32>
    %cst_102 = arith.constant 1.000000e+00 : f32
    %274 = vector.broadcast %cst_102 : f32 to vector<8x128xf32>
    %275 = arith.addf %274, %273 : vector<8x128xf32>
    %276 = arith.divf %274, %275 : vector<8x128xf32>
    %277 = vector.extract_strided_slice %270 {offsets = [0, 128], sizes = [8, 128], strides = [1, 1]} : vector<8x512xf32> to vector<8x128xf32>
    %278 = arith.negf %277 : vector<8x128xf32>
    %279 = math.exp %278 : vector<8x128xf32>
    %cst_103 = arith.constant 1.000000e+00 : f32
    %280 = vector.broadcast %cst_103 : f32 to vector<8x128xf32>
    %281 = arith.addf %280, %279 : vector<8x128xf32>
    %282 = arith.divf %280, %281 : vector<8x128xf32>
    %283 = vector.extract_strided_slice %270 {offsets = [0, 256], sizes = [8, 128], strides = [1, 1]} : vector<8x512xf32> to vector<8x128xf32>
    %284 = math.tanh %283 : vector<8x128xf32>
    %285 = vector.extract_strided_slice %270 {offsets = [0, 384], sizes = [8, 128], strides = [1, 1]} : vector<8x512xf32> to vector<8x128xf32>
    %286 = arith.negf %285 : vector<8x128xf32>
    %287 = math.exp %286 : vector<8x128xf32>
    %cst_104 = arith.constant 1.000000e+00 : f32
    %288 = vector.broadcast %cst_104 : f32 to vector<8x128xf32>
    %289 = arith.addf %288, %287 : vector<8x128xf32>
    %290 = arith.divf %288, %289 : vector<8x128xf32>
    %291 = arith.mulf %282, %196 : vector<8x128xf32>
    %292 = arith.mulf %276, %284 : vector<8x128xf32>
    %293 = arith.addf %291, %292 : vector<8x128xf32>
    %294 = math.tanh %293 : vector<8x128xf32>
    %295 = arith.mulf %290, %294 : vector<8x128xf32>
    %296 = arith.truncf %265 : vector<8x128xf32> to vector<8x128xbf16>
    %cst_105 = arith.constant dense<0.000000e+00> : vector<8x512xf32>
    %297 = tpu.matmul %296, %30, %cst_105 {dimension_numbers = #tpu.dot_dimension_numbers<[1], [0], [0], [1], [0, 0, 1, 1], [], []>} : vector<8x128xbf16>, vector<128x512xbf16>, vector<8x512xf32> -> vector<8x512xf32>
    %298 = arith.addf %35, %297 : vector<8x512xf32>
    %299 = arith.truncf %295 : vector<8x128xf32> to vector<8x128xbf16>
    %cst_106 = arith.constant dense<0.000000e+00> : vector<8x512xf32>
    %300 = tpu.matmul %299, %31, %cst_106 {dimension_numbers = #tpu.dot_dimension_numbers<[1], [0], [0], [1], [0, 0, 1, 1], [], []>} : vector<8x128xbf16>, vector<128x512xbf16>, vector<8x512xf32> -> vector<8x512xf32>
    %301 = arith.addf %298, %300 : vector<8x512xf32>
    %302 = arith.truncf %232 : vector<8x128xf32> to vector<8x128xbf16>
    %cst_107 = arith.constant dense<0.000000e+00> : vector<8x512xf32>
    %303 = tpu.matmul %302, %32, %cst_107 {dimension_numbers = #tpu.dot_dimension_numbers<[1], [0], [0], [1], [0, 0, 1, 1], [], []>} : vector<8x128xbf16>, vector<128x512xbf16>, vector<8x512xf32> -> vector<8x512xf32>
    %304 = arith.addf %301, %303 : vector<8x512xf32>
    %305 = vector.extract_strided_slice %304 {offsets = [0, 0], sizes = [8, 128], strides = [1, 1]} : vector<8x512xf32> to vector<8x128xf32>
    %306 = arith.negf %305 : vector<8x128xf32>
    %307 = math.exp %306 : vector<8x128xf32>
    %cst_108 = arith.constant 1.000000e+00 : f32
    %308 = vector.broadcast %cst_108 : f32 to vector<8x128xf32>
    %309 = arith.addf %308, %307 : vector<8x128xf32>
    %310 = arith.divf %308, %309 : vector<8x128xf32>
    %311 = vector.extract_strided_slice %304 {offsets = [0, 128], sizes = [8, 128], strides = [1, 1]} : vector<8x512xf32> to vector<8x128xf32>
    %312 = arith.negf %311 : vector<8x128xf32>
    %313 = math.exp %312 : vector<8x128xf32>
    %cst_109 = arith.constant 1.000000e+00 : f32
    %314 = vector.broadcast %cst_109 : f32 to vector<8x128xf32>
    %315 = arith.addf %314, %313 : vector<8x128xf32>
    %316 = arith.divf %314, %315 : vector<8x128xf32>
    %317 = vector.extract_strided_slice %304 {offsets = [0, 256], sizes = [8, 128], strides = [1, 1]} : vector<8x512xf32> to vector<8x128xf32>
    %318 = math.tanh %317 : vector<8x128xf32>
    %319 = vector.extract_strided_slice %304 {offsets = [0, 384], sizes = [8, 128], strides = [1, 1]} : vector<8x512xf32> to vector<8x128xf32>
    %320 = arith.negf %319 : vector<8x128xf32>
    %321 = math.exp %320 : vector<8x128xf32>
    %cst_110 = arith.constant 1.000000e+00 : f32
    %322 = vector.broadcast %cst_110 : f32 to vector<8x128xf32>
    %323 = arith.addf %322, %321 : vector<8x128xf32>
    %324 = arith.divf %322, %323 : vector<8x128xf32>
    %325 = arith.mulf %316, %230 : vector<8x128xf32>
    %326 = arith.mulf %310, %318 : vector<8x128xf32>
    %327 = arith.addf %325, %326 : vector<8x128xf32>
    %328 = math.tanh %327 : vector<8x128xf32>
    %329 = arith.mulf %324, %328 : vector<8x128xf32>
    %c2_111 = arith.constant 2 : index
    %c0_112 = arith.constant 0 : index
    %c0_113 = arith.constant 0 : index
    %330 = vector.load %arg23[%c2_111, %c0_112, %c0_113] : memref<8x8x128xf32, #tpu.memory_space<vmem>>, vector<1x8x128xf32>
    %331 = vector.shape_cast %330 : vector<1x8x128xf32> to vector<8x128xf32>
    %332 = vector.shape_cast %329 : vector<8x128xf32> to vector<1x8x128xf32>
    tpu.vector_store %arg23[%c2_111, %c0_112, %c0_113], %332 {strides = array<i32>} : memref<8x8x128xf32, #tpu.memory_space<vmem>>, vector<1x8x128xf32>,
    %c3 = arith.constant 3 : index
    %c0_114 = arith.constant 0 : index
    %c0_115 = arith.constant 0 : index
    %333 = vector.load %arg21[%c3, %c0_114, %c0_115] : memref<8x8x512xf32, #tpu.memory_space<vmem>>, vector<1x8x512xf32>
    %334 = vector.shape_cast %333 : vector<1x8x512xf32> to vector<8x512xf32>
    %335 = arith.truncf %265 : vector<8x128xf32> to vector<8x128xbf16>
    %cst_116 = arith.constant dense<0.000000e+00> : vector<8x512xf32>
    %336 = tpu.matmul %335, %28, %cst_116 {dimension_numbers = #tpu.dot_dimension_numbers<[1], [0], [0], [1], [0, 0, 1, 1], [], []>} : vector<8x128xbf16>, vector<128x512xbf16>, vector<8x512xf32> -> vector<8x512xf32>
    %337 = arith.addf %334, %336 : vector<8x512xf32>
    %338 = vector.extract_strided_slice %337 {offsets = [0, 0], sizes = [8, 128], strides = [1, 1]} : vector<8x512xf32> to vector<8x128xf32>
    %339 = arith.negf %338 : vector<8x128xf32>
    %340 = math.exp %339 : vector<8x128xf32>
    %cst_117 = arith.constant 1.000000e+00 : f32
    %341 = vector.broadcast %cst_117 : f32 to vector<8x128xf32>
    %342 = arith.addf %341, %340 : vector<8x128xf32>
    %343 = arith.divf %341, %342 : vector<8x128xf32>
    %344 = vector.extract_strided_slice %337 {offsets = [0, 128], sizes = [8, 128], strides = [1, 1]} : vector<8x512xf32> to vector<8x128xf32>
    %345 = arith.negf %344 : vector<8x128xf32>
    %346 = math.exp %345 : vector<8x128xf32>
    %cst_118 = arith.constant 1.000000e+00 : f32
    %347 = vector.broadcast %cst_118 : f32 to vector<8x128xf32>
    %348 = arith.addf %347, %346 : vector<8x128xf32>
    %349 = arith.divf %347, %348 : vector<8x128xf32>
    %350 = vector.extract_strided_slice %337 {offsets = [0, 256], sizes = [8, 128], strides = [1, 1]} : vector<8x512xf32> to vector<8x128xf32>
    %351 = math.tanh %350 : vector<8x128xf32>
    %352 = vector.extract_strided_slice %337 {offsets = [0, 384], sizes = [8, 128], strides = [1, 1]} : vector<8x512xf32> to vector<8x128xf32>
    %353 = arith.negf %352 : vector<8x128xf32>
    %354 = math.exp %353 : vector<8x128xf32>
    %cst_119 = arith.constant 1.000000e+00 : f32
    %355 = vector.broadcast %cst_119 : f32 to vector<8x128xf32>
    %356 = arith.addf %355, %354 : vector<8x128xf32>
    %357 = arith.divf %355, %356 : vector<8x128xf32>
    %358 = arith.mulf %349, %263 : vector<8x128xf32>
    %359 = arith.mulf %343, %351 : vector<8x128xf32>
    %360 = arith.addf %358, %359 : vector<8x128xf32>
    %361 = math.tanh %360 : vector<8x128xf32>
    %362 = arith.mulf %357, %361 : vector<8x128xf32>
    %c3_120 = arith.constant 3 : index
    %c0_121 = arith.constant 0 : index
    %c0_122 = arith.constant 0 : index
    %363 = vector.load %arg22[%c3_120, %c0_121, %c0_122] : memref<8x8x512xf32, #tpu.memory_space<vmem>>, vector<1x8x512xf32>
    %364 = vector.shape_cast %363 : vector<1x8x512xf32> to vector<8x512xf32>
    %365 = arith.truncf %295 : vector<8x128xf32> to vector<8x128xbf16>
    %cst_123 = arith.constant dense<0.000000e+00> : vector<8x512xf32>
    %366 = tpu.matmul %365, %29, %cst_123 {dimension_numbers = #tpu.dot_dimension_numbers<[1], [0], [0], [1], [0, 0, 1, 1], [], []>} : vector<8x128xbf16>, vector<128x512xbf16>, vector<8x512xf32> -> vector<8x512xf32>
    %367 = arith.addf %364, %366 : vector<8x512xf32>
    %368 = vector.extract_strided_slice %367 {offsets = [0, 0], sizes = [8, 128], strides = [1, 1]} : vector<8x512xf32> to vector<8x128xf32>
    %369 = arith.negf %368 : vector<8x128xf32>
    %370 = math.exp %369 : vector<8x128xf32>
    %cst_124 = arith.constant 1.000000e+00 : f32
    %371 = vector.broadcast %cst_124 : f32 to vector<8x128xf32>
    %372 = arith.addf %371, %370 : vector<8x128xf32>
    %373 = arith.divf %371, %372 : vector<8x128xf32>
    %374 = vector.extract_strided_slice %367 {offsets = [0, 128], sizes = [8, 128], strides = [1, 1]} : vector<8x512xf32> to vector<8x128xf32>
    %375 = arith.negf %374 : vector<8x128xf32>
    %376 = math.exp %375 : vector<8x128xf32>
    %cst_125 = arith.constant 1.000000e+00 : f32
    %377 = vector.broadcast %cst_125 : f32 to vector<8x128xf32>
    %378 = arith.addf %377, %376 : vector<8x128xf32>
    %379 = arith.divf %377, %378 : vector<8x128xf32>
    %380 = vector.extract_strided_slice %367 {offsets = [0, 256], sizes = [8, 128], strides = [1, 1]} : vector<8x512xf32> to vector<8x128xf32>
    %381 = math.tanh %380 : vector<8x128xf32>
    %382 = vector.extract_strided_slice %367 {offsets = [0, 384], sizes = [8, 128], strides = [1, 1]} : vector<8x512xf32> to vector<8x128xf32>
    %383 = arith.negf %382 : vector<8x128xf32>
    %384 = math.exp %383 : vector<8x128xf32>
    %cst_126 = arith.constant 1.000000e+00 : f32
    %385 = vector.broadcast %cst_126 : f32 to vector<8x128xf32>
    %386 = arith.addf %385, %384 : vector<8x128xf32>
    %387 = arith.divf %385, %386 : vector<8x128xf32>
    %388 = arith.mulf %379, %293 : vector<8x128xf32>
    %389 = arith.mulf %373, %381 : vector<8x128xf32>
    %390 = arith.addf %388, %389 : vector<8x128xf32>
    %391 = math.tanh %390 : vector<8x128xf32>
    %392 = arith.mulf %387, %391 : vector<8x128xf32>
    %393 = arith.truncf %362 : vector<8x128xf32> to vector<8x128xbf16>
    %cst_127 = arith.constant dense<0.000000e+00> : vector<8x512xf32>
    %394 = tpu.matmul %393, %30, %cst_127 {dimension_numbers = #tpu.dot_dimension_numbers<[1], [0], [0], [1], [0, 0, 1, 1], [], []>} : vector<8x128xbf16>, vector<128x512xbf16>, vector<8x512xf32> -> vector<8x512xf32>
    %395 = arith.addf %35, %394 : vector<8x512xf32>
    %396 = arith.truncf %392 : vector<8x128xf32> to vector<8x128xbf16>
    %cst_128 = arith.constant dense<0.000000e+00> : vector<8x512xf32>
    %397 = tpu.matmul %396, %31, %cst_128 {dimension_numbers = #tpu.dot_dimension_numbers<[1], [0], [0], [1], [0, 0, 1, 1], [], []>} : vector<8x128xbf16>, vector<128x512xbf16>, vector<8x512xf32> -> vector<8x512xf32>
    %398 = arith.addf %395, %397 : vector<8x512xf32>
    %399 = arith.truncf %329 : vector<8x128xf32> to vector<8x128xbf16>
    %cst_129 = arith.constant dense<0.000000e+00> : vector<8x512xf32>
    %400 = tpu.matmul %399, %32, %cst_129 {dimension_numbers = #tpu.dot_dimension_numbers<[1], [0], [0], [1], [0, 0, 1, 1], [], []>} : vector<8x128xbf16>, vector<128x512xbf16>, vector<8x512xf32> -> vector<8x512xf32>
    %401 = arith.addf %398, %400 : vector<8x512xf32>
    %402 = vector.extract_strided_slice %401 {offsets = [0, 0], sizes = [8, 128], strides = [1, 1]} : vector<8x512xf32> to vector<8x128xf32>
    %403 = arith.negf %402 : vector<8x128xf32>
    %404 = math.exp %403 : vector<8x128xf32>
    %cst_130 = arith.constant 1.000000e+00 : f32
    %405 = vector.broadcast %cst_130 : f32 to vector<8x128xf32>
    %406 = arith.addf %405, %404 : vector<8x128xf32>
    %407 = arith.divf %405, %406 : vector<8x128xf32>
    %408 = vector.extract_strided_slice %401 {offsets = [0, 128], sizes = [8, 128], strides = [1, 1]} : vector<8x512xf32> to vector<8x128xf32>
    %409 = arith.negf %408 : vector<8x128xf32>
    %410 = math.exp %409 : vector<8x128xf32>
    %cst_131 = arith.constant 1.000000e+00 : f32
    %411 = vector.broadcast %cst_131 : f32 to vector<8x128xf32>
    %412 = arith.addf %411, %410 : vector<8x128xf32>
    %413 = arith.divf %411, %412 : vector<8x128xf32>
    %414 = vector.extract_strided_slice %401 {offsets = [0, 256], sizes = [8, 128], strides = [1, 1]} : vector<8x512xf32> to vector<8x128xf32>
    %415 = math.tanh %414 : vector<8x128xf32>
    %416 = vector.extract_strided_slice %401 {offsets = [0, 384], sizes = [8, 128], strides = [1, 1]} : vector<8x512xf32> to vector<8x128xf32>
    %417 = arith.negf %416 : vector<8x128xf32>
    %418 = math.exp %417 : vector<8x128xf32>
    %cst_132 = arith.constant 1.000000e+00 : f32
    %419 = vector.broadcast %cst_132 : f32 to vector<8x128xf32>
    %420 = arith.addf %419, %418 : vector<8x128xf32>
    %421 = arith.divf %419, %420 : vector<8x128xf32>
    %422 = arith.mulf %413, %327 : vector<8x128xf32>
    %423 = arith.mulf %407, %415 : vector<8x128xf32>
    %424 = arith.addf %422, %423 : vector<8x128xf32>
    %425 = math.tanh %424 : vector<8x128xf32>
    %426 = arith.mulf %421, %425 : vector<8x128xf32>
    %c3_133 = arith.constant 3 : index
    %c0_134 = arith.constant 0 : index
    %c0_135 = arith.constant 0 : index
    %427 = vector.load %arg23[%c3_133, %c0_134, %c0_135] : memref<8x8x128xf32, #tpu.memory_space<vmem>>, vector<1x8x128xf32>
    %428 = vector.shape_cast %427 : vector<1x8x128xf32> to vector<8x128xf32>
    %429 = vector.shape_cast %426 : vector<8x128xf32> to vector<1x8x128xf32>
    tpu.vector_store %arg23[%c3_133, %c0_134, %c0_135], %429 {strides = array<i32>} : memref<8x8x128xf32, #tpu.memory_space<vmem>>, vector<1x8x128xf32>,
    %c4 = arith.constant 4 : index
    %c0_136 = arith.constant 0 : index
    %c0_137 = arith.constant 0 : index
    %430 = vector.load %arg21[%c4, %c0_136, %c0_137] : memref<8x8x512xf32, #tpu.memory_space<vmem>>, vector<1x8x512xf32>
    %431 = vector.shape_cast %430 : vector<1x8x512xf32> to vector<8x512xf32>
    %432 = arith.truncf %362 : vector<8x128xf32> to vector<8x128xbf16>
    %cst_138 = arith.constant dense<0.000000e+00> : vector<8x512xf32>
    %433 = tpu.matmul %432, %28, %cst_138 {dimension_numbers = #tpu.dot_dimension_numbers<[1], [0], [0], [1], [0, 0, 1, 1], [], []>} : vector<8x128xbf16>, vector<128x512xbf16>, vector<8x512xf32> -> vector<8x512xf32>
    %434 = arith.addf %431, %433 : vector<8x512xf32>
    %435 = vector.extract_strided_slice %434 {offsets = [0, 0], sizes = [8, 128], strides = [1, 1]} : vector<8x512xf32> to vector<8x128xf32>
    %436 = arith.negf %435 : vector<8x128xf32>
    %437 = math.exp %436 : vector<8x128xf32>
    %cst_139 = arith.constant 1.000000e+00 : f32
    %438 = vector.broadcast %cst_139 : f32 to vector<8x128xf32>
    %439 = arith.addf %438, %437 : vector<8x128xf32>
    %440 = arith.divf %438, %439 : vector<8x128xf32>
    %441 = vector.extract_strided_slice %434 {offsets = [0, 128], sizes = [8, 128], strides = [1, 1]} : vector<8x512xf32> to vector<8x128xf32>
    %442 = arith.negf %441 : vector<8x128xf32>
    %443 = math.exp %442 : vector<8x128xf32>
    %cst_140 = arith.constant 1.000000e+00 : f32
    %444 = vector.broadcast %cst_140 : f32 to vector<8x128xf32>
    %445 = arith.addf %444, %443 : vector<8x128xf32>
    %446 = arith.divf %444, %445 : vector<8x128xf32>
    %447 = vector.extract_strided_slice %434 {offsets = [0, 256], sizes = [8, 128], strides = [1, 1]} : vector<8x512xf32> to vector<8x128xf32>
    %448 = math.tanh %447 : vector<8x128xf32>
    %449 = vector.extract_strided_slice %434 {offsets = [0, 384], sizes = [8, 128], strides = [1, 1]} : vector<8x512xf32> to vector<8x128xf32>
    %450 = arith.negf %449 : vector<8x128xf32>
    %451 = math.exp %450 : vector<8x128xf32>
    %cst_141 = arith.constant 1.000000e+00 : f32
    %452 = vector.broadcast %cst_141 : f32 to vector<8x128xf32>
    %453 = arith.addf %452, %451 : vector<8x128xf32>
    %454 = arith.divf %452, %453 : vector<8x128xf32>
    %455 = arith.mulf %446, %360 : vector<8x128xf32>
    %456 = arith.mulf %440, %448 : vector<8x128xf32>
    %457 = arith.addf %455, %456 : vector<8x128xf32>
    %458 = math.tanh %457 : vector<8x128xf32>
    %459 = arith.mulf %454, %458 : vector<8x128xf32>
    %c4_142 = arith.constant 4 : index
    %c0_143 = arith.constant 0 : index
    %c0_144 = arith.constant 0 : index
    %460 = vector.load %arg22[%c4_142, %c0_143, %c0_144] : memref<8x8x512xf32, #tpu.memory_space<vmem>>, vector<1x8x512xf32>
    %461 = vector.shape_cast %460 : vector<1x8x512xf32> to vector<8x512xf32>
    %462 = arith.truncf %392 : vector<8x128xf32> to vector<8x128xbf16>
    %cst_145 = arith.constant dense<0.000000e+00> : vector<8x512xf32>
    %463 = tpu.matmul %462, %29, %cst_145 {dimension_numbers = #tpu.dot_dimension_numbers<[1], [0], [0], [1], [0, 0, 1, 1], [], []>} : vector<8x128xbf16>, vector<128x512xbf16>, vector<8x512xf32> -> vector<8x512xf32>
    %464 = arith.addf %461, %463 : vector<8x512xf32>
    %465 = vector.extract_strided_slice %464 {offsets = [0, 0], sizes = [8, 128], strides = [1, 1]} : vector<8x512xf32> to vector<8x128xf32>
    %466 = arith.negf %465 : vector<8x128xf32>
    %467 = math.exp %466 : vector<8x128xf32>
    %cst_146 = arith.constant 1.000000e+00 : f32
    %468 = vector.broadcast %cst_146 : f32 to vector<8x128xf32>
    %469 = arith.addf %468, %467 : vector<8x128xf32>
    %470 = arith.divf %468, %469 : vector<8x128xf32>
    %471 = vector.extract_strided_slice %464 {offsets = [0, 128], sizes = [8, 128], strides = [1, 1]} : vector<8x512xf32> to vector<8x128xf32>
    %472 = arith.negf %471 : vector<8x128xf32>
    %473 = math.exp %472 : vector<8x128xf32>
    %cst_147 = arith.constant 1.000000e+00 : f32
    %474 = vector.broadcast %cst_147 : f32 to vector<8x128xf32>
    %475 = arith.addf %474, %473 : vector<8x128xf32>
    %476 = arith.divf %474, %475 : vector<8x128xf32>
    %477 = vector.extract_strided_slice %464 {offsets = [0, 256], sizes = [8, 128], strides = [1, 1]} : vector<8x512xf32> to vector<8x128xf32>
    %478 = math.tanh %477 : vector<8x128xf32>
    %479 = vector.extract_strided_slice %464 {offsets = [0, 384], sizes = [8, 128], strides = [1, 1]} : vector<8x512xf32> to vector<8x128xf32>
    %480 = arith.negf %479 : vector<8x128xf32>
    %481 = math.exp %480 : vector<8x128xf32>
    %cst_148 = arith.constant 1.000000e+00 : f32
    %482 = vector.broadcast %cst_148 : f32 to vector<8x128xf32>
    %483 = arith.addf %482, %481 : vector<8x128xf32>
    %484 = arith.divf %482, %483 : vector<8x128xf32>
    %485 = arith.mulf %476, %390 : vector<8x128xf32>
    %486 = arith.mulf %470, %478 : vector<8x128xf32>
    %487 = arith.addf %485, %486 : vector<8x128xf32>
    %488 = math.tanh %487 : vector<8x128xf32>
    %489 = arith.mulf %484, %488 : vector<8x128xf32>
    %490 = arith.truncf %459 : vector<8x128xf32> to vector<8x128xbf16>
    %cst_149 = arith.constant dense<0.000000e+00> : vector<8x512xf32>
    %491 = tpu.matmul %490, %30, %cst_149 {dimension_numbers = #tpu.dot_dimension_numbers<[1], [0], [0], [1], [0, 0, 1, 1], [], []>} : vector<8x128xbf16>, vector<128x512xbf16>, vector<8x512xf32> -> vector<8x512xf32>
    %492 = arith.addf %35, %491 : vector<8x512xf32>
    %493 = arith.truncf %489 : vector<8x128xf32> to vector<8x128xbf16>
    %cst_150 = arith.constant dense<0.000000e+00> : vector<8x512xf32>
    %494 = tpu.matmul %493, %31, %cst_150 {dimension_numbers = #tpu.dot_dimension_numbers<[1], [0], [0], [1], [0, 0, 1, 1], [], []>} : vector<8x128xbf16>, vector<128x512xbf16>, vector<8x512xf32> -> vector<8x512xf32>
    %495 = arith.addf %492, %494 : vector<8x512xf32>
    %496 = arith.truncf %426 : vector<8x128xf32> to vector<8x128xbf16>
    %cst_151 = arith.constant dense<0.000000e+00> : vector<8x512xf32>
    %497 = tpu.matmul %496, %32, %cst_151 {dimension_numbers = #tpu.dot_dimension_numbers<[1], [0], [0], [1], [0, 0, 1, 1], [], []>} : vector<8x128xbf16>, vector<128x512xbf16>, vector<8x512xf32> -> vector<8x512xf32>
    %498 = arith.addf %495, %497 : vector<8x512xf32>
    %499 = vector.extract_strided_slice %498 {offsets = [0, 0], sizes = [8, 128], strides = [1, 1]} : vector<8x512xf32> to vector<8x128xf32>
    %500 = arith.negf %499 : vector<8x128xf32>
    %501 = math.exp %500 : vector<8x128xf32>
    %cst_152 = arith.constant 1.000000e+00 : f32
    %502 = vector.broadcast %cst_152 : f32 to vector<8x128xf32>
    %503 = arith.addf %502, %501 : vector<8x128xf32>
    %504 = arith.divf %502, %503 : vector<8x128xf32>
    %505 = vector.extract_strided_slice %498 {offsets = [0, 128], sizes = [8, 128], strides = [1, 1]} : vector<8x512xf32> to vector<8x128xf32>
    %506 = arith.negf %505 : vector<8x128xf32>
    %507 = math.exp %506 : vector<8x128xf32>
    %cst_153 = arith.constant 1.000000e+00 : f32
    %508 = vector.broadcast %cst_153 : f32 to vector<8x128xf32>
    %509 = arith.addf %508, %507 : vector<8x128xf32>
    %510 = arith.divf %508, %509 : vector<8x128xf32>
    %511 = vector.extract_strided_slice %498 {offsets = [0, 256], sizes = [8, 128], strides = [1, 1]} : vector<8x512xf32> to vector<8x128xf32>
    %512 = math.tanh %511 : vector<8x128xf32>
    %513 = vector.extract_strided_slice %498 {offsets = [0, 384], sizes = [8, 128], strides = [1, 1]} : vector<8x512xf32> to vector<8x128xf32>
    %514 = arith.negf %513 : vector<8x128xf32>
    %515 = math.exp %514 : vector<8x128xf32>
    %cst_154 = arith.constant 1.000000e+00 : f32
    %516 = vector.broadcast %cst_154 : f32 to vector<8x128xf32>
    %517 = arith.addf %516, %515 : vector<8x128xf32>
    %518 = arith.divf %516, %517 : vector<8x128xf32>
    %519 = arith.mulf %510, %424 : vector<8x128xf32>
    %520 = arith.mulf %504, %512 : vector<8x128xf32>
    %521 = arith.addf %519, %520 : vector<8x128xf32>
    %522 = math.tanh %521 : vector<8x128xf32>
    %523 = arith.mulf %518, %522 : vector<8x128xf32>
    %c4_155 = arith.constant 4 : index
    %c0_156 = arith.constant 0 : index
    %c0_157 = arith.constant 0 : index
    %524 = vector.load %arg23[%c4_155, %c0_156, %c0_157] : memref<8x8x128xf32, #tpu.memory_space<vmem>>, vector<1x8x128xf32>
    %525 = vector.shape_cast %524 : vector<1x8x128xf32> to vector<8x128xf32>
    %526 = vector.shape_cast %523 : vector<8x128xf32> to vector<1x8x128xf32>
    tpu.vector_store %arg23[%c4_155, %c0_156, %c0_157], %526 {strides = array<i32>} : memref<8x8x128xf32, #tpu.memory_space<vmem>>, vector<1x8x128xf32>,
    %c5 = arith.constant 5 : index
    %c0_158 = arith.constant 0 : index
    %c0_159 = arith.constant 0 : index
    %527 = vector.load %arg21[%c5, %c0_158, %c0_159] : memref<8x8x512xf32, #tpu.memory_space<vmem>>, vector<1x8x512xf32>
    %528 = vector.shape_cast %527 : vector<1x8x512xf32> to vector<8x512xf32>
    %529 = arith.truncf %459 : vector<8x128xf32> to vector<8x128xbf16>
    %cst_160 = arith.constant dense<0.000000e+00> : vector<8x512xf32>
    %530 = tpu.matmul %529, %28, %cst_160 {dimension_numbers = #tpu.dot_dimension_numbers<[1], [0], [0], [1], [0, 0, 1, 1], [], []>} : vector<8x128xbf16>, vector<128x512xbf16>, vector<8x512xf32> -> vector<8x512xf32>
    %531 = arith.addf %528, %530 : vector<8x512xf32>
    %532 = vector.extract_strided_slice %531 {offsets = [0, 0], sizes = [8, 128], strides = [1, 1]} : vector<8x512xf32> to vector<8x128xf32>
    %533 = arith.negf %532 : vector<8x128xf32>
    %534 = math.exp %533 : vector<8x128xf32>
    %cst_161 = arith.constant 1.000000e+00 : f32
    %535 = vector.broadcast %cst_161 : f32 to vector<8x128xf32>
    %536 = arith.addf %535, %534 : vector<8x128xf32>
    %537 = arith.divf %535, %536 : vector<8x128xf32>
    %538 = vector.extract_strided_slice %531 {offsets = [0, 128], sizes = [8, 128], strides = [1, 1]} : vector<8x512xf32> to vector<8x128xf32>
    %539 = arith.negf %538 : vector<8x128xf32>
    %540 = math.exp %539 : vector<8x128xf32>
    %cst_162 = arith.constant 1.000000e+00 : f32
    %541 = vector.broadcast %cst_162 : f32 to vector<8x128xf32>
    %542 = arith.addf %541, %540 : vector<8x128xf32>
    %543 = arith.divf %541, %542 : vector<8x128xf32>
    %544 = vector.extract_strided_slice %531 {offsets = [0, 256], sizes = [8, 128], strides = [1, 1]} : vector<8x512xf32> to vector<8x128xf32>
    %545 = math.tanh %544 : vector<8x128xf32>
    %546 = vector.extract_strided_slice %531 {offsets = [0, 384], sizes = [8, 128], strides = [1, 1]} : vector<8x512xf32> to vector<8x128xf32>
    %547 = arith.negf %546 : vector<8x128xf32>
    %548 = math.exp %547 : vector<8x128xf32>
    %cst_163 = arith.constant 1.000000e+00 : f32
    %549 = vector.broadcast %cst_163 : f32 to vector<8x128xf32>
    %550 = arith.addf %549, %548 : vector<8x128xf32>
    %551 = arith.divf %549, %550 : vector<8x128xf32>
    %552 = arith.mulf %543, %457 : vector<8x128xf32>
    %553 = arith.mulf %537, %545 : vector<8x128xf32>
    %554 = arith.addf %552, %553 : vector<8x128xf32>
    %555 = math.tanh %554 : vector<8x128xf32>
    %556 = arith.mulf %551, %555 : vector<8x128xf32>
    %c5_164 = arith.constant 5 : index
    %c0_165 = arith.constant 0 : index
    %c0_166 = arith.constant 0 : index
    %557 = vector.load %arg22[%c5_164, %c0_165, %c0_166] : memref<8x8x512xf32, #tpu.memory_space<vmem>>, vector<1x8x512xf32>
    %558 = vector.shape_cast %557 : vector<1x8x512xf32> to vector<8x512xf32>
    %559 = arith.truncf %489 : vector<8x128xf32> to vector<8x128xbf16>
    %cst_167 = arith.constant dense<0.000000e+00> : vector<8x512xf32>
    %560 = tpu.matmul %559, %29, %cst_167 {dimension_numbers = #tpu.dot_dimension_numbers<[1], [0], [0], [1], [0, 0, 1, 1], [], []>} : vector<8x128xbf16>, vector<128x512xbf16>, vector<8x512xf32> -> vector<8x512xf32>
    %561 = arith.addf %558, %560 : vector<8x512xf32>
    %562 = vector.extract_strided_slice %561 {offsets = [0, 0], sizes = [8, 128], strides = [1, 1]} : vector<8x512xf32> to vector<8x128xf32>
    %563 = arith.negf %562 : vector<8x128xf32>
    %564 = math.exp %563 : vector<8x128xf32>
    %cst_168 = arith.constant 1.000000e+00 : f32
    %565 = vector.broadcast %cst_168 : f32 to vector<8x128xf32>
    %566 = arith.addf %565, %564 : vector<8x128xf32>
    %567 = arith.divf %565, %566 : vector<8x128xf32>
    %568 = vector.extract_strided_slice %561 {offsets = [0, 128], sizes = [8, 128], strides = [1, 1]} : vector<8x512xf32> to vector<8x128xf32>
    %569 = arith.negf %568 : vector<8x128xf32>
    %570 = math.exp %569 : vector<8x128xf32>
    %cst_169 = arith.constant 1.000000e+00 : f32
    %571 = vector.broadcast %cst_169 : f32 to vector<8x128xf32>
    %572 = arith.addf %571, %570 : vector<8x128xf32>
    %573 = arith.divf %571, %572 : vector<8x128xf32>
    %574 = vector.extract_strided_slice %561 {offsets = [0, 256], sizes = [8, 128], strides = [1, 1]} : vector<8x512xf32> to vector<8x128xf32>
    %575 = math.tanh %574 : vector<8x128xf32>
    %576 = vector.extract_strided_slice %561 {offsets = [0, 384], sizes = [8, 128], strides = [1, 1]} : vector<8x512xf32> to vector<8x128xf32>
    %577 = arith.negf %576 : vector<8x128xf32>
    %578 = math.exp %577 : vector<8x128xf32>
    %cst_170 = arith.constant 1.000000e+00 : f32
    %579 = vector.broadcast %cst_170 : f32 to vector<8x128xf32>
    %580 = arith.addf %579, %578 : vector<8x128xf32>
    %581 = arith.divf %579, %580 : vector<8x128xf32>
    %582 = arith.mulf %573, %487 : vector<8x128xf32>
    %583 = arith.mulf %567, %575 : vector<8x128xf32>
    %584 = arith.addf %582, %583 : vector<8x128xf32>
    %585 = math.tanh %584 : vector<8x128xf32>
    %586 = arith.mulf %581, %585 : vector<8x128xf32>
    %587 = arith.truncf %556 : vector<8x128xf32> to vector<8x128xbf16>
    %cst_171 = arith.constant dense<0.000000e+00> : vector<8x512xf32>
    %588 = tpu.matmul %587, %30, %cst_171 {dimension_numbers = #tpu.dot_dimension_numbers<[1], [0], [0], [1], [0, 0, 1, 1], [], []>} : vector<8x128xbf16>, vector<128x512xbf16>, vector<8x512xf32> -> vector<8x512xf32>
    %589 = arith.addf %35, %588 : vector<8x512xf32>
    %590 = arith.truncf %586 : vector<8x128xf32> to vector<8x128xbf16>
    %cst_172 = arith.constant dense<0.000000e+00> : vector<8x512xf32>
    %591 = tpu.matmul %590, %31, %cst_172 {dimension_numbers = #tpu.dot_dimension_numbers<[1], [0], [0], [1], [0, 0, 1, 1], [], []>} : vector<8x128xbf16>, vector<128x512xbf16>, vector<8x512xf32> -> vector<8x512xf32>
    %592 = arith.addf %589, %591 : vector<8x512xf32>
    %593 = arith.truncf %523 : vector<8x128xf32> to vector<8x128xbf16>
    %cst_173 = arith.constant dense<0.000000e+00> : vector<8x512xf32>
    %594 = tpu.matmul %593, %32, %cst_173 {dimension_numbers = #tpu.dot_dimension_numbers<[1], [0], [0], [1], [0, 0, 1, 1], [], []>} : vector<8x128xbf16>, vector<128x512xbf16>, vector<8x512xf32> -> vector<8x512xf32>
    %595 = arith.addf %592, %594 : vector<8x512xf32>
    %596 = vector.extract_strided_slice %595 {offsets = [0, 0], sizes = [8, 128], strides = [1, 1]} : vector<8x512xf32> to vector<8x128xf32>
    %597 = arith.negf %596 : vector<8x128xf32>
    %598 = math.exp %597 : vector<8x128xf32>
    %cst_174 = arith.constant 1.000000e+00 : f32
    %599 = vector.broadcast %cst_174 : f32 to vector<8x128xf32>
    %600 = arith.addf %599, %598 : vector<8x128xf32>
    %601 = arith.divf %599, %600 : vector<8x128xf32>
    %602 = vector.extract_strided_slice %595 {offsets = [0, 128], sizes = [8, 128], strides = [1, 1]} : vector<8x512xf32> to vector<8x128xf32>
    %603 = arith.negf %602 : vector<8x128xf32>
    %604 = math.exp %603 : vector<8x128xf32>
    %cst_175 = arith.constant 1.000000e+00 : f32
    %605 = vector.broadcast %cst_175 : f32 to vector<8x128xf32>
    %606 = arith.addf %605, %604 : vector<8x128xf32>
    %607 = arith.divf %605, %606 : vector<8x128xf32>
    %608 = vector.extract_strided_slice %595 {offsets = [0, 256], sizes = [8, 128], strides = [1, 1]} : vector<8x512xf32> to vector<8x128xf32>
    %609 = math.tanh %608 : vector<8x128xf32>
    %610 = vector.extract_strided_slice %595 {offsets = [0, 384], sizes = [8, 128], strides = [1, 1]} : vector<8x512xf32> to vector<8x128xf32>
    %611 = arith.negf %610 : vector<8x128xf32>
    %612 = math.exp %611 : vector<8x128xf32>
    %cst_176 = arith.constant 1.000000e+00 : f32
    %613 = vector.broadcast %cst_176 : f32 to vector<8x128xf32>
    %614 = arith.addf %613, %612 : vector<8x128xf32>
    %615 = arith.divf %613, %614 : vector<8x128xf32>
    %616 = arith.mulf %607, %521 : vector<8x128xf32>
    %617 = arith.mulf %601, %609 : vector<8x128xf32>
    %618 = arith.addf %616, %617 : vector<8x128xf32>
    %619 = math.tanh %618 : vector<8x128xf32>
    %620 = arith.mulf %615, %619 : vector<8x128xf32>
    %c5_177 = arith.constant 5 : index
    %c0_178 = arith.constant 0 : index
    %c0_179 = arith.constant 0 : index
    %621 = vector.load %arg23[%c5_177, %c0_178, %c0_179] : memref<8x8x128xf32, #tpu.memory_space<vmem>>, vector<1x8x128xf32>
    %622 = vector.shape_cast %621 : vector<1x8x128xf32> to vector<8x128xf32>
    %623 = vector.shape_cast %620 : vector<8x128xf32> to vector<1x8x128xf32>
    tpu.vector_store %arg23[%c5_177, %c0_178, %c0_179], %623 {strides = array<i32>} : memref<8x8x128xf32, #tpu.memory_space<vmem>>, vector<1x8x128xf32>,
    %c6 = arith.constant 6 : index
    %c0_180 = arith.constant 0 : index
    %c0_181 = arith.constant 0 : index
    %624 = vector.load %arg21[%c6, %c0_180, %c0_181] : memref<8x8x512xf32, #tpu.memory_space<vmem>>, vector<1x8x512xf32>
    %625 = vector.shape_cast %624 : vector<1x8x512xf32> to vector<8x512xf32>
    %626 = arith.truncf %556 : vector<8x128xf32> to vector<8x128xbf16>
    %cst_182 = arith.constant dense<0.000000e+00> : vector<8x512xf32>
    %627 = tpu.matmul %626, %28, %cst_182 {dimension_numbers = #tpu.dot_dimension_numbers<[1], [0], [0], [1], [0, 0, 1, 1], [], []>} : vector<8x128xbf16>, vector<128x512xbf16>, vector<8x512xf32> -> vector<8x512xf32>
    %628 = arith.addf %625, %627 : vector<8x512xf32>
    %629 = vector.extract_strided_slice %628 {offsets = [0, 0], sizes = [8, 128], strides = [1, 1]} : vector<8x512xf32> to vector<8x128xf32>
    %630 = arith.negf %629 : vector<8x128xf32>
    %631 = math.exp %630 : vector<8x128xf32>
    %cst_183 = arith.constant 1.000000e+00 : f32
    %632 = vector.broadcast %cst_183 : f32 to vector<8x128xf32>
    %633 = arith.addf %632, %631 : vector<8x128xf32>
    %634 = arith.divf %632, %633 : vector<8x128xf32>
    %635 = vector.extract_strided_slice %628 {offsets = [0, 128], sizes = [8, 128], strides = [1, 1]} : vector<8x512xf32> to vector<8x128xf32>
    %636 = arith.negf %635 : vector<8x128xf32>
    %637 = math.exp %636 : vector<8x128xf32>
    %cst_184 = arith.constant 1.000000e+00 : f32
    %638 = vector.broadcast %cst_184 : f32 to vector<8x128xf32>
    %639 = arith.addf %638, %637 : vector<8x128xf32>
    %640 = arith.divf %638, %639 : vector<8x128xf32>
    %641 = vector.extract_strided_slice %628 {offsets = [0, 256], sizes = [8, 128], strides = [1, 1]} : vector<8x512xf32> to vector<8x128xf32>
    %642 = math.tanh %641 : vector<8x128xf32>
    %643 = vector.extract_strided_slice %628 {offsets = [0, 384], sizes = [8, 128], strides = [1, 1]} : vector<8x512xf32> to vector<8x128xf32>
    %644 = arith.negf %643 : vector<8x128xf32>
    %645 = math.exp %644 : vector<8x128xf32>
    %cst_185 = arith.constant 1.000000e+00 : f32
    %646 = vector.broadcast %cst_185 : f32 to vector<8x128xf32>
    %647 = arith.addf %646, %645 : vector<8x128xf32>
    %648 = arith.divf %646, %647 : vector<8x128xf32>
    %649 = arith.mulf %640, %554 : vector<8x128xf32>
    %650 = arith.mulf %634, %642 : vector<8x128xf32>
    %651 = arith.addf %649, %650 : vector<8x128xf32>
    %652 = math.tanh %651 : vector<8x128xf32>
    %653 = arith.mulf %648, %652 : vector<8x128xf32>
    %c6_186 = arith.constant 6 : index
    %c0_187 = arith.constant 0 : index
    %c0_188 = arith.constant 0 : index
    %654 = vector.load %arg22[%c6_186, %c0_187, %c0_188] : memref<8x8x512xf32, #tpu.memory_space<vmem>>, vector<1x8x512xf32>
    %655 = vector.shape_cast %654 : vector<1x8x512xf32> to vector<8x512xf32>
    %656 = arith.truncf %586 : vector<8x128xf32> to vector<8x128xbf16>
    %cst_189 = arith.constant dense<0.000000e+00> : vector<8x512xf32>
    %657 = tpu.matmul %656, %29, %cst_189 {dimension_numbers = #tpu.dot_dimension_numbers<[1], [0], [0], [1], [0, 0, 1, 1], [], []>} : vector<8x128xbf16>, vector<128x512xbf16>, vector<8x512xf32> -> vector<8x512xf32>
    %658 = arith.addf %655, %657 : vector<8x512xf32>
    %659 = vector.extract_strided_slice %658 {offsets = [0, 0], sizes = [8, 128], strides = [1, 1]} : vector<8x512xf32> to vector<8x128xf32>
    %660 = arith.negf %659 : vector<8x128xf32>
    %661 = math.exp %660 : vector<8x128xf32>
    %cst_190 = arith.constant 1.000000e+00 : f32
    %662 = vector.broadcast %cst_190 : f32 to vector<8x128xf32>
    %663 = arith.addf %662, %661 : vector<8x128xf32>
    %664 = arith.divf %662, %663 : vector<8x128xf32>
    %665 = vector.extract_strided_slice %658 {offsets = [0, 128], sizes = [8, 128], strides = [1, 1]} : vector<8x512xf32> to vector<8x128xf32>
    %666 = arith.negf %665 : vector<8x128xf32>
    %667 = math.exp %666 : vector<8x128xf32>
    %cst_191 = arith.constant 1.000000e+00 : f32
    %668 = vector.broadcast %cst_191 : f32 to vector<8x128xf32>
    %669 = arith.addf %668, %667 : vector<8x128xf32>
    %670 = arith.divf %668, %669 : vector<8x128xf32>
    %671 = vector.extract_strided_slice %658 {offsets = [0, 256], sizes = [8, 128], strides = [1, 1]} : vector<8x512xf32> to vector<8x128xf32>
    %672 = math.tanh %671 : vector<8x128xf32>
    %673 = vector.extract_strided_slice %658 {offsets = [0, 384], sizes = [8, 128], strides = [1, 1]} : vector<8x512xf32> to vector<8x128xf32>
    %674 = arith.negf %673 : vector<8x128xf32>
    %675 = math.exp %674 : vector<8x128xf32>
    %cst_192 = arith.constant 1.000000e+00 : f32
    %676 = vector.broadcast %cst_192 : f32 to vector<8x128xf32>
    %677 = arith.addf %676, %675 : vector<8x128xf32>
    %678 = arith.divf %676, %677 : vector<8x128xf32>
    %679 = arith.mulf %670, %584 : vector<8x128xf32>
    %680 = arith.mulf %664, %672 : vector<8x128xf32>
    %681 = arith.addf %679, %680 : vector<8x128xf32>
    %682 = math.tanh %681 : vector<8x128xf32>
    %683 = arith.mulf %678, %682 : vector<8x128xf32>
    %684 = arith.truncf %653 : vector<8x128xf32> to vector<8x128xbf16>
    %cst_193 = arith.constant dense<0.000000e+00> : vector<8x512xf32>
    %685 = tpu.matmul %684, %30, %cst_193 {dimension_numbers = #tpu.dot_dimension_numbers<[1], [0], [0], [1], [0, 0, 1, 1], [], []>} : vector<8x128xbf16>, vector<128x512xbf16>, vector<8x512xf32> -> vector<8x512xf32>
    %686 = arith.addf %35, %685 : vector<8x512xf32>
    %687 = arith.truncf %683 : vector<8x128xf32> to vector<8x128xbf16>
    %cst_194 = arith.constant dense<0.000000e+00> : vector<8x512xf32>
    %688 = tpu.matmul %687, %31, %cst_194 {dimension_numbers = #tpu.dot_dimension_numbers<[1], [0], [0], [1], [0, 0, 1, 1], [], []>} : vector<8x128xbf16>, vector<128x512xbf16>, vector<8x512xf32> -> vector<8x512xf32>
    %689 = arith.addf %686, %688 : vector<8x512xf32>
    %690 = arith.truncf %620 : vector<8x128xf32> to vector<8x128xbf16>
    %cst_195 = arith.constant dense<0.000000e+00> : vector<8x512xf32>
    %691 = tpu.matmul %690, %32, %cst_195 {dimension_numbers = #tpu.dot_dimension_numbers<[1], [0], [0], [1], [0, 0, 1, 1], [], []>} : vector<8x128xbf16>, vector<128x512xbf16>, vector<8x512xf32> -> vector<8x512xf32>
    %692 = arith.addf %689, %691 : vector<8x512xf32>
    %693 = vector.extract_strided_slice %692 {offsets = [0, 0], sizes = [8, 128], strides = [1, 1]} : vector<8x512xf32> to vector<8x128xf32>
    %694 = arith.negf %693 : vector<8x128xf32>
    %695 = math.exp %694 : vector<8x128xf32>
    %cst_196 = arith.constant 1.000000e+00 : f32
    %696 = vector.broadcast %cst_196 : f32 to vector<8x128xf32>
    %697 = arith.addf %696, %695 : vector<8x128xf32>
    %698 = arith.divf %696, %697 : vector<8x128xf32>
    %699 = vector.extract_strided_slice %692 {offsets = [0, 128], sizes = [8, 128], strides = [1, 1]} : vector<8x512xf32> to vector<8x128xf32>
    %700 = arith.negf %699 : vector<8x128xf32>
    %701 = math.exp %700 : vector<8x128xf32>
    %cst_197 = arith.constant 1.000000e+00 : f32
    %702 = vector.broadcast %cst_197 : f32 to vector<8x128xf32>
    %703 = arith.addf %702, %701 : vector<8x128xf32>
    %704 = arith.divf %702, %703 : vector<8x128xf32>
    %705 = vector.extract_strided_slice %692 {offsets = [0, 256], sizes = [8, 128], strides = [1, 1]} : vector<8x512xf32> to vector<8x128xf32>
    %706 = math.tanh %705 : vector<8x128xf32>
    %707 = vector.extract_strided_slice %692 {offsets = [0, 384], sizes = [8, 128], strides = [1, 1]} : vector<8x512xf32> to vector<8x128xf32>
    %708 = arith.negf %707 : vector<8x128xf32>
    %709 = math.exp %708 : vector<8x128xf32>
    %cst_198 = arith.constant 1.000000e+00 : f32
    %710 = vector.broadcast %cst_198 : f32 to vector<8x128xf32>
    %711 = arith.addf %710, %709 : vector<8x128xf32>
    %712 = arith.divf %710, %711 : vector<8x128xf32>
    %713 = arith.mulf %704, %618 : vector<8x128xf32>
    %714 = arith.mulf %698, %706 : vector<8x128xf32>
    %715 = arith.addf %713, %714 : vector<8x128xf32>
    %716 = math.tanh %715 : vector<8x128xf32>
    %717 = arith.mulf %712, %716 : vector<8x128xf32>
    %c6_199 = arith.constant 6 : index
    %c0_200 = arith.constant 0 : index
    %c0_201 = arith.constant 0 : index
    %718 = vector.load %arg23[%c6_199, %c0_200, %c0_201] : memref<8x8x128xf32, #tpu.memory_space<vmem>>, vector<1x8x128xf32>
    %719 = vector.shape_cast %718 : vector<1x8x128xf32> to vector<8x128xf32>
    %720 = vector.shape_cast %717 : vector<8x128xf32> to vector<1x8x128xf32>
    tpu.vector_store %arg23[%c6_199, %c0_200, %c0_201], %720 {strides = array<i32>} : memref<8x8x128xf32, #tpu.memory_space<vmem>>, vector<1x8x128xf32>,
    %c7 = arith.constant 7 : index
    %c0_202 = arith.constant 0 : index
    %c0_203 = arith.constant 0 : index
    %721 = vector.load %arg21[%c7, %c0_202, %c0_203] : memref<8x8x512xf32, #tpu.memory_space<vmem>>, vector<1x8x512xf32>
    %722 = vector.shape_cast %721 : vector<1x8x512xf32> to vector<8x512xf32>
    %723 = arith.truncf %653 : vector<8x128xf32> to vector<8x128xbf16>
    %cst_204 = arith.constant dense<0.000000e+00> : vector<8x512xf32>
    %724 = tpu.matmul %723, %28, %cst_204 {dimension_numbers = #tpu.dot_dimension_numbers<[1], [0], [0], [1], [0, 0, 1, 1], [], []>} : vector<8x128xbf16>, vector<128x512xbf16>, vector<8x512xf32> -> vector<8x512xf32>
    %725 = arith.addf %722, %724 : vector<8x512xf32>
    %726 = vector.extract_strided_slice %725 {offsets = [0, 0], sizes = [8, 128], strides = [1, 1]} : vector<8x512xf32> to vector<8x128xf32>
    %727 = arith.negf %726 : vector<8x128xf32>
    %728 = math.exp %727 : vector<8x128xf32>
    %cst_205 = arith.constant 1.000000e+00 : f32
    %729 = vector.broadcast %cst_205 : f32 to vector<8x128xf32>
    %730 = arith.addf %729, %728 : vector<8x128xf32>
    %731 = arith.divf %729, %730 : vector<8x128xf32>
    %732 = vector.extract_strided_slice %725 {offsets = [0, 128], sizes = [8, 128], strides = [1, 1]} : vector<8x512xf32> to vector<8x128xf32>
    %733 = arith.negf %732 : vector<8x128xf32>
    %734 = math.exp %733 : vector<8x128xf32>
    %cst_206 = arith.constant 1.000000e+00 : f32
    %735 = vector.broadcast %cst_206 : f32 to vector<8x128xf32>
    %736 = arith.addf %735, %734 : vector<8x128xf32>
    %737 = arith.divf %735, %736 : vector<8x128xf32>
    %738 = vector.extract_strided_slice %725 {offsets = [0, 256], sizes = [8, 128], strides = [1, 1]} : vector<8x512xf32> to vector<8x128xf32>
    %739 = math.tanh %738 : vector<8x128xf32>
    %740 = vector.extract_strided_slice %725 {offsets = [0, 384], sizes = [8, 128], strides = [1, 1]} : vector<8x512xf32> to vector<8x128xf32>
    %741 = arith.negf %740 : vector<8x128xf32>
    %742 = math.exp %741 : vector<8x128xf32>
    %cst_207 = arith.constant 1.000000e+00 : f32
    %743 = vector.broadcast %cst_207 : f32 to vector<8x128xf32>
    %744 = arith.addf %743, %742 : vector<8x128xf32>
    %745 = arith.divf %743, %744 : vector<8x128xf32>
    %746 = arith.mulf %737, %651 : vector<8x128xf32>
    %747 = arith.mulf %731, %739 : vector<8x128xf32>
    %748 = arith.addf %746, %747 : vector<8x128xf32>
    %749 = math.tanh %748 : vector<8x128xf32>
    %750 = arith.mulf %745, %749 : vector<8x128xf32>
    %c7_208 = arith.constant 7 : index
    %c0_209 = arith.constant 0 : index
    %c0_210 = arith.constant 0 : index
    %751 = vector.load %arg22[%c7_208, %c0_209, %c0_210] : memref<8x8x512xf32, #tpu.memory_space<vmem>>, vector<1x8x512xf32>
    %752 = vector.shape_cast %751 : vector<1x8x512xf32> to vector<8x512xf32>
    %753 = arith.truncf %683 : vector<8x128xf32> to vector<8x128xbf16>
    %cst_211 = arith.constant dense<0.000000e+00> : vector<8x512xf32>
    %754 = tpu.matmul %753, %29, %cst_211 {dimension_numbers = #tpu.dot_dimension_numbers<[1], [0], [0], [1], [0, 0, 1, 1], [], []>} : vector<8x128xbf16>, vector<128x512xbf16>, vector<8x512xf32> -> vector<8x512xf32>
    %755 = arith.addf %752, %754 : vector<8x512xf32>
    %756 = vector.extract_strided_slice %755 {offsets = [0, 0], sizes = [8, 128], strides = [1, 1]} : vector<8x512xf32> to vector<8x128xf32>
    %757 = arith.negf %756 : vector<8x128xf32>
    %758 = math.exp %757 : vector<8x128xf32>
    %cst_212 = arith.constant 1.000000e+00 : f32
    %759 = vector.broadcast %cst_212 : f32 to vector<8x128xf32>
    %760 = arith.addf %759, %758 : vector<8x128xf32>
    %761 = arith.divf %759, %760 : vector<8x128xf32>
    %762 = vector.extract_strided_slice %755 {offsets = [0, 128], sizes = [8, 128], strides = [1, 1]} : vector<8x512xf32> to vector<8x128xf32>
    %763 = arith.negf %762 : vector<8x128xf32>
    %764 = math.exp %763 : vector<8x128xf32>
    %cst_213 = arith.constant 1.000000e+00 : f32
    %765 = vector.broadcast %cst_213 : f32 to vector<8x128xf32>
    %766 = arith.addf %765, %764 : vector<8x128xf32>
    %767 = arith.divf %765, %766 : vector<8x128xf32>
    %768 = vector.extract_strided_slice %755 {offsets = [0, 256], sizes = [8, 128], strides = [1, 1]} : vector<8x512xf32> to vector<8x128xf32>
    %769 = math.tanh %768 : vector<8x128xf32>
    %770 = vector.extract_strided_slice %755 {offsets = [0, 384], sizes = [8, 128], strides = [1, 1]} : vector<8x512xf32> to vector<8x128xf32>
    %771 = arith.negf %770 : vector<8x128xf32>
    %772 = math.exp %771 : vector<8x128xf32>
    %cst_214 = arith.constant 1.000000e+00 : f32
    %773 = vector.broadcast %cst_214 : f32 to vector<8x128xf32>
    %774 = arith.addf %773, %772 : vector<8x128xf32>
    %775 = arith.divf %773, %774 : vector<8x128xf32>
    %776 = arith.mulf %767, %681 : vector<8x128xf32>
    %777 = arith.mulf %761, %769 : vector<8x128xf32>
    %778 = arith.addf %776, %777 : vector<8x128xf32>
    %779 = math.tanh %778 : vector<8x128xf32>
    %780 = arith.mulf %775, %779 : vector<8x128xf32>
    %781 = arith.truncf %750 : vector<8x128xf32> to vector<8x128xbf16>
    %cst_215 = arith.constant dense<0.000000e+00> : vector<8x512xf32>
    %782 = tpu.matmul %781, %30, %cst_215 {dimension_numbers = #tpu.dot_dimension_numbers<[1], [0], [0], [1], [0, 0, 1, 1], [], []>} : vector<8x128xbf16>, vector<128x512xbf16>, vector<8x512xf32> -> vector<8x512xf32>
    %783 = arith.addf %35, %782 : vector<8x512xf32>
    %784 = arith.truncf %780 : vector<8x128xf32> to vector<8x128xbf16>
    %cst_216 = arith.constant dense<0.000000e+00> : vector<8x512xf32>
    %785 = tpu.matmul %784, %31, %cst_216 {dimension_numbers = #tpu.dot_dimension_numbers<[1], [0], [0], [1], [0, 0, 1, 1], [], []>} : vector<8x128xbf16>, vector<128x512xbf16>, vector<8x512xf32> -> vector<8x512xf32>
    %786 = arith.addf %783, %785 : vector<8x512xf32>
    %787 = arith.truncf %717 : vector<8x128xf32> to vector<8x128xbf16>
    %cst_217 = arith.constant dense<0.000000e+00> : vector<8x512xf32>
    %788 = tpu.matmul %787, %32, %cst_217 {dimension_numbers = #tpu.dot_dimension_numbers<[1], [0], [0], [1], [0, 0, 1, 1], [], []>} : vector<8x128xbf16>, vector<128x512xbf16>, vector<8x512xf32> -> vector<8x512xf32>
    %789 = arith.addf %786, %788 : vector<8x512xf32>
    %790 = vector.extract_strided_slice %789 {offsets = [0, 0], sizes = [8, 128], strides = [1, 1]} : vector<8x512xf32> to vector<8x128xf32>
    %791 = arith.negf %790 : vector<8x128xf32>
    %792 = math.exp %791 : vector<8x128xf32>
    %cst_218 = arith.constant 1.000000e+00 : f32
    %793 = vector.broadcast %cst_218 : f32 to vector<8x128xf32>
    %794 = arith.addf %793, %792 : vector<8x128xf32>
    %795 = arith.divf %793, %794 : vector<8x128xf32>
    %796 = vector.extract_strided_slice %789 {offsets = [0, 128], sizes = [8, 128], strides = [1, 1]} : vector<8x512xf32> to vector<8x128xf32>
    %797 = arith.negf %796 : vector<8x128xf32>
    %798 = math.exp %797 : vector<8x128xf32>
    %cst_219 = arith.constant 1.000000e+00 : f32
    %799 = vector.broadcast %cst_219 : f32 to vector<8x128xf32>
    %800 = arith.addf %799, %798 : vector<8x128xf32>
    %801 = arith.divf %799, %800 : vector<8x128xf32>
    %802 = vector.extract_strided_slice %789 {offsets = [0, 256], sizes = [8, 128], strides = [1, 1]} : vector<8x512xf32> to vector<8x128xf32>
    %803 = math.tanh %802 : vector<8x128xf32>
    %804 = vector.extract_strided_slice %789 {offsets = [0, 384], sizes = [8, 128], strides = [1, 1]} : vector<8x512xf32> to vector<8x128xf32>
    %805 = arith.negf %804 : vector<8x128xf32>
    %806 = math.exp %805 : vector<8x128xf32>
    %cst_220 = arith.constant 1.000000e+00 : f32
    %807 = vector.broadcast %cst_220 : f32 to vector<8x128xf32>
    %808 = arith.addf %807, %806 : vector<8x128xf32>
    %809 = arith.divf %807, %808 : vector<8x128xf32>
    %810 = arith.mulf %801, %715 : vector<8x128xf32>
    %811 = arith.mulf %795, %803 : vector<8x128xf32>
    %812 = arith.addf %810, %811 : vector<8x128xf32>
    %813 = math.tanh %812 : vector<8x128xf32>
    %814 = arith.mulf %809, %813 : vector<8x128xf32>
    %c7_221 = arith.constant 7 : index
    %c0_222 = arith.constant 0 : index
    %c0_223 = arith.constant 0 : index
    %815 = vector.load %arg23[%c7_221, %c0_222, %c0_223] : memref<8x8x128xf32, #tpu.memory_space<vmem>>, vector<1x8x128xf32>
    %816 = vector.shape_cast %815 : vector<1x8x128xf32> to vector<8x128xf32>
    %817 = vector.shape_cast %814 : vector<8x128xf32> to vector<1x8x128xf32>
    tpu.vector_store %arg23[%c7_221, %c0_222, %c0_223], %817 {strides = array<i32>} : memref<8x8x128xf32, #tpu.memory_space<vmem>>, vector<1x8x128xf32>,
    %c0_224 = arith.constant 0 : index
    %c0_225 = arith.constant 0 : index
    %c0_226 = arith.constant 0 : index
    %818 = vector.load %arg23[%c0_224, %c0_225, %c0_226] : memref<8x8x128xf32, #tpu.memory_space<vmem>>, vector<8x8x128xf32>
    %819 = vector.shape_cast %818 : vector<8x8x128xf32> to vector<64x128xf32>
    %c0_227 = arith.constant 0 : index
    %c0_228 = arith.constant 0 : index
    %820 = vector.load %arg16[%c0_227, %c0_228] : memref<128x16xf32, #tpu.memory_space<vmem>>, vector<128x16xf32>
    %cst_229 = arith.constant dense<0.000000e+00> : vector<64x16xf32>
    %821 = tpu.matmul %819, %820, %cst_229 {dimension_numbers = #tpu.dot_dimension_numbers<[1], [0], [0], [1], [0, 0, 1, 1], [], []>} : vector<64x128xf32>, vector<128x16xf32>, vector<64x16xf32> -> vector<64x16xf32>
    %c0_230 = arith.constant 0 : index
    %c0_231 = arith.constant 0 : index
    %822 = vector.load %arg17[%c0_230, %c0_231] : memref<1x16xf32, #tpu.memory_space<vmem>>, vector<1x16xf32>
    %823 = vector.broadcast %822 : vector<1x16xf32> to vector<64x16xf32>
    %824 = arith.addf %821, %823 : vector<64x16xf32>
    %cst_232 = arith.constant 0.000000e+00 : f32
    %825 = vector.broadcast %cst_232 : f32 to vector<64x16xf32>
    %826 = arith.maximumf %824, %825 : vector<64x16xf32>
    %c0_233 = arith.constant 0 : index
    %c0_234 = arith.constant 0 : index
    %827 = vector.load %arg18[%c0_233, %c0_234] : memref<16x2xf32, #tpu.memory_space<vmem>>, vector<16x2xf32>
    %cst_235 = arith.constant dense<0.000000e+00> : vector<64x2xf32>
    %828 = tpu.matmul %826, %827, %cst_235 {dimension_numbers = #tpu.dot_dimension_numbers<[1], [0], [0], [1], [0, 0, 1, 1], [], []>} : vector<64x16xf32>, vector<16x2xf32>, vector<64x2xf32> -> vector<64x2xf32>
    %c0_236 = arith.constant 0 : index
    %c0_237 = arith.constant 0 : index
    %829 = vector.load %arg19[%c0_236, %c0_237] : memref<1x2xf32, #tpu.memory_space<vmem>>, vector<1x2xf32>
    %830 = vector.broadcast %829 : vector<1x2xf32> to vector<64x2xf32>
    %831 = arith.addf %828, %830 : vector<64x2xf32>
    %c0_238 = arith.constant 0 : index
    %c0_239 = arith.constant 0 : index
    %832 = vector.load %arg20[%c0_238, %c0_239] : memref<64x2xf32, #tpu.memory_space<vmem>>, vector<64x2xf32>
    tpu.vector_store %arg20[%c0_238, %c0_239], %831 {strides = array<i32>} : memref<64x2xf32, #tpu.memory_space<vmem>>, vector<64x2xf32>,
    return
  }
}

</mosaic_0001>

<bundles_post_ra>
// kernel: tpu_custom_call.1
= control target key start
LH: loop header
LB: loop body
LE: loop exit
PB: predicated region body
PF: predicated region fallthrough
CT: control target
= control target key end

     0   :  { %s12430_s0 = inlined_call_operand.vmem [shape: f32[64,8], index: 0, kind: input, shape index: {}]   ;;  %s12431_s1 = inlined_call_operand.vmem [shape: f32[64,36], index: 1, kind: input, shape index: {}]   ;;  %s12432_s2 = inlined_call_operand.hbm [shape: f32[8,512], index: 2, kind: input, shape index: {}]   ;;  %s12433_s3 = inlined_call_operand.hbm [shape: f32[1,512], index: 3, kind: input, shape index: {}]   ;;  %s12434_s4 = inlined_call_operand.vmem [shape: f32[72,512], index: 4, kind: input, shape index: {}]   ;;  %s12435_s5 = inlined_call_operand.hbm [shape: f32[1,512], index: 5, kind: input, shape index: {}]   ;;  %s12436_s6 = inlined_call_operand.hbm [shape: bf16[128,512], index: 6, kind: input, shape index: {}]   ;;  %s12437_s7 = inlined_call_operand.hbm [shape: bf16[128,512], index: 7, kind: input, shape index: {}]   ;;  %s12438_s8 = inlined_call_operand.hbm [shape: bf16[128,512], index: 8, kind: input, shape index: {}]   ;;  %s12439_s9 = inlined_call_operand.hbm [shape: bf16[128,512], index: 9, kind: input, shape index: {}]   ;;  %s12440_s10 = inlined_call_operand.hbm [shape: bf16[128,512], index: 10, kind: input, shape index: {}]   ;;  %s12441_s11 = inlined_call_operand.vmem [shape: f32[1,512], index: 11, kind: input, shape index: {}]   ;;  %s12442_s12 = inlined_call_operand.hbm [shape: f32[36,64], index: 12, kind: input, shape index: {}]   ;;  %s12443_s13 = inlined_call_operand.vmem [shape: f32[1,64], index: 13, kind: input, shape index: {}]   ;;  %s12444_s14 = inlined_call_operand.vmem [shape: f32[64,72], index: 14, kind: input, shape index: {}]   ;;  %s12445_s15 = inlined_call_operand.vmem [shape: f32[1,72], index: 15, kind: input, shape index: {}]   ;;  %s12446_s16 = inlined_call_operand.vmem [shape: f32[128,16], index: 16, kind: input, shape index: {}]   ;;  %s12447_s17 = inlined_call_operand.vmem [shape: f32[1,16], index: 17, kind: input, shape index: {}]   ;;  %s12448_s18 = inlined_call_operand.vmem [shape: f32[16,2], index: 18, kind: input, shape index: {}]   ;;  %s12449_s19 = inlined_call_operand.vmem [shape: f32[1,2], index: 19, kind: input, shape index: {}]   ;;  %s12450_s20 = inlined_call_operand.vmem [shape: f32[64,2], index: 20, kind: output, shape index: {}]  }
   0x1   :  { %12879 = sst [smem:[#allocation185_spill]] %s12430_s0 }
   0x2   :  { %12880 = sst [smem:[#allocation186_spill]] %s12431_s1 }
   0x3   :  { %12881 = sst [smem:[#allocation187_spill]] %s12432_s2 }
   0x4   :  { %12882 = sst [smem:[#allocation188_spill]] %s12433_s3 }
   0x5   :  { %12883 = sst [smem:[#allocation189_spill]] %s12434_s4 }
   0x6   :  { %12884 = sst [smem:[#allocation190_spill]] %s12450_s20 }
   0x7   :  { %25 = vsyncpa [#allocation6], 0 }
   0x8   :  { %26 = vsyncpa [#allocation8], 0 }
   0x9   :  { %27 = vsyncpa [#allocation11], 0 }
   0xa   :  { %28 = vsyncpa [#allocation14], 0 }
   0xb   :  { %29 = vsyncpa [#allocation17], 0  ;;  %s8633_s1 = smov [#allocation7]   ;;  %s8634_s23 = smov [#allocation10]  }
   0xc   :  { %s50_s22 = sshll.u32 %s8633_s1, 4  ;;  %s71_s24 = sshll.u32 %s8634_s23, 4  ;;  %s51_s22 = int_to_ptr.vmem [resolvable:$true] %s50_s22  ;;  %s8753_s24 = int_to_ptr.vmem [resolvable:$true] %s71_s24 }
   0xd   :  { %s12885_s3 = sld [smem:[#allocation188_spill]] }
  0x13   :  { %s8425_s26 = scalar_lea.hbm %s12885_s3, 64 }
  0x14   :  { %p8426_p0 = scmp.ne.s32.totalorder %s12885_s3, %s8425_s26  ;;  %p8429_p1 = scmp.lt.u32.totalorder %s8425_s26, %s12885_s3 }
  0x16   :  { %p8431_p2 = pnand %p8429_p1, %p8426_p0 }
  0x18   :  { %8434 = shalt.err (!%p8431_p2)
}
  0x19   :  { %s8435_s30 = scalar_lea.vmem %s51_s22, 64  ;;  %p8440_p4 = scmp.lt.s32.totalorder %s51_s22, %s51_s22 }
  0x1a   :  { %p8436_p3 = scmp.ne.s32.totalorder %s51_s22, %s8435_s30  ;;  %p8441_p5 = scmp.lt.s32.totalorder %s8435_s30, %s8435_s30 }
  0x1c   :  { %p8442_p6 = por %p8441_p5, %p8440_p4 }
  0x1e   :  { %p8443_p7 = pnand %p8442_p6, %p8436_p3 }
  0x20   :  { %8446 = shalt.err (!%p8443_p7)
}
  0x21   :  { %53 = dma.hbm_to_vmem [thread:$0]  %s12885_s3, 64, %s51_s22, [#allocation8]  }
  0x22   :  { %s8447_s2 = scalar_lea.hbm %s12436_s6, 4096 }
  0x23   :  { %p8448_p8 = scmp.ne.s32.totalorder %s12436_s6, %s8447_s2  ;;  %p8451_p9 = scmp.lt.u32.totalorder %s8447_s2, %s12436_s6 }
  0x25   :  { %p8453_p10 = pnand %p8451_p9, %p8448_p8 }
  0x27   :  { %8456 = shalt.err (!%p8453_p10)
}
  0x28   :  { %s8457_s4 = scalar_lea.vmem %s8753_s24, 4096  ;;  %p8462_p12 = scmp.lt.s32.totalorder %s8753_s24, %s8753_s24 }
  0x29   :  { %p8458_p11 = scmp.ne.s32.totalorder %s8753_s24, %s8457_s4  ;;  %p8463_p13 = scmp.lt.s32.totalorder %s8457_s4, %s8457_s4 }
  0x2b   :  { %p8464_p0 = por %p8463_p13, %p8462_p12 }
  0x2d   :  { %p8465_p1 = pnand %p8464_p0, %p8458_p11 }
  0x2f   :  { %8468 = shalt.err (!%p8465_p1)
}
  0x30   :  { %s8635_s22 = smov 256   ;;  %s8636_s3 = smov 16  }
  0x31   :  { %77 = dma.hbm_to_vmem [thread:$0]  %s12436_s6, 4096, %s8753_s24, [#allocation11], %s8635_s22, %s8635_s22, %s8636_s3  }
  0x32   :  { %s8637_s0 = smov [#allocation13]   ;;  %s8638_s1 = smov [#allocation16]  }
  0x33   :  { %s95_s21 = sshll.u32 %s8637_s0, 4  ;;  %s119_s23 = sshll.u32 %s8638_s1, 4  ;;  %s96_s21 = int_to_ptr.vmem [resolvable:$true] %s95_s21  ;;  %s8787_s23 = int_to_ptr.vmem [resolvable:$true] %s119_s23 }
  0x34   :  { %s8469_s27 = scalar_lea.hbm %s12438_s8, 4096 }
  0x35   :  { %p8470_p2 = scmp.ne.s32.totalorder %s12438_s8, %s8469_s27  ;;  %p8473_p3 = scmp.lt.u32.totalorder %s8469_s27, %s12438_s8 }
  0x37   :  { %p8475_p4 = pnand %p8473_p3, %p8470_p2 }
  0x39   :  { %8478 = shalt.err (!%p8475_p4)
}
  0x3a   :  { %s8479_s6 = scalar_lea.vmem %s96_s21, 4096  ;;  %p8484_p6 = scmp.lt.s32.totalorder %s96_s21, %s96_s21 }
  0x3b   :  { %p8480_p5 = scmp.ne.s32.totalorder %s96_s21, %s8479_s6  ;;  %p8485_p7 = scmp.lt.s32.totalorder %s8479_s6, %s8479_s6 }
  0x3d   :  { %p8486_p8 = por %p8485_p7, %p8484_p6 }
  0x3f   :  { %p8487_p9 = pnand %p8486_p8, %p8480_p5 }
  0x41   :  { %8490 = shalt.err (!%p8487_p9)
}
  0x42   :  { %101 = dma.hbm_to_vmem [thread:$0]  %s12438_s8, 4096, %s96_s21, [#allocation14], %s8635_s22, %s8635_s22, %s8636_s3  }
  0x43   :  { %s8491_s20 = scalar_lea.hbm %s12440_s10, 4096 }
  0x44   :  { %p8492_p10 = scmp.ne.s32.totalorder %s12440_s10, %s8491_s20  ;;  %p8495_p11 = scmp.lt.u32.totalorder %s8491_s20, %s12440_s10 }
  0x46   :  { %p8497_p12 = pnand %p8495_p11, %p8492_p10 }
  0x48   :  { %8500 = shalt.err (!%p8497_p12)
}
  0x49   :  { %s8501_s26 = scalar_lea.vmem %s8787_s23, 4096  ;;  %p8506_p0 = scmp.lt.s32.totalorder %s8787_s23, %s8787_s23 }
  0x4a   :  { %p8502_p13 = scmp.ne.s32.totalorder %s8787_s23, %s8501_s26  ;;  %p8507_p1 = scmp.lt.s32.totalorder %s8501_s26, %s8501_s26 }
  0x4c   :  { %p8508_p2 = por %p8507_p1, %p8506_p0 }
  0x4e   :  { %p8509_p3 = pnand %p8508_p2, %p8502_p13 }
  0x50   :  { %8512 = shalt.err (!%p8509_p3)
}
  0x51   :  { %125 = dma.hbm_to_vmem [thread:$0]  %s12440_s10, 4096, %s8787_s23, [#allocation17], %s8635_s22, %s8635_s22, %s8636_s3  }
  0x52   :  { %s8639_s28 = smov [#allocation5]   ;;  %s8640_s6 = smov [#allocation9]  }
  0x53   :  { %s40_s4 = sshll.u32 %s8639_s28, 4  ;;  %s62_s24 = sshll.u32 %s8640_s6, 4  ;;  %s41_s4 = int_to_ptr.vmem [resolvable:$true] %s40_s4  ;;  %s63_s24 = int_to_ptr.vmem [resolvable:$true] %s62_s24 }
  0x54   :  { %s12886_s0 = sld [smem:[#allocation187_spill]] }
  0x5a   :  { %s8513_s20 = scalar_lea.hbm %s12886_s0, 512 }
  0x5b   :  { %p8514_p4 = scmp.ne.s32.totalorder %s12886_s0, %s8513_s20  ;;  %p8517_p5 = scmp.lt.u32.totalorder %s8513_s20, %s12886_s0 }
  0x5d   :  { %p8519_p6 = pnand %p8517_p5, %p8514_p4 }
  0x5f   :  { %8522 = shalt.err (!%p8519_p6)
}
  0x60   :  { %s8523_s10 = scalar_lea.vmem %s41_s4, 512  ;;  %p8528_p8 = scmp.lt.s32.totalorder %s41_s4, %s41_s4 }
  0x61   :  { %p8524_p7 = scmp.ne.s32.totalorder %s41_s4, %s8523_s10  ;;  %p8529_p9 = scmp.lt.s32.totalorder %s8523_s10, %s8523_s10 }
  0x63   :  { %p8530_p10 = por %p8529_p9, %p8528_p8 }
  0x65   :  { %p8531_p11 = pnand %p8530_p10, %p8524_p7 }
  0x67   :  { %8534 = shalt.err (!%p8531_p11)
}
  0x68   :  { %43 = dma.hbm_to_vmem [thread:$0]  %s12886_s0, 512, %s41_s4, [#allocation6]  }
  0x69   :  { %s8535_s28 = scalar_lea.hbm %s12435_s5, 64 }
  0x6a   :  { %p8536_p12 = scmp.ne.s32.totalorder %s12435_s5, %s8535_s28  ;;  %p8539_p13 = scmp.lt.u32.totalorder %s8535_s28, %s12435_s5 }
  0x6c   :  { %p8541_p0 = pnand %p8539_p13, %p8536_p12 }
  0x6e   :  { %8544 = shalt.err (!%p8541_p0)
}
  0x6f   :  { %s8545_s1 = scalar_lea.vmem %s63_s24, 64  ;;  %p8550_p2 = scmp.lt.s32.totalorder %s63_s24, %s63_s24 }
  0x70   :  { %p8546_p1 = scmp.ne.s32.totalorder %s63_s24, %s8545_s1  ;;  %p8551_p3 = scmp.lt.s32.totalorder %s8545_s1, %s8545_s1 }
  0x72   :  { %p8552_p4 = por %p8551_p3, %p8550_p2 }
  0x74   :  { %p8553_p5 = pnand %p8552_p4, %p8546_p1 }
  0x76   :  { %8556 = shalt.err (!%p8553_p5)
}
  0x77   :  { %65 = dma.hbm_to_vmem [thread:$0]  %s12435_s5, 64, %s63_s24, [#allocation8]  }
  0x78   :  { %s8641_s2 = smov [#allocation12]   ;;  %s8642_s27 = smov [#allocation15]  }
  0x79   :  { %s83_s25 = sshll.u32 %s8641_s2, 4  ;;  %s107_s10 = sshll.u32 %s8642_s27, 4  ;;  %s84_s25 = int_to_ptr.vmem [resolvable:$true] %s83_s25  ;;  %s8848_s10 = int_to_ptr.vmem [resolvable:$true] %s107_s10 }
  0x7a   :  { %s8557_s8 = scalar_lea.hbm %s12437_s7, 4096 }
  0x7b   :  { %p8558_p6 = scmp.ne.s32.totalorder %s12437_s7, %s8557_s8  ;;  %p8561_p7 = scmp.lt.u32.totalorder %s8557_s8, %s12437_s7 }
  0x7d   :  { %p8563_p8 = pnand %p8561_p7, %p8558_p6 }
  0x7f   :  { %8566 = shalt.err (!%p8563_p8)
}
  0x80   :  { %s8567_s5 = scalar_lea.vmem %s84_s25, 4096  ;;  %p8572_p10 = scmp.lt.s32.totalorder %s84_s25, %s84_s25 }
  0x81   :  { %p8568_p9 = scmp.ne.s32.totalorder %s84_s25, %s8567_s5  ;;  %p8573_p11 = scmp.lt.s32.totalorder %s8567_s5, %s8567_s5 }
  0x83   :  { %p8574_p12 = por %p8573_p11, %p8572_p10 }
  0x85   :  { %p8575_p13 = pnand %p8574_p12, %p8568_p9 }
  0x87   :  { %8578 = shalt.err (!%p8575_p13)
}
  0x88   :  { %89 = dma.hbm_to_vmem [thread:$0]  %s12437_s7, 4096, %s84_s25, [#allocation11], %s8635_s22, %s8635_s22, %s8636_s3  }
  0x89   :  { %s8579_s4 = scalar_lea.hbm %s12439_s9, 4096 }
  0x8a   :  { %p8580_p0 = scmp.ne.s32.totalorder %s12439_s9, %s8579_s4  ;;  %p8583_p1 = scmp.lt.u32.totalorder %s8579_s4, %s12439_s9 }
  0x8c   :  { %p8585_p2 = pnand %p8583_p1, %p8580_p0 }
  0x8e   :  { %8588 = shalt.err (!%p8585_p2)
}
  0x8f   :  { %s8589_s26 = scalar_lea.vmem %s8848_s10, 4096  ;;  %p8594_p4 = scmp.lt.s32.totalorder %s8848_s10, %s8848_s10 }
  0x90   :  { %p8590_p3 = scmp.ne.s32.totalorder %s8848_s10, %s8589_s26  ;;  %p8595_p5 = scmp.lt.s32.totalorder %s8589_s26, %s8589_s26 }
  0x92   :  { %p8596_p6 = por %p8595_p5, %p8594_p4 }
  0x94   :  { %p8597_p7 = pnand %p8596_p6, %p8590_p3 }
  0x96   :  { %8600 = shalt.err (!%p8597_p7)
}
  0x97   :  { %113 = dma.hbm_to_vmem [thread:$0]  %s12439_s9, 4096, %s8848_s10, [#allocation14], %s8635_s22, %s8635_s22, %s8636_s3  }
  0x98   :  { %s8643_s8 = smov [#allocation18]   ;;  %s8601_s29 = scalar_lea.hbm %s12442_s12, 640 }
  0x99   :  { %s133_s21 = sshll.u32 %s8643_s8, 4  ;;  %p8602_p8 = scmp.ne.s32.totalorder %s12442_s12, %s8601_s29  ;;  %s134_s21 = int_to_ptr.vmem [resolvable:$true] %s133_s21 }
  0x9a   :  { %p8605_p9 = scmp.lt.u32.totalorder %s8601_s29, %s12442_s12 }
  0x9c   :  { %p8607_p10 = pnand %p8605_p9, %p8602_p8 }
  0x9e   :  { %8610 = shalt.err (!%p8607_p10)
}
  0x9f   :  { %s8611_s1 = scalar_lea.vmem %s134_s21, 640  ;;  %p8616_p12 = scmp.lt.s32.totalorder %s134_s21, %s134_s21 }
  0xa0   :  { %p8612_p11 = scmp.ne.s32.totalorder %s134_s21, %s8611_s1  ;;  %p8617_p13 = scmp.lt.s32.totalorder %s8611_s1, %s8611_s1 }
  0xa2   :  { %p8618_p0 = por %p8617_p13, %p8616_p12 }
  0xa4   :  { %p8619_p1 = pnand %p8618_p0, %p8612_p11 }
  0xa6   :  { %8622 = shalt.err (!%p8619_p1)
}
  0xa7   :  { %s8644_s9 = smov 128   ;;  %s8645_s22 = smov 8  }
  0xa8   :  { %139 = dma.hbm_to_vmem [thread:$0]  %s12442_s12, 640, %s134_s21, [#allocation17], %s8644_s9, %s8644_s9, %s8645_s22  }
  0xa9   :  { %8623 = dma.done.wait [#allocation6], 512  }
  0xaa   :  { %8624 = vsyncadd [#allocation6], 4294966784 }
  0xab   :  { %8625 = dma.done.wait [#allocation8], 128  }
  0xac   :  { %8626 = vsyncadd [#allocation8], 4294967168 }
  0xad   :  { %8627 = dma.done.wait [#allocation11], 8192  }
  0xae   :  { %8628 = vsyncadd [#allocation11], 4294959104 }
  0xaf   :  { %8629 = dma.done.wait [#allocation14], 8192  }
  0xb0   :  { %8630 = vsyncadd [#allocation14], 4294959104 }
  0xb1   :  { %8631 = dma.done.wait [#allocation17], 4736  }
  0xb2   :  { %8632 = vsyncadd [#allocation17], 4294962560  ;;  %vm202_vm0 = vcmask 293888   ;;  %v190_v0 = vld [vmem:[#allocation18] sm:$0xff]  ;;  %v191_v1 = vld [vmem:[#allocation18 + $0x8] sm:$0xff]  ;;  %s12887_s2 = sld [smem:[#allocation186_spill]] }
  0xb3   :  { %v192_v2 = vld [vmem:[#allocation18 + $0x10] sm:$0xff]  ;;  %v7028_v3 = vpack.c.bf16 %v191_v1, %v190_v0  ;;  %v193_v4 = vld [vmem:[#allocation18 + $0x18] sm:$0xff]  ;;  %v194_v7 = vld [vmem:[#allocation18 + $0x20] sm:$0xf]  ;;  %vm227_vm1 = vcmask 1043456   ;;  %vm523_vm2 = vcmask 64512  }
  0xb4   :  { %v7032_v6 = vpack.c.bf16 %v193_v4, %v192_v2  ;;  %v344_v8 = vld [vmem:[%s12444_s14] sm:$0xff]  ;;  %v345_v9 = vld [vmem:[%s12444_s14 + $0x8] sm:$0xff]  ;;  %v346_v10 = vld [vmem:[%s12444_s14 + $0x10] sm:$0xff]  ;;  %v8646_v30 = vmov 0.0   ;;  %s12888_s6 = sld [smem:[#allocation185_spill]]  ;;  %s12889_s24 = sld [smem:[#allocation189_spill]] }
  0xb5   :  { %7029 = vmatprep.subr.bf16.mxu1 %v7028_v3  ;;  %v347_v11 = vld [vmem:[%s12444_s14 + $0x18] sm:$0xff]  ;;  %v7036_v14 = vpack.c.bf16 %v345_v9, %v344_v8  ;;  %v348_v15 = vld [vmem:[%s12444_s14 + $0x20] sm:$0xff]  ;;  %v349_v16 = vld [vmem:[%s12444_s14 + $0x28] sm:$0xff]  ;;  %612 = vmatprep.mubr.f32.mxu0 %v8646_v30  ;;  %vm359_vm3 = vcmask 523264   ;;  %vm832_vm4 = vcmask 588800   ;;  %vm6414_vm5 = vcmask 130048  }
  0xb6   :  { %7031 = vmatpush3.bf16.msra.mxu1 %v7028_v3  ;;  %v7040_v17 = vpack.c.bf16 %v347_v11, %v346_v10  ;;  %v7044_v20 = vpack.c.bf16 %v349_v16, %v348_v15  ;;  %v350_v24 = vld [vmem:[%s12444_s14 + $0x30] sm:$0xff]  ;;  %v351_v25 = vld [vmem:[%s12444_s14 + $0x38] sm:$0xff]  ;;  %v498_v27 = vld [vmem:[#allocation5 + $0x8] sm:$0xff]  ;;  %vm6544_vm6 = vcmask 15360   ;;  %s13827_s10 = sld [smem:[#allocation190_spill]] }
  0xb7   :  { %7033 = vmatprep.subr.bf16.mxu1 %v7032_v6  ;;  %v7048_v26 = vpack.c.bf16 %v351_v25, %v350_v24  ;;  %v497_v28 = vld [vmem:[#allocation5] sm:$0xff]  ;;  %v500_v29 = vld [vmem:[#allocation5 + $0x18] sm:$0xff]  ;;  %548 = vmatprep.subr.mxu0 %v498_v27 }
  0xb8   :  { %v182_v5 = vld [vmem:[%s12887_s2] sm:$0xff]  ;;  %v183_v12 = vld [vmem:[%s12887_s2 + $0x8] sm:$0xff]  ;;  %v184_v13 = vld [vmem:[%s12887_s2 + $0x10] sm:$0xff]  ;;  %549 = vmatpush1.msra.mxu0 %v497_v28 }
  0xb9   :  { %6928 = vmatprep.mubr.msk.f32.mxu1 %vm202_vm0, %v182_v5  ;;  %v185_v18 = vld [vmem:[%s12887_s2 + $0x18] sm:$0xff]  ;;  %v186_v19 = vld [vmem:[%s12887_s2 + $0x20] sm:$0xff]  ;;  %v187_v21 = vld [vmem:[%s12887_s2 + $0x28] sm:$0xff] }
  0xba   :  { %7035 = vmatpush3.bf16.msra.mxu1 %v7032_v6  ;;  %v188_v22 = vld [vmem:[%s12887_s2 + $0x30] sm:$0xff]  ;;  %v189_v23 = vld [vmem:[%s12887_s2 + $0x38] sm:$0xff]  ;;  %v8957_v31 = vld [vmem:[%s12888_s6] sm:$0xff] }
  0xbb   :  { %6926 = vmatprep.subr.msk.mxu1 %vm227_vm1, %v194_v7  ;;  %v775_v32 = vld [vmem:[%s12889_s24 + $0x8] sm:$0xff]  ;;  %6581 = vmatmul.mubr.msk.f32.vlgmr.msra.gmra.mrb[0].mxu0 %vm523_vm2, %v8957_v31  ;;  %v774_v35 = vld [vmem:[%s12889_s24] sm:$0xff]  ;;  %v8991_v42 = vld [vmem:[%s12888_s6 + $0x10] sm:$0xff] }
  0xbc   :  { %v779_v33 = vld [vmem:[%s12889_s24 + $0x28] sm:$0xff]  ;;  %v778_v36 = vld [vmem:[%s12889_s24 + $0x20] sm:$0xff]  ;;  %618 = vmatprep.mubr.f32.mxu0 %v8646_v30  ;;  %v9005_v46 = vld [vmem:[%s12888_s6 + $0x18] sm:$0xff] }
  0xbd   :  { %v7052_v34 = vpack.c.bf16 %v779_v33, %v775_v32  ;;  %v7054_v37 = vpack.c.bf16 %v778_v36, %v774_v35  ;;  %v8977_v38 = vld [vmem:[%s12888_s6 + $0x8] sm:$0xff]  ;;  %v782_v43 = vld [vmem:[%s12889_s24 + $0x40] sm:$0xff]  ;;  %v9053_v61 = vld [vmem:[%s12888_s6 + $0x30] sm:$0xff] }
  0xbe   :  { %6927 = vmatpush3.msk.msra.mxu1 %vm227_vm1, %v194_v7  ;;  %v783_v39 = vld [vmem:[%s12889_s24 + $0x48] sm:$0xff]  ;;  %v786_v44 = vld [vmem:[%s12889_s24 + $0x60] sm:$0xff]  ;;  %v9067_v0 = vld [vmem:[%s12888_s6 + $0x38] sm:$0xff] }
  0xbf   :  { %6929 = vmatmul.mubr.msk.f32.vlgmr.msra.gmra.mrb[0].mxu1 %vm202_vm0, %v183_v12  ;;  %7037 = vmatprep.subr.bf16.mxu1 %v7036_v14  ;;  %v787_v40 = vld [vmem:[%s12889_s24 + $0x68] sm:$0xff]  ;;  %v7058_v45 = vpack.c.bf16 %v786_v44, %v782_v43  ;;  %v790_v49 = vld [vmem:[%s12889_s24 + $0x80] sm:$0xff]  ;;  %v777_v6 = vld [vmem:[%s12889_s24 + $0x18] sm:$0xff] }
  0xc0   :  { %6931 = vmatprep.mubr.msk.f32.mxu1 %vm202_vm0, %v184_v13  ;;  %7039 = vmatpush3.bf16.msra.mxu1 %v7036_v14  ;;  %v7056_v41 = vpack.c.bf16 %v787_v40, %v783_v39  ;;  %v791_v47 = vld [vmem:[%s12889_s24 + $0x88] sm:$0xff]  ;;  %v794_v51 = vld [vmem:[%s12889_s24 + $0xa0] sm:$0xff]  ;;  %v781_v7 = vld [vmem:[%s12889_s24 + $0x38] sm:$0xff] }
  0xc1   :  { %7041 = vmatprep.subr.bf16.mxu1 %v7040_v17  ;;  %7053 = vmatprep.subr.bf16.mxu0 %v7052_v34  ;;  %v795_v48 = vld [vmem:[%s12889_s24 + $0xa8] sm:$0xff]  ;;  %v7062_v52 = vpack.c.bf16 %v794_v51, %v790_v49  ;;  %v9025_v53 = vld [vmem:[%s12888_s6 + $0x20] sm:$0xff]  ;;  %v499_v13 = vld [vmem:[#allocation5 + $0x10] sm:$0xff]  ;;  %v7068_v14 = vpack.c.bf16 %v781_v7, %v777_v6 }
  0xc2   :  { %7055 = vmatpush1.bf16.msra.mxu0 %v7054_v37  ;;  %v7060_v50 = vpack.c.bf16 %v795_v48, %v791_v47  ;;  %v799_v54 = vld [vmem:[%s12889_s24 + $0xc8] sm:$0xff]  ;;  %v798_v58 = vld [vmem:[%s12889_s24 + $0xc0] sm:$0xff]  ;;  %v776_v32 = vld [vmem:[%s12889_s24 + $0x10] sm:$0xff] }
  0xc3   :  { %6932 = vmatmul.mubr.msk.f32.gmra.mrb[2].mxu1 %vm202_vm0, %v185_v18  ;;  %6582 = vmatmul.mubr.msk.f32.gmra.mrb[2].mxu0 %vm523_vm2, %v8977_v38  ;;  %v9036_v55 = vld [vmem:[%s12888_s6 + $0x28] sm:$0xff]  ;;  %v802_v59 = vld [vmem:[%s12889_s24 + $0xe0] sm:$0xff]  ;;  %v780_v33 = vld [vmem:[%s12889_s24 + $0x30] sm:$0xff] }
  0xc4   :  { %6934 = vmatprep.mubr.msk.f32.mxu1 %vm202_vm0, %v186_v19  ;;  %7043 = vmatpush3.bf16.msra.mxu1 %v7040_v17  ;;  %v803_v56 = vld [vmem:[%s12889_s24 + $0xe8] sm:$0xff]  ;;  %v7066_v60 = vpack.c.bf16 %v802_v59, %v798_v58  ;;  %v806_v63 = vld [vmem:[%s12889_s24 + $0x100] sm:$0xff]  ;;  %v785_v34 = vld [vmem:[%s12889_s24 + $0x58] sm:$0xff]  ;;  %v7070_v36 = vpack.c.bf16 %v780_v33, %v776_v32 }
  0xc5   :  { %7045 = vmatprep.subr.bf16.mxu1 %v7044_v20  ;;  %624 = vmatprep.mubr.f32.mxu0 %v8646_v30  ;;  %v7064_v57 = vpack.c.bf16 %v803_v56, %v799_v54  ;;  %v807_v62 = vld [vmem:[%s12889_s24 + $0x108] sm:$0xff]  ;;  %v6562_v1 = vld [vmem:[%s12443_s13] ss:$0 sm:$0xff]  ;;  %v789_v35 = vld [vmem:[%s12889_s24 + $0x78] sm:$0xff]  ;;  %v503_v56 = vlaneseq }
  0xc6   :  { %7057 = vmatprep.subr.bf16.mxu0 %v7056_v41  ;;  %v7072_v37 = vpack.c.bf16 %v789_v35, %v785_v34  ;;  %v784_v39 = vld [vmem:[%s12889_s24 + $0x50] sm:$0xff]  ;;  %v793_v41 = vld [vmem:[%s12889_s24 + $0x98] sm:$0xff] }
  0xc7   :  { %6935 = vmatmul.mubr.msk.f32.gmra.mrb[4].mxu1 %vm202_vm0, %v187_v21  ;;  %6583 = vmatmul.mubr.msk.f32.gmra.mrb[4].mxu0 %vm523_vm2, %v8991_v42  ;;  %v788_v40 = vld [vmem:[%s12889_s24 + $0x70] sm:$0xff]  ;;  %v797_v43 = vld [vmem:[%s12889_s24 + $0xb8] sm:$0xff]  ;;  %v9166_v59 = vshrl.u32 %v503_v56, 7 }
  0xc8   :  { %6937 = vmatprep.mubr.msk.f32.mxu1 %vm202_vm0, %v188_v22  ;;  %7047 = vmatpush3.bf16.msra.mxu1 %v7044_v20  ;;  %v7074_v44 = vpack.c.bf16 %v788_v40, %v784_v39  ;;  %v792_v47 = vld [vmem:[%s12889_s24 + $0x90] sm:$0xff]  ;;  %v801_v49 = vld [vmem:[%s12889_s24 + $0xd8] sm:$0xff] }
  0xc9   :  { %7049 = vmatprep.subr.bf16.mxu1 %v7048_v26  ;;  %7059 = vmatpush1.bf16.msra.mxu0 %v7058_v45  ;;  %v7076_v45 = vpack.c.bf16 %v797_v43, %v793_v41  ;;  %v796_v48 = vld [vmem:[%s12889_s24 + $0xb0] sm:$0xff]  ;;  %v7301_v34 = vld [vmem:[#allocation10] ss:$16 sps:$4 sm:$0xff]  }
  0xca   :  { %630 = vmatprep.mubr.f32.mxu0 %v8646_v30  ;;  %7061 = vmatprep.subr.bf16.mxu0 %v7060_v50  ;;  %v7078_v50 = vpack.c.bf16 %v796_v48, %v792_v47  ;;  %v804_v54 = vld [vmem:[%s12889_s24 + $0xf0] sm:$0xff]  ;;  %v7307_v43 = vld [vmem:[#allocation10 + $0x20] ss:$16 sps:$4 sm:$0xff]   ;;  %v7309_v47 = vld [vmem:[#allocation10 + $0x44] ss:$16 sps:$4 sm:$0xff]  }
  0xcb   :  { %6938 = vmatmul.mubr.msk.f32.gmra.mrb[6].mxu1 %vm202_vm0, %v189_v23  ;;  %6584 = vmatmul.mubr.msk.f32.gmra.mrb[6].mxu0 %vm523_vm2, %v9005_v46  ;;  %v7302_v35 = vld [vmem:[#allocation10 + $0x8] ss:$16 sps:$4 sm:$0xff]   ;;  %v7305_v39 = vld [vmem:[#allocation10 + $0x2c] ss:$16 sps:$4 sm:$0xff]  }
  0xcc   :  { %7051 = vmatpush3.bf16.msra.mxu1 %v7048_v26  ;;  %636 = vmatprep.mubr.f32.mxu0 %v8646_v30  ;;  %v7311_v48 = vld [vmem:[#allocation10 + $0x4c] ss:$16 sps:$4 sm:$0xff]  }
  0xcd   :  { %661 = vmatprep.subr.mxu1 %v500_v29  ;;  %7063 = vmatpush1.bf16.msra.mxu0 %v7062_v52  ;;  %v800_v52 = vld [vmem:[%s12889_s24 + $0xd0] sm:$0xff] }
  0xce   :  { %7065 = vmatprep.subr.bf16.mxu0 %v7064_v57 }
  0xcf   :  { %6585 = vmatmul.mubr.msk.f32.gmra.mrb[8].mxu0 %vm523_vm2, %v9025_v53 }
  0xd0   :  { %642 = vmatprep.mubr.f32.mxu0 %v8646_v30 }
  0xd1   :  { %7067 = vmatpush1.bf16.msra.mxu0 %v7066_v60 }
  0xd2   :  { %873 = vmatprep.subr.mxu0 %v807_v62 }
  0xd3   :  { %6586 = vmatmul.mubr.msk.f32.gmra.mrb[10].mxu0 %vm523_vm2, %v9036_v55 }
  0xd4   :  { %648 = vmatprep.mubr.f32.mxu0 %v8646_v30 }
  0xd5   :  { %874 = vmatpush1.msra.mxu0 %v806_v63  ;;  %v9171_v63 = vsub.s32 0, %v9166_v59 }
  0xd7   :  { %6587 = vmatmul.mubr.msk.f32.gmra.mrb[12].mxu0 %vm523_vm2, %v9053_v61  ;;  %12890 = vst [vmem:[#allocation24_spill] sm:$0xff] %v9171_v63 }
  0xd8   :  { %654 = vmatprep.mubr.f32.mxu0 %v8646_v30 }
  0xdb   :  { %6588 = vmatmul.mubr.msk.f32.gmra.mrb[14].mxu0 %vm523_vm2, %v9067_v0 }
  0xdc   :  { %921 = vmatprep.mubr.f32.mxu0 %v8646_v30 }
 0x18e   :  { %v9162_v57 = vpop.f32.mrb[0].mxu0 }
 0x18f   :  { %v9164_v58 = vpop.f32.mrb[1].mxu0 }
 0x192   :  { %v6930_v2 = vpop.f32.mrb[0].mxu1 }
 0x193   :  { %v303_v3 = vadd.f32 %v6930_v2, %v6562_v1  ;;  %v297_v4 = vpop.f32.mrb[1].mxu1 }
 0x194   :  { %v298_v5 = vadd.f32 %v6562_v1, %v297_v4 }
 0x195   :  { %v337_v10 = vmax.f32 %v303_v3, 0.0 }
 0x196   :  { %v336_v8 = vmax.f32 %v298_v5, 0.0  ;;  %v6933_v9 = vpop.f32.mrb[2].mxu1  ;;  %v620_v60 = vpop.f32.mrb[2].mxu0 }
 0x197   :  { %v313_v11 = vadd.f32 %v6933_v9, %v6562_v1  ;;  %v307_v12 = vpop.f32.mrb[3].mxu1  ;;  %v622_v62 = vpop.f32.mrb[3].mxu0 }
 0x198   :  { %v308_v15 = vadd.f32 %v6562_v1, %v307_v12  ;;  %6956 = vmatprep.mubr.msk.f32.mxu1 %vm359_vm3, %v336_v8 }
 0x199   :  { %v339_v16 = vmax.f32 %v313_v11, 0.0  ;;  %6957 = vmatmul.mubr.msk.f32.vlgmr.msra.gmra.mrb[8].mxu1 %vm359_vm3, %v337_v10 }
 0x19a   :  { %v338_v17 = vmax.f32 %v308_v15, 0.0  ;;  %v6936_v18 = vpop.f32.mrb[4].mxu1  ;;  %662 = vmatpush1.msra.mxu1 %v499_v13 }
 0x19b   :  { %v323_v19 = vadd.f32 %v6936_v18, %v6562_v1  ;;  %v317_v20 = vpop.f32.mrb[5].mxu1  ;;  %7069 = vmatprep.subr.bf16.mxu1 %v7068_v14 }
 0x19c   :  { %6959 = vmatprep.mubr.msk.f32.mxu1 %vm359_vm3, %v338_v17  ;;  %v318_v21 = vadd.f32 %v6562_v1, %v317_v20 }
 0x19d   :  { %6960 = vmatmul.mubr.msk.f32.gmra.mrb[10].mxu1 %vm359_vm3, %v339_v16  ;;  %v341_v22 = vmax.f32 %v323_v19, 0.0 }
 0x19e   :  { %v340_v23 = vmax.f32 %v318_v21, 0.0  ;;  %v6939_v24 = vpop.f32.mrb[6].mxu1 }
 0x19f   :  { %v333_v25 = vadd.f32 %v6939_v24, %v6562_v1  ;;  %v327_v26 = vpop.f32.mrb[7].mxu1 }
 0x1a0   :  { %6962 = vmatprep.mubr.msk.f32.mxu1 %vm359_vm3, %v340_v23  ;;  %v328_v27 = vadd.f32 %v6562_v1, %v327_v26  ;;  %v626_v1 = vpop.f32.mrb[4].mxu0 }
 0x1a1   :  { %6963 = vmatmul.mubr.msk.f32.gmra.mrb[12].mxu1 %vm359_vm3, %v341_v22  ;;  %v343_v28 = vmax.f32 %v333_v25, 0.0  ;;  %v628_v2 = vpop.f32.mrb[5].mxu0 }
 0x1a2   :  { %v342_v29 = vmax.f32 %v328_v27, 0.0  ;;  %v632_v5 = vpop.f32.mrb[6].mxu0 }
 0x1a3   :  { %v634_v6 = vpop.f32.mrb[7].mxu0 }
 0x1a4   :  { %6965 = vmatprep.mubr.msk.f32.mxu1 %vm359_vm3, %v342_v29  ;;  %v638_v9 = vpop.f32.mrb[8].mxu0  ;;  %v9229_v29 = vld [vmem:[%s12445_s15] ss:$0 sm:$0xff] }
 0x1a5   :  { %6966 = vmatmul.mubr.msk.f32.gmra.mrb[14].mxu1 %vm359_vm3, %v343_v28  ;;  %v640_v14 = vpop.f32.mrb[9].mxu0 }
 0x1a6   :  { %725 = vmatprep.mubr.f32.mxu1 %v8646_v30  ;;  %v644_v17 = vpop.f32.mrb[10].mxu0 }
 0x1a7   :  { %v646_v19 = vpop.f32.mrb[11].mxu0 }
 0x1a9   :  { %6589 = vmatmul.mubr.msk.f32.vlgmr.msra.gmra.mrb[16].mxu1 %vm523_vm2, %v8957_v31  ;;  %v805_v31 = vld [vmem:[%s12889_s24 + $0xf8] sm:$0xff] }
 0x1aa   :  { %731 = vmatprep.mubr.f32.mxu1 %v8646_v30  ;;  %7071 = vmatpush1.bf16.msra.mxu1 %v7070_v36  ;;  %v7080_v51 = vpack.c.bf16 %v805_v31, %v801_v49  ;;  %v650_v21 = vpop.f32.mrb[12].mxu0  ;;  %v7313_v31 = vld [vmem:[#allocation10 + $0x40] ss:$16 sps:$4 sm:$0xff]  }
 0x1ab   :  { %7073 = vmatprep.subr.bf16.mxu1 %v7072_v37  ;;  %v652_v23 = vpop.f32.mrb[13].mxu0  ;;  %v7303_v37 = vld [vmem:[#allocation10 + $0x24] ss:$16 sps:$4 sm:$0xff]  }
 0x1ad   :  { %6590 = vmatmul.mubr.msk.f32.gmra.mrb[18].mxu1 %vm523_vm2, %v8977_v38  ;;  %v7082_v38 = vpack.c.bf16 %v804_v54, %v800_v52  ;;  %v7315_v54 = vld [vmem:[#allocation10 + $0x64] ss:$16 sps:$4 sm:$0xff]  }
 0x1ae   :  { %737 = vmatprep.mubr.f32.mxu1 %v8646_v30  ;;  %7075 = vmatpush1.bf16.msra.mxu1 %v7074_v44  ;;  %v656_v25 = vpop.f32.mrb[14].mxu0  ;;  %v7308_v44 = vld [vmem:[#allocation10 + $0x28] ss:$16 sps:$4 sm:$0xff]  }
 0x1af   :  { %7077 = vmatprep.subr.bf16.mxu1 %v7076_v45  ;;  %v658_v27 = vpop.f32.mrb[15].mxu0 }
 0x1b1   :  { %6591 = vmatmul.mubr.msk.f32.gmra.mrb[20].mxu1 %vm523_vm2, %v8991_v42  ;;  %v809_v42 = vld [vmem:[%s12889_s24 + $0x118] sm:$0xff] }
 0x1b2   :  { %743 = vmatprep.mubr.f32.mxu1 %v8646_v30  ;;  %7079 = vmatpush1.bf16.msra.mxu1 %v7078_v50  ;;  %v7314_v50 = vld [vmem:[#allocation10 + $0x48] ss:$16 sps:$4 sm:$0xff]  }
 0x1b3   :  { %7081 = vmatprep.subr.bf16.mxu1 %v7080_v51 }
 0x1b5   :  { %6592 = vmatmul.mubr.msk.f32.gmra.mrb[22].mxu1 %vm523_vm2, %v9005_v46  ;;  %v808_v46 = vld [vmem:[%s12889_s24 + $0x110] sm:$0xff] }
 0x1b6   :  { %749 = vmatprep.mubr.f32.mxu1 %v8646_v30  ;;  %7083 = vmatpush1.bf16.msra.mxu1 %v7082_v38  ;;  %v7317_v38 = vld [vmem:[#allocation10 + $0x6c] ss:$16 sps:$4 sm:$0xff]  }
 0x1b7   :  { %986 = vmatprep.subr.mxu1 %v809_v42 }
 0x1b9   :  { %6593 = vmatmul.mubr.msk.f32.gmra.mrb[24].mxu1 %vm523_vm2, %v9025_v53  ;;  %v7297_v53 = vld [vmem:[#allocation10 + $0x4] ss:$16 sps:$4 sm:$0xff]  }
 0x1ba   :  { %755 = vmatprep.mubr.f32.mxu1 %v8646_v30  ;;  %987 = vmatpush1.msra.mxu1 %v808_v46  ;;  %v7319_v46 = vld [vmem:[#allocation10 + $0x60] ss:$16 sps:$4 sm:$0xff]  }
 0x1bb   :  { %1493 = vmatprep.subr.bf16.mxu0 %v7297_v53  ;;  %v7320_v53 = vld [vmem:[#allocation10 + $0x68] ss:$16 sps:$4 sm:$0xff]  }
 0x1bd   :  { %6594 = vmatmul.mubr.msk.f32.gmra.mrb[26].mxu1 %vm523_vm2, %v9036_v55  ;;  %v7299_v55 = vld [vmem:[#allocation10 + $0xc] ss:$16 sps:$4 sm:$0xff]  }
 0x1be   :  { %761 = vmatprep.mubr.f32.mxu1 %v8646_v30  ;;  %1534 = vmatprep.subr.bf16.mxu1 %v7299_v55 }
 0x1c1   :  { %6595 = vmatmul.mubr.msk.f32.gmra.mrb[28].mxu1 %vm523_vm2, %v9053_v61  ;;  %v9168_v61 = vld [vmem:[#allocation7] sm:$0xf] }
 0x1c2   :  { %767 = vmatprep.mubr.f32.mxu1 %v8646_v30  ;;  %v9178_v3 = vrot.slane %v9168_v61, %v9171_v63 }
 0x1c4   :  { %v9185_v7 = vadd.f32 %v620_v60, %v9178_v3  ;;  %v9191_v10 = vadd.f32 %v626_v1, %v9178_v3  ;;  %v9197_v12 = vadd.f32 %v632_v5, %v9178_v3  ;;  %v9203_v15 = vadd.f32 %v638_v9, %v9178_v3  ;;  %v7321_v60 = vld [vmem:[#allocation10 + $0x84] ss:$16 sps:$4 sm:$0xff]   ;;  %v7326_v9 = vld [vmem:[#allocation10 + $0x88] ss:$16 sps:$4 sm:$0xff]  }
 0x1c5   :  { %6596 = vmatmul.mubr.msk.f32.gmra.mrb[30].mxu1 %vm523_vm2, %v9067_v0  ;;  %v9174_v0 = vsub.s32 1, %v9166_v59  ;;  %v9209_v18 = vadd.f32 %v644_v17, %v9178_v3  ;;  %v9215_v22 = vadd.f32 %v650_v21, %v9178_v3  ;;  %v9221_v26 = vadd.f32 %v656_v25, %v9178_v3  ;;  %v7329_v21 = vld [vmem:[#allocation10 + $0xac] ss:$16 sps:$4 sm:$0xff]  }
 0x1c6   :  { %1034 = vmatprep.mubr.f32.mxu1 %v8646_v30  ;;  %12892 = vst [vmem:[#allocation26_spill] sm:$0xff] %v9185_v7  ;;  %12894 = vst [vmem:[#allocation28_spill] sm:$0xff] %v9191_v10  ;;  %v9250_v1 = vsub.s32 2, %v9166_v59  ;;  %v9257_v5 = vsub.s32 3, %v9166_v59  ;;  %v9478_v10 = vld [vmem:[#allocation13 + $0x20] ss:$16 sps:$4 sm:$0xff]  }
 0x1c7   :  { %12891 = vst [vmem:[#allocation25_spill] sm:$0xff] %v9174_v0  ;;  %v9182_v4 = vrot.slane %v9168_v61, %v9174_v0  ;;  %12896 = vst [vmem:[#allocation30_spill] sm:$0xff] %v9197_v12  ;;  %v9466_v12 = vld [vmem:[#allocation13] ss:$16 sps:$4 sm:$0xff]  }
 0x1c8   :  { %12898 = vst [vmem:[#allocation32_spill] sm:$0xff] %v9203_v15  ;;  %12900 = vst [vmem:[#allocation34_spill] sm:$0xff] %v9209_v18  ;;  %v9266_v59 = vrot.slane %v9168_v61, %v9250_v1  ;;  %v9440_v18 = vld [vmem:[#allocation12 + $0xc8] ss:$16 sps:$4 sm:$0xff]   ;;  %v9490_v7 = vld [vmem:[#allocation13 + $0x40] ss:$16 sps:$4 sm:$0xff]  }
 0x1c9   :  { %v9188_v8 = vadd.f32 %v622_v62, %v9182_v4  ;;  %v9194_v11 = vadd.f32 %v628_v2, %v9182_v4  ;;  %v9200_v13 = vadd.f32 %v634_v6, %v9182_v4  ;;  %v9206_v16 = vadd.f32 %v640_v14, %v9182_v4  ;;  %12902 = vst [vmem:[#allocation36_spill] sm:$0xff] %v9215_v22  ;;  %v7323_v62 = vld [vmem:[#allocation10 + $0x8c] ss:$16 sps:$4 sm:$0xff]   ;;  %v7325_v6 = vld [vmem:[#allocation10 + $0x80] ss:$16 sps:$4 sm:$0xff]  }
 0x1ca   :  { %v9212_v20 = vadd.f32 %v646_v19, %v9182_v4  ;;  %v9218_v24 = vadd.f32 %v652_v23, %v9182_v4  ;;  %12904 = vst [vmem:[#allocation38_spill] sm:$0xff] %v9221_v26  ;;  %v9224_v28 = vadd.f32 %v658_v27, %v9182_v4  ;;  %12906 = vst [vmem:[#allocation40_spill] sm:$0xff] %v9250_v1  ;;  %v7327_v19 = vld [vmem:[#allocation10 + $0xa4] ss:$16 sps:$4 sm:$0xff]   ;;  %v7331_v27 = vld [vmem:[#allocation10 + $0xa0] ss:$16 sps:$4 sm:$0xff]  }
 0x1cb   :  { %12893 = vst [vmem:[#allocation27_spill] sm:$0xff] %v9188_v8  ;;  %12895 = vst [vmem:[#allocation29_spill] sm:$0xff] %v9194_v11  ;;  %v9272_v23 = vrot.slane %v9168_v61, %v9257_v5  ;;  %v9283_v61 = vld [vmem:[#allocation10 + $0xc4] ss:$16 sps:$4 sm:$0xff]   ;;  %v9422_v22 = vld [vmem:[#allocation12 + $0xac] ss:$16 sps:$4 sm:$0xff]  }
 0x1cc   :  { %12897 = vst [vmem:[#allocation31_spill] sm:$0xff] %v9200_v13  ;;  %12899 = vst [vmem:[#allocation33_spill] sm:$0xff] %v9206_v16  ;;  %v9446_v16 = vld [vmem:[#allocation12 + $0xec] ss:$16 sps:$4 sm:$0xff]   ;;  %v9452_v15 = vld [vmem:[#allocation12 + $0xe8] ss:$16 sps:$4 sm:$0xff]  }
 0x1cd   :  { %12901 = vst [vmem:[#allocation35_spill] sm:$0xff] %v9212_v20  ;;  %12903 = vst [vmem:[#allocation37_spill] sm:$0xff] %v9218_v24  ;;  %v9405_v24 = vld [vmem:[#allocation12 + $0x84] ss:$16 sps:$4 sm:$0xff]   ;;  %v9434_v20 = vld [vmem:[#allocation12 + $0xcc] ss:$16 sps:$4 sm:$0xff]  }
 0x1ce   :  { %12905 = vst [vmem:[#allocation39_spill] sm:$0xff] %v9224_v28  ;;  %12907 = vst [vmem:[#allocation41_spill] sm:$0xff] %v9257_v5  ;;  %v9462_v13 = vld [vmem:[#allocation13 + $0x4] ss:$16 sps:$4 sm:$0xff]  }
 0x1cf   :  { %12923 = vst [vmem:[#allocation57_spill] sm:$0xff] %v9434_v20  ;;  %12925 = vst [vmem:[#allocation59_spill] sm:$0xff] %v9440_v18  ;;  %v9474_v11 = vld [vmem:[#allocation13 + $0x24] ss:$16 sps:$4 sm:$0xff]  }
 0x1d0   :  { %12927 = vst [vmem:[#allocation61_spill] sm:$0xff] %v9446_v16  ;;  %12929 = vst [vmem:[#allocation63_spill] sm:$0xff] %v9452_v15  ;;  %v9486_v8 = vld [vmem:[#allocation13 + $0x44] ss:$16 sps:$4 sm:$0xff]  }
 0x1d1   :  { %12931 = vst [vmem:[#allocation64_spill] sm:$0xff] %v9462_v13  ;;  %12933 = vst [vmem:[#allocation66_spill] sm:$0xff] %v9466_v12 }
 0x1d2   :  { %12935 = vst [vmem:[#allocation68_spill] sm:$0xff] %v9474_v11  ;;  %12937 = vst [vmem:[#allocation70_spill] sm:$0xff] %v9478_v10 }
 0x1d3   :  { %12939 = vst [vmem:[#allocation72_spill] sm:$0xff] %v9486_v8  ;;  %12941 = vst [vmem:[#allocation74_spill] sm:$0xff] %v9490_v7 }
 0x26c   :  { %v6958_v32 = vpop.f32.mrb[8].mxu1 }
 0x26d   :  { %v450_v33 = vpop.f32.mrb[9].mxu1  ;;  %v456_v45 = vadd.f32 %v6958_v32, %v9229_v29  ;;  %v7332_v32 = vld [vmem:[#allocation10 + $0xa8] ss:$16 sps:$4 sm:$0xff]  }
 0x26e   :  { %v451_v36 = vadd.f32 %v9229_v29, %v450_v33 }
 0x270   :  { %6597 = vmatmul.mubr.msk.f32.vlgmr.msra.gmra.mrb[16].mxu0 %vm832_vm4, %v451_v36  ;;  %6605 = vmatmul.mubr.msk.f32.vlgmr.msra.gmra.mrb[32].mxu1 %vm832_vm4, %v451_v36  ;;  %v6961_v40 = vpop.f32.mrb[10].mxu1 }
 0x271   :  { %1494 = vmatpush1.bf16.msra.mxu0 %v7301_v34  ;;  %1535 = vmatpush1.bf16.msra.mxu1 %v7302_v35  ;;  %v460_v41 = vpop.f32.mrb[11].mxu1  ;;  %v466_v56 = vadd.f32 %v6961_v40, %v9229_v29  ;;  %v9289_v40 = vld [vmem:[#allocation10 + $0xc0] ss:$16 sps:$4 sm:$0xff]  }
 0x272   :  { %927 = vmatprep.mubr.f32.mxu0 %v8646_v30  ;;  %1040 = vmatprep.mubr.f32.mxu1 %v8646_v30  ;;  %v461_v52 = vadd.f32 %v9229_v29, %v460_v41  ;;  %v9291_v41 = vld [vmem:[#allocation10 + $0xc8] ss:$16 sps:$4 sm:$0xff]  }
 0x273   :  { %1495 = vmatprep.subr.bf16.mxu0 %v7303_v37  ;;  %1536 = vmatprep.subr.bf16.mxu1 %v7305_v39  ;;  %v9285_v37 = vld [vmem:[#allocation10 + $0xcc] ss:$16 sps:$4 sm:$0xff]  }
 0x274   :  { %6598 = vmatmul.mubr.msk.f32.gmra.mrb[18].mxu0 %vm832_vm4, %v456_v45  ;;  %6606 = vmatmul.mubr.msk.f32.gmra.mrb[34].mxu1 %vm832_vm4, %v456_v45  ;;  %v6964_v49 = vpop.f32.mrb[12].mxu1 }
 0x275   :  { %1496 = vmatpush1.bf16.msra.mxu0 %v7307_v43  ;;  %1537 = vmatpush1.bf16.msra.mxu1 %v7308_v44  ;;  %v470_v51 = vpop.f32.mrb[13].mxu1  ;;  %v476_v35 = vadd.f32 %v6964_v49, %v9229_v29  ;;  %v9306_v49 = vld [vmem:[#allocation10 + $0xec] ss:$16 sps:$4 sm:$0xff]  }
 0x276   :  { %933 = vmatprep.mubr.f32.mxu0 %v8646_v30  ;;  %1046 = vmatprep.mubr.f32.mxu1 %v8646_v30  ;;  %v471_v17 = vadd.f32 %v9229_v29, %v470_v51  ;;  %v9314_v51 = vld [vmem:[#allocation10 + $0xe8] ss:$16 sps:$4 sm:$0xff]  }
 0x277   :  { %1497 = vmatprep.subr.bf16.mxu0 %v7309_v47  ;;  %1538 = vmatprep.subr.bf16.mxu1 %v7311_v48  ;;  %v9304_v48 = vld [vmem:[#allocation10 + $0xe4] ss:$16 sps:$4 sm:$0xff]  }
 0x278   :  { %6599 = vmatmul.mubr.msk.f32.gmra.mrb[20].mxu0 %vm832_vm4, %v461_v52  ;;  %6607 = vmatmul.mubr.msk.f32.gmra.mrb[36].mxu1 %vm832_vm4, %v461_v52  ;;  %v9244_v42 = vpop.f32.mrb[14].mxu1 }
 0x279   :  { %1498 = vmatpush1.bf16.msra.mxu0 %v7313_v31  ;;  %1539 = vmatpush1.bf16.msra.mxu1 %v7314_v50  ;;  %v480_v55 = vpop.f32.mrb[15].mxu1  ;;  %v9312_v50 = vld [vmem:[#allocation10 + $0xe0] ss:$16 sps:$4 sm:$0xff]  }
 0x27a   :  { %939 = vmatprep.mubr.f32.mxu0 %v8646_v30  ;;  %1052 = vmatprep.mubr.f32.mxu1 %v8646_v30  ;;  %v481_v45 = vadd.f32 %v9229_v29, %v480_v55  ;;  %v9330_v55 = vld [vmem:[#allocation12 + $0xc] ss:$16 sps:$4 sm:$0xff]  }
 0x27b   :  { %1499 = vmatprep.subr.bf16.mxu0 %v7315_v54  ;;  %1540 = vmatprep.subr.bf16.mxu1 %v7317_v38  ;;  %v486_v38 = vadd.f32 %v9244_v42, %v9229_v29  ;;  %v9338_v42 = vld [vmem:[#allocation12 + $0x8] ss:$16 sps:$4 sm:$0xff]  }
 0x27c   :  { %6600 = vmatmul.mubr.msk.f32.gmra.mrb[22].mxu0 %vm832_vm4, %v466_v56  ;;  %6608 = vmatmul.mubr.msk.f32.gmra.mrb[38].mxu1 %vm832_vm4, %v466_v56  ;;  %v9254_v2 = vpop.f32.mrb[16].mxu1 }
 0x27d   :  { %1500 = vmatpush1.bf16.msra.mxu0 %v7319_v46  ;;  %1541 = vmatpush1.bf16.msra.mxu1 %v7320_v53  ;;  %v9259_v14 = vpop.f32.mrb[17].mxu1  ;;  %v9328_v53 = vld [vmem:[#allocation12 + $0x4] ss:$16 sps:$4 sm:$0xff]  }
 0x27e   :  { %945 = vmatprep.mubr.f32.mxu0 %v8646_v30  ;;  %1058 = vmatprep.mubr.f32.mxu1 %v8646_v30 }
 0x27f   :  { %1501 = vmatprep.subr.bf16.mxu0 %v7321_v60  ;;  %1542 = vmatprep.subr.bf16.mxu1 %v7323_v62  ;;  %v12457_v62 = vmov 0  }
 0x280   :  { %6601 = vmatmul.mubr.msk.f32.gmra.mrb[24].mxu0 %vm832_vm4, %v471_v17  ;;  %6609 = vmatmul.mubr.msk.f32.gmra.mrb[40].mxu1 %vm832_vm4, %v471_v17  ;;  %v733_v25 = vpop.f32.mrb[18].mxu1 }
 0x281   :  { %1502 = vmatpush1.bf16.msra.mxu0 %v7325_v6  ;;  %1543 = vmatpush1.bf16.msra.mxu1 %v7326_v9  ;;  %v9275_v33 = vadd.f32 %v733_v25, %v9266_v59  ;;  %v735_v34 = vpop.f32.mrb[19].mxu1  ;;  %v9345_v6 = vld [vmem:[#allocation12 + $0x24] ss:$16 sps:$4 sm:$0xff]   ;;  %v9347_v9 = vld [vmem:[#allocation12 + $0x2c] ss:$16 sps:$4 sm:$0xff]  }
 0x282   :  { %951 = vmatprep.mubr.f32.mxu0 %v8646_v30  ;;  %1064 = vmatprep.mubr.f32.mxu1 %v8646_v30  ;;  %v9281_v36 = vadd.f32 %v735_v34, %v9272_v23  ;;  %v9360_v25 = vld [vmem:[#allocation12 + $0x28] ss:$16 sps:$4 sm:$0xff]   ;;  %v9367_v34 = vld [vmem:[#allocation12 + $0x44] ss:$16 sps:$4 sm:$0xff]  }
 0x283   :  { %12908 = vst [vmem:[#allocation42_spill] sm:$0xff] %v9275_v33  ;;  %1503 = vmatprep.subr.bf16.mxu0 %v7327_v19  ;;  %1544 = vmatprep.subr.bf16.mxu1 %v7329_v21  ;;  %v9358_v21 = vld [vmem:[#allocation12 + $0x20] ss:$16 sps:$4 sm:$0xff]   ;;  %v9488_v33 = vld [vmem:[#allocation13 + $0x4c] ss:$16 sps:$4 sm:$0xff]  }
 0x284   :  { %12909 = vst [vmem:[#allocation43_spill] sm:$0xff] %v9281_v36  ;;  %6602 = vmatmul.mubr.msk.f32.gmra.mrb[26].mxu0 %vm832_vm4, %v476_v35  ;;  %6610 = vmatmul.mubr.msk.f32.gmra.mrb[42].mxu1 %vm832_vm4, %v476_v35  ;;  %v739_v39 = vpop.f32.mrb[20].mxu1  ;;  %v9369_v35 = vld [vmem:[#allocation12 + $0x4c] ss:$16 sps:$4 sm:$0xff]   ;;  %v9480_v36 = vld [vmem:[#allocation13 + $0x28] ss:$16 sps:$4 sm:$0xff]  }
 0x285   :  { %1504 = vmatpush1.bf16.msra.mxu0 %v7331_v27  ;;  %1545 = vmatpush1.bf16.msra.mxu1 %v7332_v32  ;;  %v9294_v43 = vadd.f32 %v739_v39, %v9266_v59  ;;  %v741_v44 = vpop.f32.mrb[21].mxu1  ;;  %12938 = vst [vmem:[#allocation71_spill] sm:$0xff] %v9480_v36  ;;  %12940 = vst [vmem:[#allocation73_spill] sm:$0xff] %v9488_v33 }
 0x286   :  { %957 = vmatprep.mubr.f32.mxu0 %v8646_v30  ;;  %1070 = vmatprep.mubr.f32.mxu1 %v8646_v30  ;;  %v9300_v47 = vadd.f32 %v741_v44, %v9272_v23 }
 0x287   :  { %12910 = vst [vmem:[#allocation44_spill] sm:$0xff] %v9294_v43  ;;  %1505 = vmatprep.subr.bf16.mxu0 %v9283_v61  ;;  %1546 = vmatprep.subr.bf16.mxu1 %v9285_v37  ;;  %v9476_v43 = vld [vmem:[#allocation13 + $0x2c] ss:$16 sps:$4 sm:$0xff]  }
 0x288   :  { %12911 = vst [vmem:[#allocation45_spill] sm:$0xff] %v9300_v47  ;;  %6603 = vmatmul.mubr.msk.f32.gmra.mrb[28].mxu0 %vm832_vm4, %v481_v45  ;;  %6611 = vmatmul.mubr.msk.f32.gmra.mrb[44].mxu1 %vm832_vm4, %v481_v45  ;;  %v745_v31 = vpop.f32.mrb[22].mxu1  ;;  %v9378_v45 = vld [vmem:[#allocation12 + $0x40] ss:$16 sps:$4 sm:$0xff]   ;;  %v9468_v47 = vld [vmem:[#allocation13 + $0x8] ss:$16 sps:$4 sm:$0xff]  }
 0x289   :  { %1506 = vmatpush1.bf16.msra.mxu0 %v9289_v40  ;;  %1547 = vmatpush1.bf16.msra.mxu1 %v9291_v41  ;;  %v9317_v52 = vadd.f32 %v745_v31, %v9266_v59  ;;  %v747_v54 = vpop.f32.mrb[23].mxu1  ;;  %v9380_v31 = vld [vmem:[#allocation12 + $0x48] ss:$16 sps:$4 sm:$0xff]   ;;  %12934 = vst [vmem:[#allocation67_spill] sm:$0xff] %v9468_v47  ;;  %12936 = vst [vmem:[#allocation69_spill] sm:$0xff] %v9476_v43 }
 0x28a   :  { %963 = vmatprep.mubr.f32.mxu0 %v8646_v30  ;;  %1076 = vmatprep.mubr.f32.mxu1 %v8646_v30  ;;  %v9324_v46 = vadd.f32 %v747_v54, %v9272_v23  ;;  %v9336_v30 = vld [vmem:[#allocation12] ss:$16 sps:$4 sm:$0xff]  }
 0x28b   :  { %12912 = vst [vmem:[#allocation46_spill] sm:$0xff] %v9317_v52  ;;  %1507 = vmatprep.subr.bf16.mxu0 %v9304_v48  ;;  %1548 = vmatprep.subr.bf16.mxu1 %v9306_v49  ;;  %v9464_v52 = vld [vmem:[#allocation13 + $0xc] ss:$16 sps:$4 sm:$0xff]  }
 0x28c   :  { %12913 = vst [vmem:[#allocation47_spill] sm:$0xff] %v9324_v46  ;;  %6604 = vmatmul.mubr.msk.f32.gmra.mrb[30].mxu0 %vm832_vm4, %v486_v38  ;;  %6612 = vmatmul.mubr.msk.f32.gmra.mrb[46].mxu1 %vm832_vm4, %v486_v38  ;;  %v751_v29 = vpop.f32.mrb[24].mxu1  ;;  %v12930_v46 = vmov 0   ;;  %12932 = vst [vmem:[#allocation65_spill] sm:$0xff] %v9464_v52 }
 0x28d   :  { %1508 = vmatpush1.bf16.msra.mxu0 %v9312_v50  ;;  %1549 = vmatpush1.bf16.msra.mxu1 %v9314_v51  ;;  %v9341_v56 = vadd.f32 %v751_v29, %v9266_v59  ;;  %v753_v60 = vpop.f32.mrb[25].mxu1  ;;  %v9387_v29 = vld [vmem:[#allocation12 + $0x64] ss:$16 sps:$4 sm:$0xff]  }
 0x28e   :  { %1525 = vmatprep.mubr.bf16.mxu0 %v12457_v62  ;;  %1566 = vmatprep.mubr.bf16.mxu1 %v12457_v62  ;;  %v9350_v17 = vadd.f32 %v753_v60, %v9272_v23  ;;  %v9389_v60 = vld [vmem:[#allocation12 + $0x6c] ss:$16 sps:$4 sm:$0xff]  }
 0x28f   :  { %12914 = vst [vmem:[#allocation48_spill] sm:$0xff] %v9341_v56  ;;  %1767 = vmatprep.subr.bf16.mxu0 %v9328_v53  ;;  %1808 = vmatprep.subr.bf16.mxu1 %v9330_v55  ;;  %v9450_v56 = vld [vmem:[#allocation12 + $0xe0] ss:$16 sps:$4 sm:$0xff]  }
 0x290   :  { %12915 = vst [vmem:[#allocation49_spill] sm:$0xff] %v9350_v17  ;;  %1526 = vmatmul.mubr.bf16.vlgmr.msra.gmra.mrb[32].mxu0 %v12457_v62  ;;  %1567 = vmatmul.mubr.bf16.vlgmr.msra.gmra.mrb[48].mxu1 %v12457_v62  ;;  %v757_v19 = vpop.f32.mrb[26].mxu1  ;;  %v9444_v17 = vld [vmem:[#allocation12 + $0xe4] ss:$16 sps:$4 sm:$0xff]   ;;  %12928 = vst [vmem:[#allocation62_spill] sm:$0xff] %v9450_v56 }
 0x291   :  { %1768 = vmatpush1.bf16.msra.mxu0 %v9336_v30  ;;  %1809 = vmatpush1.bf16.msra.mxu1 %v9338_v42  ;;  %v9363_v27 = vadd.f32 %v757_v19, %v9266_v59  ;;  %v759_v32 = vpop.f32.mrb[27].mxu1  ;;  %12926 = vst [vmem:[#allocation60_spill] sm:$0xff] %v9444_v17 }
 0x292   :  { %1769 = vmatprep.subr.bf16.mxu0 %v9345_v6  ;;  %1810 = vmatprep.subr.bf16.mxu1 %v9347_v9  ;;  %v9372_v39 = vadd.f32 %v759_v32, %v9272_v23 }
 0x293   :  { %12916 = vst [vmem:[#allocation50_spill] sm:$0xff] %v9363_v27  ;;  %1799 = vmatprep.mubr.bf16.mxu0 %v12457_v62  ;;  %1840 = vmatprep.mubr.bf16.mxu1 %v12457_v62  ;;  %v9396_v62 = vld [vmem:[#allocation12 + $0x60] ss:$16 sps:$4 sm:$0xff]  }
 0x294   :  { %12917 = vst [vmem:[#allocation51_spill] sm:$0xff] %v9372_v39  ;;  %v763_v44 = vpop.f32.mrb[28].mxu1  ;;  %v9432_v39 = vld [vmem:[#allocation12 + $0xc4] ss:$16 sps:$4 sm:$0xff]   ;;  %v9438_v27 = vld [vmem:[#allocation12 + $0xc0] ss:$16 sps:$4 sm:$0xff]  }
 0x295   :  { %1770 = vmatpush1.bf16.msra.mxu0 %v9358_v21  ;;  %1811 = vmatpush1.bf16.msra.mxu1 %v9360_v25  ;;  %v9383_v54 = vadd.f32 %v763_v44, %v9266_v59  ;;  %v765_v38 = vpop.f32.mrb[29].mxu1  ;;  %v9398_v44 = vld [vmem:[#allocation12 + $0x68] ss:$16 sps:$4 sm:$0xff]   ;;  %12922 = vst [vmem:[#allocation56_spill] sm:$0xff] %v9432_v39  ;;  %12924 = vst [vmem:[#allocation58_spill] sm:$0xff] %v9438_v27 }
 0x296   :  { %1771 = vmatprep.subr.bf16.mxu0 %v9367_v34  ;;  %1812 = vmatprep.subr.bf16.mxu1 %v9369_v35  ;;  %v9392_v19 = vadd.f32 %v765_v38, %v9272_v23  ;;  %v9407_v38 = vld [vmem:[#allocation12 + $0x8c] ss:$16 sps:$4 sm:$0xff]  }
 0x297   :  { %12918 = vst [vmem:[#allocation52_spill] sm:$0xff] %v9383_v54  ;;  %v9414_v54 = vld [vmem:[#allocation12 + $0x80] ss:$16 sps:$4 sm:$0xff]  }
 0x298   :  { %12919 = vst [vmem:[#allocation53_spill] sm:$0xff] %v9392_v19  ;;  %v769_v32 = vpop.f32.mrb[30].mxu1 }
 0x299   :  { %1772 = vmatpush1.bf16.msra.mxu0 %v9378_v45  ;;  %1813 = vmatpush1.bf16.msra.mxu1 %v9380_v31  ;;  %v9401_v28 = vadd.f32 %v769_v32, %v9266_v59  ;;  %v771_v26 = vpop.f32.mrb[31].mxu1  ;;  %v9416_v32 = vld [vmem:[#allocation12 + $0x88] ss:$16 sps:$4 sm:$0xff]  }
 0x29a   :  { %1773 = vmatprep.subr.bf16.mxu0 %v9387_v29  ;;  %1814 = vmatprep.subr.bf16.mxu1 %v9389_v60  ;;  %v9410_v19 = vadd.f32 %v771_v26, %v9272_v23  ;;  %v9426_v26 = vld [vmem:[#allocation12 + $0xa0] ss:$16 sps:$4 sm:$0xff]  }
 0x29b   :  { %12920 = vst [vmem:[#allocation54_spill] sm:$0xff] %v9401_v28  ;;  %v9420_v28 = vld [vmem:[#allocation12 + $0xa4] ss:$16 sps:$4 sm:$0xff]  }
 0x29c   :  { %12921 = vst [vmem:[#allocation55_spill] sm:$0xff] %v9410_v19  ;;  %v9428_v19 = vld [vmem:[#allocation12 + $0xa8] ss:$16 sps:$4 sm:$0xff]  }
 0x29d   :  { %1774 = vmatpush1.bf16.msra.mxu0 %v9396_v62  ;;  %1815 = vmatpush1.bf16.msra.mxu1 %v9398_v44 }
 0x29e   :  { %1775 = vmatprep.subr.bf16.mxu0 %v9405_v24  ;;  %1816 = vmatprep.subr.bf16.mxu1 %v9407_v38 }
 0x2a1   :  { %1776 = vmatpush1.bf16.msra.mxu0 %v9414_v54  ;;  %1817 = vmatpush1.bf16.msra.mxu1 %v9416_v32 }
 0x2a2   :  { %1777 = vmatprep.subr.bf16.mxu0 %v9420_v28  ;;  %1818 = vmatprep.subr.bf16.mxu1 %v9422_v22 }
 0x2a5   :  { %1778 = vmatpush1.bf16.msra.mxu0 %v9426_v26  ;;  %1819 = vmatpush1.bf16.msra.mxu1 %v9428_v19 }
 0x2a6   :  { %1779 = vmatprep.subr.bf16.mxu0 %v9432_v39  ;;  %1820 = vmatprep.subr.bf16.mxu1 %v9434_v20 }
 0x2a9   :  { %1780 = vmatpush1.bf16.msra.mxu0 %v9438_v27  ;;  %1821 = vmatpush1.bf16.msra.mxu1 %v9440_v18 }
 0x2aa   :  { %1781 = vmatprep.subr.bf16.mxu0 %v9444_v17  ;;  %1822 = vmatprep.subr.bf16.mxu1 %v9446_v16 }
 0x2ad   :  { %1782 = vmatpush1.bf16.msra.mxu0 %v9450_v56  ;;  %1823 = vmatpush1.bf16.msra.mxu1 %v9452_v15 }
 0x2ae   :  { %2038 = vmatprep.subr.bf16.mxu0 %v9462_v13  ;;  %2079 = vmatprep.subr.bf16.mxu1 %v9464_v52 }
 0x2b0   :  { %1800 = vmatmul.mubr.bf16.vlgmr.msra.gmra.mrb[36].mxu0 %v12930_v46  ;;  %1841 = vmatmul.mubr.bf16.vlgmr.msra.gmra.mrb[52].mxu1 %v12930_v46 }
 0x2b1   :  { %2070 = vmatprep.mubr.bf16.mxu0 %v12930_v46  ;;  %2111 = vmatprep.mubr.bf16.mxu1 %v12930_v46 }
 0x2b2   :  { %2039 = vmatpush1.bf16.msra.mxu0 %v9466_v12  ;;  %2080 = vmatpush1.bf16.msra.mxu1 %v9468_v47  ;;  %v9492_v47 = vld [vmem:[#allocation13 + $0x48] ss:$16 sps:$4 sm:$0xff]  }
 0x2b3   :  { %2040 = vmatprep.subr.bf16.mxu0 %v9474_v11  ;;  %2081 = vmatprep.subr.bf16.mxu1 %v9476_v43  ;;  %12942 = vst [vmem:[#allocation75_spill] sm:$0xff] %v9492_v47  ;;  %v9498_v43 = vld [vmem:[#allocation13 + $0x64] ss:$16 sps:$4 sm:$0xff]   ;;  %v9504_v11 = vld [vmem:[#allocation13 + $0x68] ss:$16 sps:$4 sm:$0xff]  }
 0x2b4   :  { %12943 = vst [vmem:[#allocation76_spill] sm:$0xff] %v9498_v43  ;;  %12946 = vst [vmem:[#allocation79_spill] sm:$0xff] %v9504_v11 }
 0x2b6   :  { %2041 = vmatpush1.bf16.msra.mxu0 %v9478_v10  ;;  %2082 = vmatpush1.bf16.msra.mxu1 %v9480_v36  ;;  %v9500_v10 = vld [vmem:[#allocation13 + $0x6c] ss:$16 sps:$4 sm:$0xff]   ;;  %v9502_v36 = vld [vmem:[#allocation13 + $0x60] ss:$16 sps:$4 sm:$0xff]  }
 0x2b7   :  { %2042 = vmatprep.subr.bf16.mxu0 %v9486_v8  ;;  %2083 = vmatprep.subr.bf16.mxu1 %v9488_v33  ;;  %12944 = vst [vmem:[#allocation77_spill] sm:$0xff] %v9500_v10  ;;  %12945 = vst [vmem:[#allocation78_spill] sm:$0xff] %v9502_v36  ;;  %v9510_v33 = vld [vmem:[#allocation13 + $0x84] ss:$16 sps:$4 sm:$0xff]   ;;  %v9516_v8 = vld [vmem:[#allocation13 + $0x88] ss:$16 sps:$4 sm:$0xff]  }
 0x2b8   :  { %12947 = vst [vmem:[#allocation80_spill] sm:$0xff] %v9510_v33  ;;  %12950 = vst [vmem:[#allocation83_spill] sm:$0xff] %v9516_v8 }
 0x2ba   :  { %2043 = vmatpush1.bf16.msra.mxu0 %v9490_v7  ;;  %2084 = vmatpush1.bf16.msra.mxu1 %v9492_v47  ;;  %v9512_v7 = vld [vmem:[#allocation13 + $0x8c] ss:$16 sps:$4 sm:$0xff]   ;;  %v9514_v47 = vld [vmem:[#allocation13 + $0x80] ss:$16 sps:$4 sm:$0xff]  }
 0x2bb   :  { %2044 = vmatprep.subr.bf16.mxu0 %v9498_v43  ;;  %2085 = vmatprep.subr.bf16.mxu1 %v9500_v10  ;;  %12948 = vst [vmem:[#allocation81_spill] sm:$0xff] %v9512_v7  ;;  %12949 = vst [vmem:[#allocation82_spill] sm:$0xff] %v9514_v47  ;;  %v9522_v10 = vld [vmem:[#allocation13 + $0xa4] ss:$16 sps:$4 sm:$0xff]   ;;  %v9528_v43 = vld [vmem:[#allocation13 + $0xa8] ss:$16 sps:$4 sm:$0xff]  }
 0x2bc   :  { %12951 = vst [vmem:[#allocation84_spill] sm:$0xff] %v9522_v10  ;;  %12954 = vst [vmem:[#allocation87_spill] sm:$0xff] %v9528_v43 }
 0x2be   :  { %2045 = vmatpush1.bf16.msra.mxu0 %v9502_v36  ;;  %2086 = vmatpush1.bf16.msra.mxu1 %v9504_v11  ;;  %v9524_v36 = vld [vmem:[#allocation13 + $0xac] ss:$16 sps:$4 sm:$0xff]   ;;  %v9526_v11 = vld [vmem:[#allocation13 + $0xa0] ss:$16 sps:$4 sm:$0xff]  }
 0x2bf   :  { %2046 = vmatprep.subr.bf16.mxu0 %v9510_v33  ;;  %2087 = vmatprep.subr.bf16.mxu1 %v9512_v7  ;;  %12952 = vst [vmem:[#allocation85_spill] sm:$0xff] %v9524_v36  ;;  %12953 = vst [vmem:[#allocation86_spill] sm:$0xff] %v9526_v11  ;;  %v9534_v7 = vld [vmem:[#allocation13 + $0xc4] ss:$16 sps:$4 sm:$0xff]   ;;  %v9540_v33 = vld [vmem:[#allocation13 + $0xc8] ss:$16 sps:$4 sm:$0xff]  }
 0x2c0   :  { %12955 = vst [vmem:[#allocation88_spill] sm:$0xff] %v9534_v7  ;;  %12958 = vst [vmem:[#allocation91_spill] sm:$0xff] %v9540_v33 }
 0x2c2   :  { %2047 = vmatpush1.bf16.msra.mxu0 %v9514_v47  ;;  %2088 = vmatpush1.bf16.msra.mxu1 %v9516_v8  ;;  %v9536_v47 = vld [vmem:[#allocation13 + $0xcc] ss:$16 sps:$4 sm:$0xff]   ;;  %v9538_v8 = vld [vmem:[#allocation13 + $0xc0] ss:$16 sps:$4 sm:$0xff]  }
 0x2c3   :  { %2048 = vmatprep.subr.bf16.mxu0 %v9522_v10  ;;  %2089 = vmatprep.subr.bf16.mxu1 %v9524_v36  ;;  %12956 = vst [vmem:[#allocation89_spill] sm:$0xff] %v9536_v47  ;;  %12957 = vst [vmem:[#allocation90_spill] sm:$0xff] %v9538_v8  ;;  %v9546_v36 = vld [vmem:[#allocation13 + $0xe4] ss:$16 sps:$4 sm:$0xff]   ;;  %v9552_v10 = vld [vmem:[#allocation13 + $0xe8] ss:$16 sps:$4 sm:$0xff]  }
 0x2c4   :  { %12959 = vst [vmem:[#allocation92_spill] sm:$0xff] %v9546_v36  ;;  %12962 = vst [vmem:[#allocation95_spill] sm:$0xff] %v9552_v10 }
 0x2c6   :  { %2049 = vmatpush1.bf16.msra.mxu0 %v9526_v11  ;;  %2090 = vmatpush1.bf16.msra.mxu1 %v9528_v43  ;;  %v9548_v11 = vld [vmem:[#allocation13 + $0xec] ss:$16 sps:$4 sm:$0xff]   ;;  %v9550_v43 = vld [vmem:[#allocation13 + $0xe0] ss:$16 sps:$4 sm:$0xff]  }
 0x2c7   :  { %2050 = vmatprep.subr.bf16.mxu0 %v9534_v7  ;;  %2091 = vmatprep.subr.bf16.mxu1 %v9536_v47  ;;  %12960 = vst [vmem:[#allocation93_spill] sm:$0xff] %v9548_v11  ;;  %12961 = vst [vmem:[#allocation94_spill] sm:$0xff] %v9550_v43  ;;  %v9558_v47 = vld [vmem:[#allocation15 + $0x4] ss:$16 sps:$4 sm:$0xff]  }
 0x2c8   :  { %12963 = vst [vmem:[#allocation96_spill] sm:$0xff] %v9558_v47 }
 0x2ca   :  { %2051 = vmatpush1.bf16.msra.mxu0 %v9538_v8  ;;  %2092 = vmatpush1.bf16.msra.mxu1 %v9540_v33  ;;  %v9560_v8 = vld [vmem:[#allocation15 + $0xc] ss:$16 sps:$4 sm:$0xff]  }
 0x2cb   :  { %2052 = vmatprep.subr.bf16.mxu0 %v9546_v36  ;;  %2093 = vmatprep.subr.bf16.mxu1 %v9548_v11  ;;  %12964 = vst [vmem:[#allocation97_spill] sm:$0xff] %v9560_v8  ;;  %v810_v33 = vld [vmem:[#allocation9] sm:$0xf] }
 0x2cc   :  { %v9579_v52 = vrot.slane %v810_v33, %v9174_v0 }
 0x2ce   :  { %2053 = vmatpush1.bf16.msra.mxu0 %v9550_v43  ;;  %2094 = vmatpush1.bf16.msra.mxu1 %v9552_v10  ;;  %v9573_v43 = vrot.slane %v810_v33, %v9171_v63  ;;  %v9576_v10 = vrot.slane %v810_v33, %v9250_v1 }
 0x2cf   :  { %2285 = vmatprep.subr.bf16.mxu0 %v9558_v47  ;;  %2326 = vmatprep.subr.bf16.mxu1 %v9560_v8  ;;  %v9582_v8 = vrot.slane %v810_v33, %v9257_v5 }
 0x343   :  { %v9564_v7 = vpop.f32.mrb[16].mxu0  ;;  %v9566_v12 = vpop.f32.mrb[32].mxu1 }
 0x344   :  { %v9568_v36 = vpop.f32.mrb[17].mxu0  ;;  %v9570_v11 = vpop.f32.mrb[33].mxu1 }
 0x347   :  { %v929_v47 = vpop.f32.mrb[18].mxu0  ;;  %v1042_v13 = vpop.f32.mrb[34].mxu1 }
 0x348   :  { %v9585_v15 = vadd.f32 %v929_v47, %v9573_v43  ;;  %v9588_v56 = vadd.f32 %v1042_v13, %v9576_v10  ;;  %v931_v16 = vpop.f32.mrb[19].mxu0  ;;  %v1044_v63 = vpop.f32.mrb[35].mxu1 }
 0x349   :  { %v9591_v17 = vadd.f32 %v931_v16, %v9579_v52  ;;  %v9594_v1 = vadd.f32 %v1044_v63, %v9582_v8 }
 0x34a   :  { %12965 = vst [vmem:[#allocation98_spill] sm:$0xff] %v9585_v15  ;;  %12966 = vst [vmem:[#allocation99_spill] sm:$0xff] %v9588_v56 }
 0x34b   :  { %12967 = vst [vmem:[#allocation100_spill] sm:$0xff] %v9591_v17  ;;  %12968 = vst [vmem:[#allocation101_spill] sm:$0xff] %v9594_v1  ;;  %v935_v0 = vpop.f32.mrb[20].mxu0  ;;  %v1048_v18 = vpop.f32.mrb[36].mxu1 }
 0x34c   :  { %v9597_v33 = vadd.f32 %v935_v0, %v9573_v43  ;;  %v9600_v5 = vadd.f32 %v1048_v18, %v9576_v10  ;;  %v937_v47 = vpop.f32.mrb[21].mxu0  ;;  %v1050_v15 = vpop.f32.mrb[37].mxu1 }
 0x34d   :  { %v9603_v13 = vadd.f32 %v937_v47, %v9579_v52  ;;  %v9606_v56 = vadd.f32 %v1050_v15, %v9582_v8 }
 0x34e   :  { %12969 = vst [vmem:[#allocation102_spill] sm:$0xff] %v9597_v33  ;;  %12970 = vst [vmem:[#allocation103_spill] sm:$0xff] %v9600_v5 }
 0x34f   :  { %12971 = vst [vmem:[#allocation104_spill] sm:$0xff] %v9603_v13  ;;  %12972 = vst [vmem:[#allocation105_spill] sm:$0xff] %v9606_v56  ;;  %v941_v16 = vpop.f32.mrb[22].mxu0  ;;  %v1054_v17 = vpop.f32.mrb[38].mxu1 }
 0x350   :  { %v9609_v63 = vadd.f32 %v941_v16, %v9573_v43  ;;  %v9612_v1 = vadd.f32 %v1054_v17, %v9576_v10  ;;  %v943_v0 = vpop.f32.mrb[23].mxu0  ;;  %v1056_v33 = vpop.f32.mrb[39].mxu1 }
 0x351   :  { %v9615_v18 = vadd.f32 %v943_v0, %v9579_v52  ;;  %v9618_v5 = vadd.f32 %v1056_v33, %v9582_v8 }
 0x352   :  { %12973 = vst [vmem:[#allocation106_spill] sm:$0xff] %v9609_v63  ;;  %12974 = vst [vmem:[#allocation107_spill] sm:$0xff] %v9612_v1 }
 0x353   :  { %12975 = vst [vmem:[#allocation108_spill] sm:$0xff] %v9615_v18  ;;  %12976 = vst [vmem:[#allocation109_spill] sm:$0xff] %v9618_v5  ;;  %v947_v47 = vpop.f32.mrb[24].mxu0  ;;  %v1060_v13 = vpop.f32.mrb[40].mxu1 }
 0x354   :  { %v9621_v15 = vadd.f32 %v947_v47, %v9573_v43  ;;  %v9624_v56 = vadd.f32 %v1060_v13, %v9576_v10  ;;  %v949_v16 = vpop.f32.mrb[25].mxu0  ;;  %v1062_v63 = vpop.f32.mrb[41].mxu1 }
 0x355   :  { %v9627_v17 = vadd.f32 %v949_v16, %v9579_v52  ;;  %v9630_v1 = vadd.f32 %v1062_v63, %v9582_v8 }
 0x356   :  { %12977 = vst [vmem:[#allocation110_spill] sm:$0xff] %v9621_v15  ;;  %12978 = vst [vmem:[#allocation111_spill] sm:$0xff] %v9624_v56 }
 0x357   :  { %12979 = vst [vmem:[#allocation112_spill] sm:$0xff] %v9627_v17  ;;  %12980 = vst [vmem:[#allocation113_spill] sm:$0xff] %v9630_v1  ;;  %v953_v0 = vpop.f32.mrb[26].mxu0  ;;  %v1066_v18 = vpop.f32.mrb[42].mxu1 }
 0x358   :  { %v9633_v33 = vadd.f32 %v953_v0, %v9573_v43  ;;  %v9636_v5 = vadd.f32 %v1066_v18, %v9576_v10  ;;  %v955_v47 = vpop.f32.mrb[27].mxu0  ;;  %v1068_v15 = vpop.f32.mrb[43].mxu1 }
 0x359   :  { %v9639_v13 = vadd.f32 %v955_v47, %v9579_v52  ;;  %v9642_v56 = vadd.f32 %v1068_v15, %v9582_v8 }
 0x35a   :  { %12981 = vst [vmem:[#allocation114_spill] sm:$0xff] %v9633_v33  ;;  %12982 = vst [vmem:[#allocation115_spill] sm:$0xff] %v9636_v5 }
 0x35b   :  { %12983 = vst [vmem:[#allocation116_spill] sm:$0xff] %v9639_v13  ;;  %12984 = vst [vmem:[#allocation117_spill] sm:$0xff] %v9642_v56  ;;  %v959_v16 = vpop.f32.mrb[28].mxu0  ;;  %v1072_v17 = vpop.f32.mrb[44].mxu1 }
 0x35c   :  { %v9645_v63 = vadd.f32 %v959_v16, %v9573_v43  ;;  %v9648_v1 = vadd.f32 %v1072_v17, %v9576_v10  ;;  %v961_v0 = vpop.f32.mrb[29].mxu0  ;;  %v1074_v33 = vpop.f32.mrb[45].mxu1 }
 0x35d   :  { %v9651_v18 = vadd.f32 %v961_v0, %v9579_v52  ;;  %v9654_v5 = vadd.f32 %v1074_v33, %v9582_v8  ;;  %v615_v33 = vadd.f32 %v9162_v57, %v9178_v3  ;;  %v728_v0 = vadd.f32 %v9254_v2, %v9266_v59 }
 0x35e   :  { %12985 = vst [vmem:[#allocation118_spill] sm:$0xff] %v9645_v63  ;;  %12986 = vst [vmem:[#allocation119_spill] sm:$0xff] %v9648_v1 }
 0x35f   :  { %12987 = vst [vmem:[#allocation120_spill] sm:$0xff] %v9651_v18  ;;  %12988 = vst [vmem:[#allocation121_spill] sm:$0xff] %v9654_v5  ;;  %v965_v47 = vpop.f32.mrb[30].mxu0  ;;  %v1078_v13 = vpop.f32.mrb[46].mxu1 }
 0x360   :  { %v9657_v15 = vadd.f32 %v965_v47, %v9573_v43  ;;  %v9660_v56 = vadd.f32 %v1078_v13, %v9576_v10  ;;  %v967_v16 = vpop.f32.mrb[31].mxu0  ;;  %v1080_v63 = vpop.f32.mrb[47].mxu1  ;;  %v617_v47 = vadd.f32 %v9164_v58, %v9182_v4  ;;  %v730_v13 = vadd.f32 %v9259_v14, %v9272_v23 }
 0x361   :  { %v9663_v17 = vadd.f32 %v967_v16, %v9579_v52  ;;  %v9666_v1 = vadd.f32 %v1080_v63, %v9582_v8 }
 0x362   :  { %12989 = vst [vmem:[#allocation122_spill] sm:$0xff] %v9657_v15  ;;  %12990 = vst [vmem:[#allocation123_spill] sm:$0xff] %v9660_v56 }
 0x363   :  { %12991 = vst [vmem:[#allocation124_spill] sm:$0xff] %v9663_v17  ;;  %12992 = vst [vmem:[#allocation125_spill] sm:$0xff] %v9666_v1  ;;  %v1527_v56 = vpop.f32.mrb[32].mxu0  ;;  %v1568_v15 = vpop.f32.mrb[48].mxu1 }
 0x364   :  { %v1575_v5 = vadd.f32 %v1527_v56, %v615_v33  ;;  %v1577_v16 = vadd.f32 %v1568_v15, %v728_v0  ;;  %v1529_v17 = vpop.f32.mrb[33].mxu0  ;;  %v1570_v18 = vpop.f32.mrb[49].mxu1  ;;  %v926_v33 = vadd.f32 %v9568_v36, %v9579_v52  ;;  %v1039_v0 = vadd.f32 %v9570_v11, %v9582_v8 }
 0x365   :  { %v1576_v63 = vadd.f32 %v1529_v17, %v617_v47  ;;  %v1578_v1 = vadd.f32 %v1570_v18, %v730_v13  ;;  %v1531_v27 = vpop.f32.mrb[34].mxu0  ;;  %v1572_v20 = vpop.f32.mrb[50].mxu1 }
 0x366   :  { %v6645_v57 = vmul.f32 -1.442695, %v1575_v5  ;;  %v1532_v3 = vpop.f32.mrb[35].mxu0  ;;  %v1573_v39 = vpop.f32.mrb[51].mxu1 }
 0x367   :  { %v6646_v2 = vmul.f32 -1.442695, %v1576_v63  ;;  %v6647_v58 = vmul.f32 -1.442695, %v1578_v1  ;;  %v924_v39 = vadd.f32 %v9564_v7, %v9573_v43  ;;  %v1037_v1 = vadd.f32 %v9566_v12, %v9576_v10 }
 0x368   :  { %7537 = vpow2.f32 %v6645_v57 }
 0x369   :  { %7539 = vpow2.f32 %v6646_v2 }
 0x36a   :  { %7541 = vpow2.f32 %v6647_v58 }
 0x36b   :  { %7543 = vtanh.f32 %v1577_v16 }
 0x372   :  { %v7538_v4 = vpop.eup %7537 }
 0x373   :  { %v7540_v59 = vpop.eup %7539  ;;  %v1582_v14 = vadd.f32 1.0, %v7538_v4 }
 0x374   :  { %v1588_v23 = vadd.f32 1.0, %v7540_v59  ;;  %v7542_v56 = vpop.eup %7541 }
 0x375   :  { %7545 = vrcp.f32 %v1582_v14  ;;  %v7544_v15 = vpop.eup %7543  ;;  %v1595_v5 = vadd.f32 1.0, %v7542_v56  ;;  %v9689_v56 = vld [vmem:[#allocation15 + $0x8] ss:$16 sps:$4 sm:$0xff]  }
 0x376   :  { %7547 = vrcp.f32 %v1588_v23  ;;  %v9687_v23 = vld [vmem:[#allocation15] ss:$16 sps:$4 sm:$0xff]  }
 0x377   :  { %7549 = vrcp.f32 %v1595_v5 }
 0x37f   :  { %v7546_v18 = vpop.eup %7545 }
 0x380   :  { %v7548_v27 = vpop.eup %7547  ;;  %v1599_v20 = vmul.f32 %v7546_v18, %v7544_v15 }
 0x381   :  { %v1598_v17 = vmul.f32 0.0, %v7548_v27  ;;  %v7550_v8 = vpop.eup %7549  ;;  %v9693_v27 = vld [vmem:[#allocation15 + $0x24] ss:$16 sps:$4 sm:$0xff]  }
 0x383   :  { %v9684_v47 = vadd.f32 %v1599_v20, %v1598_v17  ;;  %v1801_v13 = vpop.f32.mrb[36].mxu0  ;;  %v1842_v16 = vpop.f32.mrb[52].mxu1  ;;  %v9695_v20 = vld [vmem:[#allocation15 + $0x2c] ss:$16 sps:$4 sm:$0xff]  }
 0x384   :  { %v1849_v63 = vadd.f32 %v1801_v13, %v924_v39  ;;  %v1851_v57 = vadd.f32 %v1842_v16, %v1037_v1  ;;  %v1803_v3 = vpop.f32.mrb[37].mxu0  ;;  %v1844_v2 = vpop.f32.mrb[53].mxu1  ;;  %v9701_v1 = vld [vmem:[#allocation15 + $0x20] ss:$16 sps:$4 sm:$0xff]   ;;  %v9709_v13 = vld [vmem:[#allocation15 + $0x4c] ss:$16 sps:$4 sm:$0xff]  }
 0x385   :  { %7551 = vtanh.f32 %v9684_v47  ;;  %v1850_v7 = vadd.f32 %v1803_v3, %v926_v33  ;;  %v1852_v43 = vadd.f32 %v1844_v2, %v1039_v0  ;;  %v1805_v10 = vpop.f32.mrb[38].mxu0  ;;  %v1846_v12 = vpop.f32.mrb[54].mxu1  ;;  %v9703_v33 = vld [vmem:[#allocation15 + $0x28] ss:$16 sps:$4 sm:$0xff]   ;;  %v9707_v0 = vld [vmem:[#allocation15 + $0x44] ss:$16 sps:$4 sm:$0xff]  }
 0x386   :  { %v6680_v58 = vmul.f32 -1.442695, %v1849_v63  ;;  %v1806_v36 = vpop.f32.mrb[39].mxu0  ;;  %v1847_v52 = vpop.f32.mrb[55].mxu1  ;;  %v9715_v16 = vld [vmem:[#allocation15 + $0x40] ss:$16 sps:$4 sm:$0xff]  }
 0x387   :  { %v6681_v4 = vmul.f32 -1.442695, %v1850_v7  ;;  %v6682_v59 = vmul.f32 -1.442695, %v1852_v43  ;;  %v9717_v63 = vld [vmem:[#allocation15 + $0x48] ss:$16 sps:$4 sm:$0xff]  }
 0x388   :  { %7553 = vpow2.f32 %v6680_v58  ;;  %v9723_v3 = vld [vmem:[#allocation15 + $0x6c] ss:$16 sps:$4 sm:$0xff]   ;;  %v9727_v7 = vld [vmem:[#allocation15 + $0x60] ss:$16 sps:$4 sm:$0xff]   ;;  %v9729_v43 = vld [vmem:[#allocation15 + $0x68] ss:$16 sps:$4 sm:$0xff]  }
 0x389   :  { %7555 = vpow2.f32 %v6681_v4  ;;  %v9733_v12 = vld [vmem:[#allocation15 + $0x84] ss:$16 sps:$4 sm:$0xff]   ;;  %v9735_v58 = vld [vmem:[#allocation15 + $0x8c] ss:$16 sps:$4 sm:$0xff]  }
 0x38a   :  { %7557 = vpow2.f32 %v6682_v59  ;;  %v9739_v59 = vld [vmem:[#allocation15 + $0x80] ss:$16 sps:$4 sm:$0xff]  }
 0x38b   :  { %7559 = vtanh.f32 %v1851_v57  ;;  %v9721_v57 = vld [vmem:[#allocation15 + $0x64] ss:$16 sps:$4 sm:$0xff]   ;;  %12993 = vst [vmem:[#allocation126_spill] sm:$0xff] %v9739_v59 }
 0x38f   :  { %v7552_v11 = vpop.eup %7551 }
 0x390   :  { %v1602_v14 = vmul.f32 %v7552_v11, %v7550_v8 }
 0x392   :  { %v7554_v15 = vpop.eup %7553  ;;  %v9691_v18 = vpack.c.bf16 %v1602_v14, %v1602_v14  ;;  %v9741_v14 = vld [vmem:[#allocation15 + $0x88] ss:$16 sps:$4 sm:$0xff]  }
 0x393   :  { %v7556_v5 = vpop.eup %7555  ;;  %v1856_v17 = vadd.f32 1.0, %v7554_v15  ;;  %12994 = vst [vmem:[#allocation127_spill] sm:$0xff] %v9741_v14  ;;  %v9745_v15 = vld [vmem:[#allocation15 + $0xa4] ss:$16 sps:$4 sm:$0xff]  }
 0x394   :  { %v1862_v39 = vadd.f32 1.0, %v7556_v5  ;;  %2071 = vmatmul.mubr.bf16.vlgmr.msra.gmra.mrb[40].mxu0 %v9691_v18  ;;  %2112 = vmatmul.mubr.bf16.vlgmr.msra.gmra.mrb[56].mxu1 %v9691_v18  ;;  %v7558_v2 = vpop.eup %7557  ;;  %12995 = vst [vmem:[#allocation128_spill] sm:$0xff] %v9745_v15  ;;  %v9747_v5 = vld [vmem:[#allocation15 + $0xac] ss:$16 sps:$4 sm:$0xff]  }
 0x395   :  { %7561 = vrcp.f32 %v1856_v17  ;;  %2286 = vmatpush1.bf16.msra.mxu0 %v9687_v23  ;;  %2327 = vmatpush1.bf16.msra.mxu1 %v9689_v56  ;;  %v7560_v10 = vpop.eup %7559  ;;  %v1869_v8 = vadd.f32 1.0, %v7558_v2  ;;  %12996 = vst [vmem:[#allocation129_spill] sm:$0xff] %v9747_v5  ;;  %v9756_v2 = vld [vmem:[#allocation15 + $0xa8] ss:$16 sps:$4 sm:$0xff]  }
 0x396   :  { %7563 = vrcp.f32 %v1862_v39  ;;  %2287 = vmatprep.subr.bf16.mxu0 %v9693_v27  ;;  %2328 = vmatprep.subr.bf16.mxu1 %v9695_v20  ;;  %v9754_v39 = vld [vmem:[#allocation15 + $0xa0] ss:$16 sps:$4 sm:$0xff]   ;;  %12998 = vst [vmem:[#allocation131_spill] sm:$0xff] %v9756_v2 }
 0x397   :  { %2317 = vmatprep.mubr.bf16.mxu0 %v12930_v46  ;;  %2358 = vmatprep.mubr.bf16.mxu1 %v12930_v46  ;;  %7565 = vrcp.f32 %v1869_v8  ;;  %12997 = vst [vmem:[#allocation130_spill] sm:$0xff] %v9754_v39  ;;  %v9772_v8 = vld [vmem:[#allocation15 + $0xe4] ss:$16 sps:$4 sm:$0xff]  }
 0x398   :  { %13003 = vst [vmem:[#allocation136_spill] sm:$0xff] %v9772_v8 }
 0x399   :  { %2288 = vmatpush1.bf16.msra.mxu0 %v9701_v1  ;;  %2329 = vmatpush1.bf16.msra.mxu1 %v9703_v33 }
 0x39a   :  { %2289 = vmatprep.subr.bf16.mxu0 %v9707_v0  ;;  %2330 = vmatprep.subr.bf16.mxu1 %v9709_v13 }
 0x39d   :  { %2290 = vmatpush1.bf16.msra.mxu0 %v9715_v16  ;;  %2331 = vmatpush1.bf16.msra.mxu1 %v9717_v63 }
 0x39e   :  { %2291 = vmatprep.subr.bf16.mxu0 %v9721_v57  ;;  %2332 = vmatprep.subr.bf16.mxu1 %v9723_v3 }
 0x39f   :  { %v7562_v36 = vpop.eup %7561 }
 0x3a0   :  { %v7564_v52 = vpop.eup %7563  ;;  %v1873_v4 = vmul.f32 %v7562_v36, %v7560_v10  ;;  %v9760_v10 = vld [vmem:[#allocation15 + $0xc4] ss:$16 sps:$4 sm:$0xff]   ;;  %v9762_v36 = vld [vmem:[#allocation15 + $0xcc] ss:$16 sps:$4 sm:$0xff]  }
 0x3a1   :  { %v1872_v11 = vmul.f32 0.0, %v7564_v52  ;;  %2292 = vmatpush1.bf16.msra.mxu0 %v9727_v7  ;;  %2333 = vmatpush1.bf16.msra.mxu1 %v9729_v43  ;;  %12999 = vst [vmem:[#allocation132_spill] sm:$0xff] %v9760_v10  ;;  %13000 = vst [vmem:[#allocation133_spill] sm:$0xff] %v9762_v36  ;;  %v9766_v52 = vld [vmem:[#allocation15 + $0xc0] ss:$16 sps:$4 sm:$0xff]  }
 0x3a2   :  { %2293 = vmatprep.subr.bf16.mxu0 %v9733_v12  ;;  %2334 = vmatprep.subr.bf16.mxu1 %v9735_v58  ;;  %13001 = vst [vmem:[#allocation134_spill] sm:$0xff] %v9766_v52 }
 0x3a3   :  { %v9749_v17 = vadd.f32 %v1873_v4, %v1872_v11  ;;  %v9768_v4 = vld [vmem:[#allocation15 + $0xc8] ss:$16 sps:$4 sm:$0xff]   ;;  %v9774_v11 = vld [vmem:[#allocation15 + $0xec] ss:$16 sps:$4 sm:$0xff]  }
 0x3a4   :  { %13002 = vst [vmem:[#allocation135_spill] sm:$0xff] %v9768_v4  ;;  %13004 = vst [vmem:[#allocation137_spill] sm:$0xff] %v9774_v11 }
 0x3a5   :  { %7567 = vtanh.f32 %v9749_v17  ;;  %2294 = vmatpush1.bf16.msra.mxu0 %v9739_v59  ;;  %2335 = vmatpush1.bf16.msra.mxu1 %v9741_v14 }
 0x3a6   :  { %2295 = vmatprep.subr.bf16.mxu0 %v9745_v15  ;;  %2336 = vmatprep.subr.bf16.mxu1 %v9747_v5  ;;  %v9778_v5 = vld [vmem:[#allocation15 + $0xe0] ss:$16 sps:$4 sm:$0xff]  }
 0x3a9   :  { %2296 = vmatpush1.bf16.msra.mxu0 %v9754_v39  ;;  %2337 = vmatpush1.bf16.msra.mxu1 %v9756_v2  ;;  %v9780_v39 = vld [vmem:[#allocation15 + $0xe8] ss:$16 sps:$4 sm:$0xff]   ;;  %v7566_v2 = vpop.eup %7565 }
 0x3aa   :  { %2297 = vmatprep.subr.bf16.mxu0 %v9760_v10  ;;  %2338 = vmatprep.subr.bf16.mxu1 %v9762_v36  ;;  %v9784_v10 = vld [vmem:[#allocation16 + $0x4] ss:$16 sps:$4 sm:$0xff]   ;;  %v9786_v36 = vld [vmem:[#allocation16 + $0xc] ss:$16 sps:$4 sm:$0xff]  }
 0x3ab   :  { %13005 = vst [vmem:[#allocation138_spill] sm:$0xff] %v9784_v10  ;;  %13006 = vst [vmem:[#allocation139_spill] sm:$0xff] %v9786_v36 }
 0x3ad   :  { %2298 = vmatpush1.bf16.msra.mxu0 %v9766_v52  ;;  %2339 = vmatpush1.bf16.msra.mxu1 %v9768_v4  ;;  %v9790_v4 = vld [vmem:[#allocation16] ss:$16 sps:$4 sm:$0xff]   ;;  %v9792_v52 = vld [vmem:[#allocation16 + $0x8] ss:$16 sps:$4 sm:$0xff]  }
 0x3ae   :  { %2299 = vmatprep.subr.bf16.mxu0 %v9772_v8  ;;  %2340 = vmatprep.subr.bf16.mxu1 %v9774_v11  ;;  %13007 = vst [vmem:[#allocation140_spill] sm:$0xff] %v9790_v4  ;;  %13008 = vst [vmem:[#allocation141_spill] sm:$0xff] %v9792_v52  ;;  %v9798_v11 = vld [vmem:[#allocation16 + $0x24] ss:$16 sps:$4 sm:$0xff]   ;;  %v9800_v8 = vld [vmem:[#allocation16 + $0x2c] ss:$16 sps:$4 sm:$0xff]  }
 0x3af   :  { %v7568_v15 = vpop.eup %7567  ;;  %13009 = vst [vmem:[#allocation142_spill] sm:$0xff] %v9798_v11  ;;  %13010 = vst [vmem:[#allocation143_spill] sm:$0xff] %v9800_v8 }
 0x3b0   :  { %v1876_v14 = vmul.f32 %v7568_v15, %v7566_v2  ;;  %v9806_v15 = vld [vmem:[#allocation16 + $0x20] ss:$16 sps:$4 sm:$0xff]   ;;  %v9812_v2 = vld [vmem:[#allocation16 + $0x44] ss:$16 sps:$4 sm:$0xff]  }
 0x3b1   :  { %2300 = vmatpush1.bf16.msra.mxu0 %v9778_v5  ;;  %2341 = vmatpush1.bf16.msra.mxu1 %v9780_v39  ;;  %13011 = vst [vmem:[#allocation144_spill] sm:$0xff] %v9806_v15  ;;  %13013 = vst [vmem:[#allocation146_spill] sm:$0xff] %v9812_v2 }
 0x3b2   :  { %v9794_v59 = vpack.c.bf16 %v1876_v14, %v1876_v14  ;;  %2531 = vmatprep.subr.bf16.mxu0 %v9784_v10  ;;  %2572 = vmatprep.subr.bf16.mxu1 %v9786_v36  ;;  %v9808_v14 = vld [vmem:[#allocation16 + $0x28] ss:$16 sps:$4 sm:$0xff]   ;;  %v9814_v36 = vld [vmem:[#allocation16 + $0x4c] ss:$16 sps:$4 sm:$0xff]   ;;  %v9832_v10 = vld [vmem:[#allocation16 + $0x60] ss:$16 sps:$4 sm:$0xff]  }
 0x3b3   :  { %13012 = vst [vmem:[#allocation145_spill] sm:$0xff] %v9808_v14  ;;  %13014 = vst [vmem:[#allocation147_spill] sm:$0xff] %v9814_v36 }
 0x3b4   :  { %2318 = vmatmul.mubr.bf16.vlgmr.msra.gmra.mrb[40].mxu0 %v9794_v59  ;;  %2359 = vmatmul.mubr.bf16.vlgmr.msra.gmra.mrb[56].mxu1 %v9794_v59  ;;  %13019 = vst [vmem:[#allocation152_spill] sm:$0xff] %v9832_v10 }
 0x3b5   :  { %2532 = vmatpush1.bf16.msra.mxu0 %v9790_v4  ;;  %2573 = vmatpush1.bf16.msra.mxu1 %v9792_v52  ;;  %v9820_v52 = vld [vmem:[#allocation16 + $0x40] ss:$16 sps:$4 sm:$0xff]   ;;  %v9822_v4 = vld [vmem:[#allocation16 + $0x48] ss:$16 sps:$4 sm:$0xff]  }
 0x3b6   :  { %2533 = vmatprep.subr.bf16.mxu0 %v9798_v11  ;;  %2574 = vmatprep.subr.bf16.mxu1 %v9800_v8  ;;  %13015 = vst [vmem:[#allocation148_spill] sm:$0xff] %v9820_v52  ;;  %13016 = vst [vmem:[#allocation149_spill] sm:$0xff] %v9822_v4  ;;  %v9826_v8 = vld [vmem:[#allocation16 + $0x64] ss:$16 sps:$4 sm:$0xff]   ;;  %v9828_v11 = vld [vmem:[#allocation16 + $0x6c] ss:$16 sps:$4 sm:$0xff]  }
 0x3b7   :  { %2563 = vmatprep.mubr.bf16.mxu0 %v12930_v46  ;;  %2604 = vmatprep.mubr.bf16.mxu1 %v12930_v46  ;;  %13017 = vst [vmem:[#allocation150_spill] sm:$0xff] %v9826_v8  ;;  %13018 = vst [vmem:[#allocation151_spill] sm:$0xff] %v9828_v11 }
 0x3b9   :  { %2534 = vmatpush1.bf16.msra.mxu0 %v9806_v15  ;;  %2575 = vmatpush1.bf16.msra.mxu1 %v9808_v14  ;;  %v9834_v15 = vld [vmem:[#allocation16 + $0x68] ss:$16 sps:$4 sm:$0xff]   ;;  %v9838_v14 = vld [vmem:[#allocation16 + $0x84] ss:$16 sps:$4 sm:$0xff]  }
 0x3ba   :  { %2535 = vmatprep.subr.bf16.mxu0 %v9812_v2  ;;  %2576 = vmatprep.subr.bf16.mxu1 %v9814_v36  ;;  %13020 = vst [vmem:[#allocation153_spill] sm:$0xff] %v9834_v15  ;;  %13021 = vst [vmem:[#allocation154_spill] sm:$0xff] %v9838_v14  ;;  %v9840_v2 = vld [vmem:[#allocation16 + $0x8c] ss:$16 sps:$4 sm:$0xff]   ;;  %v9844_v36 = vld [vmem:[#allocation16 + $0x80] ss:$16 sps:$4 sm:$0xff]  }
 0x3bb   :  { %13022 = vst [vmem:[#allocation155_spill] sm:$0xff] %v9840_v2  ;;  %13023 = vst [vmem:[#allocation156_spill] sm:$0xff] %v9844_v36 }
 0x3bd   :  { %2536 = vmatpush1.bf16.msra.mxu0 %v9820_v52  ;;  %2577 = vmatpush1.bf16.msra.mxu1 %v9822_v4  ;;  %v9846_v52 = vld [vmem:[#allocation16 + $0x88] ss:$16 sps:$4 sm:$0xff]   ;;  %v9850_v4 = vld [vmem:[#allocation16 + $0xa4] ss:$16 sps:$4 sm:$0xff]  }
 0x3be   :  { %2537 = vmatprep.subr.bf16.mxu0 %v9826_v8  ;;  %2578 = vmatprep.subr.bf16.mxu1 %v9828_v11  ;;  %13024 = vst [vmem:[#allocation157_spill] sm:$0xff] %v9846_v52  ;;  %13025 = vst [vmem:[#allocation158_spill] sm:$0xff] %v9850_v4  ;;  %v9852_v8 = vld [vmem:[#allocation16 + $0xac] ss:$16 sps:$4 sm:$0xff]   ;;  %v9856_v11 = vld [vmem:[#allocation16 + $0xa0] ss:$16 sps:$4 sm:$0xff]  }
 0x3bf   :  { %13026 = vst [vmem:[#allocation159_spill] sm:$0xff] %v9852_v8  ;;  %13027 = vst [vmem:[#allocation160_spill] sm:$0xff] %v9856_v11 }
 0x3c1   :  { %2538 = vmatpush1.bf16.msra.mxu0 %v9832_v10  ;;  %2579 = vmatpush1.bf16.msra.mxu1 %v9834_v15  ;;  %v9858_v10 = vld [vmem:[#allocation16 + $0xa8] ss:$16 sps:$4 sm:$0xff]   ;;  %v9862_v15 = vld [vmem:[#allocation16 + $0xc4] ss:$16 sps:$4 sm:$0xff]  }
 0x3c2   :  { %2539 = vmatprep.subr.bf16.mxu0 %v9838_v14  ;;  %2580 = vmatprep.subr.bf16.mxu1 %v9840_v2  ;;  %13028 = vst [vmem:[#allocation161_spill] sm:$0xff] %v9862_v15  ;;  %v9864_v14 = vld [vmem:[#allocation16 + $0xcc] ss:$16 sps:$4 sm:$0xff]   ;;  %v9868_v2 = vld [vmem:[#allocation16 + $0xc0] ss:$16 sps:$4 sm:$0xff]  }
 0x3c3   :  { %13029 = vst [vmem:[#allocation162_spill] sm:$0xff] %v9864_v14 }
 0x3c5   :  { %2540 = vmatpush1.bf16.msra.mxu0 %v9844_v36  ;;  %2581 = vmatpush1.bf16.msra.mxu1 %v9846_v52  ;;  %v9870_v36 = vld [vmem:[#allocation16 + $0xc8] ss:$16 sps:$4 sm:$0xff]   ;;  %v9874_v52 = vld [vmem:[#allocation16 + $0xe4] ss:$16 sps:$4 sm:$0xff]  }
 0x3c6   :  { %2541 = vmatprep.subr.bf16.mxu0 %v9850_v4  ;;  %2582 = vmatprep.subr.bf16.mxu1 %v9852_v8  ;;  %13030 = vst [vmem:[#allocation163_spill] sm:$0xff] %v9870_v36  ;;  %v9876_v4 = vld [vmem:[#allocation16 + $0xec] ss:$16 sps:$4 sm:$0xff]   ;;  %v9880_v8 = vld [vmem:[#allocation16 + $0xe0] ss:$16 sps:$4 sm:$0xff]  }
 0x3c7   :  { %13031 = vst [vmem:[#allocation164_spill] sm:$0xff] %v9876_v4  ;;  %13032 = vst [vmem:[#allocation165_spill] sm:$0xff] %v9880_v8 }
 0x3c9   :  { %2542 = vmatpush1.bf16.msra.mxu0 %v9856_v11  ;;  %2583 = vmatpush1.bf16.msra.mxu1 %v9858_v10  ;;  %v9882_v11 = vld [vmem:[#allocation16 + $0xe8] ss:$16 sps:$4 sm:$0xff]  }
 0x3ca   :  { %2543 = vmatprep.subr.bf16.mxu0 %v9862_v15  ;;  %2584 = vmatprep.subr.bf16.mxu1 %v9864_v14  ;;  %13033 = vst [vmem:[#allocation166_spill] sm:$0xff] %v9882_v11  ;;  %v9888_v14 = vld [vmem:[#allocation10 + $0x4] ss:$16 sps:$4 sm:$0xff]   ;;  %v9891_v15 = vld [vmem:[#allocation10 + $0xc] ss:$16 sps:$4 sm:$0xff]  }
 0x3cb   :  { %13034 = vst [vmem:[#allocation167_spill] sm:$0xff] %v9888_v14  ;;  %13035 = vst [vmem:[#allocation168_spill] sm:$0xff] %v9891_v15 }
 0x3cd   :  { %2544 = vmatpush1.bf16.msra.mxu0 %v9868_v2  ;;  %2585 = vmatpush1.bf16.msra.mxu1 %v9870_v36  ;;  %v9896_v36 = vld [vmem:[#allocation10] ss:$16 sps:$4 sm:$0xff]  }
 0x3ce   :  { %2545 = vmatprep.subr.bf16.mxu0 %v9874_v52  ;;  %2586 = vmatprep.subr.bf16.mxu1 %v9876_v4  ;;  %13036 = vst [vmem:[#allocation169_spill] sm:$0xff] %v9896_v36  ;;  %v9899_v4 = vld [vmem:[#allocation10 + $0x8] ss:$16 sps:$4 sm:$0xff]  }
 0x3cf   :  { %13037 = vst [vmem:[#allocation170_spill] sm:$0xff] %v9899_v4 }
 0x3d1   :  { %2546 = vmatpush1.bf16.msra.mxu0 %v9880_v8  ;;  %2587 = vmatpush1.bf16.msra.mxu1 %v9882_v11  ;;  %v9902_v11 = vld [vmem:[#allocation10 + $0x24] ss:$16 sps:$4 sm:$0xff]   ;;  %v9925_v8 = vld [vmem:[#allocation10 + $0x48] ss:$16 sps:$4 sm:$0xff]  }
 0x3d2   :  { %2647 = vmatprep.subr.bf16.mxu0 %v9888_v14  ;;  %2688 = vmatprep.subr.bf16.mxu1 %v9891_v15  ;;  %13038 = vst [vmem:[#allocation171_spill] sm:$0xff] %v9902_v11  ;;  %v9905_v14 = vld [vmem:[#allocation10 + $0x2c] ss:$16 sps:$4 sm:$0xff]   ;;  %v9910_v15 = vld [vmem:[#allocation10 + $0x20] ss:$16 sps:$4 sm:$0xff]   ;;  %13045 = vst [vmem:[#allocation178_spill] sm:$0xff] %v9925_v8 }
 0x3d3   :  { %13039 = vst [vmem:[#allocation172_spill] sm:$0xff] %v9905_v14  ;;  %13040 = vst [vmem:[#allocation173_spill] sm:$0xff] %v9910_v15 }
 0x3d4   :  { %2564 = vmatmul.mubr.bf16.vlgmr.msra.gmra.mrb[40].mxu0 %v12930_v46  ;;  %2605 = vmatmul.mubr.bf16.vlgmr.msra.gmra.mrb[56].mxu1 %v12930_v46 }
 0x3d5   :  { %2648 = vmatpush1.bf16.msra.mxu0 %v9896_v36  ;;  %2689 = vmatpush1.bf16.msra.mxu1 %v9899_v4  ;;  %v9913_v36 = vld [vmem:[#allocation10 + $0x28] ss:$16 sps:$4 sm:$0xff]   ;;  %v9916_v4 = vld [vmem:[#allocation10 + $0x44] ss:$16 sps:$4 sm:$0xff]  }
 0x3d6   :  { %2649 = vmatprep.subr.bf16.mxu0 %v9902_v11  ;;  %2690 = vmatprep.subr.bf16.mxu1 %v9905_v14  ;;  %13041 = vst [vmem:[#allocation174_spill] sm:$0xff] %v9913_v36  ;;  %13042 = vst [vmem:[#allocation175_spill] sm:$0xff] %v9916_v4  ;;  %v9919_v11 = vld [vmem:[#allocation10 + $0x4c] ss:$16 sps:$4 sm:$0xff]   ;;  %v9922_v14 = vld [vmem:[#allocation10 + $0x40] ss:$16 sps:$4 sm:$0xff]  }
 0x3d7   :  { %2679 = vmatprep.mubr.bf16.mxu0 %v12930_v46  ;;  %2720 = vmatprep.mubr.bf16.mxu1 %v12930_v46  ;;  %13043 = vst [vmem:[#allocation176_spill] sm:$0xff] %v9919_v11  ;;  %13044 = vst [vmem:[#allocation177_spill] sm:$0xff] %v9922_v14 }
 0x3d9   :  { %2650 = vmatpush1.bf16.msra.mxu0 %v9910_v15  ;;  %2691 = vmatpush1.bf16.msra.mxu1 %v9913_v36  ;;  %v9928_v15 = vld [vmem:[#allocation10 + $0x64] ss:$16 sps:$4 sm:$0xff]   ;;  %v9931_v36 = vld [vmem:[#allocation10 + $0x6c] ss:$16 sps:$4 sm:$0xff]  }
 0x3da   :  { %2651 = vmatprep.subr.bf16.mxu0 %v9916_v4  ;;  %2692 = vmatprep.subr.bf16.mxu1 %v9919_v11  ;;  %13046 = vst [vmem:[#allocation179_spill] sm:$0xff] %v9928_v15  ;;  %13047 = vst [vmem:[#allocation180_spill] sm:$0xff] %v9931_v36  ;;  %v9934_v4 = vld [vmem:[#allocation10 + $0x60] ss:$16 sps:$4 sm:$0xff]   ;;  %v9937_v11 = vld [vmem:[#allocation10 + $0x68] ss:$16 sps:$4 sm:$0xff]  }
 0x3db   :  { %13048 = vst [vmem:[#allocation181_spill] sm:$0xff] %v9934_v4  ;;  %13049 = vst [vmem:[#allocation182_spill] sm:$0xff] %v9937_v11 }
 0x3dd   :  { %2652 = vmatpush1.bf16.msra.mxu0 %v9922_v14  ;;  %2693 = vmatpush1.bf16.msra.mxu1 %v9925_v8  ;;  %v9940_v14 = vld [vmem:[#allocation10 + $0x84] ss:$16 sps:$4 sm:$0xff]   ;;  %v9943_v8 = vld [vmem:[#allocation10 + $0x8c] ss:$16 sps:$4 sm:$0xff]  }
 0x3de   :  { %2653 = vmatprep.subr.bf16.mxu0 %v9928_v15  ;;  %2694 = vmatprep.subr.bf16.mxu1 %v9931_v36  ;;  %13050 = vst [vmem:[#allocation183_spill] sm:$0xff] %v9940_v14  ;;  %13051 = vst [vmem:[#allocation184_spill] sm:$0xff] %v9943_v8  ;;  %v9946_v15 = vld [vmem:[#allocation10 + $0x80] ss:$16 sps:$4 sm:$0xff]   ;;  %v9949_v36 = vld [vmem:[#allocation10 + $0x88] ss:$16 sps:$4 sm:$0xff]  }
 0x3e1   :  { %2654 = vmatpush1.bf16.msra.mxu0 %v9934_v4  ;;  %2695 = vmatpush1.bf16.msra.mxu1 %v9937_v11  ;;  %v9952_v4 = vld [vmem:[#allocation10 + $0xa4] ss:$16 sps:$4 sm:$0xff]   ;;  %v9955_v11 = vld [vmem:[#allocation10 + $0xac] ss:$16 sps:$4 sm:$0xff]  }
 0x3e2   :  { %2655 = vmatprep.subr.bf16.mxu0 %v9940_v14  ;;  %2696 = vmatprep.subr.bf16.mxu1 %v9943_v8  ;;  %v9958_v14 = vld [vmem:[#allocation10 + $0xa0] ss:$16 sps:$4 sm:$0xff]   ;;  %v9961_v8 = vld [vmem:[#allocation10 + $0xa8] ss:$16 sps:$4 sm:$0xff]  }
 0x3e5   :  { %2656 = vmatpush1.bf16.msra.mxu0 %v9946_v15  ;;  %2697 = vmatpush1.bf16.msra.mxu1 %v9949_v36 }
 0x3e6   :  { %2657 = vmatprep.subr.bf16.mxu0 %v9952_v4  ;;  %2698 = vmatprep.subr.bf16.mxu1 %v9955_v11 }
 0x3e9   :  { %2658 = vmatpush1.bf16.msra.mxu0 %v9958_v14  ;;  %2699 = vmatpush1.bf16.msra.mxu1 %v9961_v8 }
 0x3ea   :  { %2659 = vmatprep.subr.bf16.mxu0 %v9283_v61  ;;  %2700 = vmatprep.subr.bf16.mxu1 %v9285_v37  ;;  %v13052_v61 = vld [vmem:[#allocation56_spill] sm:$0xff]  ;;  %v13053_v37 = vld [vmem:[#allocation57_spill] sm:$0xff] }
 0x3ed   :  { %2660 = vmatpush1.bf16.msra.mxu0 %v9289_v40  ;;  %2701 = vmatpush1.bf16.msra.mxu1 %v9291_v41  ;;  %v13054_v40 = vld [vmem:[#allocation58_spill] sm:$0xff]  ;;  %v13056_v41 = vld [vmem:[#allocation60_spill] sm:$0xff] }
 0x3ee   :  { %2661 = vmatprep.subr.bf16.mxu0 %v9304_v48  ;;  %2702 = vmatprep.subr.bf16.mxu1 %v9306_v49  ;;  %v13057_v48 = vld [vmem:[#allocation61_spill] sm:$0xff]  ;;  %v13058_v49 = vld [vmem:[#allocation62_spill] sm:$0xff] }
 0x3f1   :  { %2662 = vmatpush1.bf16.msra.mxu0 %v9312_v50  ;;  %2703 = vmatpush1.bf16.msra.mxu1 %v9314_v51  ;;  %v13061_v50 = vld [vmem:[#allocation65_spill] sm:$0xff]  ;;  %v13062_v51 = vld [vmem:[#allocation66_spill] sm:$0xff] }
 0x3f2   :  { %2762 = vmatprep.subr.bf16.mxu0 %v9328_v53  ;;  %2803 = vmatprep.subr.bf16.mxu1 %v9330_v55  ;;  %v13063_v53 = vld [vmem:[#allocation67_spill] sm:$0xff]  ;;  %v13064_v55 = vld [vmem:[#allocation68_spill] sm:$0xff] }
 0x3f4   :  { %2680 = vmatmul.mubr.bf16.vlgmr.msra.gmra.mrb[44].mxu0 %v9691_v18  ;;  %2721 = vmatmul.mubr.bf16.vlgmr.msra.gmra.mrb[60].mxu1 %v9691_v18  ;;  %v13084_v18 = vld [vmem:[#allocation88_spill] sm:$0xff] }
 0x3f5   :  { %2763 = vmatpush1.bf16.msra.mxu0 %v9336_v30  ;;  %2804 = vmatpush1.bf16.msra.mxu1 %v9338_v42  ;;  %v13065_v30 = vld [vmem:[#allocation69_spill] sm:$0xff]  ;;  %v13066_v42 = vld [vmem:[#allocation70_spill] sm:$0xff] }
 0x3f6   :  { %2764 = vmatprep.subr.bf16.mxu0 %v9345_v6  ;;  %2805 = vmatprep.subr.bf16.mxu1 %v9347_v9  ;;  %v13068_v6 = vld [vmem:[#allocation72_spill] sm:$0xff]  ;;  %v13069_v9 = vld [vmem:[#allocation73_spill] sm:$0xff] }
 0x3f7   :  { %2794 = vmatprep.mubr.bf16.mxu0 %v12930_v46  ;;  %2835 = vmatprep.mubr.bf16.mxu1 %v12930_v46 }
 0x3f9   :  { %2765 = vmatpush1.bf16.msra.mxu0 %v9358_v21  ;;  %2806 = vmatpush1.bf16.msra.mxu1 %v9360_v25  ;;  %v13070_v21 = vld [vmem:[#allocation74_spill] sm:$0xff]  ;;  %v13071_v25 = vld [vmem:[#allocation75_spill] sm:$0xff] }
 0x3fa   :  { %2766 = vmatprep.subr.bf16.mxu0 %v9367_v34  ;;  %2807 = vmatprep.subr.bf16.mxu1 %v9369_v35  ;;  %v13072_v34 = vld [vmem:[#allocation76_spill] sm:$0xff]  ;;  %v13073_v35 = vld [vmem:[#allocation77_spill] sm:$0xff] }
 0x3fd   :  { %2767 = vmatpush1.bf16.msra.mxu0 %v9378_v45  ;;  %2808 = vmatpush1.bf16.msra.mxu1 %v9380_v31  ;;  %v13074_v45 = vld [vmem:[#allocation78_spill] sm:$0xff]  ;;  %v13075_v31 = vld [vmem:[#allocation79_spill] sm:$0xff] }
 0x3fe   :  { %2768 = vmatprep.subr.bf16.mxu0 %v9387_v29  ;;  %2809 = vmatprep.subr.bf16.mxu1 %v9389_v60  ;;  %v13077_v29 = vld [vmem:[#allocation81_spill] sm:$0xff]  ;;  %v13078_v60 = vld [vmem:[#allocation82_spill] sm:$0xff] }
 0x401   :  { %2769 = vmatpush1.bf16.msra.mxu0 %v9396_v62  ;;  %2810 = vmatpush1.bf16.msra.mxu1 %v9398_v44  ;;  %v13067_v62 = vld [vmem:[#allocation71_spill] sm:$0xff]  ;;  %v13080_v44 = vld [vmem:[#allocation84_spill] sm:$0xff] }
 0x402   :  { %2770 = vmatprep.subr.bf16.mxu0 %v9405_v24  ;;  %2811 = vmatprep.subr.bf16.mxu1 %v9407_v38  ;;  %v13055_v24 = vld [vmem:[#allocation59_spill] sm:$0xff]  ;;  %v13081_v38 = vld [vmem:[#allocation85_spill] sm:$0xff] }
 0x405   :  { %2771 = vmatpush1.bf16.msra.mxu0 %v9414_v54  ;;  %2812 = vmatpush1.bf16.msra.mxu1 %v9416_v32  ;;  %v13076_v54 = vld [vmem:[#allocation80_spill] sm:$0xff]  ;;  %v13082_v32 = vld [vmem:[#allocation86_spill] sm:$0xff] }
 0x406   :  { %2772 = vmatprep.subr.bf16.mxu0 %v9420_v28  ;;  %2813 = vmatprep.subr.bf16.mxu1 %v9422_v22  ;;  %v13059_v28 = vld [vmem:[#allocation63_spill] sm:$0xff]  ;;  %v13060_v22 = vld [vmem:[#allocation64_spill] sm:$0xff] }
 0x409   :  { %2773 = vmatpush1.bf16.msra.mxu0 %v9426_v26  ;;  %2814 = vmatpush1.bf16.msra.mxu1 %v9428_v19  ;;  %v13079_v19 = vld [vmem:[#allocation83_spill] sm:$0xff] }
 0x40a   :  { %2774 = vmatprep.subr.bf16.mxu0 %v13052_v61  ;;  %2815 = vmatprep.subr.bf16.mxu1 %v13053_v37  ;;  %v13083_v26 = vld [vmem:[#allocation87_spill] sm:$0xff]  ;;  %v13086_v61 = vld [vmem:[#allocation90_spill] sm:$0xff] }
 0x40b   :  { %v13087_v37 = vld [vmem:[#allocation91_spill] sm:$0xff] }
 0x40d   :  { %2775 = vmatpush1.bf16.msra.mxu0 %v13054_v40  ;;  %2816 = vmatpush1.bf16.msra.mxu1 %v13055_v24  ;;  %v13088_v40 = vld [vmem:[#allocation92_spill] sm:$0xff]  ;;  %v13089_v24 = vld [vmem:[#allocation93_spill] sm:$0xff] }
 0x40e   :  { %2776 = vmatprep.subr.bf16.mxu0 %v13056_v41  ;;  %2817 = vmatprep.subr.bf16.mxu1 %v13057_v48  ;;  %v13090_v41 = vld [vmem:[#allocation94_spill] sm:$0xff]  ;;  %v13091_v48 = vld [vmem:[#allocation95_spill] sm:$0xff] }
 0x411   :  { %2777 = vmatpush1.bf16.msra.mxu0 %v13058_v49  ;;  %2818 = vmatpush1.bf16.msra.mxu1 %v13059_v28  ;;  %v13092_v49 = vld [vmem:[#allocation96_spill] sm:$0xff]  ;;  %v13093_v28 = vld [vmem:[#allocation97_spill] sm:$0xff] }
 0x412   :  { %2873 = vmatprep.subr.bf16.mxu0 %v13060_v22  ;;  %2914 = vmatprep.subr.bf16.mxu1 %v13061_v50  ;;  %v10049_v22 = vld [vmem:[%s12441_s11] sm:$0xf]  ;;  %v13094_v50 = vld [vmem:[#allocation24_spill] sm:$0xff] }
 0x414   :  { %2795 = vmatmul.mubr.bf16.vlgmr.msra.gmra.mrb[48].mxu0 %v9794_v59  ;;  %2836 = vmatmul.mubr.bf16.vlgmr.msra.gmra.mrb[64].mxu1 %v9794_v59  ;;  %v13085_v59 = vld [vmem:[#allocation89_spill] sm:$0xff] }
 0x415   :  { %2874 = vmatpush1.bf16.msra.mxu0 %v13062_v51  ;;  %2915 = vmatpush1.bf16.msra.mxu1 %v13063_v53  ;;  %v10053_v51 = vrot.slane %v10049_v22, %v13094_v50  ;;  %v13096_v53 = vld [vmem:[#allocation25_spill] sm:$0xff]  ;;  %v13101_v50 = vld [vmem:[#allocation42_spill] sm:$0xff] }
 0x416   :  { %2875 = vmatprep.subr.bf16.mxu0 %v13064_v55  ;;  %2916 = vmatprep.subr.bf16.mxu1 %v13065_v30  ;;  %v10057_v55 = vrot.slane %v10049_v22, %v13096_v53 }
 0x417   :  { %2905 = vmatprep.mubr.bf16.mxu0 %v12930_v46  ;;  %2946 = vmatprep.mubr.bf16.mxu1 %v12930_v46  ;;  %13095 = vst [vmem:[#allocation56_spill] sm:$0xff] %v10053_v51 }
 0x418   :  { %13097 = vst [vmem:[#allocation57_spill] sm:$0xff] %v10057_v55 }
 0x419   :  { %2876 = vmatpush1.bf16.msra.mxu0 %v13066_v42  ;;  %2917 = vmatpush1.bf16.msra.mxu1 %v13067_v62 }
 0x41a   :  { %2877 = vmatprep.subr.bf16.mxu0 %v13068_v6  ;;  %2918 = vmatprep.subr.bf16.mxu1 %v13069_v9 }
 0x41d   :  { %2878 = vmatpush1.bf16.msra.mxu0 %v13070_v21  ;;  %2919 = vmatpush1.bf16.msra.mxu1 %v13071_v25 }
 0x41e   :  { %2879 = vmatprep.subr.bf16.mxu0 %v13072_v34  ;;  %2920 = vmatprep.subr.bf16.mxu1 %v13073_v35 }
 0x421   :  { %2880 = vmatpush1.bf16.msra.mxu0 %v13074_v45  ;;  %2921 = vmatpush1.bf16.msra.mxu1 %v13075_v31 }
 0x422   :  { %2881 = vmatprep.subr.bf16.mxu0 %v13076_v54  ;;  %2922 = vmatprep.subr.bf16.mxu1 %v13077_v29  ;;  %v13098_v29 = vld [vmem:[#allocation40_spill] sm:$0xff] }
 0x425   :  { %2882 = vmatpush1.bf16.msra.mxu0 %v13078_v60  ;;  %2923 = vmatpush1.bf16.msra.mxu1 %v13079_v19  ;;  %v10065_v60 = vrot.slane %v10049_v22, %v13098_v29 }
 0x426   :  { %2883 = vmatprep.subr.bf16.mxu0 %v13080_v44  ;;  %2924 = vmatprep.subr.bf16.mxu1 %v13081_v38 }
 0x427   :  { %13099 = vst [vmem:[#allocation58_spill] sm:$0xff] %v10065_v60 }
 0x429   :  { %2884 = vmatpush1.bf16.msra.mxu0 %v13082_v32  ;;  %2925 = vmatpush1.bf16.msra.mxu1 %v13083_v26 }
 0x42a   :  { %2885 = vmatprep.subr.bf16.mxu0 %v13084_v18  ;;  %2926 = vmatprep.subr.bf16.mxu1 %v13085_v59 }
 0x42d   :  { %2886 = vmatpush1.bf16.msra.mxu0 %v13086_v61  ;;  %2927 = vmatpush1.bf16.msra.mxu1 %v13087_v37 }
 0x42e   :  { %2887 = vmatprep.subr.bf16.mxu0 %v13088_v40  ;;  %2928 = vmatprep.subr.bf16.mxu1 %v13089_v24 }
 0x431   :  { %2888 = vmatpush1.bf16.msra.mxu0 %v13090_v41  ;;  %2929 = vmatpush1.bf16.msra.mxu1 %v13091_v48 }
 0x432   :  { %2960 = vmatprep.subr.bf16.mxu0 %v13092_v49  ;;  %3001 = vmatprep.subr.bf16.mxu1 %v13093_v28  ;;  %v13100_v49 = vld [vmem:[#allocation26_spill] sm:$0xff] }
 0x4a7   :  { %v2565_v30 = vpop.f32.mrb[40].mxu0  ;;  %v2606_v42 = vpop.f32.mrb[56].mxu1 }
 0x4a8   :  { %v7122_v62 = vadd.f32 %v2565_v30, %v10053_v51  ;;  %v2567_v6 = vpop.f32.mrb[41].mxu0  ;;  %v10060_v9 = vpop.f32.mrb[57].mxu1  ;;  %v7124_v19 = vadd.f32 %v2606_v42, %v10065_v60 }
 0x4a9   :  { %v7123_v21 = vadd.f32 %v2567_v6, %v10057_v55  ;;  %v2569_v25 = vpop.f32.mrb[42].mxu0  ;;  %v2610_v34 = vpop.f32.mrb[58].mxu1 }
 0x4aa   :  { %v6779_v35 = vmul.f32 -1.442695, %v7122_v62  ;;  %v2570_v45 = vpop.f32.mrb[43].mxu0  ;;  %v2611_v31 = vpop.f32.mrb[59].mxu1  ;;  %v13102_v62 = vld [vmem:[#allocation27_spill] sm:$0xff] }
 0x4ab   :  { %v6780_v54 = vmul.f32 -1.442695, %v7123_v21  ;;  %v13103_v21 = vld [vmem:[#allocation43_spill] sm:$0xff] }
 0x4ac   :  { %7569 = vpow2.f32 %v6779_v35 }
 0x4ad   :  { %7571 = vpow2.f32 %v6780_v54 }
 0x4ae   :  { %7573 = vtanh.f32 %v7124_v19 }
 0x4b6   :  { %v7570_v44 = vpop.eup %7569 }
 0x4b7   :  { %v7572_v38 = vpop.eup %7571  ;;  %v2620_v32 = vadd.f32 1.0, %v7570_v44 }
 0x4b8   :  { %v2626_v26 = vadd.f32 1.0, %v7572_v38  ;;  %v7574_v18 = vpop.eup %7573 }
 0x4b9   :  { %7575 = vrcp.f32 %v2620_v32 }
 0x4ba   :  { %7577 = vrcp.f32 %v2626_v26 }
 0x4c3   :  { %v7576_v59 = vpop.eup %7575 }
 0x4c4   :  { %v7578_v61 = vpop.eup %7577  ;;  %v2637_v37 = vmul.f32 %v7576_v59, %v7574_v18 }
 0x4c5   :  { %v2636_v40 = vmul.f32 0.0, %v7578_v61 }
 0x4c7   :  { %v10068_v24 = vadd.f32 %v2637_v37, %v2636_v40  ;;  %v2681_v41 = vpop.f32.mrb[44].mxu0  ;;  %v2722_v48 = vpop.f32.mrb[60].mxu1 }
 0x4c8   :  { %v2729_v28 = vadd.f32 %v2681_v41, %v13100_v49  ;;  %v2731_v53 = vadd.f32 %v2722_v48, %v13101_v50  ;;  %v2683_v30 = vpop.f32.mrb[45].mxu0  ;;  %v2724_v42 = vpop.f32.mrb[61].mxu1 }
 0x4c9   :  { %v2730_v6 = vadd.f32 %v2683_v30, %v13102_v62  ;;  %v2732_v25 = vadd.f32 %v2724_v42, %v13103_v21  ;;  %v2685_v34 = vpop.f32.mrb[46].mxu0  ;;  %v2726_v35 = vpop.f32.mrb[62].mxu1  ;;  %v13104_v30 = vld [vmem:[#allocation98_spill] sm:$0xff]  ;;  %v13105_v62 = vld [vmem:[#allocation99_spill] sm:$0xff] }
 0x4ca   :  { %v6782_v45 = vmul.f32 -1.442695, %v2729_v28  ;;  %v2686_v31 = vpop.f32.mrb[47].mxu0  ;;  %v2727_v54 = vpop.f32.mrb[63].mxu1  ;;  %v13107_v35 = vld [vmem:[#allocation101_spill] sm:$0xff] }
 0x4cb   :  { %v6783_v29 = vmul.f32 -1.442695, %v2730_v6  ;;  %v6784_v19 = vmul.f32 -1.442695, %v2732_v25  ;;  %v13106_v25 = vld [vmem:[#allocation100_spill] sm:$0xff] }
 0x4cc   :  { %7579 = vpow2.f32 %v6782_v45 }
 0x4cd   :  { %7581 = vpow2.f32 %v6783_v29 }
 0x4ce   :  { %7583 = vpow2.f32 %v6784_v19 }
 0x4cf   :  { %7585 = vtanh.f32 %v2731_v53 }
 0x4d6   :  { %v7580_v44 = vpop.eup %7579 }
 0x4d7   :  { %v7582_v38 = vpop.eup %7581  ;;  %v2736_v32 = vadd.f32 1.0, %v7580_v44 }
 0x4d8   :  { %v2742_v26 = vadd.f32 1.0, %v7582_v38  ;;  %v7584_v18 = vpop.eup %7583 }
 0x4d9   :  { %7587 = vrcp.f32 %v2736_v32  ;;  %v7586_v59 = vpop.eup %7585  ;;  %v2749_v41 = vadd.f32 1.0, %v7584_v18 }
 0x4da   :  { %7589 = vrcp.f32 %v2742_v26 }
 0x4db   :  { %7591 = vrcp.f32 %v2749_v41 }
 0x4e3   :  { %v7588_v61 = vpop.eup %7587 }
 0x4e4   :  { %v7590_v37 = vpop.eup %7589  ;;  %v2753_v40 = vmul.f32 %v7588_v61, %v7586_v59 }
 0x4e5   :  { %v2752_v48 = vmul.f32 %v7590_v37, %v9684_v47  ;;  %v7592_v38 = vpop.eup %7591 }
 0x4e7   :  { %v10075_v49 = vadd.f32 %v2753_v40, %v2752_v48  ;;  %v2796_v28 = vpop.f32.mrb[48].mxu0  ;;  %v2837_v50 = vpop.f32.mrb[64].mxu1 }
 0x4e8   :  { %v2844_v42 = vadd.f32 %v2796_v28, %v13104_v30  ;;  %v2846_v53 = vadd.f32 %v2837_v50, %v13105_v62  ;;  %v2798_v6 = vpop.f32.mrb[49].mxu0  ;;  %v2839_v21 = vpop.f32.mrb[65].mxu1  ;;  %v13117_v28 = vld [vmem:[#allocation133_spill] sm:$0xff]  ;;  %v13118_v50 = vld [vmem:[#allocation134_spill] sm:$0xff]  ;;  %v13119_v30 = vld [vmem:[#allocation135_spill] sm:$0xff] }
 0x4e9   :  { %v2845_v34 = vadd.f32 %v2798_v6, %v13106_v25  ;;  %v2847_v45 = vadd.f32 %v2839_v21, %v13107_v35  ;;  %v2800_v31 = vpop.f32.mrb[50].mxu0  ;;  %v2841_v54 = vpop.f32.mrb[66].mxu1  ;;  %7593 = vtanh.f32 %v10075_v49  ;;  %v13120_v62 = vld [vmem:[#allocation136_spill] sm:$0xff]  ;;  %v13123_v25 = vld [vmem:[#allocation139_spill] sm:$0xff] }
 0x4ea   :  { %v6785_v47 = vmul.f32 -1.442695, %v2844_v42  ;;  %v2801_v29 = vpop.f32.mrb[51].mxu0  ;;  %v2842_v19 = vpop.f32.mrb[67].mxu1  ;;  %v13124_v35 = vld [vmem:[#allocation140_spill] sm:$0xff]  ;;  %v13126_v31 = vld [vmem:[#allocation142_spill] sm:$0xff] }
 0x4eb   :  { %v6786_v44 = vmul.f32 -1.442695, %v2845_v34  ;;  %v6787_v26 = vmul.f32 -1.442695, %v2847_v45  ;;  %v13125_v45 = vld [vmem:[#allocation141_spill] sm:$0xff]  ;;  %v13131_v29 = vld [vmem:[#allocation147_spill] sm:$0xff] }
 0x4ec   :  { %7595 = vpow2.f32 %v6785_v47  ;;  %v13129_v54 = vld [vmem:[#allocation145_spill] sm:$0xff]  ;;  %v13130_v47 = vld [vmem:[#allocation146_spill] sm:$0xff] }
 0x4ed   :  { %7597 = vpow2.f32 %v6786_v44  ;;  %v13132_v44 = vld [vmem:[#allocation148_spill] sm:$0xff] }
 0x4ee   :  { %7599 = vpow2.f32 %v6787_v26  ;;  %v13135_v26 = vld [vmem:[#allocation151_spill] sm:$0xff] }
 0x4ef   :  { %7601 = vtanh.f32 %v2846_v53  ;;  %v13121_v53 = vld [vmem:[#allocation137_spill] sm:$0xff] }
 0x4f3   :  { %v7594_v32 = vpop.eup %7593 }
 0x4f4   :  { %v2756_v18 = vmul.f32 %v7594_v32, %v7592_v38  ;;  %v13133_v38 = vld [vmem:[#allocation149_spill] sm:$0xff]  ;;  %v13134_v32 = vld [vmem:[#allocation150_spill] sm:$0xff] }
 0x4f6   :  { %v7596_v59 = vpop.eup %7595  ;;  %v10082_v61 = vpack.c.bf16 %v2756_v18, %v2756_v18 }
 0x4f7   :  { %v7598_v37 = vpop.eup %7597  ;;  %v2851_v40 = vadd.f32 1.0, %v7596_v59  ;;  %v13136_v59 = vld [vmem:[#allocation152_spill] sm:$0xff] }
 0x4f8   :  { %v2857_v41 = vadd.f32 1.0, %v7598_v37  ;;  %2906 = vmatmul.mubr.bf16.vlgmr.msra.gmra.mrb[52].mxu0 %v10082_v61  ;;  %2947 = vmatmul.mubr.bf16.vlgmr.msra.gmra.mrb[68].mxu1 %v10082_v61  ;;  %v13137_v37 = vld [vmem:[#allocation153_spill] sm:$0xff] }
 0x4f9   :  { %7603 = vrcp.f32 %v2851_v40  ;;  %2961 = vmatpush1.bf16.msra.mxu0 %v9687_v23  ;;  %3002 = vmatpush1.bf16.msra.mxu1 %v9689_v56  ;;  %v7600_v23 = vpop.eup %7599  ;;  %v13138_v40 = vld [vmem:[#allocation154_spill] sm:$0xff] }
 0x4fa   :  { %7605 = vrcp.f32 %v2857_v41  ;;  %2962 = vmatprep.subr.bf16.mxu0 %v9693_v27  ;;  %3003 = vmatprep.subr.bf16.mxu1 %v9695_v20  ;;  %v7602_v56 = vpop.eup %7601  ;;  %v13139_v41 = vld [vmem:[#allocation155_spill] sm:$0xff] }
 0x4fb   :  { %2992 = vmatprep.mubr.bf16.mxu0 %v12930_v46  ;;  %3033 = vmatprep.mubr.bf16.mxu1 %v12930_v46 }
 0x4fd   :  { %2963 = vmatpush1.bf16.msra.mxu0 %v9701_v1  ;;  %3004 = vmatpush1.bf16.msra.mxu1 %v9703_v33  ;;  %v2864_v1 = vadd.f32 1.0, %v7600_v23  ;;  %v13140_v23 = vld [vmem:[#allocation156_spill] sm:$0xff] }
 0x4fe   :  { %2964 = vmatprep.subr.bf16.mxu0 %v9707_v0  ;;  %3005 = vmatprep.subr.bf16.mxu1 %v9709_v13  ;;  %v13108_v13 = vld [vmem:[#allocation126_spill] sm:$0xff] }
 0x4ff   :  { %7607 = vrcp.f32 %v2864_v1  ;;  %v13145_v1 = vld [vmem:[#allocation161_spill] sm:$0xff] }
 0x501   :  { %2965 = vmatpush1.bf16.msra.mxu0 %v9715_v16  ;;  %3006 = vmatpush1.bf16.msra.mxu1 %v9717_v63  ;;  %v13109_v16 = vld [vmem:[#allocation127_spill] sm:$0xff]  ;;  %v13110_v63 = vld [vmem:[#allocation41_spill] sm:$0xff] }
 0x502   :  { %2966 = vmatprep.subr.bf16.mxu0 %v9721_v57  ;;  %3007 = vmatprep.subr.bf16.mxu1 %v9723_v3  ;;  %v10112_v57 = vrot.slane %v10049_v22, %v13110_v63  ;;  %v13112_v3 = vld [vmem:[#allocation128_spill] sm:$0xff]  ;;  %v13147_v63 = vld [vmem:[#allocation163_spill] sm:$0xff] }
 0x503   :  { %v7604_v27 = vpop.eup %7603 }
 0x504   :  { %v7606_v20 = vpop.eup %7605  ;;  %v2868_v48 = vmul.f32 %v7604_v27, %v7602_v56  ;;  %13111 = vst [vmem:[#allocation59_spill] sm:$0xff] %v10112_v57  ;;  %v13141_v56 = vld [vmem:[#allocation157_spill] sm:$0xff]  ;;  %v13142_v27 = vld [vmem:[#allocation158_spill] sm:$0xff] }
 0x505   :  { %v2867_v33 = vmul.f32 %v7606_v20, %v9749_v17  ;;  %2967 = vmatpush1.bf16.msra.mxu0 %v9727_v7  ;;  %3008 = vmatpush1.bf16.msra.mxu1 %v9729_v43  ;;  %v13113_v7 = vld [vmem:[#allocation129_spill] sm:$0xff]  ;;  %v13114_v43 = vld [vmem:[#allocation130_spill] sm:$0xff]  ;;  %v13116_v17 = vld [vmem:[#allocation132_spill] sm:$0xff] }
 0x506   :  { %2968 = vmatprep.subr.bf16.mxu0 %v9733_v12  ;;  %3009 = vmatprep.subr.bf16.mxu1 %v9735_v58  ;;  %v13115_v12 = vld [vmem:[#allocation131_spill] sm:$0xff]  ;;  %v7125_v58 = vadd.f32 %v10060_v9, %v10112_v57  ;;  %v13122_v9 = vld [vmem:[#allocation138_spill] sm:$0xff] }
 0x507   :  { %v10105_v0 = vadd.f32 %v2868_v48, %v2867_v33  ;;  %v13143_v20 = vld [vmem:[#allocation159_spill] sm:$0xff]  ;;  %v13144_v48 = vld [vmem:[#allocation160_spill] sm:$0xff]  ;;  %v13146_v33 = vld [vmem:[#allocation162_spill] sm:$0xff] }
 0x508   :  { %v6781_v42 = vmul.f32 -1.442695, %v7125_v58  ;;  %v13152_v58 = vld [vmem:[#allocation167_spill] sm:$0xff] }
 0x509   :  { %2969 = vmatpush1.bf16.msra.mxu0 %v13108_v13  ;;  %3010 = vmatpush1.bf16.msra.mxu1 %v13109_v16  ;;  %7609 = vtanh.f32 %v10105_v0  ;;  %v7608_v22 = vpop.eup %7607 }
 0x50a   :  { %2970 = vmatprep.subr.bf16.mxu0 %v13112_v3  ;;  %3011 = vmatprep.subr.bf16.mxu1 %v13113_v7  ;;  %7611 = vpow2.f32 %v6781_v42  ;;  %v13148_v3 = vld [vmem:[#allocation164_spill] sm:$0xff]  ;;  %v13160_v42 = vld [vmem:[#allocation175_spill] sm:$0xff] }
 0x50b   :  { %7613 = vtanh.f32 %v10068_v24 }
 0x50d   :  { %2971 = vmatpush1.bf16.msra.mxu0 %v13114_v43  ;;  %3012 = vmatpush1.bf16.msra.mxu1 %v13115_v12  ;;  %v13150_v43 = vld [vmem:[#allocation165_spill] sm:$0xff]  ;;  %v13151_v12 = vld [vmem:[#allocation166_spill] sm:$0xff] }
 0x50e   :  { %2972 = vmatprep.subr.bf16.mxu0 %v13116_v17  ;;  %3013 = vmatprep.subr.bf16.mxu1 %v13117_v28  ;;  %v13153_v17 = vld [vmem:[#allocation168_spill] sm:$0xff]  ;;  %v13156_v28 = vld [vmem:[#allocation171_spill] sm:$0xff] }
 0x511   :  { %2973 = vmatpush1.bf16.msra.mxu0 %v13118_v50  ;;  %3014 = vmatpush1.bf16.msra.mxu1 %v13119_v30  ;;  %v13157_v50 = vld [vmem:[#allocation172_spill] sm:$0xff]  ;;  %v13158_v30 = vld [vmem:[#allocation173_spill] sm:$0xff] }
 0x512   :  { %2974 = vmatprep.subr.bf16.mxu0 %v13120_v62  ;;  %3015 = vmatprep.subr.bf16.mxu1 %v13121_v53  ;;  %v13161_v62 = vld [vmem:[#allocation176_spill] sm:$0xff]  ;;  %v13162_v53 = vld [vmem:[#allocation177_spill] sm:$0xff] }
 0x513   :  { %v7610_v6 = vpop.eup %7609 }
 0x514   :  { %v2871_v21 = vmul.f32 %v7610_v6, %v7608_v22  ;;  %v7612_v19 = vpop.eup %7611  ;;  %v13159_v22 = vld [vmem:[#allocation174_spill] sm:$0xff] }
 0x515   :  { %2975 = vmatpush1.bf16.msra.mxu0 %v9778_v5  ;;  %3016 = vmatpush1.bf16.msra.mxu1 %v9780_v39  ;;  %v13127_v5 = vld [vmem:[#allocation143_spill] sm:$0xff]  ;;  %v13128_v39 = vld [vmem:[#allocation144_spill] sm:$0xff]  ;;  %v2633_v18 = vadd.f32 1.0, %v7612_v19  ;;  %v7614_v13 = vpop.eup %7613  ;;  %v13163_v6 = vld [vmem:[#allocation178_spill] sm:$0xff] }
 0x516   :  { %3047 = vmatprep.subr.bf16.mxu0 %v13122_v9  ;;  %3088 = vmatprep.subr.bf16.mxu1 %v13123_v25  ;;  %v10130_v34 = vpack.c.bf16 %v2871_v21, %v2871_v21  ;;  %v13164_v21 = vld [vmem:[#allocation179_spill] sm:$0xff]  ;;  %v13165_v9 = vld [vmem:[#allocation180_spill] sm:$0xff]  ;;  %v13166_v25 = vld [vmem:[#allocation181_spill] sm:$0xff] }
 0x517   :  { %7615 = vrcp.f32 %v2633_v18  ;;  %v10232_v19 = vld [vmem:[#allocation12 + $0x8] ss:$16 sps:$4 sm:$0xff]   ;;  %v10252_v18 = vld [vmem:[#allocation12 + $0x4c] ss:$16 sps:$4 sm:$0xff]  }
 0x518   :  { %2993 = vmatmul.mubr.bf16.vlgmr.msra.gmra.mrb[52].mxu0 %v10130_v34  ;;  %3034 = vmatmul.mubr.bf16.vlgmr.msra.gmra.mrb[68].mxu1 %v10130_v34 }
 0x519   :  { %3048 = vmatpush1.bf16.msra.mxu0 %v13124_v35  ;;  %3089 = vmatpush1.bf16.msra.mxu1 %v13125_v45  ;;  %v13167_v35 = vld [vmem:[#allocation182_spill] sm:$0xff]  ;;  %v13168_v45 = vld [vmem:[#allocation183_spill] sm:$0xff] }
 0x51a   :  { %3049 = vmatprep.subr.bf16.mxu0 %v13126_v31  ;;  %3090 = vmatprep.subr.bf16.mxu1 %v13127_v5  ;;  %v13169_v31 = vld [vmem:[#allocation184_spill] sm:$0xff]  ;;  %v10197_v5 = vld [vmem:[#allocation10 + $0xc4] ss:$16 sps:$4 sm:$0xff]  }
 0x51b   :  { %3079 = vmatprep.mubr.bf16.mxu0 %v12930_v46  ;;  %3120 = vmatprep.mubr.bf16.mxu1 %v12930_v46 }
 0x51d   :  { %3050 = vmatpush1.bf16.msra.mxu0 %v13128_v39  ;;  %3091 = vmatpush1.bf16.msra.mxu1 %v13129_v54  ;;  %v10200_v39 = vld [vmem:[#allocation10 + $0xcc] ss:$16 sps:$4 sm:$0xff]   ;;  %v10203_v54 = vld [vmem:[#allocation10 + $0xc0] ss:$16 sps:$4 sm:$0xff]  }
 0x51e   :  { %3051 = vmatprep.subr.bf16.mxu0 %v13130_v47  ;;  %3092 = vmatprep.subr.bf16.mxu1 %v13131_v29  ;;  %v10224_v47 = vld [vmem:[#allocation12 + $0xc] ss:$16 sps:$4 sm:$0xff]   ;;  %v10229_v29 = vld [vmem:[#allocation12] ss:$16 sps:$4 sm:$0xff]  }
 0x521   :  { %3052 = vmatpush1.bf16.msra.mxu0 %v13132_v44  ;;  %3093 = vmatpush1.bf16.msra.mxu1 %v13133_v38  ;;  %v7616_v16 = vpop.eup %7615  ;;  %v10235_v44 = vld [vmem:[#allocation12 + $0x24] ss:$16 sps:$4 sm:$0xff]   ;;  %v10238_v38 = vld [vmem:[#allocation12 + $0x2c] ss:$16 sps:$4 sm:$0xff]  }
 0x522   :  { %3053 = vmatprep.subr.bf16.mxu0 %v13134_v32  ;;  %3094 = vmatprep.subr.bf16.mxu1 %v13135_v26  ;;  %v10165_v7 = vmul.f32 %v7616_v16, %v7614_v13  ;;  %v10246_v32 = vld [vmem:[#allocation12 + $0x28] ss:$16 sps:$4 sm:$0xff]   ;;  %v10249_v26 = vld [vmem:[#allocation12 + $0x44] ss:$16 sps:$4 sm:$0xff]   ;;  %v10288_v13 = vld [vmem:[#allocation12 + $0xac] ss:$16 sps:$4 sm:$0xff]  }
 0x523   :  { %v10291_v16 = vld [vmem:[#allocation12 + $0xa0] ss:$16 sps:$4 sm:$0xff]  }
 0x524   :  { %13149 = vst [vmem:[#allocation60_spill] sm:$0xff] %v10165_v7 }
 0x525   :  { %3054 = vmatpush1.bf16.msra.mxu0 %v13136_v59  ;;  %3095 = vmatpush1.bf16.msra.mxu1 %v13137_v37  ;;  %v10255_v59 = vld [vmem:[#allocation12 + $0x40] ss:$16 sps:$4 sm:$0xff]   ;;  %v10258_v37 = vld [vmem:[#allocation12 + $0x48] ss:$16 sps:$4 sm:$0xff]  }
 0x526   :  { %3055 = vmatprep.subr.bf16.mxu0 %v13138_v40  ;;  %3096 = vmatprep.subr.bf16.mxu1 %v13139_v41  ;;  %v10261_v40 = vld [vmem:[#allocation12 + $0x64] ss:$16 sps:$4 sm:$0xff]   ;;  %v10264_v41 = vld [vmem:[#allocation12 + $0x6c] ss:$16 sps:$4 sm:$0xff]  }
 0x529   :  { %3056 = vmatpush1.bf16.msra.mxu0 %v13140_v23  ;;  %3097 = vmatpush1.bf16.msra.mxu1 %v13141_v56  ;;  %v10267_v23 = vld [vmem:[#allocation12 + $0x60] ss:$16 sps:$4 sm:$0xff]   ;;  %v10270_v56 = vld [vmem:[#allocation12 + $0x68] ss:$16 sps:$4 sm:$0xff]  }
 0x52a   :  { %3057 = vmatprep.subr.bf16.mxu0 %v13142_v27  ;;  %3098 = vmatprep.subr.bf16.mxu1 %v13143_v20  ;;  %v10273_v27 = vld [vmem:[#allocation12 + $0x84] ss:$16 sps:$4 sm:$0xff]   ;;  %v10276_v20 = vld [vmem:[#allocation12 + $0x8c] ss:$16 sps:$4 sm:$0xff]  }
 0x52d   :  { %3058 = vmatpush1.bf16.msra.mxu0 %v13144_v48  ;;  %3099 = vmatpush1.bf16.msra.mxu1 %v9858_v10  ;;  %v3046_v10 = vpack.c.bf16 %v10165_v7, %v10165_v7  ;;  %v10279_v48 = vld [vmem:[#allocation12 + $0x80] ss:$16 sps:$4 sm:$0xff]   ;;  %v10370_v7 = vld [vmem:[#allocation13 + $0x68] ss:$16 sps:$4 sm:$0xff]  }
 0x52e   :  { %3059 = vmatprep.subr.bf16.mxu0 %v13145_v1  ;;  %3100 = vmatprep.subr.bf16.mxu1 %v13146_v33  ;;  %v10282_v1 = vld [vmem:[#allocation12 + $0x88] ss:$16 sps:$4 sm:$0xff]   ;;  %v10285_v33 = vld [vmem:[#allocation12 + $0xa4] ss:$16 sps:$4 sm:$0xff]   ;;  %13188 = vst [vmem:[#allocation79_spill] sm:$0xff] %v10370_v7 }
 0x531   :  { %3060 = vmatpush1.bf16.msra.mxu0 %v9868_v2  ;;  %3101 = vmatpush1.bf16.msra.mxu1 %v13147_v63  ;;  %v13154_v2 = vld [vmem:[#allocation169_spill] sm:$0xff]  ;;  %v10294_v63 = vld [vmem:[#allocation12 + $0xa8] ss:$16 sps:$4 sm:$0xff]  }
 0x532   :  { %3061 = vmatprep.subr.bf16.mxu0 %v9874_v52  ;;  %3102 = vmatprep.subr.bf16.mxu1 %v13148_v3  ;;  %v13155_v52 = vld [vmem:[#allocation170_spill] sm:$0xff]  ;;  %v10297_v3 = vld [vmem:[#allocation12 + $0xc4] ss:$16 sps:$4 sm:$0xff]  }
 0x535   :  { %3062 = vmatpush1.bf16.msra.mxu0 %v13150_v43  ;;  %3103 = vmatpush1.bf16.msra.mxu1 %v13151_v12  ;;  %v10300_v43 = vld [vmem:[#allocation12 + $0xcc] ss:$16 sps:$4 sm:$0xff]   ;;  %v10303_v12 = vld [vmem:[#allocation12 + $0xc0] ss:$16 sps:$4 sm:$0xff]  }
 0x536   :  { %3164 = vmatprep.subr.bf16.mxu0 %v13152_v58  ;;  %3205 = vmatprep.subr.bf16.mxu1 %v13153_v17  ;;  %v10309_v58 = vld [vmem:[#allocation12 + $0xe4] ss:$16 sps:$4 sm:$0xff]   ;;  %v10312_v17 = vld [vmem:[#allocation12 + $0xec] ss:$16 sps:$4 sm:$0xff]  }
 0x537   :  { %13170 = vst [vmem:[#allocation61_spill] sm:$0xff] %v10312_v17 }
 0x538   :  { %3080 = vmatmul.mubr.bf16.vlgmr.msra.gmra.mrb[52].mxu0 %v3046_v10  ;;  %3121 = vmatmul.mubr.bf16.vlgmr.msra.gmra.mrb[68].mxu1 %v3046_v10  ;;  %v10306_v10 = vld [vmem:[#allocation12 + $0xc8] ss:$16 sps:$4 sm:$0xff]  }
 0x539   :  { %3165 = vmatpush1.bf16.msra.mxu0 %v13154_v2  ;;  %3206 = vmatpush1.bf16.msra.mxu1 %v13155_v52  ;;  %v10315_v2 = vld [vmem:[#allocation12 + $0xe0] ss:$16 sps:$4 sm:$0xff]   ;;  %v10318_v52 = vld [vmem:[#allocation12 + $0xe8] ss:$16 sps:$4 sm:$0xff]  }
 0x53a   :  { %3166 = vmatprep.subr.bf16.mxu0 %v13156_v28  ;;  %3207 = vmatprep.subr.bf16.mxu1 %v13157_v50  ;;  %13171 = vst [vmem:[#allocation62_spill] sm:$0xff] %v10315_v2  ;;  %13172 = vst [vmem:[#allocation63_spill] sm:$0xff] %v10318_v52  ;;  %v10321_v28 = vld [vmem:[#allocation13 + $0x4] ss:$16 sps:$4 sm:$0xff]   ;;  %v10324_v50 = vld [vmem:[#allocation13 + $0xc] ss:$16 sps:$4 sm:$0xff]  }
 0x53b   :  { %3196 = vmatprep.mubr.bf16.mxu0 %v12930_v46  ;;  %3237 = vmatprep.mubr.bf16.mxu1 %v12930_v46  ;;  %13173 = vst [vmem:[#allocation64_spill] sm:$0xff] %v10321_v28  ;;  %13174 = vst [vmem:[#allocation65_spill] sm:$0xff] %v10324_v50 }
 0x53d   :  { %3167 = vmatpush1.bf16.msra.mxu0 %v13158_v30  ;;  %3208 = vmatpush1.bf16.msra.mxu1 %v13159_v22  ;;  %v10329_v30 = vld [vmem:[#allocation13] ss:$16 sps:$4 sm:$0xff]   ;;  %v10332_v22 = vld [vmem:[#allocation13 + $0x8] ss:$16 sps:$4 sm:$0xff]  }
 0x53e   :  { %3168 = vmatprep.subr.bf16.mxu0 %v13160_v42  ;;  %3209 = vmatprep.subr.bf16.mxu1 %v13161_v62  ;;  %13175 = vst [vmem:[#allocation66_spill] sm:$0xff] %v10329_v30  ;;  %13176 = vst [vmem:[#allocation67_spill] sm:$0xff] %v10332_v22  ;;  %v10335_v42 = vld [vmem:[#allocation13 + $0x24] ss:$16 sps:$4 sm:$0xff]   ;;  %v10338_v62 = vld [vmem:[#allocation13 + $0x2c] ss:$16 sps:$4 sm:$0xff]  }
 0x53f   :  { %13177 = vst [vmem:[#allocation68_spill] sm:$0xff] %v10335_v42  ;;  %13178 = vst [vmem:[#allocation69_spill] sm:$0xff] %v10338_v62 }
 0x541   :  { %3169 = vmatpush1.bf16.msra.mxu0 %v13162_v53  ;;  %3210 = vmatpush1.bf16.msra.mxu1 %v13163_v6  ;;  %v10346_v53 = vld [vmem:[#allocation13 + $0x28] ss:$16 sps:$4 sm:$0xff]   ;;  %v10349_v6 = vld [vmem:[#allocation13 + $0x44] ss:$16 sps:$4 sm:$0xff]  }
 0x542   :  { %3170 = vmatprep.subr.bf16.mxu0 %v13164_v21  ;;  %3211 = vmatprep.subr.bf16.mxu1 %v13165_v9  ;;  %13180 = vst [vmem:[#allocation71_spill] sm:$0xff] %v10346_v53  ;;  %13181 = vst [vmem:[#allocation72_spill] sm:$0xff] %v10349_v6  ;;  %v10352_v21 = vld [vmem:[#allocation13 + $0x4c] ss:$16 sps:$4 sm:$0xff]   ;;  %v10355_v9 = vld [vmem:[#allocation13 + $0x40] ss:$16 sps:$4 sm:$0xff]  }
 0x543   :  { %13182 = vst [vmem:[#allocation73_spill] sm:$0xff] %v10352_v21  ;;  %13183 = vst [vmem:[#allocation74_spill] sm:$0xff] %v10355_v9 }
 0x545   :  { %3171 = vmatpush1.bf16.msra.mxu0 %v13166_v25  ;;  %3212 = vmatpush1.bf16.msra.mxu1 %v13167_v35  ;;  %v10358_v25 = vld [vmem:[#allocation13 + $0x48] ss:$16 sps:$4 sm:$0xff]   ;;  %v10361_v35 = vld [vmem:[#allocation13 + $0x64] ss:$16 sps:$4 sm:$0xff]  }
 0x546   :  { %3172 = vmatprep.subr.bf16.mxu0 %v13168_v45  ;;  %3213 = vmatprep.subr.bf16.mxu1 %v13169_v31  ;;  %13184 = vst [vmem:[#allocation75_spill] sm:$0xff] %v10358_v25  ;;  %13185 = vst [vmem:[#allocation76_spill] sm:$0xff] %v10361_v35  ;;  %v10364_v45 = vld [vmem:[#allocation13 + $0x6c] ss:$16 sps:$4 sm:$0xff]   ;;  %v10367_v31 = vld [vmem:[#allocation13 + $0x60] ss:$16 sps:$4 sm:$0xff]  }
 0x547   :  { %13186 = vst [vmem:[#allocation77_spill] sm:$0xff] %v10364_v45  ;;  %13187 = vst [vmem:[#allocation78_spill] sm:$0xff] %v10367_v31 }
 0x549   :  { %3173 = vmatpush1.bf16.msra.mxu0 %v9946_v15  ;;  %3214 = vmatpush1.bf16.msra.mxu1 %v9949_v36  ;;  %v10206_v36 = vld [vmem:[#allocation10 + $0xc8] ss:$16 sps:$4 sm:$0xff]  }
 0x54a   :  { %3174 = vmatprep.subr.bf16.mxu0 %v9952_v4  ;;  %3215 = vmatprep.subr.bf16.mxu1 %v9955_v11  ;;  %v10209_v4 = vld [vmem:[#allocation10 + $0xe4] ss:$16 sps:$4 sm:$0xff]   ;;  %v10215_v11 = vld [vmem:[#allocation10 + $0xe0] ss:$16 sps:$4 sm:$0xff]   ;;  %v10218_v15 = vld [vmem:[#allocation10 + $0xe8] ss:$16 sps:$4 sm:$0xff]  }
 0x54d   :  { %3175 = vmatpush1.bf16.msra.mxu0 %v9958_v14  ;;  %3216 = vmatpush1.bf16.msra.mxu1 %v9961_v8  ;;  %v10212_v8 = vld [vmem:[#allocation10 + $0xec] ss:$16 sps:$4 sm:$0xff]   ;;  %v10221_v14 = vld [vmem:[#allocation12 + $0x4] ss:$16 sps:$4 sm:$0xff]  }
 0x54e   :  { %3176 = vmatprep.subr.bf16.mxu0 %v10197_v5  ;;  %3217 = vmatprep.subr.bf16.mxu1 %v10200_v39 }
 0x551   :  { %3177 = vmatpush1.bf16.msra.mxu0 %v10203_v54  ;;  %3218 = vmatpush1.bf16.msra.mxu1 %v10206_v36 }
 0x552   :  { %3178 = vmatprep.subr.bf16.mxu0 %v10209_v4  ;;  %3219 = vmatprep.subr.bf16.mxu1 %v10212_v8 }
 0x555   :  { %3179 = vmatpush1.bf16.msra.mxu0 %v10215_v11  ;;  %3220 = vmatpush1.bf16.msra.mxu1 %v10218_v15 }
 0x556   :  { %3279 = vmatprep.subr.bf16.mxu0 %v10221_v14  ;;  %3320 = vmatprep.subr.bf16.mxu1 %v10224_v47 }
 0x558   :  { %3197 = vmatmul.mubr.bf16.vlgmr.msra.gmra.mrb[56].mxu0 %v10082_v61  ;;  %3238 = vmatmul.mubr.bf16.vlgmr.msra.gmra.mrb[72].mxu1 %v10082_v61  ;;  %v10243_v61 = vld [vmem:[#allocation12 + $0x20] ss:$16 sps:$4 sm:$0xff]  }
 0x559   :  { %3280 = vmatpush1.bf16.msra.mxu0 %v10229_v29  ;;  %3321 = vmatpush1.bf16.msra.mxu1 %v10232_v19 }
 0x55a   :  { %3281 = vmatprep.subr.bf16.mxu0 %v10235_v44  ;;  %3322 = vmatprep.subr.bf16.mxu1 %v10238_v38 }
 0x55b   :  { %3311 = vmatprep.mubr.bf16.mxu0 %v12930_v46  ;;  %3352 = vmatprep.mubr.bf16.mxu1 %v12930_v46 }
 0x55d   :  { %3282 = vmatpush1.bf16.msra.mxu0 %v10243_v61  ;;  %3323 = vmatpush1.bf16.msra.mxu1 %v10246_v32 }
 0x55e   :  { %3283 = vmatprep.subr.bf16.mxu0 %v10249_v26  ;;  %3324 = vmatprep.subr.bf16.mxu1 %v10252_v18 }
 0x561   :  { %3284 = vmatpush1.bf16.msra.mxu0 %v10255_v59  ;;  %3325 = vmatpush1.bf16.msra.mxu1 %v10258_v37 }
 0x562   :  { %3285 = vmatprep.subr.bf16.mxu0 %v10261_v40  ;;  %3326 = vmatprep.subr.bf16.mxu1 %v10264_v41 }
 0x565   :  { %3286 = vmatpush1.bf16.msra.mxu0 %v10267_v23  ;;  %3327 = vmatpush1.bf16.msra.mxu1 %v10270_v56 }
 0x566   :  { %3287 = vmatprep.subr.bf16.mxu0 %v10273_v27  ;;  %3328 = vmatprep.subr.bf16.mxu1 %v10276_v20 }
 0x569   :  { %3288 = vmatpush1.bf16.msra.mxu0 %v10279_v48  ;;  %3329 = vmatpush1.bf16.msra.mxu1 %v10282_v1 }
 0x56a   :  { %3289 = vmatprep.subr.bf16.mxu0 %v10285_v33  ;;  %3330 = vmatprep.subr.bf16.mxu1 %v10288_v13 }
 0x56d   :  { %3290 = vmatpush1.bf16.msra.mxu0 %v10291_v16  ;;  %3331 = vmatpush1.bf16.msra.mxu1 %v10294_v63 }
 0x56e   :  { %3291 = vmatprep.subr.bf16.mxu0 %v10297_v3  ;;  %3332 = vmatprep.subr.bf16.mxu1 %v10300_v43 }
 0x571   :  { %3292 = vmatpush1.bf16.msra.mxu0 %v10303_v12  ;;  %3333 = vmatpush1.bf16.msra.mxu1 %v10306_v10 }
 0x572   :  { %3293 = vmatprep.subr.bf16.mxu0 %v10309_v58  ;;  %3334 = vmatprep.subr.bf16.mxu1 %v10312_v17 }
 0x575   :  { %3294 = vmatpush1.bf16.msra.mxu0 %v10315_v2  ;;  %3335 = vmatpush1.bf16.msra.mxu1 %v10318_v52 }
 0x576   :  { %3390 = vmatprep.subr.bf16.mxu0 %v10321_v28  ;;  %3431 = vmatprep.subr.bf16.mxu1 %v10324_v50 }
 0x578   :  { %3312 = vmatmul.mubr.bf16.vlgmr.msra.gmra.mrb[60].mxu0 %v10130_v34  ;;  %3353 = vmatmul.mubr.bf16.vlgmr.msra.gmra.mrb[76].mxu1 %v10130_v34  ;;  %v10343_v34 = vld [vmem:[#allocation13 + $0x20] ss:$16 sps:$4 sm:$0xff]  }
 0x579   :  { %3391 = vmatpush1.bf16.msra.mxu0 %v10329_v30  ;;  %3432 = vmatpush1.bf16.msra.mxu1 %v10332_v22  ;;  %13179 = vst [vmem:[#allocation70_spill] sm:$0xff] %v10343_v34 }
 0x57a   :  { %3392 = vmatprep.subr.bf16.mxu0 %v10335_v42  ;;  %3433 = vmatprep.subr.bf16.mxu1 %v10338_v62 }
 0x57b   :  { %3422 = vmatprep.mubr.bf16.mxu0 %v12930_v46  ;;  %3463 = vmatprep.mubr.bf16.mxu1 %v12930_v46 }
 0x57d   :  { %3393 = vmatpush1.bf16.msra.mxu0 %v10343_v34  ;;  %3434 = vmatpush1.bf16.msra.mxu1 %v10346_v53 }
 0x57e   :  { %3394 = vmatprep.subr.bf16.mxu0 %v10349_v6  ;;  %3435 = vmatprep.subr.bf16.mxu1 %v10352_v21 }
 0x581   :  { %3395 = vmatpush1.bf16.msra.mxu0 %v10355_v9  ;;  %3436 = vmatpush1.bf16.msra.mxu1 %v10358_v25  ;;  %v10373_v9 = vld [vmem:[#allocation13 + $0x84] ss:$16 sps:$4 sm:$0xff]   ;;  %v10376_v25 = vld [vmem:[#allocation13 + $0x8c] ss:$16 sps:$4 sm:$0xff]  }
 0x582   :  { %3396 = vmatprep.subr.bf16.mxu0 %v10361_v35  ;;  %3437 = vmatprep.subr.bf16.mxu1 %v10364_v45  ;;  %13189 = vst [vmem:[#allocation80_spill] sm:$0xff] %v10373_v9  ;;  %13190 = vst [vmem:[#allocation81_spill] sm:$0xff] %v10376_v25  ;;  %v10379_v35 = vld [vmem:[#allocation13 + $0x80] ss:$16 sps:$4 sm:$0xff]   ;;  %v10382_v45 = vld [vmem:[#allocation13 + $0x88] ss:$16 sps:$4 sm:$0xff]  }
 0x583   :  { %13191 = vst [vmem:[#allocation82_spill] sm:$0xff] %v10379_v35  ;;  %13192 = vst [vmem:[#allocation83_spill] sm:$0xff] %v10382_v45 }
 0x585   :  { %3397 = vmatpush1.bf16.msra.mxu0 %v10367_v31  ;;  %3438 = vmatpush1.bf16.msra.mxu1 %v10370_v7  ;;  %v10385_v31 = vld [vmem:[#allocation13 + $0xa4] ss:$16 sps:$4 sm:$0xff]   ;;  %v10388_v7 = vld [vmem:[#allocation13 + $0xac] ss:$16 sps:$4 sm:$0xff]  }
 0x586   :  { %3398 = vmatprep.subr.bf16.mxu0 %v10373_v9  ;;  %3439 = vmatprep.subr.bf16.mxu1 %v10376_v25  ;;  %13193 = vst [vmem:[#allocation84_spill] sm:$0xff] %v10385_v31  ;;  %13194 = vst [vmem:[#allocation85_spill] sm:$0xff] %v10388_v7  ;;  %v10391_v9 = vld [vmem:[#allocation13 + $0xa0] ss:$16 sps:$4 sm:$0xff]   ;;  %v10394_v25 = vld [vmem:[#allocation13 + $0xa8] ss:$16 sps:$4 sm:$0xff]  }
 0x587   :  { %13195 = vst [vmem:[#allocation86_spill] sm:$0xff] %v10391_v9  ;;  %13196 = vst [vmem:[#allocation87_spill] sm:$0xff] %v10394_v25 }
 0x589   :  { %3399 = vmatpush1.bf16.msra.mxu0 %v10379_v35  ;;  %3440 = vmatpush1.bf16.msra.mxu1 %v10382_v45  ;;  %v10397_v35 = vld [vmem:[#allocation13 + $0xc4] ss:$16 sps:$4 sm:$0xff]   ;;  %v10400_v45 = vld [vmem:[#allocation13 + $0xcc] ss:$16 sps:$4 sm:$0xff]  }
 0x58a   :  { %3400 = vmatprep.subr.bf16.mxu0 %v10385_v31  ;;  %3441 = vmatprep.subr.bf16.mxu1 %v10388_v7  ;;  %13197 = vst [vmem:[#allocation88_spill] sm:$0xff] %v10397_v35  ;;  %13198 = vst [vmem:[#allocation89_spill] sm:$0xff] %v10400_v45  ;;  %v10403_v31 = vld [vmem:[#allocation13 + $0xc0] ss:$16 sps:$4 sm:$0xff]   ;;  %v10406_v7 = vld [vmem:[#allocation13 + $0xc8] ss:$16 sps:$4 sm:$0xff]  }
 0x58b   :  { %13199 = vst [vmem:[#allocation90_spill] sm:$0xff] %v10403_v31  ;;  %13200 = vst [vmem:[#allocation91_spill] sm:$0xff] %v10406_v7 }
 0x58d   :  { %3401 = vmatpush1.bf16.msra.mxu0 %v10391_v9  ;;  %3442 = vmatpush1.bf16.msra.mxu1 %v10394_v25  ;;  %v10409_v9 = vld [vmem:[#allocation13 + $0xe4] ss:$16 sps:$4 sm:$0xff]   ;;  %v10412_v25 = vld [vmem:[#allocation13 + $0xec] ss:$16 sps:$4 sm:$0xff]  }
 0x58e   :  { %3402 = vmatprep.subr.bf16.mxu0 %v10397_v35  ;;  %3443 = vmatprep.subr.bf16.mxu1 %v10400_v45  ;;  %13201 = vst [vmem:[#allocation92_spill] sm:$0xff] %v10409_v9  ;;  %13202 = vst [vmem:[#allocation93_spill] sm:$0xff] %v10412_v25  ;;  %v10415_v35 = vld [vmem:[#allocation13 + $0xe0] ss:$16 sps:$4 sm:$0xff]   ;;  %v10418_v45 = vld [vmem:[#allocation13 + $0xe8] ss:$16 sps:$4 sm:$0xff]  }
 0x58f   :  { %13203 = vst [vmem:[#allocation94_spill] sm:$0xff] %v10415_v35  ;;  %13204 = vst [vmem:[#allocation95_spill] sm:$0xff] %v10418_v45 }
 0x591   :  { %3403 = vmatpush1.bf16.msra.mxu0 %v10403_v31  ;;  %3444 = vmatpush1.bf16.msra.mxu1 %v10406_v7  ;;  %v10421_v31 = vld [vmem:[#allocation15 + $0x4] ss:$16 sps:$4 sm:$0xff]   ;;  %v10424_v7 = vld [vmem:[#allocation15 + $0xc] ss:$16 sps:$4 sm:$0xff]  }
 0x592   :  { %3404 = vmatprep.subr.bf16.mxu0 %v10409_v9  ;;  %3445 = vmatprep.subr.bf16.mxu1 %v10412_v25  ;;  %13205 = vst [vmem:[#allocation96_spill] sm:$0xff] %v10421_v31  ;;  %13206 = vst [vmem:[#allocation97_spill] sm:$0xff] %v10424_v7 }
 0x595   :  { %3405 = vmatpush1.bf16.msra.mxu0 %v10415_v35  ;;  %3446 = vmatpush1.bf16.msra.mxu1 %v10418_v45 }
 0x596   :  { %3477 = vmatprep.subr.bf16.mxu0 %v10421_v31  ;;  %3518 = vmatprep.subr.bf16.mxu1 %v10424_v7 }
 0x60b   :  { %v3081_v9 = vpop.f32.mrb[52].mxu0  ;;  %v3122_v21 = vpop.f32.mrb[68].mxu1 }
 0x60c   :  { %v7126_v25 = vadd.f32 %v3081_v9, %v10053_v51  ;;  %v3083_v6 = vpop.f32.mrb[53].mxu0  ;;  %v10428_v53 = vpop.f32.mrb[69].mxu1  ;;  %v7128_v31 = vadd.f32 %v3122_v21, %v10065_v60  ;;  %v13208_v21 = vld [vmem:[#allocation44_spill] sm:$0xff] }
 0x60d   :  { %v7127_v35 = vadd.f32 %v3083_v6, %v10057_v55  ;;  %v3085_v34 = vpop.f32.mrb[54].mxu0  ;;  %v3126_v62 = vpop.f32.mrb[70].mxu1 }
 0x60e   :  { %v6788_v45 = vmul.f32 -1.442695, %v7126_v25  ;;  %v3086_v42 = vpop.f32.mrb[55].mxu0  ;;  %v3127_v22 = vpop.f32.mrb[71].mxu1 }
 0x60f   :  { %v6789_v30 = vmul.f32 -1.442695, %v7127_v35 }
 0x610   :  { %7617 = vpow2.f32 %v6788_v45 }
 0x611   :  { %7619 = vpow2.f32 %v6789_v30  ;;  %v13207_v30 = vld [vmem:[#allocation28_spill] sm:$0xff] }
 0x612   :  { %7621 = vtanh.f32 %v7128_v31  ;;  %v13209_v31 = vld [vmem:[#allocation29_spill] sm:$0xff] }
 0x61a   :  { %v7618_v7 = vpop.eup %7617 }
 0x61b   :  { %v7620_v50 = vpop.eup %7619  ;;  %v3136_v28 = vadd.f32 1.0, %v7618_v7 }
 0x61c   :  { %v3142_v9 = vadd.f32 1.0, %v7620_v50  ;;  %v7622_v51 = vpop.eup %7621 }
 0x61d   :  { %7623 = vrcp.f32 %v3136_v28  ;;  %v13210_v28 = vld [vmem:[#allocation45_spill] sm:$0xff] }
 0x61e   :  { %7625 = vrcp.f32 %v3142_v9 }
 0x627   :  { %v7624_v52 = vpop.eup %7623 }
 0x628   :  { %v7626_v6 = vpop.eup %7625  ;;  %v3153_v34 = vmul.f32 %v7624_v52, %v7622_v51 }
 0x629   :  { %v3152_v62 = vmul.f32 %v7626_v6, %v10068_v24 }
 0x62b   :  { %v10433_v42 = vadd.f32 %v3153_v34, %v3152_v62  ;;  %v3198_v22 = vpop.f32.mrb[56].mxu0  ;;  %v3239_v25 = vpop.f32.mrb[72].mxu1 }
 0x62c   :  { %v3246_v35 = vadd.f32 %v3198_v22, %v13207_v30  ;;  %v3248_v45 = vadd.f32 %v3239_v25, %v13208_v21  ;;  %v3200_v60 = vpop.f32.mrb[57].mxu0  ;;  %v3241_v7 = vpop.f32.mrb[73].mxu1 }
 0x62d   :  { %v3247_v50 = vadd.f32 %v3200_v60, %v13209_v31  ;;  %v3249_v9 = vadd.f32 %v3241_v7, %v13210_v28  ;;  %v3202_v55 = vpop.f32.mrb[58].mxu0  ;;  %v3243_v2 = vpop.f32.mrb[74].mxu1  ;;  %v13211_v28 = vld [vmem:[#allocation102_spill] sm:$0xff] }
 0x62e   :  { %v6791_v17 = vmul.f32 -1.442695, %v3246_v35  ;;  %v3203_v51 = vpop.f32.mrb[59].mxu0  ;;  %v3244_v52 = vpop.f32.mrb[75].mxu1 }
 0x62f   :  { %v6792_v24 = vmul.f32 -1.442695, %v3247_v50  ;;  %v6793_v6 = vmul.f32 -1.442695, %v3249_v9  ;;  %v13212_v51 = vld [vmem:[#allocation103_spill] sm:$0xff] }
 0x630   :  { %7627 = vpow2.f32 %v6791_v17 }
 0x631   :  { %7629 = vpow2.f32 %v6792_v24 }
 0x632   :  { %7631 = vpow2.f32 %v6793_v6  ;;  %v13213_v6 = vld [vmem:[#allocation104_spill] sm:$0xff] }
 0x633   :  { %7633 = vtanh.f32 %v3248_v45 }
 0x63a   :  { %v7628_v34 = vpop.eup %7627 }
 0x63b   :  { %v7630_v62 = vpop.eup %7629  ;;  %v3253_v22 = vadd.f32 1.0, %v7628_v34 }
 0x63c   :  { %v3259_v25 = vadd.f32 1.0, %v7630_v62  ;;  %v7632_v60 = vpop.eup %7631  ;;  %v13214_v62 = vld [vmem:[#allocation105_spill] sm:$0xff] }
 0x63d   :  { %7635 = vrcp.f32 %v3253_v22  ;;  %v7634_v30 = vpop.eup %7633  ;;  %v3266_v35 = vadd.f32 1.0, %v7632_v60 }
 0x63e   :  { %7637 = vrcp.f32 %v3259_v25 }
 0x63f   :  { %7639 = vrcp.f32 %v3266_v35 }
 0x647   :  { %v7636_v21 = vpop.eup %7635 }
 0x648   :  { %v7638_v55 = vpop.eup %7637  ;;  %v3270_v2 = vmul.f32 %v7636_v21, %v7634_v30 }
 0x649   :  { %v3269_v7 = vmul.f32 %v7638_v55, %v10075_v49 }
 0x64b   :  { %v10440_v31 = vadd.f32 %v3270_v2, %v3269_v7  ;;  %v3313_v17 = vpop.f32.mrb[60].mxu0  ;;  %v3354_v50 = vpop.f32.mrb[76].mxu1 }
 0x64c   :  { %v3361_v9 = vadd.f32 %v3313_v17, %v13211_v28  ;;  %v3363_v45 = vadd.f32 %v3354_v50, %v13212_v51  ;;  %v3315_v52 = vpop.f32.mrb[61].mxu0  ;;  %v3356_v24 = vpop.f32.mrb[77].mxu1 }
 0x64d   :  { %v3362_v34 = vadd.f32 %v3315_v52, %v13213_v6  ;;  %v3364_v22 = vadd.f32 %v3356_v24, %v13214_v62  ;;  %v3317_v25 = vpop.f32.mrb[62].mxu0  ;;  %v3358_v30 = vpop.f32.mrb[78].mxu1  ;;  %7641 = vtanh.f32 %v10440_v31  ;;  %v10454_v6 = vld [vmem:[#allocation15 + $0x8] ss:$16 sps:$4 sm:$0xff]   ;;  %v10465_v62 = vld [vmem:[#allocation15 + $0x20] ss:$16 sps:$4 sm:$0xff]  }
 0x64e   :  { %v6794_v49 = vmul.f32 -1.442695, %v3361_v9  ;;  %v3318_v60 = vpop.f32.mrb[63].mxu0  ;;  %v3359_v21 = vpop.f32.mrb[79].mxu1  ;;  %v10451_v9 = vld [vmem:[#allocation15] ss:$16 sps:$4 sm:$0xff]  }
 0x64f   :  { %v6795_v55 = vmul.f32 -1.442695, %v3362_v34  ;;  %v7640_v2 = vpop.eup %7639  ;;  %v6796_v7 = vmul.f32 -1.442695, %v3364_v22  ;;  %v10457_v34 = vld [vmem:[#allocation15 + $0x24] ss:$16 sps:$4 sm:$0xff]  }
 0x650   :  { %7643 = vpow2.f32 %v6794_v49  ;;  %v10468_v22 = vld [vmem:[#allocation15 + $0x28] ss:$16 sps:$4 sm:$0xff]   ;;  %v10471_v25 = vld [vmem:[#allocation15 + $0x44] ss:$16 sps:$4 sm:$0xff]   ;;  %v10474_v30 = vld [vmem:[#allocation15 + $0x4c] ss:$16 sps:$4 sm:$0xff]  }
 0x651   :  { %7645 = vpow2.f32 %v6795_v55  ;;  %v10477_v60 = vld [vmem:[#allocation15 + $0x40] ss:$16 sps:$4 sm:$0xff]   ;;  %v10480_v21 = vld [vmem:[#allocation15 + $0x48] ss:$16 sps:$4 sm:$0xff]  }
 0x652   :  { %7647 = vpow2.f32 %v6796_v7  ;;  %13215 = vst [vmem:[#allocation24_spill] sm:$0xff] %v10477_v60  ;;  %13216 = vst [vmem:[#allocation25_spill] sm:$0xff] %v10480_v21 }
 0x653   :  { %7649 = vtanh.f32 %v3363_v45  ;;  %v10460_v45 = vld [vmem:[#allocation15 + $0x2c] ss:$16 sps:$4 sm:$0xff]  }
 0x657   :  { %v7642_v35 = vpop.eup %7641 }
 0x658   :  { %v3273_v17 = vmul.f32 %v7642_v35, %v7640_v2  ;;  %v10483_v2 = vld [vmem:[#allocation15 + $0x64] ss:$16 sps:$4 sm:$0xff]   ;;  %v10486_v35 = vld [vmem:[#allocation15 + $0x6c] ss:$16 sps:$4 sm:$0xff]  }
 0x659   :  { %13217 = vst [vmem:[#allocation40_spill] sm:$0xff] %v10483_v2 }
 0x65a   :  { %v7644_v50 = vpop.eup %7643  ;;  %v10447_v28 = vpack.c.bf16 %v3273_v17, %v3273_v17 }
 0x65b   :  { %v7646_v51 = vpop.eup %7645  ;;  %v3368_v52 = vadd.f32 1.0, %v7644_v50 }
 0x65c   :  { %v3374_v24 = vadd.f32 1.0, %v7646_v51  ;;  %3423 = vmatmul.mubr.bf16.vlgmr.msra.gmra.mrb[64].mxu0 %v10447_v28  ;;  %3464 = vmatmul.mubr.bf16.vlgmr.msra.gmra.mrb[80].mxu1 %v10447_v28  ;;  %v7648_v49 = vpop.eup %7647 }
 0x65d   :  { %7651 = vrcp.f32 %v3368_v52  ;;  %3478 = vmatpush1.bf16.msra.mxu0 %v10451_v9  ;;  %3519 = vmatpush1.bf16.msra.mxu1 %v10454_v6  ;;  %v7650_v55 = vpop.eup %7649  ;;  %v3381_v51 = vadd.f32 1.0, %v7648_v49  ;;  %v10507_v49 = vld [vmem:[#allocation15 + $0x88] ss:$16 sps:$4 sm:$0xff]  }
 0x65e   :  { %7653 = vrcp.f32 %v3374_v24  ;;  %3479 = vmatprep.subr.bf16.mxu0 %v10457_v34  ;;  %3520 = vmatprep.subr.bf16.mxu1 %v10460_v45  ;;  %v10490_v24 = vld [vmem:[#allocation15 + $0x60] ss:$16 sps:$4 sm:$0xff]   ;;  %13220 = vst [vmem:[#allocation27_spill] sm:$0xff] %v10507_v49 }
 0x65f   :  { %3509 = vmatprep.mubr.bf16.mxu0 %v12930_v46  ;;  %3550 = vmatprep.mubr.bf16.mxu1 %v12930_v46  ;;  %7655 = vrcp.f32 %v3381_v51  ;;  %v10520_v51 = vld [vmem:[#allocation15 + $0xa8] ss:$16 sps:$4 sm:$0xff]  }
 0x660   :  { %13224 = vst [vmem:[#allocation100_spill] sm:$0xff] %v10520_v51 }
 0x661   :  { %3480 = vmatpush1.bf16.msra.mxu0 %v10465_v62  ;;  %3521 = vmatpush1.bf16.msra.mxu1 %v10468_v22 }
 0x662   :  { %3481 = vmatprep.subr.bf16.mxu0 %v10471_v25  ;;  %3522 = vmatprep.subr.bf16.mxu1 %v10474_v30 }
 0x665   :  { %3482 = vmatpush1.bf16.msra.mxu0 %v10477_v60  ;;  %3523 = vmatpush1.bf16.msra.mxu1 %v10480_v21  ;;  %v10493_v21 = vld [vmem:[#allocation15 + $0x68] ss:$16 sps:$4 sm:$0xff]   ;;  %v10496_v60 = vld [vmem:[#allocation15 + $0x84] ss:$16 sps:$4 sm:$0xff]  }
 0x666   :  { %3483 = vmatprep.subr.bf16.mxu0 %v10483_v2  ;;  %3524 = vmatprep.subr.bf16.mxu1 %v10486_v35  ;;  %v10499_v2 = vld [vmem:[#allocation15 + $0x8c] ss:$16 sps:$4 sm:$0xff]  }
 0x667   :  { %v7652_v7 = vpop.eup %7651  ;;  %13218 = vst [vmem:[#allocation26_spill] sm:$0xff] %v10499_v2 }
 0x668   :  { %v7654_v17 = vpop.eup %7653  ;;  %v3385_v50 = vmul.f32 %v7652_v7, %v7650_v55  ;;  %v10511_v7 = vld [vmem:[#allocation15 + $0xa4] ss:$16 sps:$4 sm:$0xff]  }
 0x669   :  { %v3384_v52 = vmul.f32 %v7654_v17, %v10105_v0  ;;  %3484 = vmatpush1.bf16.msra.mxu0 %v10490_v24  ;;  %3525 = vmatpush1.bf16.msra.mxu1 %v10493_v21  ;;  %v10504_v0 = vld [vmem:[#allocation15 + $0x80] ss:$16 sps:$4 sm:$0xff]   ;;  %13221 = vst [vmem:[#allocation43_spill] sm:$0xff] %v10511_v7  ;;  %v10514_v17 = vld [vmem:[#allocation15 + $0xac] ss:$16 sps:$4 sm:$0xff]  }
 0x66a   :  { %3485 = vmatprep.subr.bf16.mxu0 %v10496_v60  ;;  %3526 = vmatprep.subr.bf16.mxu1 %v10499_v2  ;;  %13219 = vst [vmem:[#allocation42_spill] sm:$0xff] %v10504_v0  ;;  %13222 = vst [vmem:[#allocation98_spill] sm:$0xff] %v10514_v17  ;;  %v10537_v2 = vld [vmem:[#allocation15 + $0xe4] ss:$16 sps:$4 sm:$0xff]  }
 0x66b   :  { %v10502_v55 = vadd.f32 %v3385_v50, %v3384_v52  ;;  %v10517_v50 = vld [vmem:[#allocation15 + $0xa0] ss:$16 sps:$4 sm:$0xff]   ;;  %v7129_v52 = vadd.f32 %v10428_v53, %v10112_v57  ;;  %13229 = vst [vmem:[#allocation128_spill] sm:$0xff] %v10537_v2  ;;  %v10540_v53 = vld [vmem:[#allocation15 + $0xec] ss:$16 sps:$4 sm:$0xff]  }
 0x66c   :  { %13223 = vst [vmem:[#allocation99_spill] sm:$0xff] %v10517_v50  ;;  %13230 = vst [vmem:[#allocation129_spill] sm:$0xff] %v10540_v53  ;;  %v10543_v57 = vld [vmem:[#allocation15 + $0xe0] ss:$16 sps:$4 sm:$0xff]  }
 0x66d   :  { %3486 = vmatpush1.bf16.msra.mxu0 %v10504_v0  ;;  %3527 = vmatpush1.bf16.msra.mxu1 %v10507_v49  ;;  %7657 = vtanh.f32 %v10502_v55  ;;  %v10525_v49 = vld [vmem:[#allocation15 + $0xc4] ss:$16 sps:$4 sm:$0xff]   ;;  %v6790_v0 = vmul.f32 -1.442695, %v7129_v52  ;;  %13231 = vst [vmem:[#allocation130_spill] sm:$0xff] %v10543_v57 }
 0x66e   :  { %3487 = vmatprep.subr.bf16.mxu0 %v10511_v7  ;;  %3528 = vmatprep.subr.bf16.mxu1 %v10514_v17  ;;  %13225 = vst [vmem:[#allocation101_spill] sm:$0xff] %v10525_v49  ;;  %v10528_v7 = vld [vmem:[#allocation15 + $0xcc] ss:$16 sps:$4 sm:$0xff]   ;;  %v10531_v17 = vld [vmem:[#allocation15 + $0xc0] ss:$16 sps:$4 sm:$0xff]  }
 0x66f   :  { %13226 = vst [vmem:[#allocation126_spill] sm:$0xff] %v10528_v7  ;;  %13227 = vst [vmem:[#allocation127_spill] sm:$0xff] %v10531_v17  ;;  %7659 = vpow2.f32 %v6790_v0  ;;  %v10549_v52 = vld [vmem:[#allocation16 + $0x4] ss:$16 sps:$4 sm:$0xff]  }
 0x670   :  { %13233 = vst [vmem:[#allocation132_spill] sm:$0xff] %v10549_v52  ;;  %v10565_v0 = vld [vmem:[#allocation16 + $0x24] ss:$16 sps:$4 sm:$0xff]   ;;  %7661 = vtanh.f32 %v10433_v42 }
 0x671   :  { %3488 = vmatpush1.bf16.msra.mxu0 %v10517_v50  ;;  %3529 = vmatpush1.bf16.msra.mxu1 %v10520_v51  ;;  %v10534_v50 = vld [vmem:[#allocation15 + $0xc8] ss:$16 sps:$4 sm:$0xff]   ;;  %v7656_v51 = vpop.eup %7655  ;;  %13237 = vst [vmem:[#allocation136_spill] sm:$0xff] %v10565_v0 }
 0x672   :  { %3489 = vmatprep.subr.bf16.mxu0 %v10525_v49  ;;  %3530 = vmatprep.subr.bf16.mxu1 %v10528_v7  ;;  %13228 = vst [vmem:[#allocation41_spill] sm:$0xff] %v10534_v50 }
 0x675   :  { %3490 = vmatpush1.bf16.msra.mxu0 %v10531_v17  ;;  %3531 = vmatpush1.bf16.msra.mxu1 %v10534_v50  ;;  %v10546_v17 = vld [vmem:[#allocation15 + $0xe8] ss:$16 sps:$4 sm:$0xff]  }
 0x676   :  { %3491 = vmatprep.subr.bf16.mxu0 %v10537_v2  ;;  %3532 = vmatprep.subr.bf16.mxu1 %v10540_v53  ;;  %13232 = vst [vmem:[#allocation131_spill] sm:$0xff] %v10546_v17  ;;  %v10552_v2 = vld [vmem:[#allocation16 + $0xc] ss:$16 sps:$4 sm:$0xff]   ;;  %v10651_v50 = vld [vmem:[#allocation16 + $0xe8] ss:$16 sps:$4 sm:$0xff]  }
 0x677   :  { %v7658_v49 = vpop.eup %7657  ;;  %13234 = vst [vmem:[#allocation133_spill] sm:$0xff] %v10552_v2  ;;  %13263 = vst [vmem:[#allocation162_spill] sm:$0xff] %v10651_v50 }
 0x678   :  { %v3388_v7 = vmul.f32 %v7658_v49, %v7656_v51  ;;  %v10559_v49 = vld [vmem:[#allocation16] ss:$16 sps:$4 sm:$0xff]   ;;  %v10562_v51 = vld [vmem:[#allocation16 + $0x8] ss:$16 sps:$4 sm:$0xff]  }
 0x679   :  { %3492 = vmatpush1.bf16.msra.mxu0 %v10543_v57  ;;  %3533 = vmatpush1.bf16.msra.mxu1 %v10546_v17  ;;  %13235 = vst [vmem:[#allocation134_spill] sm:$0xff] %v10559_v49  ;;  %13236 = vst [vmem:[#allocation135_spill] sm:$0xff] %v10562_v51  ;;  %v10588_v17 = vld [vmem:[#allocation16 + $0x48] ss:$16 sps:$4 sm:$0xff]   ;;  %v10634_v57 = vld [vmem:[#allocation16 + $0xc0] ss:$16 sps:$4 sm:$0xff]  }
 0x67a   :  { %3564 = vmatprep.subr.bf16.mxu0 %v10549_v52  ;;  %3605 = vmatprep.subr.bf16.mxu1 %v10552_v2  ;;  %v10555_v53 = vpack.c.bf16 %v3388_v7, %v3388_v7  ;;  %v10568_v52 = vld [vmem:[#allocation16 + $0x2c] ss:$16 sps:$4 sm:$0xff]   ;;  %v10573_v7 = vld [vmem:[#allocation16 + $0x20] ss:$16 sps:$4 sm:$0xff]   ;;  %13244 = vst [vmem:[#allocation143_spill] sm:$0xff] %v10588_v17  ;;  %13259 = vst [vmem:[#allocation158_spill] sm:$0xff] %v10634_v57 }
 0x67b   :  { %13238 = vst [vmem:[#allocation137_spill] sm:$0xff] %v10568_v52  ;;  %13239 = vst [vmem:[#allocation138_spill] sm:$0xff] %v10573_v7  ;;  %v10585_v2 = vld [vmem:[#allocation16 + $0x40] ss:$16 sps:$4 sm:$0xff]  }
 0x67c   :  { %3510 = vmatmul.mubr.bf16.vlgmr.msra.gmra.mrb[64].mxu0 %v10555_v53  ;;  %3551 = vmatmul.mubr.bf16.vlgmr.msra.gmra.mrb[80].mxu1 %v10555_v53  ;;  %13243 = vst [vmem:[#allocation142_spill] sm:$0xff] %v10585_v2 }
 0x67d   :  { %3565 = vmatpush1.bf16.msra.mxu0 %v10559_v49  ;;  %3606 = vmatpush1.bf16.msra.mxu1 %v10562_v51  ;;  %v10576_v49 = vld [vmem:[#allocation16 + $0x28] ss:$16 sps:$4 sm:$0xff]   ;;  %v10579_v51 = vld [vmem:[#allocation16 + $0x44] ss:$16 sps:$4 sm:$0xff]  }
 0x67e   :  { %3566 = vmatprep.subr.bf16.mxu0 %v10565_v0  ;;  %3607 = vmatprep.subr.bf16.mxu1 %v10568_v52  ;;  %13240 = vst [vmem:[#allocation139_spill] sm:$0xff] %v10576_v49  ;;  %13241 = vst [vmem:[#allocation140_spill] sm:$0xff] %v10579_v51  ;;  %v10582_v0 = vld [vmem:[#allocation16 + $0x4c] ss:$16 sps:$4 sm:$0xff]   ;;  %v7660_v52 = vpop.eup %7659 }
 0x67f   :  { %3596 = vmatprep.mubr.bf16.mxu0 %v12930_v46  ;;  %3637 = vmatprep.mubr.bf16.mxu1 %v12930_v46  ;;  %13242 = vst [vmem:[#allocation141_spill] sm:$0xff] %v10582_v0 }
 0x681   :  { %3567 = vmatpush1.bf16.msra.mxu0 %v10573_v7  ;;  %3608 = vmatpush1.bf16.msra.mxu1 %v10576_v49  ;;  %v10591_v7 = vld [vmem:[#allocation16 + $0x64] ss:$16 sps:$4 sm:$0xff]   ;;  %v10594_v49 = vld [vmem:[#allocation16 + $0x6c] ss:$16 sps:$4 sm:$0xff]  }
 0x682   :  { %3568 = vmatprep.subr.bf16.mxu0 %v10579_v51  ;;  %3609 = vmatprep.subr.bf16.mxu1 %v10582_v0  ;;  %13245 = vst [vmem:[#allocation144_spill] sm:$0xff] %v10591_v7  ;;  %13246 = vst [vmem:[#allocation145_spill] sm:$0xff] %v10594_v49  ;;  %v3149_v51 = vadd.f32 1.0, %v7660_v52  ;;  %v10598_v0 = vld [vmem:[#allocation16 + $0x60] ss:$16 sps:$4 sm:$0xff]  }
 0x683   :  { %13247 = vst [vmem:[#allocation146_spill] sm:$0xff] %v10598_v0  ;;  %v10610_v52 = vld [vmem:[#allocation16 + $0x80] ss:$16 sps:$4 sm:$0xff]  }
 0x684   :  { %7663 = vrcp.f32 %v3149_v51  ;;  %13251 = vst [vmem:[#allocation150_spill] sm:$0xff] %v10610_v52  ;;  %v10625_v51 = vld [vmem:[#allocation16 + $0xa8] ss:$16 sps:$4 sm:$0xff]  }
 0x685   :  { %3569 = vmatpush1.bf16.msra.mxu0 %v10585_v2  ;;  %3610 = vmatpush1.bf16.msra.mxu1 %v10588_v17  ;;  %v10601_v2 = vld [vmem:[#allocation16 + $0x68] ss:$16 sps:$4 sm:$0xff]   ;;  %v10604_v17 = vld [vmem:[#allocation16 + $0x84] ss:$16 sps:$4 sm:$0xff]   ;;  %13256 = vst [vmem:[#allocation155_spill] sm:$0xff] %v10625_v51 }
 0x686   :  { %3570 = vmatprep.subr.bf16.mxu0 %v10591_v7  ;;  %3611 = vmatprep.subr.bf16.mxu1 %v10594_v49  ;;  %13248 = vst [vmem:[#allocation147_spill] sm:$0xff] %v10601_v2  ;;  %13249 = vst [vmem:[#allocation148_spill] sm:$0xff] %v10604_v17  ;;  %v10607_v7 = vld [vmem:[#allocation16 + $0x8c] ss:$16 sps:$4 sm:$0xff]   ;;  %v10613_v49 = vld [vmem:[#allocation16 + $0x88] ss:$16 sps:$4 sm:$0xff]  }
 0x687   :  { %13250 = vst [vmem:[#allocation149_spill] sm:$0xff] %v10607_v7  ;;  %13252 = vst [vmem:[#allocation151_spill] sm:$0xff] %v10613_v49 }
 0x689   :  { %3571 = vmatpush1.bf16.msra.mxu0 %v10598_v0  ;;  %3612 = vmatpush1.bf16.msra.mxu1 %v10601_v2  ;;  %v10616_v0 = vld [vmem:[#allocation16 + $0xa4] ss:$16 sps:$4 sm:$0xff]   ;;  %v10619_v2 = vld [vmem:[#allocation16 + $0xac] ss:$16 sps:$4 sm:$0xff]  }
 0x68a   :  { %3572 = vmatprep.subr.bf16.mxu0 %v10604_v17  ;;  %3613 = vmatprep.subr.bf16.mxu1 %v10607_v7  ;;  %13253 = vst [vmem:[#allocation152_spill] sm:$0xff] %v10616_v0  ;;  %13254 = vst [vmem:[#allocation153_spill] sm:$0xff] %v10619_v2  ;;  %v10622_v17 = vld [vmem:[#allocation16 + $0xa0] ss:$16 sps:$4 sm:$0xff]  }
 0x68b   :  { %13255 = vst [vmem:[#allocation154_spill] sm:$0xff] %v10622_v17 }
 0x68d   :  { %3573 = vmatpush1.bf16.msra.mxu0 %v10610_v52  ;;  %3614 = vmatpush1.bf16.msra.mxu1 %v10613_v49  ;;  %v10628_v52 = vld [vmem:[#allocation16 + $0xc4] ss:$16 sps:$4 sm:$0xff]   ;;  %v10631_v49 = vld [vmem:[#allocation16 + $0xcc] ss:$16 sps:$4 sm:$0xff]  }
 0x68e   :  { %3574 = vmatprep.subr.bf16.mxu0 %v10616_v0  ;;  %3615 = vmatprep.subr.bf16.mxu1 %v10619_v2  ;;  %13257 = vst [vmem:[#allocation156_spill] sm:$0xff] %v10628_v52  ;;  %13258 = vst [vmem:[#allocation157_spill] sm:$0xff] %v10631_v49  ;;  %v7662_v0 = vpop.eup %7661  ;;  %v10637_v2 = vld [vmem:[#allocation16 + $0xc8] ss:$16 sps:$4 sm:$0xff]  }
 0x68f   :  { %v7664_v7 = vpop.eup %7663  ;;  %13260 = vst [vmem:[#allocation159_spill] sm:$0xff] %v10637_v2 }
 0x691   :  { %3575 = vmatpush1.bf16.msra.mxu0 %v10622_v17  ;;  %3616 = vmatpush1.bf16.msra.mxu1 %v10625_v51  ;;  %v10640_v17 = vld [vmem:[#allocation16 + $0xe4] ss:$16 sps:$4 sm:$0xff]   ;;  %v10643_v51 = vld [vmem:[#allocation16 + $0xec] ss:$16 sps:$4 sm:$0xff]  }
 0x692   :  { %3576 = vmatprep.subr.bf16.mxu0 %v10628_v52  ;;  %3617 = vmatprep.subr.bf16.mxu1 %v10631_v49  ;;  %13261 = vst [vmem:[#allocation160_spill] sm:$0xff] %v10640_v17  ;;  %v10646_v52 = vmul.f32 %v7664_v7, %v7662_v0  ;;  %v10648_v49 = vld [vmem:[#allocation16 + $0xe0] ss:$16 sps:$4 sm:$0xff]   ;;  %v10665_v7 = vld [vmem:[#allocation10 + $0x8] ss:$16 sps:$4 sm:$0xff]  }
 0x693   :  { %v10662_v0 = vld [vmem:[#allocation10] ss:$16 sps:$4 sm:$0xff]   ;;  %13266 = vst [vmem:[#allocation165_spill] sm:$0xff] %v10665_v7 }
 0x694   :  { %13262 = vst [vmem:[#allocation161_spill] sm:$0xff] %v10646_v52  ;;  %13265 = vst [vmem:[#allocation164_spill] sm:$0xff] %v10662_v0 }
 0x695   :  { %3577 = vmatpush1.bf16.msra.mxu0 %v10634_v57  ;;  %3618 = vmatpush1.bf16.msra.mxu1 %v10637_v2  ;;  %v3563_v2 = vpack.c.bf16 %v10646_v52, %v10646_v52  ;;  %v10656_v57 = vld [vmem:[#allocation10 + $0x4] ss:$16 sps:$4 sm:$0xff]   ;;  %v10671_v52 = vld [vmem:[#allocation10 + $0x2c] ss:$16 sps:$4 sm:$0xff]  }
 0x696   :  { %3578 = vmatprep.subr.bf16.mxu0 %v10640_v17  ;;  %3619 = vmatprep.subr.bf16.mxu1 %v10643_v51  ;;  %v10659_v17 = vld [vmem:[#allocation10 + $0xc] ss:$16 sps:$4 sm:$0xff]   ;;  %13268 = vst [vmem:[#allocation167_spill] sm:$0xff] %v10671_v52 }
 0x697   :  { %13264 = vst [vmem:[#allocation163_spill] sm:$0xff] %v10659_v17 }
 0x699   :  { %3579 = vmatpush1.bf16.msra.mxu0 %v10648_v49  ;;  %3620 = vmatpush1.bf16.msra.mxu1 %v10651_v50  ;;  %v10668_v50 = vld [vmem:[#allocation10 + $0x24] ss:$16 sps:$4 sm:$0xff]  }
 0x69a   :  { %3681 = vmatprep.subr.bf16.mxu0 %v10656_v57  ;;  %3722 = vmatprep.subr.bf16.mxu1 %v10659_v17  ;;  %13267 = vst [vmem:[#allocation166_spill] sm:$0xff] %v10668_v50  ;;  %v10691_v17 = vld [vmem:[#allocation10 + $0x48] ss:$16 sps:$4 sm:$0xff]  }
 0x69b   :  { %13274 = vst [vmem:[#allocation173_spill] sm:$0xff] %v10691_v17 }
 0x69c   :  { %3597 = vmatmul.mubr.bf16.vlgmr.msra.gmra.mrb[64].mxu0 %v3563_v2  ;;  %3638 = vmatmul.mubr.bf16.vlgmr.msra.gmra.mrb[80].mxu1 %v3563_v2  ;;  %v10676_v2 = vld [vmem:[#allocation10 + $0x20] ss:$16 sps:$4 sm:$0xff]  }
 0x69d   :  { %3682 = vmatpush1.bf16.msra.mxu0 %v10662_v0  ;;  %3723 = vmatpush1.bf16.msra.mxu1 %v10665_v7  ;;  %13269 = vst [vmem:[#allocation168_spill] sm:$0xff] %v10676_v2  ;;  %v10679_v0 = vld [vmem:[#allocation10 + $0x28] ss:$16 sps:$4 sm:$0xff]   ;;  %v10682_v7 = vld [vmem:[#allocation10 + $0x44] ss:$16 sps:$4 sm:$0xff]  }
 0x69e   :  { %3683 = vmatprep.subr.bf16.mxu0 %v10668_v50  ;;  %3724 = vmatprep.subr.bf16.mxu1 %v10671_v52  ;;  %13270 = vst [vmem:[#allocation169_spill] sm:$0xff] %v10679_v0  ;;  %13271 = vst [vmem:[#allocation170_spill] sm:$0xff] %v10682_v7  ;;  %v10685_v50 = vld [vmem:[#allocation10 + $0x4c] ss:$16 sps:$4 sm:$0xff]   ;;  %v10688_v52 = vld [vmem:[#allocation10 + $0x40] ss:$16 sps:$4 sm:$0xff]  }
 0x69f   :  { %3713 = vmatprep.mubr.bf16.mxu0 %v12930_v46  ;;  %3754 = vmatprep.mubr.bf16.mxu1 %v12930_v46  ;;  %13272 = vst [vmem:[#allocation171_spill] sm:$0xff] %v10685_v50  ;;  %13273 = vst [vmem:[#allocation172_spill] sm:$0xff] %v10688_v52 }
 0x6a1   :  { %3684 = vmatpush1.bf16.msra.mxu0 %v10676_v2  ;;  %3725 = vmatpush1.bf16.msra.mxu1 %v10679_v0  ;;  %v10694_v2 = vld [vmem:[#allocation10 + $0x64] ss:$16 sps:$4 sm:$0xff]   ;;  %v10697_v0 = vld [vmem:[#allocation10 + $0x6c] ss:$16 sps:$4 sm:$0xff]  }
 0x6a2   :  { %3685 = vmatprep.subr.bf16.mxu0 %v10682_v7  ;;  %3726 = vmatprep.subr.bf16.mxu1 %v10685_v50  ;;  %13275 = vst [vmem:[#allocation174_spill] sm:$0xff] %v10694_v2  ;;  %13276 = vst [vmem:[#allocation175_spill] sm:$0xff] %v10697_v0  ;;  %v10700_v7 = vld [vmem:[#allocation10 + $0x60] ss:$16 sps:$4 sm:$0xff]   ;;  %v10703_v50 = vld [vmem:[#allocation10 + $0x68] ss:$16 sps:$4 sm:$0xff]  }
 0x6a3   :  { %13277 = vst [vmem:[#allocation176_spill] sm:$0xff] %v10700_v7  ;;  %13278 = vst [vmem:[#allocation177_spill] sm:$0xff] %v10703_v50 }
 0x6a5   :  { %3686 = vmatpush1.bf16.msra.mxu0 %v10688_v52  ;;  %3727 = vmatpush1.bf16.msra.mxu1 %v10691_v17  ;;  %v10706_v52 = vld [vmem:[#allocation10 + $0x84] ss:$16 sps:$4 sm:$0xff]   ;;  %v10709_v17 = vld [vmem:[#allocation10 + $0x8c] ss:$16 sps:$4 sm:$0xff]  }
 0x6a6   :  { %3687 = vmatprep.subr.bf16.mxu0 %v10694_v2  ;;  %3728 = vmatprep.subr.bf16.mxu1 %v10697_v0  ;;  %13279 = vst [vmem:[#allocation178_spill] sm:$0xff] %v10706_v52  ;;  %13280 = vst [vmem:[#allocation179_spill] sm:$0xff] %v10709_v17  ;;  %v10712_v2 = vld [vmem:[#allocation10 + $0x80] ss:$16 sps:$4 sm:$0xff]   ;;  %v10715_v0 = vld [vmem:[#allocation10 + $0x88] ss:$16 sps:$4 sm:$0xff]  }
 0x6a9   :  { %3688 = vmatpush1.bf16.msra.mxu0 %v10700_v7  ;;  %3729 = vmatpush1.bf16.msra.mxu1 %v10703_v50  ;;  %v10718_v7 = vld [vmem:[#allocation10 + $0xa4] ss:$16 sps:$4 sm:$0xff]   ;;  %v10721_v50 = vld [vmem:[#allocation10 + $0xac] ss:$16 sps:$4 sm:$0xff]  }
 0x6aa   :  { %3689 = vmatprep.subr.bf16.mxu0 %v10706_v52  ;;  %3730 = vmatprep.subr.bf16.mxu1 %v10709_v17  ;;  %v10724_v52 = vld [vmem:[#allocation10 + $0xa0] ss:$16 sps:$4 sm:$0xff]   ;;  %v10727_v17 = vld [vmem:[#allocation10 + $0xa8] ss:$16 sps:$4 sm:$0xff]  }
 0x6ad   :  { %3690 = vmatpush1.bf16.msra.mxu0 %v10712_v2  ;;  %3731 = vmatpush1.bf16.msra.mxu1 %v10715_v0 }
 0x6ae   :  { %3691 = vmatprep.subr.bf16.mxu0 %v10718_v7  ;;  %3732 = vmatprep.subr.bf16.mxu1 %v10721_v50 }
 0x6b1   :  { %3692 = vmatpush1.bf16.msra.mxu0 %v10724_v52  ;;  %3733 = vmatpush1.bf16.msra.mxu1 %v10727_v17 }
 0x6b2   :  { %3693 = vmatprep.subr.bf16.mxu0 %v10197_v5  ;;  %3734 = vmatprep.subr.bf16.mxu1 %v10200_v39  ;;  %v13281_v5 = vld [vmem:[#allocation61_spill] sm:$0xff]  ;;  %v13282_v39 = vld [vmem:[#allocation62_spill] sm:$0xff] }
 0x6b5   :  { %3694 = vmatpush1.bf16.msra.mxu0 %v10203_v54  ;;  %3735 = vmatpush1.bf16.msra.mxu1 %v10206_v36  ;;  %v13283_v54 = vld [vmem:[#allocation63_spill] sm:$0xff]  ;;  %v13284_v36 = vld [vmem:[#allocation64_spill] sm:$0xff] }
 0x6b6   :  { %3695 = vmatprep.subr.bf16.mxu0 %v10209_v4  ;;  %3736 = vmatprep.subr.bf16.mxu1 %v10212_v8  ;;  %v13285_v4 = vld [vmem:[#allocation65_spill] sm:$0xff]  ;;  %v13286_v8 = vld [vmem:[#allocation66_spill] sm:$0xff] }
 0x6b9   :  { %3696 = vmatpush1.bf16.msra.mxu0 %v10215_v11  ;;  %3737 = vmatpush1.bf16.msra.mxu1 %v10218_v15  ;;  %v13287_v11 = vld [vmem:[#allocation67_spill] sm:$0xff]  ;;  %v13288_v15 = vld [vmem:[#allocation68_spill] sm:$0xff] }
 0x6ba   :  { %3796 = vmatprep.subr.bf16.mxu0 %v10221_v14  ;;  %3837 = vmatprep.subr.bf16.mxu1 %v10224_v47  ;;  %v13289_v14 = vld [vmem:[#allocation69_spill] sm:$0xff]  ;;  %v13290_v47 = vld [vmem:[#allocation70_spill] sm:$0xff] }
 0x6bc   :  { %3714 = vmatmul.mubr.bf16.vlgmr.msra.gmra.mrb[68].mxu0 %v10447_v28  ;;  %3755 = vmatmul.mubr.bf16.vlgmr.msra.gmra.mrb[84].mxu1 %v10447_v28 }
 0x6bd   :  { %3797 = vmatpush1.bf16.msra.mxu0 %v10229_v29  ;;  %3838 = vmatpush1.bf16.msra.mxu1 %v10232_v19  ;;  %v13291_v29 = vld [vmem:[#allocation71_spill] sm:$0xff]  ;;  %v13292_v19 = vld [vmem:[#allocation72_spill] sm:$0xff] }
 0x6be   :  { %3798 = vmatprep.subr.bf16.mxu0 %v10235_v44  ;;  %3839 = vmatprep.subr.bf16.mxu1 %v10238_v38  ;;  %v13293_v44 = vld [vmem:[#allocation73_spill] sm:$0xff]  ;;  %v13294_v38 = vld [vmem:[#allocation74_spill] sm:$0xff] }
 0x6bf   :  { %3828 = vmatprep.mubr.bf16.mxu0 %v12930_v46  ;;  %3869 = vmatprep.mubr.bf16.mxu1 %v12930_v46 }
 0x6c1   :  { %3799 = vmatpush1.bf16.msra.mxu0 %v10243_v61  ;;  %3840 = vmatpush1.bf16.msra.mxu1 %v10246_v32  ;;  %v13295_v61 = vld [vmem:[#allocation75_spill] sm:$0xff]  ;;  %v13296_v32 = vld [vmem:[#allocation76_spill] sm:$0xff] }
 0x6c2   :  { %3800 = vmatprep.subr.bf16.mxu0 %v10249_v26  ;;  %3841 = vmatprep.subr.bf16.mxu1 %v10252_v18  ;;  %v13297_v26 = vld [vmem:[#allocation77_spill] sm:$0xff]  ;;  %v13298_v18 = vld [vmem:[#allocation78_spill] sm:$0xff] }
 0x6c5   :  { %3801 = vmatpush1.bf16.msra.mxu0 %v10255_v59  ;;  %3842 = vmatpush1.bf16.msra.mxu1 %v10258_v37  ;;  %v13299_v59 = vld [vmem:[#allocation79_spill] sm:$0xff]  ;;  %v13300_v37 = vld [vmem:[#allocation80_spill] sm:$0xff] }
 0x6c6   :  { %3802 = vmatprep.subr.bf16.mxu0 %v10261_v40  ;;  %3843 = vmatprep.subr.bf16.mxu1 %v10264_v41  ;;  %v13301_v40 = vld [vmem:[#allocation81_spill] sm:$0xff]  ;;  %v13302_v41 = vld [vmem:[#allocation82_spill] sm:$0xff] }
 0x6c9   :  { %3803 = vmatpush1.bf16.msra.mxu0 %v10267_v23  ;;  %3844 = vmatpush1.bf16.msra.mxu1 %v10270_v56  ;;  %v13303_v23 = vld [vmem:[#allocation83_spill] sm:$0xff]  ;;  %v13304_v56 = vld [vmem:[#allocation84_spill] sm:$0xff] }
 0x6ca   :  { %3804 = vmatprep.subr.bf16.mxu0 %v10273_v27  ;;  %3845 = vmatprep.subr.bf16.mxu1 %v10276_v20  ;;  %v13305_v27 = vld [vmem:[#allocation85_spill] sm:$0xff]  ;;  %v13306_v20 = vld [vmem:[#allocation86_spill] sm:$0xff] }
 0x6cd   :  { %3805 = vmatpush1.bf16.msra.mxu0 %v10279_v48  ;;  %3846 = vmatpush1.bf16.msra.mxu1 %v10282_v1  ;;  %v13307_v48 = vld [vmem:[#allocation87_spill] sm:$0xff]  ;;  %v13308_v1 = vld [vmem:[#allocation88_spill] sm:$0xff] }
 0x6ce   :  { %3806 = vmatprep.subr.bf16.mxu0 %v10285_v33  ;;  %3847 = vmatprep.subr.bf16.mxu1 %v10288_v13  ;;  %v13309_v33 = vld [vmem:[#allocation89_spill] sm:$0xff]  ;;  %v13310_v13 = vld [vmem:[#allocation90_spill] sm:$0xff] }
 0x6d1   :  { %3807 = vmatpush1.bf16.msra.mxu0 %v10291_v16  ;;  %3848 = vmatpush1.bf16.msra.mxu1 %v10294_v63  ;;  %v13311_v16 = vld [vmem:[#allocation91_spill] sm:$0xff]  ;;  %v13312_v63 = vld [vmem:[#allocation92_spill] sm:$0xff] }
 0x6d2   :  { %3808 = vmatprep.subr.bf16.mxu0 %v10297_v3  ;;  %3849 = vmatprep.subr.bf16.mxu1 %v10300_v43  ;;  %v13313_v3 = vld [vmem:[#allocation93_spill] sm:$0xff]  ;;  %v13314_v43 = vld [vmem:[#allocation94_spill] sm:$0xff] }
 0x6d5   :  { %3809 = vmatpush1.bf16.msra.mxu0 %v10303_v12  ;;  %3850 = vmatpush1.bf16.msra.mxu1 %v10306_v10  ;;  %v13315_v12 = vld [vmem:[#allocation95_spill] sm:$0xff]  ;;  %v13316_v10 = vld [vmem:[#allocation96_spill] sm:$0xff] }
 0x6d6   :  { %3810 = vmatprep.subr.bf16.mxu0 %v10309_v58  ;;  %3851 = vmatprep.subr.bf16.mxu1 %v13281_v5  ;;  %v13317_v58 = vld [vmem:[#allocation97_spill] sm:$0xff]  ;;  %v13318_v5 = vld [vmem:[#allocation56_spill] sm:$0xff] }
 0x6d9   :  { %3811 = vmatpush1.bf16.msra.mxu0 %v13282_v39  ;;  %3852 = vmatpush1.bf16.msra.mxu1 %v13283_v54 }
 0x6da   :  { %3907 = vmatprep.subr.bf16.mxu0 %v13284_v36  ;;  %3948 = vmatprep.subr.bf16.mxu1 %v13285_v4  ;;  %v13319_v4 = vld [vmem:[#allocation57_spill] sm:$0xff] }
 0x6dc   :  { %3829 = vmatmul.mubr.bf16.vlgmr.msra.gmra.mrb[72].mxu0 %v10555_v53  ;;  %3870 = vmatmul.mubr.bf16.vlgmr.msra.gmra.mrb[88].mxu1 %v10555_v53 }
 0x6dd   :  { %3908 = vmatpush1.bf16.msra.mxu0 %v13286_v8  ;;  %3949 = vmatpush1.bf16.msra.mxu1 %v13287_v11 }
 0x6de   :  { %3909 = vmatprep.subr.bf16.mxu0 %v13288_v15  ;;  %3950 = vmatprep.subr.bf16.mxu1 %v13289_v14 }
 0x6df   :  { %3939 = vmatprep.mubr.bf16.mxu0 %v12930_v46  ;;  %3980 = vmatprep.mubr.bf16.mxu1 %v12930_v46 }
 0x6e1   :  { %3910 = vmatpush1.bf16.msra.mxu0 %v13290_v47  ;;  %3951 = vmatpush1.bf16.msra.mxu1 %v13291_v29 }
 0x6e2   :  { %3911 = vmatprep.subr.bf16.mxu0 %v13292_v19  ;;  %3952 = vmatprep.subr.bf16.mxu1 %v13293_v44  ;;  %v13320_v44 = vld [vmem:[#allocation58_spill] sm:$0xff] }
 0x6e5   :  { %3912 = vmatpush1.bf16.msra.mxu0 %v13294_v38  ;;  %3953 = vmatpush1.bf16.msra.mxu1 %v13295_v61 }
 0x6e6   :  { %3913 = vmatprep.subr.bf16.mxu0 %v13296_v32  ;;  %3954 = vmatprep.subr.bf16.mxu1 %v13297_v26 }
 0x6e9   :  { %3914 = vmatpush1.bf16.msra.mxu0 %v13298_v18  ;;  %3955 = vmatpush1.bf16.msra.mxu1 %v13299_v59 }
 0x6ea   :  { %3915 = vmatprep.subr.bf16.mxu0 %v13300_v37  ;;  %3956 = vmatprep.subr.bf16.mxu1 %v13301_v40 }
 0x6ed   :  { %3916 = vmatpush1.bf16.msra.mxu0 %v13302_v41  ;;  %3957 = vmatpush1.bf16.msra.mxu1 %v13303_v23 }
 0x6ee   :  { %3917 = vmatprep.subr.bf16.mxu0 %v13304_v56  ;;  %3958 = vmatprep.subr.bf16.mxu1 %v13305_v27 }
 0x6f1   :  { %3918 = vmatpush1.bf16.msra.mxu0 %v13306_v20  ;;  %3959 = vmatpush1.bf16.msra.mxu1 %v13307_v48  ;;  %v13321_v48 = vld [vmem:[#allocation30_spill] sm:$0xff] }
 0x6f2   :  { %3919 = vmatprep.subr.bf16.mxu0 %v13308_v1  ;;  %3960 = vmatprep.subr.bf16.mxu1 %v13309_v33  ;;  %v13322_v33 = vld [vmem:[#allocation46_spill] sm:$0xff] }
 0x6f5   :  { %3920 = vmatpush1.bf16.msra.mxu0 %v13310_v13  ;;  %3961 = vmatpush1.bf16.msra.mxu1 %v13311_v16 }
 0x6f6   :  { %3921 = vmatprep.subr.bf16.mxu0 %v13312_v63  ;;  %3962 = vmatprep.subr.bf16.mxu1 %v13313_v3  ;;  %v13323_v3 = vld [vmem:[#allocation31_spill] sm:$0xff] }
 0x6f9   :  { %3922 = vmatpush1.bf16.msra.mxu0 %v13314_v43  ;;  %3963 = vmatpush1.bf16.msra.mxu1 %v13315_v12  ;;  %v13324_v12 = vld [vmem:[#allocation47_spill] sm:$0xff] }
 0x6fa   :  { %3994 = vmatprep.subr.bf16.mxu0 %v13316_v10  ;;  %4035 = vmatprep.subr.bf16.mxu1 %v13317_v58 }
 0x76f   :  { %v3598_v28 = vpop.f32.mrb[64].mxu0  ;;  %v3639_v53 = vpop.f32.mrb[80].mxu1 }
 0x770   :  { %v7130_v39 = vadd.f32 %v3598_v28, %v13318_v5  ;;  %v3600_v54 = vpop.f32.mrb[65].mxu0  ;;  %v10813_v36 = vpop.f32.mrb[81].mxu1  ;;  %v7132_v38 = vadd.f32 %v3639_v53, %v13320_v44 }
 0x771   :  { %v7131_v8 = vadd.f32 %v3600_v54, %v13319_v4  ;;  %v3602_v11 = vpop.f32.mrb[66].mxu0  ;;  %v3643_v15 = vpop.f32.mrb[82].mxu1 }
 0x772   :  { %v6797_v14 = vmul.f32 -1.442695, %v7130_v39  ;;  %v3603_v47 = vpop.f32.mrb[67].mxu0  ;;  %v3644_v29 = vpop.f32.mrb[83].mxu1 }
 0x773   :  { %v6798_v19 = vmul.f32 -1.442695, %v7131_v8 }
 0x774   :  { %7665 = vpow2.f32 %v6797_v14 }
 0x775   :  { %7667 = vpow2.f32 %v6798_v19 }
 0x776   :  { %7669 = vtanh.f32 %v7132_v38 }
 0x77e   :  { %v7666_v61 = vpop.eup %7665 }
 0x77f   :  { %v7668_v32 = vpop.eup %7667  ;;  %v3653_v26 = vadd.f32 1.0, %v7666_v61 }
 0x780   :  { %v3659_v18 = vadd.f32 1.0, %v7668_v32  ;;  %v7670_v59 = vpop.eup %7669 }
 0x781   :  { %7671 = vrcp.f32 %v3653_v26 }
 0x782   :  { %7673 = vrcp.f32 %v3659_v18 }
 0x78b   :  { %v7672_v37 = vpop.eup %7671 }
 0x78c   :  { %v7674_v40 = vpop.eup %7673  ;;  %v3670_v41 = vmul.f32 %v7672_v37, %v7670_v59 }
 0x78d   :  { %v3669_v23 = vmul.f32 %v7674_v40, %v10433_v42 }
 0x78f   :  { %v10818_v56 = vadd.f32 %v3670_v41, %v3669_v23  ;;  %v3715_v27 = vpop.f32.mrb[68].mxu0  ;;  %v3756_v20 = vpop.f32.mrb[84].mxu1  ;;  %v13325_v41 = vld [vmem:[#allocation106_spill] sm:$0xff] }
 0x790   :  { %v3763_v1 = vadd.f32 %v3715_v27, %v13321_v48  ;;  %v3765_v13 = vadd.f32 %v3756_v20, %v13322_v33  ;;  %v3717_v16 = vpop.f32.mrb[69].mxu0  ;;  %v3758_v63 = vpop.f32.mrb[85].mxu1  ;;  %v13326_v27 = vld [vmem:[#allocation107_spill] sm:$0xff]  ;;  %v13327_v33 = vld [vmem:[#allocation108_spill] sm:$0xff] }
 0x791   :  { %v3764_v43 = vadd.f32 %v3717_v16, %v13323_v3  ;;  %v3766_v10 = vadd.f32 %v3758_v63, %v13324_v12  ;;  %v3719_v58 = vpop.f32.mrb[70].mxu0  ;;  %v3760_v28 = vpop.f32.mrb[86].mxu1  ;;  %v13328_v16 = vld [vmem:[#allocation109_spill] sm:$0xff] }
 0x792   :  { %v6800_v53 = vmul.f32 -1.442695, %v3763_v1  ;;  %v3720_v39 = vpop.f32.mrb[71].mxu0  ;;  %v3761_v54 = vpop.f32.mrb[87].mxu1 }
 0x793   :  { %v6801_v42 = vmul.f32 -1.442695, %v3764_v43  ;;  %v6802_v8 = vmul.f32 -1.442695, %v3766_v10 }
 0x794   :  { %7675 = vpow2.f32 %v6800_v53 }
 0x795   :  { %7677 = vpow2.f32 %v6801_v42 }
 0x796   :  { %7679 = vpow2.f32 %v6802_v8 }
 0x797   :  { %7681 = vtanh.f32 %v3765_v13 }
 0x79e   :  { %v7676_v11 = vpop.eup %7675 }
 0x79f   :  { %v7678_v15 = vpop.eup %7677  ;;  %v3770_v14 = vadd.f32 1.0, %v7676_v11 }
 0x7a0   :  { %v3776_v47 = vadd.f32 1.0, %v7678_v15  ;;  %v7680_v29 = vpop.eup %7679 }
 0x7a1   :  { %7683 = vrcp.f32 %v3770_v14  ;;  %v7682_v19 = vpop.eup %7681  ;;  %v3783_v26 = vadd.f32 1.0, %v7680_v29  ;;  %v13331_v29 = vld [vmem:[#allocation40_spill] sm:$0xff] }
 0x7a2   :  { %7685 = vrcp.f32 %v3776_v47  ;;  %v13329_v47 = vld [vmem:[#allocation24_spill] sm:$0xff] }
 0x7a3   :  { %7687 = vrcp.f32 %v3783_v26 }
 0x7ab   :  { %v7684_v38 = vpop.eup %7683 }
 0x7ac   :  { %v7686_v61 = vpop.eup %7685  ;;  %v3787_v32 = vmul.f32 %v7684_v38, %v7682_v19 }
 0x7ad   :  { %v3786_v18 = vmul.f32 %v7686_v61, %v10440_v31  ;;  %v7688_v28 = vpop.eup %7687  ;;  %v13333_v61 = vld [vmem:[#allocation42_spill] sm:$0xff] }
 0x7af   :  { %v10825_v59 = vadd.f32 %v3787_v32, %v3786_v18  ;;  %v3830_v37 = vpop.f32.mrb[72].mxu0  ;;  %v3871_v40 = vpop.f32.mrb[88].mxu1  ;;  %v13335_v32 = vld [vmem:[#allocation43_spill] sm:$0xff]  ;;  %v13340_v18 = vld [vmem:[#allocation101_spill] sm:$0xff] }
 0x7b0   :  { %v3878_v23 = vadd.f32 %v3830_v37, %v13325_v41  ;;  %v3880_v20 = vadd.f32 %v3871_v40, %v13326_v27  ;;  %v3832_v48 = vpop.f32.mrb[73].mxu0  ;;  %v3873_v1 = vpop.f32.mrb[89].mxu1  ;;  %v13341_v37 = vld [vmem:[#allocation126_spill] sm:$0xff]  ;;  %v13342_v40 = vld [vmem:[#allocation127_spill] sm:$0xff]  ;;  %v13343_v41 = vld [vmem:[#allocation41_spill] sm:$0xff] }
 0x7b1   :  { %v3879_v13 = vadd.f32 %v3832_v48, %v13327_v33  ;;  %v3881_v63 = vadd.f32 %v3873_v1, %v13328_v16  ;;  %v3834_v3 = vpop.f32.mrb[74].mxu0  ;;  %v3875_v43 = vpop.f32.mrb[90].mxu1  ;;  %7689 = vtanh.f32 %v10825_v59  ;;  %v13345_v48 = vld [vmem:[#allocation129_spill] sm:$0xff]  ;;  %v13347_v16 = vld [vmem:[#allocation131_spill] sm:$0xff] }
 0x7b2   :  { %v6803_v31 = vmul.f32 -1.442695, %v3878_v23  ;;  %v3835_v12 = vpop.f32.mrb[75].mxu0  ;;  %v3876_v10 = vpop.f32.mrb[91].mxu1  ;;  %v13350_v43 = vld [vmem:[#allocation134_spill] sm:$0xff] }
 0x7b3   :  { %v6804_v58 = vmul.f32 -1.442695, %v3879_v13  ;;  %v6805_v39 = vmul.f32 -1.442695, %v3881_v63  ;;  %v13346_v13 = vld [vmem:[#allocation130_spill] sm:$0xff]  ;;  %v13349_v63 = vld [vmem:[#allocation133_spill] sm:$0xff] }
 0x7b4   :  { %7691 = vpow2.f32 %v6803_v31  ;;  %v13351_v31 = vld [vmem:[#allocation135_spill] sm:$0xff]  ;;  %v13352_v12 = vld [vmem:[#allocation136_spill] sm:$0xff]  ;;  %v13353_v10 = vld [vmem:[#allocation137_spill] sm:$0xff] }
 0x7b5   :  { %7693 = vpow2.f32 %v6804_v58  ;;  %v13354_v58 = vld [vmem:[#allocation138_spill] sm:$0xff] }
 0x7b6   :  { %7695 = vpow2.f32 %v6805_v39  ;;  %v13357_v39 = vld [vmem:[#allocation141_spill] sm:$0xff] }
 0x7b7   :  { %7697 = vtanh.f32 %v3880_v20  ;;  %v13344_v20 = vld [vmem:[#allocation128_spill] sm:$0xff] }
 0x7bb   :  { %v7690_v53 = vpop.eup %7689 }
 0x7bc   :  { %v3790_v54 = vmul.f32 %v7690_v53, %v7688_v28  ;;  %v13355_v28 = vld [vmem:[#allocation139_spill] sm:$0xff]  ;;  %v13356_v53 = vld [vmem:[#allocation140_spill] sm:$0xff] }
 0x7be   :  { %v7692_v42 = vpop.eup %7691  ;;  %v10832_v8 = vpack.c.bf16 %v3790_v54, %v3790_v54 }
 0x7bf   :  { %v7694_v11 = vpop.eup %7693  ;;  %v3885_v15 = vadd.f32 1.0, %v7692_v42  ;;  %v13358_v42 = vld [vmem:[#allocation142_spill] sm:$0xff] }
 0x7c0   :  { %v3891_v14 = vadd.f32 1.0, %v7694_v11  ;;  %3940 = vmatmul.mubr.bf16.vlgmr.msra.gmra.mrb[76].mxu0 %v10832_v8  ;;  %3981 = vmatmul.mubr.bf16.vlgmr.msra.gmra.mrb[92].mxu1 %v10832_v8  ;;  %v13359_v11 = vld [vmem:[#allocation143_spill] sm:$0xff] }
 0x7c1   :  { %7699 = vrcp.f32 %v3885_v15  ;;  %3995 = vmatpush1.bf16.msra.mxu0 %v10451_v9  ;;  %4036 = vmatpush1.bf16.msra.mxu1 %v10454_v6  ;;  %v7696_v9 = vpop.eup %7695  ;;  %v13330_v6 = vld [vmem:[#allocation25_spill] sm:$0xff]  ;;  %v13360_v15 = vld [vmem:[#allocation144_spill] sm:$0xff] }
 0x7c2   :  { %7701 = vrcp.f32 %v3891_v14  ;;  %3996 = vmatprep.subr.bf16.mxu0 %v10457_v34  ;;  %4037 = vmatprep.subr.bf16.mxu1 %v10460_v45  ;;  %v7698_v34 = vpop.eup %7697  ;;  %v13361_v14 = vld [vmem:[#allocation145_spill] sm:$0xff] }
 0x7c3   :  { %4026 = vmatprep.mubr.bf16.mxu0 %v12930_v46  ;;  %4067 = vmatprep.mubr.bf16.mxu1 %v12930_v46 }
 0x7c5   :  { %3997 = vmatpush1.bf16.msra.mxu0 %v10465_v62  ;;  %4038 = vmatpush1.bf16.msra.mxu1 %v10468_v22  ;;  %v3898_v62 = vadd.f32 1.0, %v7696_v9 }
 0x7c6   :  { %3998 = vmatprep.subr.bf16.mxu0 %v10471_v25  ;;  %4039 = vmatprep.subr.bf16.mxu1 %v10474_v30  ;;  %v13332_v25 = vld [vmem:[#allocation26_spill] sm:$0xff] }
 0x7c7   :  { %7703 = vrcp.f32 %v3898_v62  ;;  %v13369_v62 = vld [vmem:[#allocation153_spill] sm:$0xff] }
 0x7c9   :  { %3999 = vmatpush1.bf16.msra.mxu0 %v13329_v47  ;;  %4040 = vmatpush1.bf16.msra.mxu1 %v13330_v6  ;;  %v13362_v47 = vld [vmem:[#allocation146_spill] sm:$0xff]  ;;  %v13363_v6 = vld [vmem:[#allocation147_spill] sm:$0xff] }
 0x7ca   :  { %4000 = vmatprep.subr.bf16.mxu0 %v13331_v29  ;;  %4041 = vmatprep.subr.bf16.mxu1 %v10486_v35  ;;  %v13334_v35 = vld [vmem:[#allocation27_spill] sm:$0xff]  ;;  %v13365_v29 = vld [vmem:[#allocation149_spill] sm:$0xff] }
 0x7cb   :  { %v7700_v45 = vpop.eup %7699 }
 0x7cc   :  { %v7702_v19 = vpop.eup %7701  ;;  %v3902_v38 = vmul.f32 %v7700_v45, %v7698_v34  ;;  %v13364_v34 = vld [vmem:[#allocation148_spill] sm:$0xff]  ;;  %v13366_v45 = vld [vmem:[#allocation150_spill] sm:$0xff] }
 0x7cd   :  { %v3901_v22 = vmul.f32 %v7702_v19, %v10502_v55  ;;  %4001 = vmatpush1.bf16.msra.mxu0 %v10490_v24  ;;  %4042 = vmatpush1.bf16.msra.mxu1 %v10493_v21  ;;  %v13336_v55 = vld [vmem:[#allocation98_spill] sm:$0xff]  ;;  %v13337_v24 = vld [vmem:[#allocation99_spill] sm:$0xff]  ;;  %v13338_v21 = vld [vmem:[#allocation100_spill] sm:$0xff] }
 0x7ce   :  { %4002 = vmatprep.subr.bf16.mxu0 %v10496_v60  ;;  %4043 = vmatprep.subr.bf16.mxu1 %v13332_v25  ;;  %v13339_v60 = vld [vmem:[#allocation59_spill] sm:$0xff] }
 0x7cf   :  { %v10855_v30 = vadd.f32 %v3902_v38, %v3901_v22  ;;  %v7133_v26 = vadd.f32 %v10813_v36, %v13339_v60  ;;  %v13348_v36 = vld [vmem:[#allocation132_spill] sm:$0xff]  ;;  %v13367_v19 = vld [vmem:[#allocation151_spill] sm:$0xff]  ;;  %v13370_v22 = vld [vmem:[#allocation154_spill] sm:$0xff] }
 0x7d0   :  { %v13368_v38 = vld [vmem:[#allocation152_spill] sm:$0xff]  ;;  %v13371_v25 = vld [vmem:[#allocation155_spill] sm:$0xff] }
 0x7d1   :  { %4003 = vmatpush1.bf16.msra.mxu0 %v13333_v61  ;;  %4044 = vmatpush1.bf16.msra.mxu1 %v13334_v35  ;;  %7705 = vtanh.f32 %v10855_v30  ;;  %v7704_v23 = vpop.eup %7703  ;;  %v6799_v27 = vmul.f32 -1.442695, %v7133_v26  ;;  %v13372_v61 = vld [vmem:[#allocation156_spill] sm:$0xff]  ;;  %v13373_v35 = vld [vmem:[#allocation157_spill] sm:$0xff] }
 0x7d2   :  { %4004 = vmatprep.subr.bf16.mxu0 %v13335_v32  ;;  %4045 = vmatprep.subr.bf16.mxu1 %v13336_v55  ;;  %v13376_v26 = vld [vmem:[#allocation160_spill] sm:$0xff] }
 0x7d3   :  { %7707 = vpow2.f32 %v6799_v27  ;;  %v13381_v27 = vld [vmem:[#allocation165_spill] sm:$0xff] }
 0x7d4   :  { %7709 = vtanh.f32 %v10818_v56 }
 0x7d5   :  { %4005 = vmatpush1.bf16.msra.mxu0 %v13337_v24  ;;  %4046 = vmatpush1.bf16.msra.mxu1 %v13338_v21  ;;  %v13374_v24 = vld [vmem:[#allocation158_spill] sm:$0xff]  ;;  %v13375_v21 = vld [vmem:[#allocation159_spill] sm:$0xff] }
 0x7d6   :  { %4006 = vmatprep.subr.bf16.mxu0 %v13340_v18  ;;  %4047 = vmatprep.subr.bf16.mxu1 %v13341_v37  ;;  %v13378_v37 = vld [vmem:[#allocation162_spill] sm:$0xff] }
 0x7d9   :  { %4007 = vmatpush1.bf16.msra.mxu0 %v13342_v40  ;;  %4048 = vmatpush1.bf16.msra.mxu1 %v13343_v41  ;;  %v13379_v41 = vld [vmem:[#allocation163_spill] sm:$0xff] }
 0x7da   :  { %4008 = vmatprep.subr.bf16.mxu0 %v13344_v20  ;;  %4049 = vmatprep.subr.bf16.mxu1 %v13345_v48  ;;  %v13383_v20 = vld [vmem:[#allocation167_spill] sm:$0xff]  ;;  %v13385_v48 = vld [vmem:[#allocation169_spill] sm:$0xff] }
 0x7db   :  { %v7706_v1 = vpop.eup %7705 }
 0x7dc   :  { %v3905_v33 = vmul.f32 %v7706_v1, %v7704_v23  ;;  %v13380_v23 = vld [vmem:[#allocation164_spill] sm:$0xff]  ;;  %v13387_v1 = vld [vmem:[#allocation171_spill] sm:$0xff] }
 0x7dd   :  { %4009 = vmatpush1.bf16.msra.mxu0 %v13346_v13  ;;  %4050 = vmatpush1.bf16.msra.mxu1 %v13347_v16  ;;  %v7708_v54 = vpop.eup %7707  ;;  %v13389_v13 = vld [vmem:[#allocation173_spill] sm:$0xff]  ;;  %v13390_v16 = vld [vmem:[#allocation174_spill] sm:$0xff] }
 0x7de   :  { %4081 = vmatprep.subr.bf16.mxu0 %v13348_v36  ;;  %4122 = vmatprep.subr.bf16.mxu1 %v13349_v63  ;;  %v10876_v3 = vpack.c.bf16 %v3905_v33, %v3905_v33  ;;  %v3666_v9 = vadd.f32 1.0, %v7708_v54  ;;  %v7710_v32 = vpop.eup %7709  ;;  %v13388_v33 = vld [vmem:[#allocation172_spill] sm:$0xff]  ;;  %v13391_v36 = vld [vmem:[#allocation175_spill] sm:$0xff] }
 0x7df   :  { %v13392_v63 = vld [vmem:[#allocation176_spill] sm:$0xff] }
 0x7e0   :  { %4027 = vmatmul.mubr.bf16.vlgmr.msra.gmra.mrb[76].mxu0 %v10876_v3  ;;  %4068 = vmatmul.mubr.bf16.vlgmr.msra.gmra.mrb[92].mxu1 %v10876_v3  ;;  %7711 = vrcp.f32 %v3666_v9  ;;  %v10978_v54 = vld [vmem:[#allocation12 + $0x8] ss:$16 sps:$4 sm:$0xff]   ;;  %v10998_v9 = vld [vmem:[#allocation12 + $0x4c] ss:$16 sps:$4 sm:$0xff]  }
 0x7e1   :  { %4082 = vmatpush1.bf16.msra.mxu0 %v13350_v43  ;;  %4123 = vmatpush1.bf16.msra.mxu1 %v13351_v31  ;;  %v13393_v43 = vld [vmem:[#allocation177_spill] sm:$0xff]  ;;  %v13394_v31 = vld [vmem:[#allocation178_spill] sm:$0xff] }
 0x7e2   :  { %4083 = vmatprep.subr.bf16.mxu0 %v13352_v12  ;;  %4124 = vmatprep.subr.bf16.mxu1 %v13353_v10  ;;  %v13395_v12 = vld [vmem:[#allocation179_spill] sm:$0xff] }
 0x7e3   :  { %4113 = vmatprep.mubr.bf16.mxu0 %v12930_v46  ;;  %4154 = vmatprep.mubr.bf16.mxu1 %v12930_v46  ;;  %v10943_v10 = vld [vmem:[#allocation10 + $0xc4] ss:$16 sps:$4 sm:$0xff]  }
 0x7e5   :  { %4084 = vmatpush1.bf16.msra.mxu0 %v13354_v58  ;;  %4125 = vmatpush1.bf16.msra.mxu1 %v13355_v28  ;;  %v10946_v58 = vld [vmem:[#allocation10 + $0xcc] ss:$16 sps:$4 sm:$0xff]   ;;  %v10949_v28 = vld [vmem:[#allocation10 + $0xc0] ss:$16 sps:$4 sm:$0xff]  }
 0x7e6   :  { %4085 = vmatprep.subr.bf16.mxu0 %v13356_v53  ;;  %4126 = vmatprep.subr.bf16.mxu1 %v13357_v39  ;;  %v10970_v53 = vld [vmem:[#allocation12 + $0xc] ss:$16 sps:$4 sm:$0xff]   ;;  %v10975_v39 = vld [vmem:[#allocation12] ss:$16 sps:$4 sm:$0xff]  }
 0x7e9   :  { %4086 = vmatpush1.bf16.msra.mxu0 %v13358_v42  ;;  %4127 = vmatpush1.bf16.msra.mxu1 %v13359_v11  ;;  %v10981_v42 = vld [vmem:[#allocation12 + $0x24] ss:$16 sps:$4 sm:$0xff]   ;;  %v10984_v11 = vld [vmem:[#allocation12 + $0x2c] ss:$16 sps:$4 sm:$0xff]  }
 0x7ea   :  { %4087 = vmatprep.subr.bf16.mxu0 %v13360_v15  ;;  %4128 = vmatprep.subr.bf16.mxu1 %v13361_v14  ;;  %v7712_v55 = vpop.eup %7711  ;;  %v10992_v15 = vld [vmem:[#allocation12 + $0x28] ss:$16 sps:$4 sm:$0xff]   ;;  %v10995_v14 = vld [vmem:[#allocation12 + $0x44] ss:$16 sps:$4 sm:$0xff]  }
 0x7eb   :  { %v10911_v18 = vmul.f32 %v7712_v55, %v7710_v32  ;;  %v11037_v32 = vld [vmem:[#allocation12 + $0xa0] ss:$16 sps:$4 sm:$0xff]   ;;  %v11040_v55 = vld [vmem:[#allocation12 + $0xa8] ss:$16 sps:$4 sm:$0xff]  }
 0x7ed   :  { %4088 = vmatpush1.bf16.msra.mxu0 %v13362_v47  ;;  %4129 = vmatpush1.bf16.msra.mxu1 %v13363_v6  ;;  %13377 = vst [vmem:[#allocation180_spill] sm:$0xff] %v10911_v18  ;;  %v4080_v40 = vpack.c.bf16 %v10911_v18, %v10911_v18  ;;  %v11001_v47 = vld [vmem:[#allocation12 + $0x40] ss:$16 sps:$4 sm:$0xff]   ;;  %v11004_v6 = vld [vmem:[#allocation12 + $0x48] ss:$16 sps:$4 sm:$0xff]  }
 0x7ee   :  { %4089 = vmatprep.subr.bf16.mxu0 %v13364_v34  ;;  %4130 = vmatprep.subr.bf16.mxu1 %v13365_v29  ;;  %v11007_v34 = vld [vmem:[#allocation12 + $0x64] ss:$16 sps:$4 sm:$0xff]   ;;  %v11010_v29 = vld [vmem:[#allocation12 + $0x6c] ss:$16 sps:$4 sm:$0xff]   ;;  %v11116_v18 = vld [vmem:[#allocation13 + $0x68] ss:$16 sps:$4 sm:$0xff]  }
 0x7ef   :  { %13414 = vst [vmem:[#allocation67_spill] sm:$0xff] %v11116_v18 }
 0x7f1   :  { %4090 = vmatpush1.bf16.msra.mxu0 %v13366_v45  ;;  %4131 = vmatpush1.bf16.msra.mxu1 %v13367_v19  ;;  %v11013_v45 = vld [vmem:[#allocation12 + $0x60] ss:$16 sps:$4 sm:$0xff]   ;;  %v11016_v19 = vld [vmem:[#allocation12 + $0x68] ss:$16 sps:$4 sm:$0xff]  }
 0x7f2   :  { %4091 = vmatprep.subr.bf16.mxu0 %v13368_v38  ;;  %4132 = vmatprep.subr.bf16.mxu1 %v13369_v62  ;;  %v11019_v38 = vld [vmem:[#allocation12 + $0x84] ss:$16 sps:$4 sm:$0xff]   ;;  %v11022_v62 = vld [vmem:[#allocation12 + $0x8c] ss:$16 sps:$4 sm:$0xff]  }
 0x7f5   :  { %4092 = vmatpush1.bf16.msra.mxu0 %v13370_v22  ;;  %4133 = vmatpush1.bf16.msra.mxu1 %v13371_v25  ;;  %v11025_v22 = vld [vmem:[#allocation12 + $0x80] ss:$16 sps:$4 sm:$0xff]   ;;  %v11028_v25 = vld [vmem:[#allocation12 + $0x88] ss:$16 sps:$4 sm:$0xff]  }
 0x7f6   :  { %4093 = vmatprep.subr.bf16.mxu0 %v13372_v61  ;;  %4134 = vmatprep.subr.bf16.mxu1 %v13373_v35  ;;  %v11031_v61 = vld [vmem:[#allocation12 + $0xa4] ss:$16 sps:$4 sm:$0xff]   ;;  %v11034_v35 = vld [vmem:[#allocation12 + $0xac] ss:$16 sps:$4 sm:$0xff]  }
 0x7f9   :  { %4094 = vmatpush1.bf16.msra.mxu0 %v13374_v24  ;;  %4135 = vmatpush1.bf16.msra.mxu1 %v13375_v21  ;;  %v11043_v24 = vld [vmem:[#allocation12 + $0xc4] ss:$16 sps:$4 sm:$0xff]   ;;  %v11046_v21 = vld [vmem:[#allocation12 + $0xcc] ss:$16 sps:$4 sm:$0xff]  }
 0x7fa   :  { %4095 = vmatprep.subr.bf16.mxu0 %v13376_v26  ;;  %4136 = vmatprep.subr.bf16.mxu1 %v10643_v51  ;;  %v13382_v51 = vld [vmem:[#allocation166_spill] sm:$0xff]  ;;  %v11049_v26 = vld [vmem:[#allocation12 + $0xc0] ss:$16 sps:$4 sm:$0xff]  }
 0x7fd   :  { %4096 = vmatpush1.bf16.msra.mxu0 %v10648_v49  ;;  %4137 = vmatpush1.bf16.msra.mxu1 %v13378_v37  ;;  %v13384_v49 = vld [vmem:[#allocation168_spill] sm:$0xff] }
 0x7fe   :  { %4198 = vmatprep.subr.bf16.mxu0 %v10656_v57  ;;  %4239 = vmatprep.subr.bf16.mxu1 %v13379_v41  ;;  %v13386_v57 = vld [vmem:[#allocation170_spill] sm:$0xff] }
 0x7ff   :  { %v11052_v37 = vld [vmem:[#allocation12 + $0xc8] ss:$16 sps:$4 sm:$0xff]   ;;  %v11058_v41 = vld [vmem:[#allocation12 + $0xec] ss:$16 sps:$4 sm:$0xff]  }
 0x800   :  { %4114 = vmatmul.mubr.bf16.vlgmr.msra.gmra.mrb[76].mxu0 %v4080_v40  ;;  %4155 = vmatmul.mubr.bf16.vlgmr.msra.gmra.mrb[92].mxu1 %v4080_v40  ;;  %v11055_v40 = vld [vmem:[#allocation12 + $0xe4] ss:$16 sps:$4 sm:$0xff]   ;;  %13396 = vst [vmem:[#allocation181_spill] sm:$0xff] %v11058_v41 }
 0x801   :  { %4199 = vmatpush1.bf16.msra.mxu0 %v13380_v23  ;;  %4240 = vmatpush1.bf16.msra.mxu1 %v13381_v27  ;;  %v11061_v23 = vld [vmem:[#allocation12 + $0xe0] ss:$16 sps:$4 sm:$0xff]   ;;  %v11064_v27 = vld [vmem:[#allocation12 + $0xe8] ss:$16 sps:$4 sm:$0xff]  }
 0x802   :  { %4200 = vmatprep.subr.bf16.mxu0 %v13382_v51  ;;  %4241 = vmatprep.subr.bf16.mxu1 %v13383_v20  ;;  %13397 = vst [vmem:[#allocation182_spill] sm:$0xff] %v11061_v23  ;;  %13398 = vst [vmem:[#allocation183_spill] sm:$0xff] %v11064_v27  ;;  %v11067_v51 = vld [vmem:[#allocation13 + $0x4] ss:$16 sps:$4 sm:$0xff]   ;;  %v11070_v20 = vld [vmem:[#allocation13 + $0xc] ss:$16 sps:$4 sm:$0xff]  }
 0x803   :  { %4230 = vmatprep.mubr.bf16.mxu0 %v12930_v46  ;;  %4271 = vmatprep.mubr.bf16.mxu1 %v12930_v46  ;;  %13399 = vst [vmem:[#allocation184_spill] sm:$0xff] %v11067_v51  ;;  %13400 = vst [vmem:[#allocation28_spill] sm:$0xff] %v11070_v20 }
 0x805   :  { %4201 = vmatpush1.bf16.msra.mxu0 %v13384_v49  ;;  %4242 = vmatpush1.bf16.msra.mxu1 %v13385_v48  ;;  %v11075_v49 = vld [vmem:[#allocation13] ss:$16 sps:$4 sm:$0xff]   ;;  %v11078_v48 = vld [vmem:[#allocation13 + $0x8] ss:$16 sps:$4 sm:$0xff]  }
 0x806   :  { %4202 = vmatprep.subr.bf16.mxu0 %v13386_v57  ;;  %4243 = vmatprep.subr.bf16.mxu1 %v13387_v1  ;;  %13401 = vst [vmem:[#allocation44_spill] sm:$0xff] %v11075_v49  ;;  %13402 = vst [vmem:[#allocation29_spill] sm:$0xff] %v11078_v48  ;;  %v11081_v57 = vld [vmem:[#allocation13 + $0x24] ss:$16 sps:$4 sm:$0xff]   ;;  %v11084_v1 = vld [vmem:[#allocation13 + $0x2c] ss:$16 sps:$4 sm:$0xff]  }
 0x807   :  { %13403 = vst [vmem:[#allocation45_spill] sm:$0xff] %v11081_v57  ;;  %13404 = vst [vmem:[#allocation102_spill] sm:$0xff] %v11084_v1 }
 0x809   :  { %4203 = vmatpush1.bf16.msra.mxu0 %v13388_v33  ;;  %4244 = vmatpush1.bf16.msra.mxu1 %v13389_v13  ;;  %v11092_v33 = vld [vmem:[#allocation13 + $0x28] ss:$16 sps:$4 sm:$0xff]   ;;  %v11095_v13 = vld [vmem:[#allocation13 + $0x44] ss:$16 sps:$4 sm:$0xff]  }
 0x80a   :  { %4204 = vmatprep.subr.bf16.mxu0 %v13390_v16  ;;  %4245 = vmatprep.subr.bf16.mxu1 %v13391_v36  ;;  %13406 = vst [vmem:[#allocation104_spill] sm:$0xff] %v11092_v33  ;;  %13407 = vst [vmem:[#allocation105_spill] sm:$0xff] %v11095_v13  ;;  %v11098_v16 = vld [vmem:[#allocation13 + $0x4c] ss:$16 sps:$4 sm:$0xff]   ;;  %v11101_v36 = vld [vmem:[#allocation13 + $0x40] ss:$16 sps:$4 sm:$0xff]  }
 0x80b   :  { %13408 = vst [vmem:[#allocation61_spill] sm:$0xff] %v11098_v16  ;;  %13409 = vst [vmem:[#allocation62_spill] sm:$0xff] %v11101_v36 }
 0x80d   :  { %4205 = vmatpush1.bf16.msra.mxu0 %v13392_v63  ;;  %4246 = vmatpush1.bf16.msra.mxu1 %v13393_v43  ;;  %v11104_v63 = vld [vmem:[#allocation13 + $0x48] ss:$16 sps:$4 sm:$0xff]   ;;  %v11107_v43 = vld [vmem:[#allocation13 + $0x64] ss:$16 sps:$4 sm:$0xff]  }
 0x80e   :  { %4206 = vmatprep.subr.bf16.mxu0 %v13394_v31  ;;  %4247 = vmatprep.subr.bf16.mxu1 %v13395_v12  ;;  %13410 = vst [vmem:[#allocation63_spill] sm:$0xff] %v11104_v63  ;;  %13411 = vst [vmem:[#allocation64_spill] sm:$0xff] %v11107_v43  ;;  %v11110_v31 = vld [vmem:[#allocation13 + $0x6c] ss:$16 sps:$4 sm:$0xff]   ;;  %v11113_v12 = vld [vmem:[#allocation13 + $0x60] ss:$16 sps:$4 sm:$0xff]  }
 0x80f   :  { %13412 = vst [vmem:[#allocation65_spill] sm:$0xff] %v11110_v31  ;;  %13413 = vst [vmem:[#allocation66_spill] sm:$0xff] %v11113_v12 }
 0x811   :  { %4207 = vmatpush1.bf16.msra.mxu0 %v10712_v2  ;;  %4248 = vmatpush1.bf16.msra.mxu1 %v10715_v0  ;;  %v10952_v0 = vld [vmem:[#allocation10 + $0xc8] ss:$16 sps:$4 sm:$0xff]   ;;  %v10967_v2 = vld [vmem:[#allocation12 + $0x4] ss:$16 sps:$4 sm:$0xff]  }
 0x812   :  { %4208 = vmatprep.subr.bf16.mxu0 %v10718_v7  ;;  %4249 = vmatprep.subr.bf16.mxu1 %v10721_v50  ;;  %v10955_v50 = vld [vmem:[#allocation10 + $0xe4] ss:$16 sps:$4 sm:$0xff]   ;;  %v10964_v7 = vld [vmem:[#allocation10 + $0xe8] ss:$16 sps:$4 sm:$0xff]  }
 0x815   :  { %4209 = vmatpush1.bf16.msra.mxu0 %v10724_v52  ;;  %4250 = vmatpush1.bf16.msra.mxu1 %v10727_v17  ;;  %v10958_v17 = vld [vmem:[#allocation10 + $0xec] ss:$16 sps:$4 sm:$0xff]   ;;  %v10961_v52 = vld [vmem:[#allocation10 + $0xe0] ss:$16 sps:$4 sm:$0xff]  }
 0x816   :  { %4210 = vmatprep.subr.bf16.mxu0 %v10943_v10  ;;  %4251 = vmatprep.subr.bf16.mxu1 %v10946_v58 }
 0x819   :  { %4211 = vmatpush1.bf16.msra.mxu0 %v10949_v28  ;;  %4252 = vmatpush1.bf16.msra.mxu1 %v10952_v0 }
 0x81a   :  { %4212 = vmatprep.subr.bf16.mxu0 %v10955_v50  ;;  %4253 = vmatprep.subr.bf16.mxu1 %v10958_v17 }
 0x81d   :  { %4213 = vmatpush1.bf16.msra.mxu0 %v10961_v52  ;;  %4254 = vmatpush1.bf16.msra.mxu1 %v10964_v7 }
 0x81e   :  { %4313 = vmatprep.subr.bf16.mxu0 %v10967_v2  ;;  %4354 = vmatprep.subr.bf16.mxu1 %v10970_v53 }
 0x820   :  { %4231 = vmatmul.mubr.bf16.vlgmr.msra.gmra.mrb[80].mxu0 %v10832_v8  ;;  %4272 = vmatmul.mubr.bf16.vlgmr.msra.gmra.mrb[96].mxu1 %v10832_v8  ;;  %v10989_v8 = vld [vmem:[#allocation12 + $0x20] ss:$16 sps:$4 sm:$0xff]  }
 0x821   :  { %4314 = vmatpush1.bf16.msra.mxu0 %v10975_v39  ;;  %4355 = vmatpush1.bf16.msra.mxu1 %v10978_v54 }
 0x822   :  { %4315 = vmatprep.subr.bf16.mxu0 %v10981_v42  ;;  %4356 = vmatprep.subr.bf16.mxu1 %v10984_v11 }
 0x823   :  { %4345 = vmatprep.mubr.bf16.mxu0 %v12930_v46  ;;  %4386 = vmatprep.mubr.bf16.mxu1 %v12930_v46 }
 0x825   :  { %4316 = vmatpush1.bf16.msra.mxu0 %v10989_v8  ;;  %4357 = vmatpush1.bf16.msra.mxu1 %v10992_v15 }
 0x826   :  { %4317 = vmatprep.subr.bf16.mxu0 %v10995_v14  ;;  %4358 = vmatprep.subr.bf16.mxu1 %v10998_v9 }
 0x829   :  { %4318 = vmatpush1.bf16.msra.mxu0 %v11001_v47  ;;  %4359 = vmatpush1.bf16.msra.mxu1 %v11004_v6 }
 0x82a   :  { %4319 = vmatprep.subr.bf16.mxu0 %v11007_v34  ;;  %4360 = vmatprep.subr.bf16.mxu1 %v11010_v29 }
 0x82d   :  { %4320 = vmatpush1.bf16.msra.mxu0 %v11013_v45  ;;  %4361 = vmatpush1.bf16.msra.mxu1 %v11016_v19 }
 0x82e   :  { %4321 = vmatprep.subr.bf16.mxu0 %v11019_v38  ;;  %4362 = vmatprep.subr.bf16.mxu1 %v11022_v62 }
 0x831   :  { %4322 = vmatpush1.bf16.msra.mxu0 %v11025_v22  ;;  %4363 = vmatpush1.bf16.msra.mxu1 %v11028_v25 }
 0x832   :  { %4323 = vmatprep.subr.bf16.mxu0 %v11031_v61  ;;  %4364 = vmatprep.subr.bf16.mxu1 %v11034_v35 }
 0x835   :  { %4324 = vmatpush1.bf16.msra.mxu0 %v11037_v32  ;;  %4365 = vmatpush1.bf16.msra.mxu1 %v11040_v55 }
 0x836   :  { %4325 = vmatprep.subr.bf16.mxu0 %v11043_v24  ;;  %4366 = vmatprep.subr.bf16.mxu1 %v11046_v21 }
 0x839   :  { %4326 = vmatpush1.bf16.msra.mxu0 %v11049_v26  ;;  %4367 = vmatpush1.bf16.msra.mxu1 %v11052_v37 }
 0x83a   :  { %4327 = vmatprep.subr.bf16.mxu0 %v11055_v40  ;;  %4368 = vmatprep.subr.bf16.mxu1 %v11058_v41 }
 0x83d   :  { %4328 = vmatpush1.bf16.msra.mxu0 %v11061_v23  ;;  %4369 = vmatpush1.bf16.msra.mxu1 %v11064_v27 }
 0x83e   :  { %4424 = vmatprep.subr.bf16.mxu0 %v11067_v51  ;;  %4465 = vmatprep.subr.bf16.mxu1 %v11070_v20 }
 0x840   :  { %4346 = vmatmul.mubr.bf16.vlgmr.msra.gmra.mrb[84].mxu0 %v10876_v3  ;;  %4387 = vmatmul.mubr.bf16.vlgmr.msra.gmra.mrb[100].mxu1 %v10876_v3  ;;  %v11089_v3 = vld [vmem:[#allocation13 + $0x20] ss:$16 sps:$4 sm:$0xff]  }
 0x841   :  { %4425 = vmatpush1.bf16.msra.mxu0 %v11075_v49  ;;  %4466 = vmatpush1.bf16.msra.mxu1 %v11078_v48  ;;  %13405 = vst [vmem:[#allocation103_spill] sm:$0xff] %v11089_v3 }
 0x842   :  { %4426 = vmatprep.subr.bf16.mxu0 %v11081_v57  ;;  %4467 = vmatprep.subr.bf16.mxu1 %v11084_v1 }
 0x843   :  { %4456 = vmatprep.mubr.bf16.mxu0 %v12930_v46  ;;  %4497 = vmatprep.mubr.bf16.mxu1 %v12930_v46 }
 0x845   :  { %4427 = vmatpush1.bf16.msra.mxu0 %v11089_v3  ;;  %4468 = vmatpush1.bf16.msra.mxu1 %v11092_v33 }
 0x846   :  { %4428 = vmatprep.subr.bf16.mxu0 %v11095_v13  ;;  %4469 = vmatprep.subr.bf16.mxu1 %v11098_v16 }
 0x849   :  { %4429 = vmatpush1.bf16.msra.mxu0 %v11101_v36  ;;  %4470 = vmatpush1.bf16.msra.mxu1 %v11104_v63  ;;  %v11119_v36 = vld [vmem:[#allocation13 + $0x84] ss:$16 sps:$4 sm:$0xff]   ;;  %v11122_v63 = vld [vmem:[#allocation13 + $0x8c] ss:$16 sps:$4 sm:$0xff]  }
 0x84a   :  { %4430 = vmatprep.subr.bf16.mxu0 %v11107_v43  ;;  %4471 = vmatprep.subr.bf16.mxu1 %v11110_v31  ;;  %13415 = vst [vmem:[#allocation68_spill] sm:$0xff] %v11119_v36  ;;  %13416 = vst [vmem:[#allocation69_spill] sm:$0xff] %v11122_v63  ;;  %v11125_v43 = vld [vmem:[#allocation13 + $0x80] ss:$16 sps:$4 sm:$0xff]   ;;  %v11128_v31 = vld [vmem:[#allocation13 + $0x88] ss:$16 sps:$4 sm:$0xff]  }
 0x84b   :  { %13417 = vst [vmem:[#allocation70_spill] sm:$0xff] %v11125_v43  ;;  %13418 = vst [vmem:[#allocation71_spill] sm:$0xff] %v11128_v31 }
 0x84d   :  { %4431 = vmatpush1.bf16.msra.mxu0 %v11113_v12  ;;  %4472 = vmatpush1.bf16.msra.mxu1 %v11116_v18  ;;  %v11131_v12 = vld [vmem:[#allocation13 + $0xa4] ss:$16 sps:$4 sm:$0xff]   ;;  %v11134_v18 = vld [vmem:[#allocation13 + $0xac] ss:$16 sps:$4 sm:$0xff]  }
 0x84e   :  { %4432 = vmatprep.subr.bf16.mxu0 %v11119_v36  ;;  %4473 = vmatprep.subr.bf16.mxu1 %v11122_v63  ;;  %13419 = vst [vmem:[#allocation72_spill] sm:$0xff] %v11131_v12  ;;  %13420 = vst [vmem:[#allocation73_spill] sm:$0xff] %v11134_v18  ;;  %v11137_v36 = vld [vmem:[#allocation13 + $0xa0] ss:$16 sps:$4 sm:$0xff]   ;;  %v11140_v63 = vld [vmem:[#allocation13 + $0xa8] ss:$16 sps:$4 sm:$0xff]  }
 0x84f   :  { %13421 = vst [vmem:[#allocation74_spill] sm:$0xff] %v11137_v36  ;;  %13422 = vst [vmem:[#allocation75_spill] sm:$0xff] %v11140_v63 }
 0x851   :  { %4433 = vmatpush1.bf16.msra.mxu0 %v11125_v43  ;;  %4474 = vmatpush1.bf16.msra.mxu1 %v11128_v31  ;;  %v11143_v43 = vld [vmem:[#allocation13 + $0xc4] ss:$16 sps:$4 sm:$0xff]   ;;  %v11146_v31 = vld [vmem:[#allocation13 + $0xcc] ss:$16 sps:$4 sm:$0xff]  }
 0x852   :  { %4434 = vmatprep.subr.bf16.mxu0 %v11131_v12  ;;  %4475 = vmatprep.subr.bf16.mxu1 %v11134_v18  ;;  %13423 = vst [vmem:[#allocation76_spill] sm:$0xff] %v11143_v43  ;;  %13424 = vst [vmem:[#allocation77_spill] sm:$0xff] %v11146_v31  ;;  %v11149_v12 = vld [vmem:[#allocation13 + $0xc0] ss:$16 sps:$4 sm:$0xff]   ;;  %v11152_v18 = vld [vmem:[#allocation13 + $0xc8] ss:$16 sps:$4 sm:$0xff]  }
 0x853   :  { %13425 = vst [vmem:[#allocation78_spill] sm:$0xff] %v11149_v12  ;;  %13426 = vst [vmem:[#allocation79_spill] sm:$0xff] %v11152_v18 }
 0x855   :  { %4435 = vmatpush1.bf16.msra.mxu0 %v11137_v36  ;;  %4476 = vmatpush1.bf16.msra.mxu1 %v11140_v63  ;;  %v11155_v36 = vld [vmem:[#allocation13 + $0xe4] ss:$16 sps:$4 sm:$0xff]   ;;  %v11158_v63 = vld [vmem:[#allocation13 + $0xec] ss:$16 sps:$4 sm:$0xff]  }
 0x856   :  { %4436 = vmatprep.subr.bf16.mxu0 %v11143_v43  ;;  %4477 = vmatprep.subr.bf16.mxu1 %v11146_v31  ;;  %13427 = vst [vmem:[#allocation80_spill] sm:$0xff] %v11155_v36  ;;  %13428 = vst [vmem:[#allocation81_spill] sm:$0xff] %v11158_v63  ;;  %v11161_v43 = vld [vmem:[#allocation13 + $0xe0] ss:$16 sps:$4 sm:$0xff]   ;;  %v11164_v31 = vld [vmem:[#allocation13 + $0xe8] ss:$16 sps:$4 sm:$0xff]  }
 0x857   :  { %13429 = vst [vmem:[#allocation82_spill] sm:$0xff] %v11161_v43  ;;  %13430 = vst [vmem:[#allocation83_spill] sm:$0xff] %v11164_v31 }
 0x859   :  { %4437 = vmatpush1.bf16.msra.mxu0 %v11149_v12  ;;  %4478 = vmatpush1.bf16.msra.mxu1 %v11152_v18  ;;  %v11167_v12 = vld [vmem:[#allocation15 + $0x4] ss:$16 sps:$4 sm:$0xff]   ;;  %v11170_v18 = vld [vmem:[#allocation15 + $0xc] ss:$16 sps:$4 sm:$0xff]  }
 0x85a   :  { %4438 = vmatprep.subr.bf16.mxu0 %v11155_v36  ;;  %4479 = vmatprep.subr.bf16.mxu1 %v11158_v63  ;;  %13431 = vst [vmem:[#allocation84_spill] sm:$0xff] %v11167_v12  ;;  %13432 = vst [vmem:[#allocation85_spill] sm:$0xff] %v11170_v18 }
 0x85d   :  { %4439 = vmatpush1.bf16.msra.mxu0 %v11161_v43  ;;  %4480 = vmatpush1.bf16.msra.mxu1 %v11164_v31 }
 0x85e   :  { %4511 = vmatprep.subr.bf16.mxu0 %v11167_v12  ;;  %4552 = vmatprep.subr.bf16.mxu1 %v11170_v18 }
 0x8d3   :  { %v4115_v36 = vpop.f32.mrb[76].mxu0  ;;  %v4156_v16 = vpop.f32.mrb[92].mxu1 }
 0x8d4   :  { %v7134_v63 = vadd.f32 %v4115_v36, %v13318_v5  ;;  %v4117_v13 = vpop.f32.mrb[77].mxu0  ;;  %v11174_v33 = vpop.f32.mrb[93].mxu1  ;;  %v7136_v12 = vadd.f32 %v4156_v16, %v13320_v44  ;;  %v13434_v16 = vld [vmem:[#allocation48_spill] sm:$0xff] }
 0x8d5   :  { %v7135_v43 = vadd.f32 %v4117_v13, %v13319_v4  ;;  %v4119_v3 = vpop.f32.mrb[78].mxu0  ;;  %v4160_v1 = vpop.f32.mrb[94].mxu1 }
 0x8d6   :  { %v6806_v31 = vmul.f32 -1.442695, %v7134_v63  ;;  %v4120_v57 = vpop.f32.mrb[79].mxu0  ;;  %v4161_v48 = vpop.f32.mrb[95].mxu1 }
 0x8d7   :  { %v6807_v49 = vmul.f32 -1.442695, %v7135_v43 }
 0x8d8   :  { %7713 = vpow2.f32 %v6806_v31 }
 0x8d9   :  { %7715 = vpow2.f32 %v6807_v49  ;;  %v13433_v49 = vld [vmem:[#allocation32_spill] sm:$0xff] }
 0x8da   :  { %7717 = vtanh.f32 %v7136_v12  ;;  %v13435_v12 = vld [vmem:[#allocation33_spill] sm:$0xff] }
 0x8e2   :  { %v7714_v18 = vpop.eup %7713 }
 0x8e3   :  { %v7716_v20 = vpop.eup %7715  ;;  %v4170_v51 = vadd.f32 1.0, %v7714_v18 }
 0x8e4   :  { %v4176_v36 = vadd.f32 1.0, %v7716_v20  ;;  %v7718_v5 = vpop.eup %7717 }
 0x8e5   :  { %7719 = vrcp.f32 %v4170_v51  ;;  %v13436_v51 = vld [vmem:[#allocation49_spill] sm:$0xff] }
 0x8e6   :  { %7721 = vrcp.f32 %v4176_v36 }
 0x8ef   :  { %v7720_v27 = vpop.eup %7719 }
 0x8f0   :  { %v7722_v13 = vpop.eup %7721  ;;  %v4187_v3 = vmul.f32 %v7720_v27, %v7718_v5 }
 0x8f1   :  { %v4186_v1 = vmul.f32 %v7722_v13, %v10818_v56 }
 0x8f3   :  { %v11179_v57 = vadd.f32 %v4187_v3, %v4186_v1  ;;  %v4232_v48 = vpop.f32.mrb[80].mxu0  ;;  %v4273_v63 = vpop.f32.mrb[96].mxu1 }
 0x8f4   :  { %v4280_v43 = vadd.f32 %v4232_v48, %v13433_v49  ;;  %v4282_v31 = vadd.f32 %v4273_v63, %v13434_v16  ;;  %v4234_v44 = vpop.f32.mrb[81].mxu0  ;;  %v4275_v18 = vpop.f32.mrb[97].mxu1 }
 0x8f5   :  { %v4281_v20 = vadd.f32 %v4234_v44, %v13435_v12  ;;  %v4283_v36 = vadd.f32 %v4275_v18, %v13436_v51  ;;  %v4236_v4 = vpop.f32.mrb[82].mxu0  ;;  %v4277_v23 = vpop.f32.mrb[98].mxu1  ;;  %v13437_v51 = vld [vmem:[#allocation110_spill] sm:$0xff] }
 0x8f6   :  { %v6809_v41 = vmul.f32 -1.442695, %v4280_v43  ;;  %v4237_v5 = vpop.f32.mrb[83].mxu0  ;;  %v4278_v27 = vpop.f32.mrb[99].mxu1 }
 0x8f7   :  { %v6810_v56 = vmul.f32 -1.442695, %v4281_v20  ;;  %v6811_v13 = vmul.f32 -1.442695, %v4283_v36  ;;  %v13438_v5 = vld [vmem:[#allocation111_spill] sm:$0xff] }
 0x8f8   :  { %7723 = vpow2.f32 %v6809_v41 }
 0x8f9   :  { %7725 = vpow2.f32 %v6810_v56 }
 0x8fa   :  { %7727 = vpow2.f32 %v6811_v13  ;;  %v13439_v13 = vld [vmem:[#allocation112_spill] sm:$0xff] }
 0x8fb   :  { %7729 = vtanh.f32 %v4282_v31 }
 0x902   :  { %v7724_v3 = vpop.eup %7723 }
 0x903   :  { %v7726_v1 = vpop.eup %7725  ;;  %v4287_v48 = vadd.f32 1.0, %v7724_v3 }
 0x904   :  { %v4293_v63 = vadd.f32 1.0, %v7726_v1  ;;  %v7728_v44 = vpop.eup %7727  ;;  %v13440_v1 = vld [vmem:[#allocation113_spill] sm:$0xff] }
 0x905   :  { %7731 = vrcp.f32 %v4287_v48  ;;  %v7730_v49 = vpop.eup %7729  ;;  %v4300_v43 = vadd.f32 1.0, %v7728_v44 }
 0x906   :  { %7733 = vrcp.f32 %v4293_v63 }
 0x907   :  { %7735 = vrcp.f32 %v4300_v43 }
 0x90f   :  { %v7732_v16 = vpop.eup %7731 }
 0x910   :  { %v7734_v4 = vpop.eup %7733  ;;  %v4304_v23 = vmul.f32 %v7732_v16, %v7730_v49 }
 0x911   :  { %v4303_v18 = vmul.f32 %v7734_v4, %v10825_v59 }
 0x913   :  { %v11186_v12 = vadd.f32 %v4304_v23, %v4303_v18  ;;  %v4347_v41 = vpop.f32.mrb[84].mxu0  ;;  %v4388_v20 = vpop.f32.mrb[100].mxu1 }
 0x914   :  { %v4395_v36 = vadd.f32 %v4347_v41, %v13437_v51  ;;  %v4397_v31 = vadd.f32 %v4388_v20, %v13438_v5  ;;  %v4349_v27 = vpop.f32.mrb[85].mxu0  ;;  %v4390_v56 = vpop.f32.mrb[101].mxu1 }
 0x915   :  { %v4396_v3 = vadd.f32 %v4349_v27, %v13439_v13  ;;  %v4398_v48 = vadd.f32 %v4390_v56, %v13440_v1  ;;  %v4351_v63 = vpop.f32.mrb[86].mxu0  ;;  %v4392_v49 = vpop.f32.mrb[102].mxu1  ;;  %7737 = vtanh.f32 %v11186_v12  ;;  %v11200_v13 = vld [vmem:[#allocation15 + $0x8] ss:$16 sps:$4 sm:$0xff]   ;;  %v11211_v1 = vld [vmem:[#allocation15 + $0x20] ss:$16 sps:$4 sm:$0xff]  }
 0x916   :  { %v6812_v59 = vmul.f32 -1.442695, %v4395_v36  ;;  %v4352_v44 = vpop.f32.mrb[87].mxu0  ;;  %v4393_v16 = vpop.f32.mrb[103].mxu1  ;;  %v11197_v36 = vld [vmem:[#allocation15] ss:$16 sps:$4 sm:$0xff]  }
 0x917   :  { %v6813_v4 = vmul.f32 -1.442695, %v4396_v3  ;;  %v7736_v23 = vpop.eup %7735  ;;  %v6814_v18 = vmul.f32 -1.442695, %v4398_v48  ;;  %v11203_v3 = vld [vmem:[#allocation15 + $0x24] ss:$16 sps:$4 sm:$0xff]  }
 0x918   :  { %7739 = vpow2.f32 %v6812_v59  ;;  %v11214_v48 = vld [vmem:[#allocation15 + $0x28] ss:$16 sps:$4 sm:$0xff]   ;;  %v11217_v63 = vld [vmem:[#allocation15 + $0x44] ss:$16 sps:$4 sm:$0xff]   ;;  %v11220_v49 = vld [vmem:[#allocation15 + $0x4c] ss:$16 sps:$4 sm:$0xff]  }
 0x919   :  { %7741 = vpow2.f32 %v6813_v4  ;;  %v11223_v44 = vld [vmem:[#allocation15 + $0x40] ss:$16 sps:$4 sm:$0xff]   ;;  %v11226_v16 = vld [vmem:[#allocation15 + $0x48] ss:$16 sps:$4 sm:$0xff]  }
 0x91a   :  { %7743 = vpow2.f32 %v6814_v18  ;;  %13441 = vst [vmem:[#allocation86_spill] sm:$0xff] %v11223_v44  ;;  %13442 = vst [vmem:[#allocation87_spill] sm:$0xff] %v11226_v16 }
 0x91b   :  { %7745 = vtanh.f32 %v4397_v31  ;;  %v11206_v31 = vld [vmem:[#allocation15 + $0x2c] ss:$16 sps:$4 sm:$0xff]  }
 0x91f   :  { %v7738_v43 = vpop.eup %7737 }
 0x920   :  { %v4307_v41 = vmul.f32 %v7738_v43, %v7736_v23  ;;  %v11229_v23 = vld [vmem:[#allocation15 + $0x64] ss:$16 sps:$4 sm:$0xff]   ;;  %v11232_v43 = vld [vmem:[#allocation15 + $0x6c] ss:$16 sps:$4 sm:$0xff]  }
 0x921   :  { %13443 = vst [vmem:[#allocation88_spill] sm:$0xff] %v11229_v23 }
 0x922   :  { %v7740_v20 = vpop.eup %7739  ;;  %v11193_v51 = vpack.c.bf16 %v4307_v41, %v4307_v41 }
 0x923   :  { %v7742_v5 = vpop.eup %7741  ;;  %v4402_v27 = vadd.f32 1.0, %v7740_v20 }
 0x924   :  { %v4408_v56 = vadd.f32 1.0, %v7742_v5  ;;  %4457 = vmatmul.mubr.bf16.vlgmr.msra.gmra.mrb[88].mxu0 %v11193_v51  ;;  %4498 = vmatmul.mubr.bf16.vlgmr.msra.gmra.mrb[104].mxu1 %v11193_v51  ;;  %v7744_v59 = vpop.eup %7743 }
 0x925   :  { %7747 = vrcp.f32 %v4402_v27  ;;  %4512 = vmatpush1.bf16.msra.mxu0 %v11197_v36  ;;  %4553 = vmatpush1.bf16.msra.mxu1 %v11200_v13  ;;  %v7746_v4 = vpop.eup %7745  ;;  %v4415_v5 = vadd.f32 1.0, %v7744_v59  ;;  %v11253_v59 = vld [vmem:[#allocation15 + $0x88] ss:$16 sps:$4 sm:$0xff]  }
 0x926   :  { %7749 = vrcp.f32 %v4408_v56  ;;  %4513 = vmatprep.subr.bf16.mxu0 %v11203_v3  ;;  %4554 = vmatprep.subr.bf16.mxu1 %v11206_v31  ;;  %v11236_v56 = vld [vmem:[#allocation15 + $0x60] ss:$16 sps:$4 sm:$0xff]   ;;  %13446 = vst [vmem:[#allocation91_spill] sm:$0xff] %v11253_v59 }
 0x927   :  { %4543 = vmatprep.mubr.bf16.mxu0 %v12930_v46  ;;  %4584 = vmatprep.mubr.bf16.mxu1 %v12930_v46  ;;  %7751 = vrcp.f32 %v4415_v5  ;;  %v11266_v5 = vld [vmem:[#allocation15 + $0xa8] ss:$16 sps:$4 sm:$0xff]  }
 0x928   :  { %13450 = vst [vmem:[#allocation95_spill] sm:$0xff] %v11266_v5 }
 0x929   :  { %4514 = vmatpush1.bf16.msra.mxu0 %v11211_v1  ;;  %4555 = vmatpush1.bf16.msra.mxu1 %v11214_v48 }
 0x92a   :  { %4515 = vmatprep.subr.bf16.mxu0 %v11217_v63  ;;  %4556 = vmatprep.subr.bf16.mxu1 %v11220_v49 }
 0x92d   :  { %4516 = vmatpush1.bf16.msra.mxu0 %v11223_v44  ;;  %4557 = vmatpush1.bf16.msra.mxu1 %v11226_v16  ;;  %v11239_v16 = vld [vmem:[#allocation15 + $0x68] ss:$16 sps:$4 sm:$0xff]   ;;  %v11242_v44 = vld [vmem:[#allocation15 + $0x84] ss:$16 sps:$4 sm:$0xff]  }
 0x92e   :  { %4517 = vmatprep.subr.bf16.mxu0 %v11229_v23  ;;  %4558 = vmatprep.subr.bf16.mxu1 %v11232_v43  ;;  %v11245_v23 = vld [vmem:[#allocation15 + $0x8c] ss:$16 sps:$4 sm:$0xff]  }
 0x92f   :  { %v7748_v18 = vpop.eup %7747  ;;  %13444 = vst [vmem:[#allocation89_spill] sm:$0xff] %v11245_v23 }
 0x930   :  { %v7750_v41 = vpop.eup %7749  ;;  %v4419_v20 = vmul.f32 %v7748_v18, %v7746_v4  ;;  %v11257_v18 = vld [vmem:[#allocation15 + $0xa4] ss:$16 sps:$4 sm:$0xff]  }
 0x931   :  { %v4418_v27 = vmul.f32 %v7750_v41, %v10855_v30  ;;  %4518 = vmatpush1.bf16.msra.mxu0 %v11236_v56  ;;  %4559 = vmatpush1.bf16.msra.mxu1 %v11239_v16  ;;  %v11250_v30 = vld [vmem:[#allocation15 + $0x80] ss:$16 sps:$4 sm:$0xff]   ;;  %13447 = vst [vmem:[#allocation92_spill] sm:$0xff] %v11257_v18  ;;  %v11260_v41 = vld [vmem:[#allocation15 + $0xac] ss:$16 sps:$4 sm:$0xff]  }
 0x932   :  { %4519 = vmatprep.subr.bf16.mxu0 %v11242_v44  ;;  %4560 = vmatprep.subr.bf16.mxu1 %v11245_v23  ;;  %13445 = vst [vmem:[#allocation90_spill] sm:$0xff] %v11250_v30  ;;  %13448 = vst [vmem:[#allocation93_spill] sm:$0xff] %v11260_v41  ;;  %v11283_v23 = vld [vmem:[#allocation15 + $0xe4] ss:$16 sps:$4 sm:$0xff]  }
 0x933   :  { %v11248_v4 = vadd.f32 %v4419_v20, %v4418_v27  ;;  %v11263_v20 = vld [vmem:[#allocation15 + $0xa0] ss:$16 sps:$4 sm:$0xff]   ;;  %v7137_v27 = vadd.f32 %v11174_v33, %v13339_v60  ;;  %13455 = vst [vmem:[#allocation31_spill] sm:$0xff] %v11283_v23  ;;  %v11286_v33 = vld [vmem:[#allocation15 + $0xec] ss:$16 sps:$4 sm:$0xff]  }
 0x934   :  { %13449 = vst [vmem:[#allocation94_spill] sm:$0xff] %v11263_v20  ;;  %13456 = vst [vmem:[#allocation47_spill] sm:$0xff] %v11286_v33  ;;  %v11289_v60 = vld [vmem:[#allocation15 + $0xe0] ss:$16 sps:$4 sm:$0xff]  }
 0x935   :  { %4520 = vmatpush1.bf16.msra.mxu0 %v11250_v30  ;;  %4561 = vmatpush1.bf16.msra.mxu1 %v11253_v59  ;;  %7753 = vtanh.f32 %v11248_v4  ;;  %v11271_v59 = vld [vmem:[#allocation15 + $0xc4] ss:$16 sps:$4 sm:$0xff]   ;;  %v6808_v30 = vmul.f32 -1.442695, %v7137_v27  ;;  %13457 = vst [vmem:[#allocation106_spill] sm:$0xff] %v11289_v60 }
 0x936   :  { %4521 = vmatprep.subr.bf16.mxu0 %v11257_v18  ;;  %4562 = vmatprep.subr.bf16.mxu1 %v11260_v41  ;;  %13451 = vst [vmem:[#allocation96_spill] sm:$0xff] %v11271_v59  ;;  %v11274_v18 = vld [vmem:[#allocation15 + $0xcc] ss:$16 sps:$4 sm:$0xff]   ;;  %v11277_v41 = vld [vmem:[#allocation15 + $0xc0] ss:$16 sps:$4 sm:$0xff]  }
 0x937   :  { %13452 = vst [vmem:[#allocation97_spill] sm:$0xff] %v11274_v18  ;;  %13453 = vst [vmem:[#allocation30_spill] sm:$0xff] %v11277_v41  ;;  %7755 = vpow2.f32 %v6808_v30  ;;  %v11295_v27 = vld [vmem:[#allocation16 + $0x4] ss:$16 sps:$4 sm:$0xff]  }
 0x938   :  { %13459 = vst [vmem:[#allocation108_spill] sm:$0xff] %v11295_v27  ;;  %v11311_v30 = vld [vmem:[#allocation16 + $0x24] ss:$16 sps:$4 sm:$0xff]   ;;  %7757 = vtanh.f32 %v11179_v57 }
 0x939   :  { %4522 = vmatpush1.bf16.msra.mxu0 %v11263_v20  ;;  %4563 = vmatpush1.bf16.msra.mxu1 %v11266_v5  ;;  %v11280_v20 = vld [vmem:[#allocation15 + $0xc8] ss:$16 sps:$4 sm:$0xff]   ;;  %v7752_v5 = vpop.eup %7751  ;;  %13463 = vst [vmem:[#allocation40_spill] sm:$0xff] %v11311_v30 }
 0x93a   :  { %4523 = vmatprep.subr.bf16.mxu0 %v11271_v59  ;;  %4564 = vmatprep.subr.bf16.mxu1 %v11274_v18  ;;  %13454 = vst [vmem:[#allocation46_spill] sm:$0xff] %v11280_v20 }
 0x93d   :  { %4524 = vmatpush1.bf16.msra.mxu0 %v11277_v41  ;;  %4565 = vmatpush1.bf16.msra.mxu1 %v11280_v20  ;;  %v11292_v41 = vld [vmem:[#allocation15 + $0xe8] ss:$16 sps:$4 sm:$0xff]  }
 0x93e   :  { %4525 = vmatprep.subr.bf16.mxu0 %v11283_v23  ;;  %4566 = vmatprep.subr.bf16.mxu1 %v11286_v33  ;;  %13458 = vst [vmem:[#allocation107_spill] sm:$0xff] %v11292_v41  ;;  %v11298_v23 = vld [vmem:[#allocation16 + $0xc] ss:$16 sps:$4 sm:$0xff]   ;;  %v11397_v20 = vld [vmem:[#allocation16 + $0xe8] ss:$16 sps:$4 sm:$0xff]  }
 0x93f   :  { %v7754_v59 = vpop.eup %7753  ;;  %13460 = vst [vmem:[#allocation109_spill] sm:$0xff] %v11298_v23  ;;  %13489 = vst [vmem:[#allocation142_spill] sm:$0xff] %v11397_v20 }
 0x940   :  { %v4422_v18 = vmul.f32 %v7754_v59, %v7752_v5  ;;  %v11305_v59 = vld [vmem:[#allocation16] ss:$16 sps:$4 sm:$0xff]   ;;  %v11308_v5 = vld [vmem:[#allocation16 + $0x8] ss:$16 sps:$4 sm:$0xff]  }
 0x941   :  { %4526 = vmatpush1.bf16.msra.mxu0 %v11289_v60  ;;  %4567 = vmatpush1.bf16.msra.mxu1 %v11292_v41  ;;  %13461 = vst [vmem:[#allocation24_spill] sm:$0xff] %v11305_v59  ;;  %13462 = vst [vmem:[#allocation25_spill] sm:$0xff] %v11308_v5  ;;  %v11334_v41 = vld [vmem:[#allocation16 + $0x48] ss:$16 sps:$4 sm:$0xff]   ;;  %v11380_v60 = vld [vmem:[#allocation16 + $0xc0] ss:$16 sps:$4 sm:$0xff]  }
 0x942   :  { %4598 = vmatprep.subr.bf16.mxu0 %v11295_v27  ;;  %4639 = vmatprep.subr.bf16.mxu1 %v11298_v23  ;;  %v11301_v33 = vpack.c.bf16 %v4422_v18, %v4422_v18  ;;  %v11314_v27 = vld [vmem:[#allocation16 + $0x2c] ss:$16 sps:$4 sm:$0xff]   ;;  %v11319_v18 = vld [vmem:[#allocation16 + $0x20] ss:$16 sps:$4 sm:$0xff]   ;;  %13470 = vst [vmem:[#allocation100_spill] sm:$0xff] %v11334_v41  ;;  %13485 = vst [vmem:[#allocation138_spill] sm:$0xff] %v11380_v60 }
 0x943   :  { %13464 = vst [vmem:[#allocation26_spill] sm:$0xff] %v11314_v27  ;;  %13465 = vst [vmem:[#allocation42_spill] sm:$0xff] %v11319_v18  ;;  %v11331_v23 = vld [vmem:[#allocation16 + $0x40] ss:$16 sps:$4 sm:$0xff]  }
 0x944   :  { %4544 = vmatmul.mubr.bf16.vlgmr.msra.gmra.mrb[88].mxu0 %v11301_v33  ;;  %4585 = vmatmul.mubr.bf16.vlgmr.msra.gmra.mrb[104].mxu1 %v11301_v33  ;;  %13469 = vst [vmem:[#allocation99_spill] sm:$0xff] %v11331_v23 }
 0x945   :  { %4599 = vmatpush1.bf16.msra.mxu0 %v11305_v59  ;;  %4640 = vmatpush1.bf16.msra.mxu1 %v11308_v5  ;;  %v11322_v59 = vld [vmem:[#allocation16 + $0x28] ss:$16 sps:$4 sm:$0xff]   ;;  %v11325_v5 = vld [vmem:[#allocation16 + $0x44] ss:$16 sps:$4 sm:$0xff]  }
 0x946   :  { %4600 = vmatprep.subr.bf16.mxu0 %v11311_v30  ;;  %4641 = vmatprep.subr.bf16.mxu1 %v11314_v27  ;;  %13466 = vst [vmem:[#allocation27_spill] sm:$0xff] %v11322_v59  ;;  %13467 = vst [vmem:[#allocation43_spill] sm:$0xff] %v11325_v5  ;;  %v11328_v30 = vld [vmem:[#allocation16 + $0x4c] ss:$16 sps:$4 sm:$0xff]   ;;  %v7756_v27 = vpop.eup %7755 }
 0x947   :  { %4630 = vmatprep.mubr.bf16.mxu0 %v12930_v46  ;;  %4671 = vmatprep.mubr.bf16.mxu1 %v12930_v46  ;;  %13468 = vst [vmem:[#allocation98_spill] sm:$0xff] %v11328_v30 }
 0x949   :  { %4601 = vmatpush1.bf16.msra.mxu0 %v11319_v18  ;;  %4642 = vmatpush1.bf16.msra.mxu1 %v11322_v59  ;;  %v11337_v18 = vld [vmem:[#allocation16 + $0x64] ss:$16 sps:$4 sm:$0xff]   ;;  %v11340_v59 = vld [vmem:[#allocation16 + $0x6c] ss:$16 sps:$4 sm:$0xff]  }
 0x94a   :  { %4602 = vmatprep.subr.bf16.mxu0 %v11325_v5  ;;  %4643 = vmatprep.subr.bf16.mxu1 %v11328_v30  ;;  %13471 = vst [vmem:[#allocation101_spill] sm:$0xff] %v11337_v18  ;;  %13472 = vst [vmem:[#allocation126_spill] sm:$0xff] %v11340_v59  ;;  %v4183_v5 = vadd.f32 1.0, %v7756_v27  ;;  %v11344_v30 = vld [vmem:[#allocation16 + $0x60] ss:$16 sps:$4 sm:$0xff]  }
 0x94b   :  { %13473 = vst [vmem:[#allocation127_spill] sm:$0xff] %v11344_v30  ;;  %v11356_v27 = vld [vmem:[#allocation16 + $0x80] ss:$16 sps:$4 sm:$0xff]  }
 0x94c   :  { %7759 = vrcp.f32 %v4183_v5  ;;  %13477 = vst [vmem:[#allocation130_spill] sm:$0xff] %v11356_v27  ;;  %v11371_v5 = vld [vmem:[#allocation16 + $0xa8] ss:$16 sps:$4 sm:$0xff]  }
 0x94d   :  { %4603 = vmatpush1.bf16.msra.mxu0 %v11331_v23  ;;  %4644 = vmatpush1.bf16.msra.mxu1 %v11334_v41  ;;  %v11347_v23 = vld [vmem:[#allocation16 + $0x68] ss:$16 sps:$4 sm:$0xff]   ;;  %v11350_v41 = vld [vmem:[#allocation16 + $0x84] ss:$16 sps:$4 sm:$0xff]   ;;  %13482 = vst [vmem:[#allocation135_spill] sm:$0xff] %v11371_v5 }
 0x94e   :  { %4604 = vmatprep.subr.bf16.mxu0 %v11337_v18  ;;  %4645 = vmatprep.subr.bf16.mxu1 %v11340_v59  ;;  %13474 = vst [vmem:[#allocation41_spill] sm:$0xff] %v11347_v23  ;;  %13475 = vst [vmem:[#allocation128_spill] sm:$0xff] %v11350_v41  ;;  %v11353_v18 = vld [vmem:[#allocation16 + $0x8c] ss:$16 sps:$4 sm:$0xff]   ;;  %v11359_v59 = vld [vmem:[#allocation16 + $0x88] ss:$16 sps:$4 sm:$0xff]  }
 0x94f   :  { %13476 = vst [vmem:[#allocation129_spill] sm:$0xff] %v11353_v18  ;;  %13478 = vst [vmem:[#allocation131_spill] sm:$0xff] %v11359_v59 }
 0x951   :  { %4605 = vmatpush1.bf16.msra.mxu0 %v11344_v30  ;;  %4646 = vmatpush1.bf16.msra.mxu1 %v11347_v23  ;;  %v11362_v30 = vld [vmem:[#allocation16 + $0xa4] ss:$16 sps:$4 sm:$0xff]   ;;  %v11365_v23 = vld [vmem:[#allocation16 + $0xac] ss:$16 sps:$4 sm:$0xff]  }
 0x952   :  { %4606 = vmatprep.subr.bf16.mxu0 %v11350_v41  ;;  %4647 = vmatprep.subr.bf16.mxu1 %v11353_v18  ;;  %13479 = vst [vmem:[#allocation132_spill] sm:$0xff] %v11362_v30  ;;  %13480 = vst [vmem:[#allocation133_spill] sm:$0xff] %v11365_v23  ;;  %v11368_v41 = vld [vmem:[#allocation16 + $0xa0] ss:$16 sps:$4 sm:$0xff]  }
 0x953   :  { %13481 = vst [vmem:[#allocation134_spill] sm:$0xff] %v11368_v41 }
 0x955   :  { %4607 = vmatpush1.bf16.msra.mxu0 %v11356_v27  ;;  %4648 = vmatpush1.bf16.msra.mxu1 %v11359_v59  ;;  %v11374_v27 = vld [vmem:[#allocation16 + $0xc4] ss:$16 sps:$4 sm:$0xff]   ;;  %v11377_v59 = vld [vmem:[#allocation16 + $0xcc] ss:$16 sps:$4 sm:$0xff]  }
 0x956   :  { %4608 = vmatprep.subr.bf16.mxu0 %v11362_v30  ;;  %4649 = vmatprep.subr.bf16.mxu1 %v11365_v23  ;;  %13483 = vst [vmem:[#allocation136_spill] sm:$0xff] %v11374_v27  ;;  %13484 = vst [vmem:[#allocation137_spill] sm:$0xff] %v11377_v59  ;;  %v7758_v30 = vpop.eup %7757  ;;  %v11383_v23 = vld [vmem:[#allocation16 + $0xc8] ss:$16 sps:$4 sm:$0xff]  }
 0x957   :  { %v7760_v18 = vpop.eup %7759  ;;  %13486 = vst [vmem:[#allocation139_spill] sm:$0xff] %v11383_v23 }
 0x959   :  { %4609 = vmatpush1.bf16.msra.mxu0 %v11368_v41  ;;  %4650 = vmatpush1.bf16.msra.mxu1 %v11371_v5  ;;  %v11386_v41 = vld [vmem:[#allocation16 + $0xe4] ss:$16 sps:$4 sm:$0xff]   ;;  %v11389_v5 = vld [vmem:[#allocation16 + $0xec] ss:$16 sps:$4 sm:$0xff]  }
 0x95a   :  { %4610 = vmatprep.subr.bf16.mxu0 %v11374_v27  ;;  %4651 = vmatprep.subr.bf16.mxu1 %v11377_v59  ;;  %13487 = vst [vmem:[#allocation140_spill] sm:$0xff] %v11386_v41  ;;  %v11392_v27 = vmul.f32 %v7760_v18, %v7758_v30  ;;  %v11394_v59 = vld [vmem:[#allocation16 + $0xe0] ss:$16 sps:$4 sm:$0xff]   ;;  %v11411_v18 = vld [vmem:[#allocation10 + $0x8] ss:$16 sps:$4 sm:$0xff]  }
 0x95b   :  { %v11408_v30 = vld [vmem:[#allocation10] ss:$16 sps:$4 sm:$0xff]   ;;  %13492 = vst [vmem:[#allocation145_spill] sm:$0xff] %v11411_v18 }
 0x95c   :  { %13488 = vst [vmem:[#allocation141_spill] sm:$0xff] %v11392_v27  ;;  %13491 = vst [vmem:[#allocation144_spill] sm:$0xff] %v11408_v30 }
 0x95d   :  { %4611 = vmatpush1.bf16.msra.mxu0 %v11380_v60  ;;  %4652 = vmatpush1.bf16.msra.mxu1 %v11383_v23  ;;  %v4597_v23 = vpack.c.bf16 %v11392_v27, %v11392_v27  ;;  %v11402_v60 = vld [vmem:[#allocation10 + $0x4] ss:$16 sps:$4 sm:$0xff]   ;;  %v11417_v27 = vld [vmem:[#allocation10 + $0x2c] ss:$16 sps:$4 sm:$0xff]  }
 0x95e   :  { %4612 = vmatprep.subr.bf16.mxu0 %v11386_v41  ;;  %4653 = vmatprep.subr.bf16.mxu1 %v11389_v5  ;;  %v11405_v41 = vld [vmem:[#allocation10 + $0xc] ss:$16 sps:$4 sm:$0xff]   ;;  %13494 = vst [vmem:[#allocation147_spill] sm:$0xff] %v11417_v27 }
 0x95f   :  { %13490 = vst [vmem:[#allocation143_spill] sm:$0xff] %v11405_v41 }
 0x961   :  { %4613 = vmatpush1.bf16.msra.mxu0 %v11394_v59  ;;  %4654 = vmatpush1.bf16.msra.mxu1 %v11397_v20  ;;  %v11414_v20 = vld [vmem:[#allocation10 + $0x24] ss:$16 sps:$4 sm:$0xff]  }
 0x962   :  { %4715 = vmatprep.subr.bf16.mxu0 %v11402_v60  ;;  %4756 = vmatprep.subr.bf16.mxu1 %v11405_v41  ;;  %13493 = vst [vmem:[#allocation146_spill] sm:$0xff] %v11414_v20  ;;  %v11437_v41 = vld [vmem:[#allocation10 + $0x48] ss:$16 sps:$4 sm:$0xff]  }
 0x963   :  { %13500 = vst [vmem:[#allocation153_spill] sm:$0xff] %v11437_v41 }
 0x964   :  { %4631 = vmatmul.mubr.bf16.vlgmr.msra.gmra.mrb[88].mxu0 %v4597_v23  ;;  %4672 = vmatmul.mubr.bf16.vlgmr.msra.gmra.mrb[104].mxu1 %v4597_v23  ;;  %v11422_v23 = vld [vmem:[#allocation10 + $0x20] ss:$16 sps:$4 sm:$0xff]  }
 0x965   :  { %4716 = vmatpush1.bf16.msra.mxu0 %v11408_v30  ;;  %4757 = vmatpush1.bf16.msra.mxu1 %v11411_v18  ;;  %13495 = vst [vmem:[#allocation148_spill] sm:$0xff] %v11422_v23  ;;  %v11425_v30 = vld [vmem:[#allocation10 + $0x28] ss:$16 sps:$4 sm:$0xff]   ;;  %v11428_v18 = vld [vmem:[#allocation10 + $0x44] ss:$16 sps:$4 sm:$0xff]  }
 0x966   :  { %4717 = vmatprep.subr.bf16.mxu0 %v11414_v20  ;;  %4758 = vmatprep.subr.bf16.mxu1 %v11417_v27  ;;  %13496 = vst [vmem:[#allocation149_spill] sm:$0xff] %v11425_v30  ;;  %13497 = vst [vmem:[#allocation150_spill] sm:$0xff] %v11428_v18  ;;  %v11431_v20 = vld [vmem:[#allocation10 + $0x4c] ss:$16 sps:$4 sm:$0xff]   ;;  %v11434_v27 = vld [vmem:[#allocation10 + $0x40] ss:$16 sps:$4 sm:$0xff]  }
 0x967   :  { %4747 = vmatprep.mubr.bf16.mxu0 %v12930_v46  ;;  %4788 = vmatprep.mubr.bf16.mxu1 %v12930_v46  ;;  %13498 = vst [vmem:[#allocation151_spill] sm:$0xff] %v11431_v20  ;;  %13499 = vst [vmem:[#allocation152_spill] sm:$0xff] %v11434_v27 }
 0x969   :  { %4718 = vmatpush1.bf16.msra.mxu0 %v11422_v23  ;;  %4759 = vmatpush1.bf16.msra.mxu1 %v11425_v30  ;;  %v11440_v23 = vld [vmem:[#allocation10 + $0x64] ss:$16 sps:$4 sm:$0xff]   ;;  %v11443_v30 = vld [vmem:[#allocation10 + $0x6c] ss:$16 sps:$4 sm:$0xff]  }
 0x96a   :  { %4719 = vmatprep.subr.bf16.mxu0 %v11428_v18  ;;  %4760 = vmatprep.subr.bf16.mxu1 %v11431_v20  ;;  %13501 = vst [vmem:[#allocation154_spill] sm:$0xff] %v11440_v23  ;;  %13502 = vst [vmem:[#allocation155_spill] sm:$0xff] %v11443_v30  ;;  %v11446_v18 = vld [vmem:[#allocation10 + $0x60] ss:$16 sps:$4 sm:$0xff]   ;;  %v11449_v20 = vld [vmem:[#allocation10 + $0x68] ss:$16 sps:$4 sm:$0xff]  }
 0x96b   :  { %13503 = vst [vmem:[#allocation156_spill] sm:$0xff] %v11446_v18  ;;  %13504 = vst [vmem:[#allocation157_spill] sm:$0xff] %v11449_v20 }
 0x96d   :  { %4720 = vmatpush1.bf16.msra.mxu0 %v11434_v27  ;;  %4761 = vmatpush1.bf16.msra.mxu1 %v11437_v41  ;;  %v11452_v27 = vld [vmem:[#allocation10 + $0x84] ss:$16 sps:$4 sm:$0xff]   ;;  %v11455_v41 = vld [vmem:[#allocation10 + $0x8c] ss:$16 sps:$4 sm:$0xff]  }
 0x96e   :  { %4721 = vmatprep.subr.bf16.mxu0 %v11440_v23  ;;  %4762 = vmatprep.subr.bf16.mxu1 %v11443_v30  ;;  %13505 = vst [vmem:[#allocation158_spill] sm:$0xff] %v11452_v27  ;;  %13506 = vst [vmem:[#allocation159_spill] sm:$0xff] %v11455_v41  ;;  %v11458_v23 = vld [vmem:[#allocation10 + $0x80] ss:$16 sps:$4 sm:$0xff]   ;;  %v11461_v30 = vld [vmem:[#allocation10 + $0x88] ss:$16 sps:$4 sm:$0xff]  }
 0x971   :  { %4722 = vmatpush1.bf16.msra.mxu0 %v11446_v18  ;;  %4763 = vmatpush1.bf16.msra.mxu1 %v11449_v20  ;;  %v11464_v18 = vld [vmem:[#allocation10 + $0xa4] ss:$16 sps:$4 sm:$0xff]   ;;  %v11467_v20 = vld [vmem:[#allocation10 + $0xac] ss:$16 sps:$4 sm:$0xff]  }
 0x972   :  { %4723 = vmatprep.subr.bf16.mxu0 %v11452_v27  ;;  %4764 = vmatprep.subr.bf16.mxu1 %v11455_v41  ;;  %v11470_v27 = vld [vmem:[#allocation10 + $0xa0] ss:$16 sps:$4 sm:$0xff]   ;;  %v11473_v41 = vld [vmem:[#allocation10 + $0xa8] ss:$16 sps:$4 sm:$0xff]  }
 0x975   :  { %4724 = vmatpush1.bf16.msra.mxu0 %v11458_v23  ;;  %4765 = vmatpush1.bf16.msra.mxu1 %v11461_v30 }
 0x976   :  { %4725 = vmatprep.subr.bf16.mxu0 %v11464_v18  ;;  %4766 = vmatprep.subr.bf16.mxu1 %v11467_v20 }
 0x979   :  { %4726 = vmatpush1.bf16.msra.mxu0 %v11470_v27  ;;  %4767 = vmatpush1.bf16.msra.mxu1 %v11473_v41 }
 0x97a   :  { %4727 = vmatprep.subr.bf16.mxu0 %v10943_v10  ;;  %4768 = vmatprep.subr.bf16.mxu1 %v10946_v58  ;;  %v13507_v10 = vld [vmem:[#allocation181_spill] sm:$0xff]  ;;  %v13508_v58 = vld [vmem:[#allocation182_spill] sm:$0xff] }
 0x97d   :  { %4728 = vmatpush1.bf16.msra.mxu0 %v10949_v28  ;;  %4769 = vmatpush1.bf16.msra.mxu1 %v10952_v0  ;;  %v13509_v28 = vld [vmem:[#allocation183_spill] sm:$0xff]  ;;  %v13510_v0 = vld [vmem:[#allocation184_spill] sm:$0xff] }
 0x97e   :  { %4729 = vmatprep.subr.bf16.mxu0 %v10955_v50  ;;  %4770 = vmatprep.subr.bf16.mxu1 %v10958_v17  ;;  %v13511_v50 = vld [vmem:[#allocation28_spill] sm:$0xff] }
 0x97f   :  { %v13512_v17 = vld [vmem:[#allocation44_spill] sm:$0xff] }
 0x981   :  { %4730 = vmatpush1.bf16.msra.mxu0 %v10961_v52  ;;  %4771 = vmatpush1.bf16.msra.mxu1 %v10964_v7  ;;  %v13513_v52 = vld [vmem:[#allocation29_spill] sm:$0xff] }
 0x982   :  { %4830 = vmatprep.subr.bf16.mxu0 %v10967_v2  ;;  %4871 = vmatprep.subr.bf16.mxu1 %v10970_v53  ;;  %v13514_v7 = vld [vmem:[#allocation45_spill] sm:$0xff]  ;;  %v13515_v2 = vld [vmem:[#allocation102_spill] sm:$0xff]  ;;  %v13516_v53 = vld [vmem:[#allocation103_spill] sm:$0xff] }
 0x984   :  { %4748 = vmatmul.mubr.bf16.vlgmr.msra.gmra.mrb[92].mxu0 %v11193_v51  ;;  %4789 = vmatmul.mubr.bf16.vlgmr.msra.gmra.mrb[108].mxu1 %v11193_v51 }
 0x985   :  { %4831 = vmatpush1.bf16.msra.mxu0 %v10975_v39  ;;  %4872 = vmatpush1.bf16.msra.mxu1 %v10978_v54  ;;  %v13517_v39 = vld [vmem:[#allocation104_spill] sm:$0xff]  ;;  %v13518_v54 = vld [vmem:[#allocation105_spill] sm:$0xff] }
 0x986   :  { %4832 = vmatprep.subr.bf16.mxu0 %v10981_v42  ;;  %4873 = vmatprep.subr.bf16.mxu1 %v10984_v11  ;;  %v13519_v42 = vld [vmem:[#allocation61_spill] sm:$0xff]  ;;  %v13520_v11 = vld [vmem:[#allocation62_spill] sm:$0xff] }
 0x987   :  { %4862 = vmatprep.mubr.bf16.mxu0 %v12930_v46  ;;  %4903 = vmatprep.mubr.bf16.mxu1 %v12930_v46 }
 0x989   :  { %4833 = vmatpush1.bf16.msra.mxu0 %v10989_v8  ;;  %4874 = vmatpush1.bf16.msra.mxu1 %v10992_v15  ;;  %v13521_v8 = vld [vmem:[#allocation63_spill] sm:$0xff]  ;;  %v13522_v15 = vld [vmem:[#allocation64_spill] sm:$0xff] }
 0x98a   :  { %4834 = vmatprep.subr.bf16.mxu0 %v10995_v14  ;;  %4875 = vmatprep.subr.bf16.mxu1 %v10998_v9  ;;  %v13523_v14 = vld [vmem:[#allocation65_spill] sm:$0xff]  ;;  %v13524_v9 = vld [vmem:[#allocation66_spill] sm:$0xff] }
 0x98d   :  { %4835 = vmatpush1.bf16.msra.mxu0 %v11001_v47  ;;  %4876 = vmatpush1.bf16.msra.mxu1 %v11004_v6  ;;  %v13525_v47 = vld [vmem:[#allocation67_spill] sm:$0xff]  ;;  %v13526_v6 = vld [vmem:[#allocation68_spill] sm:$0xff] }
 0x98e   :  { %4836 = vmatprep.subr.bf16.mxu0 %v11007_v34  ;;  %4877 = vmatprep.subr.bf16.mxu1 %v11010_v29  ;;  %v13527_v34 = vld [vmem:[#allocation69_spill] sm:$0xff]  ;;  %v13528_v29 = vld [vmem:[#allocation70_spill] sm:$0xff] }
 0x991   :  { %4837 = vmatpush1.bf16.msra.mxu0 %v11013_v45  ;;  %4878 = vmatpush1.bf16.msra.mxu1 %v11016_v19  ;;  %v13529_v45 = vld [vmem:[#allocation71_spill] sm:$0xff]  ;;  %v13530_v19 = vld [vmem:[#allocation72_spill] sm:$0xff] }
 0x992   :  { %4838 = vmatprep.subr.bf16.mxu0 %v11019_v38  ;;  %4879 = vmatprep.subr.bf16.mxu1 %v11022_v62  ;;  %v13531_v38 = vld [vmem:[#allocation73_spill] sm:$0xff]  ;;  %v13532_v62 = vld [vmem:[#allocation74_spill] sm:$0xff] }
 0x995   :  { %4839 = vmatpush1.bf16.msra.mxu0 %v11025_v22  ;;  %4880 = vmatpush1.bf16.msra.mxu1 %v11028_v25  ;;  %v13533_v22 = vld [vmem:[#allocation75_spill] sm:$0xff]  ;;  %v13534_v25 = vld [vmem:[#allocation76_spill] sm:$0xff] }
 0x996   :  { %4840 = vmatprep.subr.bf16.mxu0 %v11031_v61  ;;  %4881 = vmatprep.subr.bf16.mxu1 %v11034_v35  ;;  %v13535_v61 = vld [vmem:[#allocation77_spill] sm:$0xff]  ;;  %v13536_v35 = vld [vmem:[#allocation78_spill] sm:$0xff] }
 0x999   :  { %4841 = vmatpush1.bf16.msra.mxu0 %v11037_v32  ;;  %4882 = vmatpush1.bf16.msra.mxu1 %v11040_v55  ;;  %v13537_v32 = vld [vmem:[#allocation79_spill] sm:$0xff]  ;;  %v13538_v55 = vld [vmem:[#allocation80_spill] sm:$0xff] }
 0x99a   :  { %4842 = vmatprep.subr.bf16.mxu0 %v11043_v24  ;;  %4883 = vmatprep.subr.bf16.mxu1 %v11046_v21  ;;  %v13539_v24 = vld [vmem:[#allocation81_spill] sm:$0xff]  ;;  %v13540_v21 = vld [vmem:[#allocation82_spill] sm:$0xff] }
 0x99d   :  { %4843 = vmatpush1.bf16.msra.mxu0 %v11049_v26  ;;  %4884 = vmatpush1.bf16.msra.mxu1 %v11052_v37  ;;  %v13541_v26 = vld [vmem:[#allocation83_spill] sm:$0xff]  ;;  %v13542_v37 = vld [vmem:[#allocation84_spill] sm:$0xff] }
 0x99e   :  { %4844 = vmatprep.subr.bf16.mxu0 %v11055_v40  ;;  %4885 = vmatprep.subr.bf16.mxu1 %v13507_v10  ;;  %v13543_v40 = vld [vmem:[#allocation85_spill] sm:$0xff]  ;;  %v13544_v10 = vld [vmem:[#allocation56_spill] sm:$0xff] }
 0x9a1   :  { %4845 = vmatpush1.bf16.msra.mxu0 %v13508_v58  ;;  %4886 = vmatpush1.bf16.msra.mxu1 %v13509_v28 }
 0x9a2   :  { %4941 = vmatprep.subr.bf16.mxu0 %v13510_v0  ;;  %4982 = vmatprep.subr.bf16.mxu1 %v13511_v50  ;;  %v13545_v50 = vld [vmem:[#allocation57_spill] sm:$0xff] }
 0x9a4   :  { %4863 = vmatmul.mubr.bf16.vlgmr.msra.gmra.mrb[96].mxu0 %v11301_v33  ;;  %4904 = vmatmul.mubr.bf16.vlgmr.msra.gmra.mrb[112].mxu1 %v11301_v33 }
 0x9a5   :  { %4942 = vmatpush1.bf16.msra.mxu0 %v13512_v17  ;;  %4983 = vmatpush1.bf16.msra.mxu1 %v13513_v52 }
 0x9a6   :  { %4943 = vmatprep.subr.bf16.mxu0 %v13514_v7  ;;  %4984 = vmatprep.subr.bf16.mxu1 %v13515_v2 }
 0x9a7   :  { %4973 = vmatprep.mubr.bf16.mxu0 %v12930_v46  ;;  %5014 = vmatprep.mubr.bf16.mxu1 %v12930_v46 }
 0x9a9   :  { %4944 = vmatpush1.bf16.msra.mxu0 %v13516_v53  ;;  %4985 = vmatpush1.bf16.msra.mxu1 %v13517_v39 }
 0x9aa   :  { %4945 = vmatprep.subr.bf16.mxu0 %v13518_v54  ;;  %4986 = vmatprep.subr.bf16.mxu1 %v13519_v42  ;;  %v13546_v42 = vld [vmem:[#allocation58_spill] sm:$0xff] }
 0x9ad   :  { %4946 = vmatpush1.bf16.msra.mxu0 %v13520_v11  ;;  %4987 = vmatpush1.bf16.msra.mxu1 %v13521_v8 }
 0x9ae   :  { %4947 = vmatprep.subr.bf16.mxu0 %v13522_v15  ;;  %4988 = vmatprep.subr.bf16.mxu1 %v13523_v14 }
 0x9b1   :  { %4948 = vmatpush1.bf16.msra.mxu0 %v13524_v9  ;;  %4989 = vmatpush1.bf16.msra.mxu1 %v13525_v47 }
 0x9b2   :  { %4949 = vmatprep.subr.bf16.mxu0 %v13526_v6  ;;  %4990 = vmatprep.subr.bf16.mxu1 %v13527_v34 }
 0x9b5   :  { %4950 = vmatpush1.bf16.msra.mxu0 %v13528_v29  ;;  %4991 = vmatpush1.bf16.msra.mxu1 %v13529_v45 }
 0x9b6   :  { %4951 = vmatprep.subr.bf16.mxu0 %v13530_v19  ;;  %4992 = vmatprep.subr.bf16.mxu1 %v13531_v38 }
 0x9b9   :  { %4952 = vmatpush1.bf16.msra.mxu0 %v13532_v62  ;;  %4993 = vmatpush1.bf16.msra.mxu1 %v13533_v22  ;;  %v13547_v22 = vld [vmem:[#allocation34_spill] sm:$0xff] }
 0x9ba   :  { %4953 = vmatprep.subr.bf16.mxu0 %v13534_v25  ;;  %4994 = vmatprep.subr.bf16.mxu1 %v13535_v61  ;;  %v13548_v61 = vld [vmem:[#allocation50_spill] sm:$0xff] }
 0x9bd   :  { %4954 = vmatpush1.bf16.msra.mxu0 %v13536_v35  ;;  %4995 = vmatpush1.bf16.msra.mxu1 %v13537_v32 }
 0x9be   :  { %4955 = vmatprep.subr.bf16.mxu0 %v13538_v55  ;;  %4996 = vmatprep.subr.bf16.mxu1 %v13539_v24  ;;  %v13549_v24 = vld [vmem:[#allocation35_spill] sm:$0xff] }
 0x9c1   :  { %4956 = vmatpush1.bf16.msra.mxu0 %v13540_v21  ;;  %4997 = vmatpush1.bf16.msra.mxu1 %v13541_v26  ;;  %v13550_v26 = vld [vmem:[#allocation51_spill] sm:$0xff] }
 0x9c2   :  { %5028 = vmatprep.subr.bf16.mxu0 %v13542_v37  ;;  %5069 = vmatprep.subr.bf16.mxu1 %v13543_v40 }
 0xa37   :  { %v4632_v51 = vpop.f32.mrb[88].mxu0  ;;  %v4673_v33 = vpop.f32.mrb[104].mxu1 }
 0xa38   :  { %v7138_v58 = vadd.f32 %v4632_v51, %v13544_v10  ;;  %v4634_v28 = vpop.f32.mrb[89].mxu0  ;;  %v11559_v0 = vpop.f32.mrb[105].mxu1  ;;  %v7140_v11 = vadd.f32 %v4673_v33, %v13546_v42 }
 0xa39   :  { %v7139_v17 = vadd.f32 %v4634_v28, %v13545_v50  ;;  %v4636_v52 = vpop.f32.mrb[90].mxu0  ;;  %v4677_v7 = vpop.f32.mrb[106].mxu1 }
 0xa3a   :  { %v6815_v2 = vmul.f32 -1.442695, %v7138_v58  ;;  %v4637_v53 = vpop.f32.mrb[91].mxu0  ;;  %v4678_v39 = vpop.f32.mrb[107].mxu1 }
 0xa3b   :  { %v6816_v54 = vmul.f32 -1.442695, %v7139_v17 }
 0xa3c   :  { %7761 = vpow2.f32 %v6815_v2 }
 0xa3d   :  { %7763 = vpow2.f32 %v6816_v54 }
 0xa3e   :  { %7765 = vtanh.f32 %v7140_v11 }
 0xa46   :  { %v7762_v8 = vpop.eup %7761 }
 0xa47   :  { %v7764_v15 = vpop.eup %7763  ;;  %v4687_v14 = vadd.f32 1.0, %v7762_v8 }
 0xa48   :  { %v4693_v9 = vadd.f32 1.0, %v7764_v15  ;;  %v7766_v47 = vpop.eup %7765 }
 0xa49   :  { %7767 = vrcp.f32 %v4687_v14 }
 0xa4a   :  { %7769 = vrcp.f32 %v4693_v9 }
 0xa53   :  { %v7768_v6 = vpop.eup %7767 }
 0xa54   :  { %v7770_v34 = vpop.eup %7769  ;;  %v4704_v29 = vmul.f32 %v7768_v6, %v7766_v47 }
 0xa55   :  { %v4703_v45 = vmul.f32 %v7770_v34, %v11179_v57 }
 0xa57   :  { %v11564_v19 = vadd.f32 %v4704_v29, %v4703_v45  ;;  %v4749_v38 = vpop.f32.mrb[92].mxu0  ;;  %v4790_v62 = vpop.f32.mrb[108].mxu1  ;;  %v13551_v29 = vld [vmem:[#allocation114_spill] sm:$0xff] }
 0xa58   :  { %v4797_v25 = vadd.f32 %v4749_v38, %v13547_v22  ;;  %v4799_v35 = vadd.f32 %v4790_v62, %v13548_v61  ;;  %v4751_v32 = vpop.f32.mrb[93].mxu0  ;;  %v4792_v55 = vpop.f32.mrb[109].mxu1  ;;  %v13552_v38 = vld [vmem:[#allocation115_spill] sm:$0xff]  ;;  %v13553_v61 = vld [vmem:[#allocation116_spill] sm:$0xff] }
 0xa59   :  { %v4798_v21 = vadd.f32 %v4751_v32, %v13549_v24  ;;  %v4800_v37 = vadd.f32 %v4792_v55, %v13550_v26  ;;  %v4753_v40 = vpop.f32.mrb[94].mxu0  ;;  %v4794_v51 = vpop.f32.mrb[110].mxu1  ;;  %v13554_v32 = vld [vmem:[#allocation117_spill] sm:$0xff] }
 0xa5a   :  { %v6818_v33 = vmul.f32 -1.442695, %v4797_v25  ;;  %v4754_v58 = vpop.f32.mrb[95].mxu0  ;;  %v4795_v28 = vpop.f32.mrb[111].mxu1 }
 0xa5b   :  { %v6819_v57 = vmul.f32 -1.442695, %v4798_v21  ;;  %v6820_v17 = vmul.f32 -1.442695, %v4800_v37 }
 0xa5c   :  { %7771 = vpow2.f32 %v6818_v33 }
 0xa5d   :  { %7773 = vpow2.f32 %v6819_v57 }
 0xa5e   :  { %7775 = vpow2.f32 %v6820_v17 }
 0xa5f   :  { %7777 = vtanh.f32 %v4799_v35 }
 0xa66   :  { %v7772_v52 = vpop.eup %7771 }
 0xa67   :  { %v7774_v7 = vpop.eup %7773  ;;  %v4804_v2 = vadd.f32 1.0, %v7772_v52 }
 0xa68   :  { %v4810_v53 = vadd.f32 1.0, %v7774_v7  ;;  %v7776_v39 = vpop.eup %7775 }
 0xa69   :  { %7779 = vrcp.f32 %v4804_v2  ;;  %v7778_v54 = vpop.eup %7777  ;;  %v4817_v14 = vadd.f32 1.0, %v7776_v39  ;;  %v13557_v39 = vld [vmem:[#allocation88_spill] sm:$0xff] }
 0xa6a   :  { %7781 = vrcp.f32 %v4810_v53  ;;  %v13555_v53 = vld [vmem:[#allocation86_spill] sm:$0xff] }
 0xa6b   :  { %7783 = vrcp.f32 %v4817_v14 }
 0xa73   :  { %v7780_v11 = vpop.eup %7779 }
 0xa74   :  { %v7782_v8 = vpop.eup %7781  ;;  %v4821_v15 = vmul.f32 %v7780_v11, %v7778_v54 }
 0xa75   :  { %v4820_v9 = vmul.f32 %v7782_v8, %v11186_v12  ;;  %v7784_v51 = vpop.eup %7783  ;;  %v13559_v8 = vld [vmem:[#allocation90_spill] sm:$0xff] }
 0xa77   :  { %v11571_v47 = vadd.f32 %v4821_v15, %v4820_v9  ;;  %v4864_v6 = vpop.f32.mrb[96].mxu0  ;;  %v4905_v34 = vpop.f32.mrb[112].mxu1  ;;  %v13561_v15 = vld [vmem:[#allocation92_spill] sm:$0xff] }
 0xa78   :  { %v4912_v45 = vadd.f32 %v4864_v6, %v13551_v29  ;;  %v4914_v62 = vadd.f32 %v4905_v34, %v13552_v38  ;;  %v4866_v22 = vpop.f32.mrb[97].mxu0  ;;  %v4907_v25 = vpop.f32.mrb[113].mxu1  ;;  %v13566_v9 = vld [vmem:[#allocation96_spill] sm:$0xff]  ;;  %v13567_v6 = vld [vmem:[#allocation97_spill] sm:$0xff]  ;;  %v13568_v34 = vld [vmem:[#allocation30_spill] sm:$0xff] }
 0xa79   :  { %v4913_v35 = vadd.f32 %v4866_v22, %v13553_v61  ;;  %v4915_v55 = vadd.f32 %v4907_v25, %v13554_v32  ;;  %v4868_v24 = vpop.f32.mrb[98].mxu0  ;;  %v4909_v21 = vpop.f32.mrb[114].mxu1  ;;  %7785 = vtanh.f32 %v11571_v47  ;;  %v13569_v29 = vld [vmem:[#allocation46_spill] sm:$0xff]  ;;  %v13571_v22 = vld [vmem:[#allocation47_spill] sm:$0xff] }
 0xa7a   :  { %v6821_v12 = vmul.f32 -1.442695, %v4912_v45  ;;  %v4869_v26 = vpop.f32.mrb[99].mxu0  ;;  %v4910_v37 = vpop.f32.mrb[115].mxu1  ;;  %v13573_v32 = vld [vmem:[#allocation107_spill] sm:$0xff]  ;;  %v13576_v21 = vld [vmem:[#allocation24_spill] sm:$0xff] }
 0xa7b   :  { %v6822_v40 = vmul.f32 -1.442695, %v4913_v35  ;;  %v6823_v58 = vmul.f32 -1.442695, %v4915_v55  ;;  %v13572_v35 = vld [vmem:[#allocation106_spill] sm:$0xff]  ;;  %v13575_v55 = vld [vmem:[#allocation109_spill] sm:$0xff] }
 0xa7c   :  { %7787 = vpow2.f32 %v6821_v12  ;;  %v13577_v12 = vld [vmem:[#allocation25_spill] sm:$0xff]  ;;  %v13578_v26 = vld [vmem:[#allocation40_spill] sm:$0xff]  ;;  %v13579_v37 = vld [vmem:[#allocation26_spill] sm:$0xff] }
 0xa7d   :  { %7789 = vpow2.f32 %v6822_v40  ;;  %v13580_v40 = vld [vmem:[#allocation42_spill] sm:$0xff] }
 0xa7e   :  { %7791 = vpow2.f32 %v6823_v58  ;;  %v13583_v58 = vld [vmem:[#allocation98_spill] sm:$0xff] }
 0xa7f   :  { %7793 = vtanh.f32 %v4914_v62  ;;  %v13570_v62 = vld [vmem:[#allocation31_spill] sm:$0xff] }
 0xa83   :  { %v7786_v33 = vpop.eup %7785 }
 0xa84   :  { %v4824_v28 = vmul.f32 %v7786_v33, %v7784_v51  ;;  %v13581_v51 = vld [vmem:[#allocation27_spill] sm:$0xff] }
 0xa85   :  { %v13582_v33 = vld [vmem:[#allocation43_spill] sm:$0xff] }
 0xa86   :  { %v7788_v57 = vpop.eup %7787  ;;  %v11578_v17 = vpack.c.bf16 %v4824_v28, %v4824_v28 }
 0xa87   :  { %v7790_v52 = vpop.eup %7789  ;;  %v4919_v7 = vadd.f32 1.0, %v7788_v57  ;;  %v13584_v57 = vld [vmem:[#allocation99_spill] sm:$0xff] }
 0xa88   :  { %v4925_v2 = vadd.f32 1.0, %v7790_v52  ;;  %4974 = vmatmul.mubr.bf16.vlgmr.msra.gmra.mrb[100].mxu0 %v11578_v17  ;;  %5015 = vmatmul.mubr.bf16.vlgmr.msra.gmra.mrb[116].mxu1 %v11578_v17  ;;  %v13585_v52 = vld [vmem:[#allocation100_spill] sm:$0xff] }
 0xa89   :  { %7795 = vrcp.f32 %v4919_v7  ;;  %5029 = vmatpush1.bf16.msra.mxu0 %v11197_v36  ;;  %5070 = vmatpush1.bf16.msra.mxu1 %v11200_v13  ;;  %v7792_v36 = vpop.eup %7791  ;;  %v13556_v13 = vld [vmem:[#allocation87_spill] sm:$0xff]  ;;  %v13586_v7 = vld [vmem:[#allocation101_spill] sm:$0xff] }
 0xa8a   :  { %7797 = vrcp.f32 %v4925_v2  ;;  %5030 = vmatprep.subr.bf16.mxu0 %v11203_v3  ;;  %5071 = vmatprep.subr.bf16.mxu1 %v11206_v31  ;;  %v7794_v3 = vpop.eup %7793  ;;  %v13587_v2 = vld [vmem:[#allocation126_spill] sm:$0xff] }
 0xa8b   :  { %5060 = vmatprep.mubr.bf16.mxu0 %v12930_v46  ;;  %5101 = vmatprep.mubr.bf16.mxu1 %v12930_v46 }
 0xa8d   :  { %5031 = vmatpush1.bf16.msra.mxu0 %v11211_v1  ;;  %5072 = vmatpush1.bf16.msra.mxu1 %v11214_v48  ;;  %v4932_v1 = vadd.f32 1.0, %v7792_v36 }
 0xa8e   :  { %5032 = vmatprep.subr.bf16.mxu0 %v11217_v63  ;;  %5073 = vmatprep.subr.bf16.mxu1 %v11220_v49  ;;  %v13558_v63 = vld [vmem:[#allocation89_spill] sm:$0xff] }
 0xa8f   :  { %7799 = vrcp.f32 %v4932_v1  ;;  %v13595_v1 = vld [vmem:[#allocation133_spill] sm:$0xff] }
 0xa91   :  { %5033 = vmatpush1.bf16.msra.mxu0 %v13555_v53  ;;  %5074 = vmatpush1.bf16.msra.mxu1 %v13556_v13  ;;  %v13588_v53 = vld [vmem:[#allocation127_spill] sm:$0xff]  ;;  %v13589_v13 = vld [vmem:[#allocation41_spill] sm:$0xff] }
 0xa92   :  { %5034 = vmatprep.subr.bf16.mxu0 %v13557_v39  ;;  %5075 = vmatprep.subr.bf16.mxu1 %v11232_v43  ;;  %v13560_v43 = vld [vmem:[#allocation91_spill] sm:$0xff]  ;;  %v13591_v39 = vld [vmem:[#allocation129_spill] sm:$0xff] }
 0xa93   :  { %v7796_v31 = vpop.eup %7795 }
 0xa94   :  { %v7798_v54 = vpop.eup %7797  ;;  %v4936_v11 = vmul.f32 %v7796_v31, %v7794_v3  ;;  %v13590_v3 = vld [vmem:[#allocation128_spill] sm:$0xff]  ;;  %v13592_v31 = vld [vmem:[#allocation130_spill] sm:$0xff] }
 0xa95   :  { %v4935_v48 = vmul.f32 %v7798_v54, %v11248_v4  ;;  %5035 = vmatpush1.bf16.msra.mxu0 %v11236_v56  ;;  %5076 = vmatpush1.bf16.msra.mxu1 %v11239_v16  ;;  %v13562_v4 = vld [vmem:[#allocation93_spill] sm:$0xff]  ;;  %v13563_v56 = vld [vmem:[#allocation94_spill] sm:$0xff]  ;;  %v13564_v16 = vld [vmem:[#allocation95_spill] sm:$0xff] }
 0xa96   :  { %5036 = vmatprep.subr.bf16.mxu0 %v11242_v44  ;;  %5077 = vmatprep.subr.bf16.mxu1 %v13558_v63  ;;  %v13565_v44 = vld [vmem:[#allocation59_spill] sm:$0xff] }
 0xa97   :  { %v11601_v49 = vadd.f32 %v4936_v11, %v4935_v48  ;;  %v7141_v14 = vadd.f32 %v11559_v0, %v13565_v44  ;;  %v13574_v0 = vld [vmem:[#allocation108_spill] sm:$0xff]  ;;  %v13593_v54 = vld [vmem:[#allocation131_spill] sm:$0xff]  ;;  %v13596_v48 = vld [vmem:[#allocation134_spill] sm:$0xff] }
 0xa98   :  { %v13594_v11 = vld [vmem:[#allocation132_spill] sm:$0xff]  ;;  %v13597_v63 = vld [vmem:[#allocation135_spill] sm:$0xff] }
 0xa99   :  { %5037 = vmatpush1.bf16.msra.mxu0 %v13559_v8  ;;  %5078 = vmatpush1.bf16.msra.mxu1 %v13560_v43  ;;  %7801 = vtanh.f32 %v11601_v49  ;;  %v7800_v45 = vpop.eup %7799  ;;  %v6817_v38 = vmul.f32 -1.442695, %v7141_v14  ;;  %v13598_v8 = vld [vmem:[#allocation136_spill] sm:$0xff]  ;;  %v13599_v43 = vld [vmem:[#allocation137_spill] sm:$0xff] }
 0xa9a   :  { %5038 = vmatprep.subr.bf16.mxu0 %v13561_v15  ;;  %5079 = vmatprep.subr.bf16.mxu1 %v13562_v4  ;;  %v13602_v14 = vld [vmem:[#allocation140_spill] sm:$0xff] }
 0xa9b   :  { %7803 = vpow2.f32 %v6817_v38  ;;  %v13607_v38 = vld [vmem:[#allocation145_spill] sm:$0xff] }
 0xa9c   :  { %7805 = vtanh.f32 %v11564_v19 }
 0xa9d   :  { %5039 = vmatpush1.bf16.msra.mxu0 %v13563_v56  ;;  %5080 = vmatpush1.bf16.msra.mxu1 %v13564_v16  ;;  %v13600_v56 = vld [vmem:[#allocation138_spill] sm:$0xff]  ;;  %v13601_v16 = vld [vmem:[#allocation139_spill] sm:$0xff] }
 0xa9e   :  { %5040 = vmatprep.subr.bf16.mxu0 %v13566_v9  ;;  %5081 = vmatprep.subr.bf16.mxu1 %v13567_v6  ;;  %v13604_v6 = vld [vmem:[#allocation142_spill] sm:$0xff] }
 0xaa1   :  { %5041 = vmatpush1.bf16.msra.mxu0 %v13568_v34  ;;  %5082 = vmatpush1.bf16.msra.mxu1 %v13569_v29  ;;  %v13605_v29 = vld [vmem:[#allocation143_spill] sm:$0xff] }
 0xaa2   :  { %5042 = vmatprep.subr.bf16.mxu0 %v13570_v62  ;;  %5083 = vmatprep.subr.bf16.mxu1 %v13571_v22  ;;  %v13609_v62 = vld [vmem:[#allocation147_spill] sm:$0xff]  ;;  %v13611_v22 = vld [vmem:[#allocation149_spill] sm:$0xff] }
 0xaa3   :  { %v7802_v25 = vpop.eup %7801 }
 0xaa4   :  { %v4939_v61 = vmul.f32 %v7802_v25, %v7800_v45  ;;  %v13606_v45 = vld [vmem:[#allocation144_spill] sm:$0xff]  ;;  %v13613_v25 = vld [vmem:[#allocation151_spill] sm:$0xff] }
 0xaa5   :  { %5043 = vmatpush1.bf16.msra.mxu0 %v13572_v35  ;;  %5084 = vmatpush1.bf16.msra.mxu1 %v13573_v32  ;;  %v7804_v28 = vpop.eup %7803  ;;  %v13615_v35 = vld [vmem:[#allocation153_spill] sm:$0xff]  ;;  %v13616_v32 = vld [vmem:[#allocation154_spill] sm:$0xff] }
 0xaa6   :  { %5115 = vmatprep.subr.bf16.mxu0 %v13574_v0  ;;  %5156 = vmatprep.subr.bf16.mxu1 %v13575_v55  ;;  %v11622_v24 = vpack.c.bf16 %v4939_v61, %v4939_v61  ;;  %v4700_v36 = vadd.f32 1.0, %v7804_v28  ;;  %v7806_v15 = vpop.eup %7805  ;;  %v13614_v61 = vld [vmem:[#allocation152_spill] sm:$0xff]  ;;  %v13617_v0 = vld [vmem:[#allocation155_spill] sm:$0xff] }
 0xaa7   :  { %v13618_v55 = vld [vmem:[#allocation156_spill] sm:$0xff] }
 0xaa8   :  { %5061 = vmatmul.mubr.bf16.vlgmr.msra.gmra.mrb[100].mxu0 %v11622_v24  ;;  %5102 = vmatmul.mubr.bf16.vlgmr.msra.gmra.mrb[116].mxu1 %v11622_v24  ;;  %7807 = vrcp.f32 %v4700_v36  ;;  %v11724_v28 = vld [vmem:[#allocation12 + $0x8] ss:$16 sps:$4 sm:$0xff]   ;;  %v11744_v36 = vld [vmem:[#allocation12 + $0x4c] ss:$16 sps:$4 sm:$0xff]  }
 0xaa9   :  { %5116 = vmatpush1.bf16.msra.mxu0 %v13576_v21  ;;  %5157 = vmatpush1.bf16.msra.mxu1 %v13577_v12  ;;  %v13619_v21 = vld [vmem:[#allocation157_spill] sm:$0xff]  ;;  %v13620_v12 = vld [vmem:[#allocation158_spill] sm:$0xff] }
 0xaaa   :  { %5117 = vmatprep.subr.bf16.mxu0 %v13578_v26  ;;  %5158 = vmatprep.subr.bf16.mxu1 %v13579_v37  ;;  %v13621_v26 = vld [vmem:[#allocation159_spill] sm:$0xff] }
 0xaab   :  { %5147 = vmatprep.mubr.bf16.mxu0 %v12930_v46  ;;  %5188 = vmatprep.mubr.bf16.mxu1 %v12930_v46  ;;  %v11689_v37 = vld [vmem:[#allocation10 + $0xc4] ss:$16 sps:$4 sm:$0xff]  }
 0xaad   :  { %5118 = vmatpush1.bf16.msra.mxu0 %v13580_v40  ;;  %5159 = vmatpush1.bf16.msra.mxu1 %v13581_v51  ;;  %v11692_v40 = vld [vmem:[#allocation10 + $0xcc] ss:$16 sps:$4 sm:$0xff]   ;;  %v11695_v51 = vld [vmem:[#allocation10 + $0xc0] ss:$16 sps:$4 sm:$0xff]  }
 0xaae   :  { %5119 = vmatprep.subr.bf16.mxu0 %v13582_v33  ;;  %5160 = vmatprep.subr.bf16.mxu1 %v13583_v58  ;;  %v11716_v33 = vld [vmem:[#allocation12 + $0xc] ss:$16 sps:$4 sm:$0xff]   ;;  %v11721_v58 = vld [vmem:[#allocation12] ss:$16 sps:$4 sm:$0xff]  }
 0xab1   :  { %5120 = vmatpush1.bf16.msra.mxu0 %v13584_v57  ;;  %5161 = vmatpush1.bf16.msra.mxu1 %v13585_v52  ;;  %v11727_v57 = vld [vmem:[#allocation12 + $0x24] ss:$16 sps:$4 sm:$0xff]   ;;  %v11730_v52 = vld [vmem:[#allocation12 + $0x2c] ss:$16 sps:$4 sm:$0xff]  }
 0xab2   :  { %5121 = vmatprep.subr.bf16.mxu0 %v13586_v7  ;;  %5162 = vmatprep.subr.bf16.mxu1 %v13587_v2  ;;  %v7808_v4 = vpop.eup %7807  ;;  %v11738_v7 = vld [vmem:[#allocation12 + $0x28] ss:$16 sps:$4 sm:$0xff]   ;;  %v11741_v2 = vld [vmem:[#allocation12 + $0x44] ss:$16 sps:$4 sm:$0xff]  }
 0xab3   :  { %v11657_v9 = vmul.f32 %v7808_v4, %v7806_v15  ;;  %v11783_v15 = vld [vmem:[#allocation12 + $0xa0] ss:$16 sps:$4 sm:$0xff]   ;;  %v11786_v4 = vld [vmem:[#allocation12 + $0xa8] ss:$16 sps:$4 sm:$0xff]  }
 0xab5   :  { %5122 = vmatpush1.bf16.msra.mxu0 %v13588_v53  ;;  %5163 = vmatpush1.bf16.msra.mxu1 %v13589_v13  ;;  %13603 = vst [vmem:[#allocation160_spill] sm:$0xff] %v11657_v9  ;;  %v5114_v34 = vpack.c.bf16 %v11657_v9, %v11657_v9  ;;  %v11747_v53 = vld [vmem:[#allocation12 + $0x40] ss:$16 sps:$4 sm:$0xff]   ;;  %v11750_v13 = vld [vmem:[#allocation12 + $0x48] ss:$16 sps:$4 sm:$0xff]  }
 0xab6   :  { %5123 = vmatprep.subr.bf16.mxu0 %v13590_v3  ;;  %5164 = vmatprep.subr.bf16.mxu1 %v13591_v39  ;;  %v11753_v3 = vld [vmem:[#allocation12 + $0x64] ss:$16 sps:$4 sm:$0xff]   ;;  %v11756_v39 = vld [vmem:[#allocation12 + $0x6c] ss:$16 sps:$4 sm:$0xff]   ;;  %v11862_v9 = vld [vmem:[#allocation13 + $0x68] ss:$16 sps:$4 sm:$0xff]  }
 0xab7   :  { %13640 = vst [vmem:[#allocation32_spill] sm:$0xff] %v11862_v9 }
 0xab9   :  { %5124 = vmatpush1.bf16.msra.mxu0 %v13592_v31  ;;  %5165 = vmatpush1.bf16.msra.mxu1 %v13593_v54  ;;  %v11759_v31 = vld [vmem:[#allocation12 + $0x60] ss:$16 sps:$4 sm:$0xff]   ;;  %v11762_v54 = vld [vmem:[#allocation12 + $0x68] ss:$16 sps:$4 sm:$0xff]  }
 0xaba   :  { %5125 = vmatprep.subr.bf16.mxu0 %v13594_v11  ;;  %5166 = vmatprep.subr.bf16.mxu1 %v13595_v1  ;;  %v11765_v11 = vld [vmem:[#allocation12 + $0x84] ss:$16 sps:$4 sm:$0xff]   ;;  %v11768_v1 = vld [vmem:[#allocation12 + $0x8c] ss:$16 sps:$4 sm:$0xff]  }
 0xabd   :  { %5126 = vmatpush1.bf16.msra.mxu0 %v13596_v48  ;;  %5167 = vmatpush1.bf16.msra.mxu1 %v13597_v63  ;;  %v11771_v48 = vld [vmem:[#allocation12 + $0x80] ss:$16 sps:$4 sm:$0xff]   ;;  %v11774_v63 = vld [vmem:[#allocation12 + $0x88] ss:$16 sps:$4 sm:$0xff]  }
 0xabe   :  { %5127 = vmatprep.subr.bf16.mxu0 %v13598_v8  ;;  %5168 = vmatprep.subr.bf16.mxu1 %v13599_v43  ;;  %v11777_v8 = vld [vmem:[#allocation12 + $0xa4] ss:$16 sps:$4 sm:$0xff]   ;;  %v11780_v43 = vld [vmem:[#allocation12 + $0xac] ss:$16 sps:$4 sm:$0xff]  }
 0xac1   :  { %5128 = vmatpush1.bf16.msra.mxu0 %v13600_v56  ;;  %5169 = vmatpush1.bf16.msra.mxu1 %v13601_v16  ;;  %v11789_v56 = vld [vmem:[#allocation12 + $0xc4] ss:$16 sps:$4 sm:$0xff]   ;;  %v11792_v16 = vld [vmem:[#allocation12 + $0xcc] ss:$16 sps:$4 sm:$0xff]  }
 0xac2   :  { %5129 = vmatprep.subr.bf16.mxu0 %v13602_v14  ;;  %5170 = vmatprep.subr.bf16.mxu1 %v11389_v5  ;;  %v13608_v5 = vld [vmem:[#allocation146_spill] sm:$0xff]  ;;  %v11795_v14 = vld [vmem:[#allocation12 + $0xc0] ss:$16 sps:$4 sm:$0xff]  }
 0xac5   :  { %5130 = vmatpush1.bf16.msra.mxu0 %v11394_v59  ;;  %5171 = vmatpush1.bf16.msra.mxu1 %v13604_v6  ;;  %v13610_v59 = vld [vmem:[#allocation148_spill] sm:$0xff] }
 0xac6   :  { %5232 = vmatprep.subr.bf16.mxu0 %v11402_v60  ;;  %5273 = vmatprep.subr.bf16.mxu1 %v13605_v29  ;;  %v13612_v60 = vld [vmem:[#allocation150_spill] sm:$0xff] }
 0xac7   :  { %v11798_v6 = vld [vmem:[#allocation12 + $0xc8] ss:$16 sps:$4 sm:$0xff]   ;;  %v11804_v29 = vld [vmem:[#allocation12 + $0xec] ss:$16 sps:$4 sm:$0xff]  }
 0xac8   :  { %5148 = vmatmul.mubr.bf16.vlgmr.msra.gmra.mrb[100].mxu0 %v5114_v34  ;;  %5189 = vmatmul.mubr.bf16.vlgmr.msra.gmra.mrb[116].mxu1 %v5114_v34  ;;  %v11801_v34 = vld [vmem:[#allocation12 + $0xe4] ss:$16 sps:$4 sm:$0xff]   ;;  %13622 = vst [vmem:[#allocation162_spill] sm:$0xff] %v11804_v29 }
 0xac9   :  { %5233 = vmatpush1.bf16.msra.mxu0 %v13606_v45  ;;  %5274 = vmatpush1.bf16.msra.mxu1 %v13607_v38  ;;  %v11807_v45 = vld [vmem:[#allocation12 + $0xe0] ss:$16 sps:$4 sm:$0xff]   ;;  %v11810_v38 = vld [vmem:[#allocation12 + $0xe8] ss:$16 sps:$4 sm:$0xff]  }
 0xaca   :  { %5234 = vmatprep.subr.bf16.mxu0 %v13608_v5  ;;  %5275 = vmatprep.subr.bf16.mxu1 %v13609_v62  ;;  %13623 = vst [vmem:[#allocation163_spill] sm:$0xff] %v11807_v45  ;;  %13624 = vst [vmem:[#allocation164_spill] sm:$0xff] %v11810_v38  ;;  %v11813_v5 = vld [vmem:[#allocation13 + $0x4] ss:$16 sps:$4 sm:$0xff]   ;;  %v11816_v62 = vld [vmem:[#allocation13 + $0xc] ss:$16 sps:$4 sm:$0xff]  }
 0xacb   :  { %5264 = vmatprep.mubr.bf16.mxu0 %v12930_v46  ;;  %5305 = vmatprep.mubr.bf16.mxu1 %v12930_v46  ;;  %13625 = vst [vmem:[#allocation165_spill] sm:$0xff] %v11813_v5  ;;  %13626 = vst [vmem:[#allocation166_spill] sm:$0xff] %v11816_v62 }
 0xacd   :  { %5235 = vmatpush1.bf16.msra.mxu0 %v13610_v59  ;;  %5276 = vmatpush1.bf16.msra.mxu1 %v13611_v22  ;;  %v11821_v59 = vld [vmem:[#allocation13] ss:$16 sps:$4 sm:$0xff]   ;;  %v11824_v22 = vld [vmem:[#allocation13 + $0x8] ss:$16 sps:$4 sm:$0xff]  }
 0xace   :  { %5236 = vmatprep.subr.bf16.mxu0 %v13612_v60  ;;  %5277 = vmatprep.subr.bf16.mxu1 %v13613_v25  ;;  %13627 = vst [vmem:[#allocation167_spill] sm:$0xff] %v11821_v59  ;;  %13628 = vst [vmem:[#allocation168_spill] sm:$0xff] %v11824_v22  ;;  %v11827_v60 = vld [vmem:[#allocation13 + $0x24] ss:$16 sps:$4 sm:$0xff]   ;;  %v11830_v25 = vld [vmem:[#allocation13 + $0x2c] ss:$16 sps:$4 sm:$0xff]  }
 0xacf   :  { %13629 = vst [vmem:[#allocation169_spill] sm:$0xff] %v11827_v60  ;;  %13630 = vst [vmem:[#allocation170_spill] sm:$0xff] %v11830_v25 }
 0xad1   :  { %5237 = vmatpush1.bf16.msra.mxu0 %v13614_v61  ;;  %5278 = vmatpush1.bf16.msra.mxu1 %v13615_v35  ;;  %v11838_v61 = vld [vmem:[#allocation13 + $0x28] ss:$16 sps:$4 sm:$0xff]   ;;  %v11841_v35 = vld [vmem:[#allocation13 + $0x44] ss:$16 sps:$4 sm:$0xff]  }
 0xad2   :  { %5238 = vmatprep.subr.bf16.mxu0 %v13616_v32  ;;  %5279 = vmatprep.subr.bf16.mxu1 %v13617_v0  ;;  %13632 = vst [vmem:[#allocation172_spill] sm:$0xff] %v11838_v61  ;;  %13633 = vst [vmem:[#allocation173_spill] sm:$0xff] %v11841_v35  ;;  %v11844_v32 = vld [vmem:[#allocation13 + $0x4c] ss:$16 sps:$4 sm:$0xff]   ;;  %v11847_v0 = vld [vmem:[#allocation13 + $0x40] ss:$16 sps:$4 sm:$0xff]  }
 0xad3   :  { %13634 = vst [vmem:[#allocation174_spill] sm:$0xff] %v11844_v32  ;;  %13635 = vst [vmem:[#allocation175_spill] sm:$0xff] %v11847_v0 }
 0xad5   :  { %5239 = vmatpush1.bf16.msra.mxu0 %v13618_v55  ;;  %5280 = vmatpush1.bf16.msra.mxu1 %v13619_v21  ;;  %v11850_v55 = vld [vmem:[#allocation13 + $0x48] ss:$16 sps:$4 sm:$0xff]   ;;  %v11853_v21 = vld [vmem:[#allocation13 + $0x64] ss:$16 sps:$4 sm:$0xff]  }
 0xad6   :  { %5240 = vmatprep.subr.bf16.mxu0 %v13620_v12  ;;  %5281 = vmatprep.subr.bf16.mxu1 %v13621_v26  ;;  %13636 = vst [vmem:[#allocation176_spill] sm:$0xff] %v11850_v55  ;;  %13637 = vst [vmem:[#allocation177_spill] sm:$0xff] %v11853_v21  ;;  %v11856_v12 = vld [vmem:[#allocation13 + $0x6c] ss:$16 sps:$4 sm:$0xff]   ;;  %v11859_v26 = vld [vmem:[#allocation13 + $0x60] ss:$16 sps:$4 sm:$0xff]  }
 0xad7   :  { %13638 = vst [vmem:[#allocation178_spill] sm:$0xff] %v11856_v12  ;;  %13639 = vst [vmem:[#allocation179_spill] sm:$0xff] %v11859_v26 }
 0xad9   :  { %5241 = vmatpush1.bf16.msra.mxu0 %v11458_v23  ;;  %5282 = vmatpush1.bf16.msra.mxu1 %v11461_v30  ;;  %v11698_v30 = vld [vmem:[#allocation10 + $0xc8] ss:$16 sps:$4 sm:$0xff]   ;;  %v11713_v23 = vld [vmem:[#allocation12 + $0x4] ss:$16 sps:$4 sm:$0xff]  }
 0xada   :  { %5242 = vmatprep.subr.bf16.mxu0 %v11464_v18  ;;  %5283 = vmatprep.subr.bf16.mxu1 %v11467_v20  ;;  %v11701_v20 = vld [vmem:[#allocation10 + $0xe4] ss:$16 sps:$4 sm:$0xff]   ;;  %v11710_v18 = vld [vmem:[#allocation10 + $0xe8] ss:$16 sps:$4 sm:$0xff]  }
 0xadd   :  { %5243 = vmatpush1.bf16.msra.mxu0 %v11470_v27  ;;  %5284 = vmatpush1.bf16.msra.mxu1 %v11473_v41  ;;  %v11704_v41 = vld [vmem:[#allocation10 + $0xec] ss:$16 sps:$4 sm:$0xff]   ;;  %v11707_v27 = vld [vmem:[#allocation10 + $0xe0] ss:$16 sps:$4 sm:$0xff]  }
 0xade   :  { %5244 = vmatprep.subr.bf16.mxu0 %v11689_v37  ;;  %5285 = vmatprep.subr.bf16.mxu1 %v11692_v40 }
 0xae1   :  { %5245 = vmatpush1.bf16.msra.mxu0 %v11695_v51  ;;  %5286 = vmatpush1.bf16.msra.mxu1 %v11698_v30 }
 0xae2   :  { %5246 = vmatprep.subr.bf16.mxu0 %v11701_v20  ;;  %5287 = vmatprep.subr.bf16.mxu1 %v11704_v41 }
 0xae5   :  { %5247 = vmatpush1.bf16.msra.mxu0 %v11707_v27  ;;  %5288 = vmatpush1.bf16.msra.mxu1 %v11710_v18 }
 0xae6   :  { %5347 = vmatprep.subr.bf16.mxu0 %v11713_v23  ;;  %5388 = vmatprep.subr.bf16.mxu1 %v11716_v33 }
 0xae8   :  { %5265 = vmatmul.mubr.bf16.vlgmr.msra.gmra.mrb[104].mxu0 %v11578_v17  ;;  %5306 = vmatmul.mubr.bf16.vlgmr.msra.gmra.mrb[120].mxu1 %v11578_v17  ;;  %v11735_v17 = vld [vmem:[#allocation12 + $0x20] ss:$16 sps:$4 sm:$0xff]  }
 0xae9   :  { %5348 = vmatpush1.bf16.msra.mxu0 %v11721_v58  ;;  %5389 = vmatpush1.bf16.msra.mxu1 %v11724_v28 }
 0xaea   :  { %5349 = vmatprep.subr.bf16.mxu0 %v11727_v57  ;;  %5390 = vmatprep.subr.bf16.mxu1 %v11730_v52 }
 0xaeb   :  { %5379 = vmatprep.mubr.bf16.mxu0 %v12930_v46  ;;  %5420 = vmatprep.mubr.bf16.mxu1 %v12930_v46 }
 0xaed   :  { %5350 = vmatpush1.bf16.msra.mxu0 %v11735_v17  ;;  %5391 = vmatpush1.bf16.msra.mxu1 %v11738_v7 }
 0xaee   :  { %5351 = vmatprep.subr.bf16.mxu0 %v11741_v2  ;;  %5392 = vmatprep.subr.bf16.mxu1 %v11744_v36 }
 0xaf1   :  { %5352 = vmatpush1.bf16.msra.mxu0 %v11747_v53  ;;  %5393 = vmatpush1.bf16.msra.mxu1 %v11750_v13 }
 0xaf2   :  { %5353 = vmatprep.subr.bf16.mxu0 %v11753_v3  ;;  %5394 = vmatprep.subr.bf16.mxu1 %v11756_v39 }
 0xaf5   :  { %5354 = vmatpush1.bf16.msra.mxu0 %v11759_v31  ;;  %5395 = vmatpush1.bf16.msra.mxu1 %v11762_v54 }
 0xaf6   :  { %5355 = vmatprep.subr.bf16.mxu0 %v11765_v11  ;;  %5396 = vmatprep.subr.bf16.mxu1 %v11768_v1 }
 0xaf9   :  { %5356 = vmatpush1.bf16.msra.mxu0 %v11771_v48  ;;  %5397 = vmatpush1.bf16.msra.mxu1 %v11774_v63 }
 0xafa   :  { %5357 = vmatprep.subr.bf16.mxu0 %v11777_v8  ;;  %5398 = vmatprep.subr.bf16.mxu1 %v11780_v43 }
 0xafd   :  { %5358 = vmatpush1.bf16.msra.mxu0 %v11783_v15  ;;  %5399 = vmatpush1.bf16.msra.mxu1 %v11786_v4 }
 0xafe   :  { %5359 = vmatprep.subr.bf16.mxu0 %v11789_v56  ;;  %5400 = vmatprep.subr.bf16.mxu1 %v11792_v16 }
 0xb01   :  { %5360 = vmatpush1.bf16.msra.mxu0 %v11795_v14  ;;  %5401 = vmatpush1.bf16.msra.mxu1 %v11798_v6 }
 0xb02   :  { %5361 = vmatprep.subr.bf16.mxu0 %v11801_v34  ;;  %5402 = vmatprep.subr.bf16.mxu1 %v11804_v29 }
 0xb05   :  { %5362 = vmatpush1.bf16.msra.mxu0 %v11807_v45  ;;  %5403 = vmatpush1.bf16.msra.mxu1 %v11810_v38 }
 0xb06   :  { %5458 = vmatprep.subr.bf16.mxu0 %v11813_v5  ;;  %5499 = vmatprep.subr.bf16.mxu1 %v11816_v62 }
 0xb08   :  { %5380 = vmatmul.mubr.bf16.vlgmr.msra.gmra.mrb[108].mxu0 %v11622_v24  ;;  %5421 = vmatmul.mubr.bf16.vlgmr.msra.gmra.mrb[124].mxu1 %v11622_v24  ;;  %v11835_v24 = vld [vmem:[#allocation13 + $0x20] ss:$16 sps:$4 sm:$0xff]  }
 0xb09   :  { %5459 = vmatpush1.bf16.msra.mxu0 %v11821_v59  ;;  %5500 = vmatpush1.bf16.msra.mxu1 %v11824_v22  ;;  %13631 = vst [vmem:[#allocation171_spill] sm:$0xff] %v11835_v24 }
 0xb0a   :  { %5460 = vmatprep.subr.bf16.mxu0 %v11827_v60  ;;  %5501 = vmatprep.subr.bf16.mxu1 %v11830_v25 }
 0xb0b   :  { %5490 = vmatprep.mubr.bf16.mxu0 %v12930_v46  ;;  %5531 = vmatprep.mubr.bf16.mxu1 %v12930_v46 }
 0xb0d   :  { %5461 = vmatpush1.bf16.msra.mxu0 %v11835_v24  ;;  %5502 = vmatpush1.bf16.msra.mxu1 %v11838_v61 }
 0xb0e   :  { %5462 = vmatprep.subr.bf16.mxu0 %v11841_v35  ;;  %5503 = vmatprep.subr.bf16.mxu1 %v11844_v32 }
 0xb11   :  { %5463 = vmatpush1.bf16.msra.mxu0 %v11847_v0  ;;  %5504 = vmatpush1.bf16.msra.mxu1 %v11850_v55  ;;  %v11865_v0 = vld [vmem:[#allocation13 + $0x84] ss:$16 sps:$4 sm:$0xff]   ;;  %v11868_v55 = vld [vmem:[#allocation13 + $0x8c] ss:$16 sps:$4 sm:$0xff]  }
 0xb12   :  { %5464 = vmatprep.subr.bf16.mxu0 %v11853_v21  ;;  %5505 = vmatprep.subr.bf16.mxu1 %v11856_v12  ;;  %13641 = vst [vmem:[#allocation48_spill] sm:$0xff] %v11865_v0  ;;  %13642 = vst [vmem:[#allocation33_spill] sm:$0xff] %v11868_v55  ;;  %v11871_v21 = vld [vmem:[#allocation13 + $0x80] ss:$16 sps:$4 sm:$0xff]   ;;  %v11874_v12 = vld [vmem:[#allocation13 + $0x88] ss:$16 sps:$4 sm:$0xff]  }
 0xb13   :  { %13643 = vst [vmem:[#allocation49_spill] sm:$0xff] %v11871_v21  ;;  %13644 = vst [vmem:[#allocation110_spill] sm:$0xff] %v11874_v12 }
 0xb15   :  { %5465 = vmatpush1.bf16.msra.mxu0 %v11859_v26  ;;  %5506 = vmatpush1.bf16.msra.mxu1 %v11862_v9  ;;  %v11877_v26 = vld [vmem:[#allocation13 + $0xa4] ss:$16 sps:$4 sm:$0xff]   ;;  %v11880_v9 = vld [vmem:[#allocation13 + $0xac] ss:$16 sps:$4 sm:$0xff]  }
 0xb16   :  { %5466 = vmatprep.subr.bf16.mxu0 %v11865_v0  ;;  %5507 = vmatprep.subr.bf16.mxu1 %v11868_v55  ;;  %13645 = vst [vmem:[#allocation111_spill] sm:$0xff] %v11877_v26  ;;  %13646 = vst [vmem:[#allocation112_spill] sm:$0xff] %v11880_v9  ;;  %v11883_v0 = vld [vmem:[#allocation13 + $0xa0] ss:$16 sps:$4 sm:$0xff]   ;;  %v11886_v55 = vld [vmem:[#allocation13 + $0xa8] ss:$16 sps:$4 sm:$0xff]  }
 0xb17   :  { %13647 = vst [vmem:[#allocation113_spill] sm:$0xff] %v11883_v0  ;;  %13648 = vst [vmem:[#allocation181_spill] sm:$0xff] %v11886_v55 }
 0xb19   :  { %5467 = vmatpush1.bf16.msra.mxu0 %v11871_v21  ;;  %5508 = vmatpush1.bf16.msra.mxu1 %v11874_v12  ;;  %v11889_v21 = vld [vmem:[#allocation13 + $0xc4] ss:$16 sps:$4 sm:$0xff]   ;;  %v11892_v12 = vld [vmem:[#allocation13 + $0xcc] ss:$16 sps:$4 sm:$0xff]  }
 0xb1a   :  { %5468 = vmatprep.subr.bf16.mxu0 %v11877_v26  ;;  %5509 = vmatprep.subr.bf16.mxu1 %v11880_v9  ;;  %13649 = vst [vmem:[#allocation182_spill] sm:$0xff] %v11889_v21  ;;  %13650 = vst [vmem:[#allocation183_spill] sm:$0xff] %v11892_v12  ;;  %v11895_v26 = vld [vmem:[#allocation13 + $0xc0] ss:$16 sps:$4 sm:$0xff]   ;;  %v11898_v9 = vld [vmem:[#allocation13 + $0xc8] ss:$16 sps:$4 sm:$0xff]  }
 0xb1b   :  { %13651 = vst [vmem:[#allocation184_spill] sm:$0xff] %v11895_v26  ;;  %13652 = vst [vmem:[#allocation28_spill] sm:$0xff] %v11898_v9 }
 0xb1d   :  { %5469 = vmatpush1.bf16.msra.mxu0 %v11883_v0  ;;  %5510 = vmatpush1.bf16.msra.mxu1 %v11886_v55  ;;  %v11901_v0 = vld [vmem:[#allocation13 + $0xe4] ss:$16 sps:$4 sm:$0xff]   ;;  %v11904_v55 = vld [vmem:[#allocation13 + $0xec] ss:$16 sps:$4 sm:$0xff]  }
 0xb1e   :  { %5470 = vmatprep.subr.bf16.mxu0 %v11889_v21  ;;  %5511 = vmatprep.subr.bf16.mxu1 %v11892_v12  ;;  %13653 = vst [vmem:[#allocation44_spill] sm:$0xff] %v11901_v0  ;;  %13654 = vst [vmem:[#allocation29_spill] sm:$0xff] %v11904_v55  ;;  %v11907_v21 = vld [vmem:[#allocation13 + $0xe0] ss:$16 sps:$4 sm:$0xff]   ;;  %v11910_v12 = vld [vmem:[#allocation13 + $0xe8] ss:$16 sps:$4 sm:$0xff]  }
 0xb1f   :  { %13655 = vst [vmem:[#allocation45_spill] sm:$0xff] %v11907_v21  ;;  %13656 = vst [vmem:[#allocation102_spill] sm:$0xff] %v11910_v12 }
 0xb21   :  { %5471 = vmatpush1.bf16.msra.mxu0 %v11895_v26  ;;  %5512 = vmatpush1.bf16.msra.mxu1 %v11898_v9  ;;  %v11913_v26 = vld [vmem:[#allocation15 + $0x4] ss:$16 sps:$4 sm:$0xff]   ;;  %v11916_v9 = vld [vmem:[#allocation15 + $0xc] ss:$16 sps:$4 sm:$0xff]  }
 0xb22   :  { %5472 = vmatprep.subr.bf16.mxu0 %v11901_v0  ;;  %5513 = vmatprep.subr.bf16.mxu1 %v11904_v55  ;;  %13657 = vst [vmem:[#allocation103_spill] sm:$0xff] %v11913_v26  ;;  %13658 = vst [vmem:[#allocation104_spill] sm:$0xff] %v11916_v9 }
 0xb25   :  { %5473 = vmatpush1.bf16.msra.mxu0 %v11907_v21  ;;  %5514 = vmatpush1.bf16.msra.mxu1 %v11910_v12 }
 0xb26   :  { %5545 = vmatprep.subr.bf16.mxu0 %v11913_v26  ;;  %5586 = vmatprep.subr.bf16.mxu1 %v11916_v9 }
 0xb9b   :  { %v5149_v0 = vpop.f32.mrb[100].mxu0  ;;  %v5190_v32 = vpop.f32.mrb[116].mxu1 }
 0xb9c   :  { %v7142_v55 = vadd.f32 %v5149_v0, %v13544_v10  ;;  %v5151_v35 = vpop.f32.mrb[101].mxu0  ;;  %v11920_v61 = vpop.f32.mrb[117].mxu1  ;;  %v7144_v26 = vadd.f32 %v5190_v32, %v13546_v42  ;;  %v13660_v32 = vld [vmem:[#allocation52_spill] sm:$0xff] }
 0xb9d   :  { %v7143_v21 = vadd.f32 %v5151_v35, %v13545_v50  ;;  %v5153_v24 = vpop.f32.mrb[102].mxu0  ;;  %v5194_v25 = vpop.f32.mrb[118].mxu1 }
 0xb9e   :  { %v6824_v12 = vmul.f32 -1.442695, %v7142_v55  ;;  %v5154_v60 = vpop.f32.mrb[103].mxu0  ;;  %v5195_v22 = vpop.f32.mrb[119].mxu1 }
 0xb9f   :  { %v6825_v59 = vmul.f32 -1.442695, %v7143_v21 }
 0xba0   :  { %7809 = vpow2.f32 %v6824_v12 }
 0xba1   :  { %7811 = vpow2.f32 %v6825_v59  ;;  %v13659_v59 = vld [vmem:[#allocation36_spill] sm:$0xff] }
 0xba2   :  { %7813 = vtanh.f32 %v7144_v26  ;;  %v13661_v26 = vld [vmem:[#allocation37_spill] sm:$0xff] }
 0xbaa   :  { %v7810_v9 = vpop.eup %7809 }
 0xbab   :  { %v7812_v62 = vpop.eup %7811  ;;  %v5204_v5 = vadd.f32 1.0, %v7810_v9 }
 0xbac   :  { %v5210_v0 = vadd.f32 1.0, %v7812_v62  ;;  %v7814_v10 = vpop.eup %7813 }
 0xbad   :  { %7815 = vrcp.f32 %v5204_v5  ;;  %v13662_v5 = vld [vmem:[#allocation53_spill] sm:$0xff] }
 0xbae   :  { %7817 = vrcp.f32 %v5210_v0 }
 0xbb7   :  { %v7816_v38 = vpop.eup %7815 }
 0xbb8   :  { %v7818_v35 = vpop.eup %7817  ;;  %v5221_v24 = vmul.f32 %v7816_v38, %v7814_v10 }
 0xbb9   :  { %v5220_v25 = vmul.f32 %v7818_v35, %v11564_v19 }
 0xbbb   :  { %v11925_v60 = vadd.f32 %v5221_v24, %v5220_v25  ;;  %v5266_v22 = vpop.f32.mrb[104].mxu0  ;;  %v5307_v55 = vpop.f32.mrb[120].mxu1 }
 0xbbc   :  { %v5314_v21 = vadd.f32 %v5266_v22, %v13659_v59  ;;  %v5316_v12 = vadd.f32 %v5307_v55, %v13660_v32  ;;  %v5268_v42 = vpop.f32.mrb[105].mxu0  ;;  %v5309_v9 = vpop.f32.mrb[121].mxu1 }
 0xbbd   :  { %v5315_v62 = vadd.f32 %v5268_v42, %v13661_v26  ;;  %v5317_v0 = vadd.f32 %v5309_v9, %v13662_v5  ;;  %v5270_v50 = vpop.f32.mrb[106].mxu0  ;;  %v5311_v45 = vpop.f32.mrb[122].mxu1  ;;  %v13663_v5 = vld [vmem:[#allocation118_spill] sm:$0xff] }
 0xbbe   :  { %v6827_v29 = vmul.f32 -1.442695, %v5314_v21  ;;  %v5271_v10 = vpop.f32.mrb[107].mxu0  ;;  %v5312_v38 = vpop.f32.mrb[123].mxu1 }
 0xbbf   :  { %v6828_v19 = vmul.f32 -1.442695, %v5315_v62  ;;  %v6829_v35 = vmul.f32 -1.442695, %v5317_v0  ;;  %v13664_v10 = vld [vmem:[#allocation119_spill] sm:$0xff] }
 0xbc0   :  { %7819 = vpow2.f32 %v6827_v29 }
 0xbc1   :  { %7821 = vpow2.f32 %v6828_v19 }
 0xbc2   :  { %7823 = vpow2.f32 %v6829_v35  ;;  %v13665_v35 = vld [vmem:[#allocation120_spill] sm:$0xff] }
 0xbc3   :  { %7825 = vtanh.f32 %v5316_v12 }
 0xbca   :  { %v7820_v24 = vpop.eup %7819 }
 0xbcb   :  { %v7822_v25 = vpop.eup %7821  ;;  %v5321_v22 = vadd.f32 1.0, %v7820_v24 }
 0xbcc   :  { %v5327_v55 = vadd.f32 1.0, %v7822_v25  ;;  %v7824_v42 = vpop.eup %7823  ;;  %v13666_v25 = vld [vmem:[#allocation121_spill] sm:$0xff] }
 0xbcd   :  { %7827 = vrcp.f32 %v5321_v22  ;;  %v7826_v59 = vpop.eup %7825  ;;  %v5334_v21 = vadd.f32 1.0, %v7824_v42 }
 0xbce   :  { %7829 = vrcp.f32 %v5327_v55 }
 0xbcf   :  { %7831 = vrcp.f32 %v5334_v21 }
 0xbd7   :  { %v7828_v32 = vpop.eup %7827 }
 0xbd8   :  { %v7830_v50 = vpop.eup %7829  ;;  %v5338_v45 = vmul.f32 %v7828_v32, %v7826_v59 }
 0xbd9   :  { %v5337_v9 = vmul.f32 %v7830_v50, %v11571_v47 }
 0xbdb   :  { %v11932_v26 = vadd.f32 %v5338_v45, %v5337_v9  ;;  %v5381_v29 = vpop.f32.mrb[108].mxu0  ;;  %v5422_v62 = vpop.f32.mrb[124].mxu1 }
 0xbdc   :  { %v5429_v0 = vadd.f32 %v5381_v29, %v13663_v5  ;;  %v5431_v12 = vadd.f32 %v5422_v62, %v13664_v10  ;;  %v5383_v38 = vpop.f32.mrb[109].mxu0  ;;  %v5424_v19 = vpop.f32.mrb[125].mxu1 }
 0xbdd   :  { %v5430_v24 = vadd.f32 %v5383_v38, %v13665_v35  ;;  %v5432_v22 = vadd.f32 %v5424_v19, %v13666_v25  ;;  %v5385_v55 = vpop.f32.mrb[110].mxu0  ;;  %v5426_v59 = vpop.f32.mrb[126].mxu1  ;;  %7833 = vtanh.f32 %v11932_v26  ;;  %v11946_v35 = vld [vmem:[#allocation15 + $0x8] ss:$16 sps:$4 sm:$0xff]   ;;  %v11957_v25 = vld [vmem:[#allocation15 + $0x20] ss:$16 sps:$4 sm:$0xff]  }
 0xbde   :  { %v6830_v47 = vmul.f32 -1.442695, %v5429_v0  ;;  %v5386_v42 = vpop.f32.mrb[111].mxu0  ;;  %v5427_v32 = vpop.f32.mrb[127].mxu1  ;;  %v11943_v0 = vld [vmem:[#allocation15] ss:$16 sps:$4 sm:$0xff]  }
 0xbdf   :  { %v6831_v50 = vmul.f32 -1.442695, %v5430_v24  ;;  %v7832_v45 = vpop.eup %7831  ;;  %v6832_v9 = vmul.f32 -1.442695, %v5432_v22  ;;  %v11949_v24 = vld [vmem:[#allocation15 + $0x24] ss:$16 sps:$4 sm:$0xff]  }
 0xbe0   :  { %7835 = vpow2.f32 %v6830_v47  ;;  %v11960_v22 = vld [vmem:[#allocation15 + $0x28] ss:$16 sps:$4 sm:$0xff]   ;;  %v11963_v55 = vld [vmem:[#allocation15 + $0x44] ss:$16 sps:$4 sm:$0xff]   ;;  %v11966_v59 = vld [vmem:[#allocation15 + $0x4c] ss:$16 sps:$4 sm:$0xff]  }
 0xbe1   :  { %7837 = vpow2.f32 %v6831_v50  ;;  %v11969_v42 = vld [vmem:[#allocation15 + $0x40] ss:$16 sps:$4 sm:$0xff]   ;;  %v11972_v32 = vld [vmem:[#allocation15 + $0x48] ss:$16 sps:$4 sm:$0xff]  }
 0xbe2   :  { %7839 = vpow2.f32 %v6832_v9  ;;  %13667 = vst [vmem:[#allocation105_spill] sm:$0xff] %v11969_v42  ;;  %13668 = vst [vmem:[#allocation61_spill] sm:$0xff] %v11972_v32 }
 0xbe3   :  { %7841 = vtanh.f32 %v5431_v12  ;;  %v11952_v12 = vld [vmem:[#allocation15 + $0x2c] ss:$16 sps:$4 sm:$0xff]  }
 0xbe7   :  { %v7834_v21 = vpop.eup %7833 }
 0xbe8   :  { %v5341_v29 = vmul.f32 %v7834_v21, %v7832_v45  ;;  %v11975_v45 = vld [vmem:[#allocation15 + $0x64] ss:$16 sps:$4 sm:$0xff]   ;;  %v11978_v21 = vld [vmem:[#allocation15 + $0x6c] ss:$16 sps:$4 sm:$0xff]  }
 0xbe9   :  { %13669 = vst [vmem:[#allocation62_spill] sm:$0xff] %v11975_v45 }
 0xbea   :  { %v7836_v62 = vpop.eup %7835  ;;  %v11939_v5 = vpack.c.bf16 %v5341_v29, %v5341_v29 }
 0xbeb   :  { %v7838_v10 = vpop.eup %7837  ;;  %v5436_v38 = vadd.f32 1.0, %v7836_v62 }
 0xbec   :  { %v5442_v19 = vadd.f32 1.0, %v7838_v10  ;;  %5491 = vmatmul.mubr.bf16.vlgmr.msra.gmra.mrb[112].mxu0 %v11939_v5  ;;  %5532 = vmatmul.mubr.bf16.vlgmr.msra.gmra.mrb[128].mxu1 %v11939_v5  ;;  %v7840_v47 = vpop.eup %7839 }
 0xbed   :  { %7843 = vrcp.f32 %v5436_v38  ;;  %5546 = vmatpush1.bf16.msra.mxu0 %v11943_v0  ;;  %5587 = vmatpush1.bf16.msra.mxu1 %v11946_v35  ;;  %v7842_v50 = vpop.eup %7841  ;;  %v5449_v10 = vadd.f32 1.0, %v7840_v47  ;;  %v11999_v47 = vld [vmem:[#allocation15 + $0x88] ss:$16 sps:$4 sm:$0xff]  }
 0xbee   :  { %7845 = vrcp.f32 %v5442_v19  ;;  %5547 = vmatprep.subr.bf16.mxu0 %v11949_v24  ;;  %5588 = vmatprep.subr.bf16.mxu1 %v11952_v12  ;;  %v11982_v19 = vld [vmem:[#allocation15 + $0x60] ss:$16 sps:$4 sm:$0xff]   ;;  %13674 = vst [vmem:[#allocation67_spill] sm:$0xff] %v11999_v47 }
 0xbef   :  { %5577 = vmatprep.mubr.bf16.mxu0 %v12930_v46  ;;  %5618 = vmatprep.mubr.bf16.mxu1 %v12930_v46  ;;  %7847 = vrcp.f32 %v5449_v10  ;;  %v12012_v10 = vld [vmem:[#allocation15 + $0xa8] ss:$16 sps:$4 sm:$0xff]  }
 0xbf0   :  { %13678 = vst [vmem:[#allocation71_spill] sm:$0xff] %v12012_v10 }
 0xbf1   :  { %5548 = vmatpush1.bf16.msra.mxu0 %v11957_v25  ;;  %5589 = vmatpush1.bf16.msra.mxu1 %v11960_v22 }
 0xbf2   :  { %5549 = vmatprep.subr.bf16.mxu0 %v11963_v55  ;;  %5590 = vmatprep.subr.bf16.mxu1 %v11966_v59 }
 0xbf5   :  { %5550 = vmatpush1.bf16.msra.mxu0 %v11969_v42  ;;  %5591 = vmatpush1.bf16.msra.mxu1 %v11972_v32  ;;  %v11985_v32 = vld [vmem:[#allocation15 + $0x68] ss:$16 sps:$4 sm:$0xff]   ;;  %v11988_v42 = vld [vmem:[#allocation15 + $0x84] ss:$16 sps:$4 sm:$0xff]  }
 0xbf6   :  { %5551 = vmatprep.subr.bf16.mxu0 %v11975_v45  ;;  %5592 = vmatprep.subr.bf16.mxu1 %v11978_v21  ;;  %13670 = vst [vmem:[#allocation63_spill] sm:$0xff] %v11985_v32  ;;  %13671 = vst [vmem:[#allocation64_spill] sm:$0xff] %v11988_v42  ;;  %v11991_v45 = vld [vmem:[#allocation15 + $0x8c] ss:$16 sps:$4 sm:$0xff]  }
 0xbf7   :  { %v7844_v9 = vpop.eup %7843  ;;  %13672 = vst [vmem:[#allocation65_spill] sm:$0xff] %v11991_v45 }
 0xbf8   :  { %v7846_v29 = vpop.eup %7845  ;;  %v5453_v62 = vmul.f32 %v7844_v9, %v7842_v50  ;;  %v12003_v9 = vld [vmem:[#allocation15 + $0xa4] ss:$16 sps:$4 sm:$0xff]  }
 0xbf9   :  { %v5452_v38 = vmul.f32 %v7846_v29, %v11601_v49  ;;  %5552 = vmatpush1.bf16.msra.mxu0 %v11982_v19  ;;  %5593 = vmatpush1.bf16.msra.mxu1 %v11985_v32  ;;  %v11996_v49 = vld [vmem:[#allocation15 + $0x80] ss:$16 sps:$4 sm:$0xff]   ;;  %13675 = vst [vmem:[#allocation68_spill] sm:$0xff] %v12003_v9  ;;  %v12006_v29 = vld [vmem:[#allocation15 + $0xac] ss:$16 sps:$4 sm:$0xff]  }
 0xbfa   :  { %5553 = vmatprep.subr.bf16.mxu0 %v11988_v42  ;;  %5594 = vmatprep.subr.bf16.mxu1 %v11991_v45  ;;  %13673 = vst [vmem:[#allocation66_spill] sm:$0xff] %v11996_v49  ;;  %13676 = vst [vmem:[#allocation69_spill] sm:$0xff] %v12006_v29  ;;  %v12029_v45 = vld [vmem:[#allocation15 + $0xe4] ss:$16 sps:$4 sm:$0xff]   ;;  %v8416_v42 = vld [vmem:[#allocation10 + $0x68] ss:$16 sps:$4 sm:$0xff]  }
 0xbfb   :  { %v11994_v50 = vadd.f32 %v5453_v62, %v5452_v38  ;;  %v12009_v62 = vld [vmem:[#allocation15 + $0xa0] ss:$16 sps:$4 sm:$0xff]   ;;  %v7145_v38 = vadd.f32 %v11920_v61, %v13565_v44  ;;  %13683 = vst [vmem:[#allocation76_spill] sm:$0xff] %v12029_v45  ;;  %v12032_v61 = vld [vmem:[#allocation15 + $0xec] ss:$16 sps:$4 sm:$0xff]  }
 0xbfc   :  { %13677 = vst [vmem:[#allocation70_spill] sm:$0xff] %v12009_v62  ;;  %13684 = vst [vmem:[#allocation77_spill] sm:$0xff] %v12032_v61  ;;  %v12035_v44 = vld [vmem:[#allocation15 + $0xe0] ss:$16 sps:$4 sm:$0xff]   ;;  %v8417_v32 = vld [vmem:[#allocation10 + $0x84] ss:$16 sps:$4 sm:$0xff]  }
 0xbfd   :  { %5554 = vmatpush1.bf16.msra.mxu0 %v11996_v49  ;;  %5595 = vmatpush1.bf16.msra.mxu1 %v11999_v47  ;;  %7849 = vtanh.f32 %v11994_v50  ;;  %v12017_v47 = vld [vmem:[#allocation15 + $0xc4] ss:$16 sps:$4 sm:$0xff]   ;;  %v6826_v49 = vmul.f32 -1.442695, %v7145_v38  ;;  %13685 = vst [vmem:[#allocation78_spill] sm:$0xff] %v12035_v44 }
 0xbfe   :  { %5555 = vmatprep.subr.bf16.mxu0 %v12003_v9  ;;  %5596 = vmatprep.subr.bf16.mxu1 %v12006_v29  ;;  %13679 = vst [vmem:[#allocation72_spill] sm:$0xff] %v12017_v47  ;;  %v12020_v9 = vld [vmem:[#allocation15 + $0xcc] ss:$16 sps:$4 sm:$0xff]   ;;  %v12023_v29 = vld [vmem:[#allocation15 + $0xc0] ss:$16 sps:$4 sm:$0xff]  }
 0xbff   :  { %13680 = vst [vmem:[#allocation73_spill] sm:$0xff] %v12020_v9  ;;  %13681 = vst [vmem:[#allocation74_spill] sm:$0xff] %v12023_v29  ;;  %7851 = vpow2.f32 %v6826_v49  ;;  %v12041_v38 = vld [vmem:[#allocation16 + $0x4] ss:$16 sps:$4 sm:$0xff]  }
 0xc00   :  { %13687 = vst [vmem:[#allocation80_spill] sm:$0xff] %v12041_v38  ;;  %v12057_v49 = vld [vmem:[#allocation16 + $0x24] ss:$16 sps:$4 sm:$0xff]   ;;  %7853 = vtanh.f32 %v11925_v60 }
 0xc01   :  { %5556 = vmatpush1.bf16.msra.mxu0 %v12009_v62  ;;  %5597 = vmatpush1.bf16.msra.mxu1 %v12012_v10  ;;  %v12026_v62 = vld [vmem:[#allocation15 + $0xc8] ss:$16 sps:$4 sm:$0xff]   ;;  %v7848_v10 = vpop.eup %7847  ;;  %13691 = vst [vmem:[#allocation84_spill] sm:$0xff] %v12057_v49 }
 0xc02   :  { %5557 = vmatprep.subr.bf16.mxu0 %v12017_v47  ;;  %5598 = vmatprep.subr.bf16.mxu1 %v12020_v9  ;;  %13682 = vst [vmem:[#allocation75_spill] sm:$0xff] %v12026_v62 }
 0xc05   :  { %5558 = vmatpush1.bf16.msra.mxu0 %v12023_v29  ;;  %5599 = vmatpush1.bf16.msra.mxu1 %v12026_v62  ;;  %v12038_v29 = vld [vmem:[#allocation15 + $0xe8] ss:$16 sps:$4 sm:$0xff]  }
 0xc06   :  { %5559 = vmatprep.subr.bf16.mxu0 %v12029_v45  ;;  %5600 = vmatprep.subr.bf16.mxu1 %v12032_v61  ;;  %13686 = vst [vmem:[#allocation79_spill] sm:$0xff] %v12038_v29  ;;  %v12044_v45 = vld [vmem:[#allocation16 + $0xc] ss:$16 sps:$4 sm:$0xff]   ;;  %v12143_v62 = vld [vmem:[#allocation16 + $0xe8] ss:$16 sps:$4 sm:$0xff]  }
 0xc07   :  { %v7850_v47 = vpop.eup %7849  ;;  %13688 = vst [vmem:[#allocation81_spill] sm:$0xff] %v12044_v45  ;;  %13719 = vst [vmem:[#allocation108_spill] sm:$0xff] %v12143_v62 }
 0xc08   :  { %v5456_v9 = vmul.f32 %v7850_v47, %v7848_v10  ;;  %v12051_v47 = vld [vmem:[#allocation16] ss:$16 sps:$4 sm:$0xff]   ;;  %v12054_v10 = vld [vmem:[#allocation16 + $0x8] ss:$16 sps:$4 sm:$0xff]  }
 0xc09   :  { %5560 = vmatpush1.bf16.msra.mxu0 %v12035_v44  ;;  %5601 = vmatpush1.bf16.msra.mxu1 %v12038_v29  ;;  %13689 = vst [vmem:[#allocation82_spill] sm:$0xff] %v12051_v47  ;;  %13690 = vst [vmem:[#allocation83_spill] sm:$0xff] %v12054_v10  ;;  %v12080_v29 = vld [vmem:[#allocation16 + $0x48] ss:$16 sps:$4 sm:$0xff]   ;;  %v12126_v44 = vld [vmem:[#allocation16 + $0xc0] ss:$16 sps:$4 sm:$0xff]  }
 0xc0a   :  { %5632 = vmatprep.subr.bf16.mxu0 %v12041_v38  ;;  %5673 = vmatprep.subr.bf16.mxu1 %v12044_v45  ;;  %v12047_v61 = vpack.c.bf16 %v5456_v9, %v5456_v9  ;;  %v12060_v38 = vld [vmem:[#allocation16 + $0x2c] ss:$16 sps:$4 sm:$0xff]   ;;  %v12065_v9 = vld [vmem:[#allocation16 + $0x20] ss:$16 sps:$4 sm:$0xff]   ;;  %13698 = vst [vmem:[#allocation115_spill] sm:$0xff] %v12080_v29  ;;  %13713 = vst [vmem:[#allocation30_spill] sm:$0xff] %v12126_v44 }
 0xc0b   :  { %13692 = vst [vmem:[#allocation85_spill] sm:$0xff] %v12060_v38  ;;  %13693 = vst [vmem:[#allocation34_spill] sm:$0xff] %v12065_v9  ;;  %v12077_v45 = vld [vmem:[#allocation16 + $0x40] ss:$16 sps:$4 sm:$0xff]  }
 0xc0c   :  { %5578 = vmatmul.mubr.bf16.vlgmr.msra.gmra.mrb[112].mxu0 %v12047_v61  ;;  %5619 = vmatmul.mubr.bf16.vlgmr.msra.gmra.mrb[128].mxu1 %v12047_v61  ;;  %13697 = vst [vmem:[#allocation114_spill] sm:$0xff] %v12077_v45 }
 0xc0d   :  { %5633 = vmatpush1.bf16.msra.mxu0 %v12051_v47  ;;  %5674 = vmatpush1.bf16.msra.mxu1 %v12054_v10  ;;  %v12068_v47 = vld [vmem:[#allocation16 + $0x28] ss:$16 sps:$4 sm:$0xff]   ;;  %v12071_v10 = vld [vmem:[#allocation16 + $0x44] ss:$16 sps:$4 sm:$0xff]  }
 0xc0e   :  { %5634 = vmatprep.subr.bf16.mxu0 %v12057_v49  ;;  %5675 = vmatprep.subr.bf16.mxu1 %v12060_v38  ;;  %13694 = vst [vmem:[#allocation50_spill] sm:$0xff] %v12068_v47  ;;  %13695 = vst [vmem:[#allocation35_spill] sm:$0xff] %v12071_v10  ;;  %v12074_v49 = vld [vmem:[#allocation16 + $0x4c] ss:$16 sps:$4 sm:$0xff]   ;;  %v7852_v38 = vpop.eup %7851 }
 0xc0f   :  { %5664 = vmatprep.mubr.bf16.mxu0 %v12930_v46  ;;  %5705 = vmatprep.mubr.bf16.mxu1 %v12930_v46  ;;  %13696 = vst [vmem:[#allocation51_spill] sm:$0xff] %v12074_v49 }
 0xc11   :  { %5635 = vmatpush1.bf16.msra.mxu0 %v12065_v9  ;;  %5676 = vmatpush1.bf16.msra.mxu1 %v12068_v47  ;;  %v12083_v9 = vld [vmem:[#allocation16 + $0x64] ss:$16 sps:$4 sm:$0xff]   ;;  %v12086_v47 = vld [vmem:[#allocation16 + $0x6c] ss:$16 sps:$4 sm:$0xff]  }
 0xc12   :  { %5636 = vmatprep.subr.bf16.mxu0 %v12071_v10  ;;  %5677 = vmatprep.subr.bf16.mxu1 %v12074_v49  ;;  %13699 = vst [vmem:[#allocation116_spill] sm:$0xff] %v12083_v9  ;;  %13700 = vst [vmem:[#allocation117_spill] sm:$0xff] %v12086_v47  ;;  %v5217_v10 = vadd.f32 1.0, %v7852_v38  ;;  %v12090_v49 = vld [vmem:[#allocation16 + $0x60] ss:$16 sps:$4 sm:$0xff]  }
 0xc13   :  { %13701 = vst [vmem:[#allocation86_spill] sm:$0xff] %v12090_v49  ;;  %v12102_v38 = vld [vmem:[#allocation16 + $0x80] ss:$16 sps:$4 sm:$0xff]  }
 0xc14   :  { %7855 = vrcp.f32 %v5217_v10  ;;  %13705 = vst [vmem:[#allocation90_spill] sm:$0xff] %v12102_v38  ;;  %v12117_v10 = vld [vmem:[#allocation16 + $0xa8] ss:$16 sps:$4 sm:$0xff]  }
 0xc15   :  { %5637 = vmatpush1.bf16.msra.mxu0 %v12077_v45  ;;  %5678 = vmatpush1.bf16.msra.mxu1 %v12080_v29  ;;  %v12093_v45 = vld [vmem:[#allocation16 + $0x68] ss:$16 sps:$4 sm:$0xff]   ;;  %v12096_v29 = vld [vmem:[#allocation16 + $0x84] ss:$16 sps:$4 sm:$0xff]   ;;  %13710 = vst [vmem:[#allocation95_spill] sm:$0xff] %v12117_v10 }
 0xc16   :  { %5638 = vmatprep.subr.bf16.mxu0 %v12083_v9  ;;  %5679 = vmatprep.subr.bf16.mxu1 %v12086_v47  ;;  %13702 = vst [vmem:[#allocation87_spill] sm:$0xff] %v12093_v45  ;;  %13703 = vst [vmem:[#allocation88_spill] sm:$0xff] %v12096_v29  ;;  %v12099_v9 = vld [vmem:[#allocation16 + $0x8c] ss:$16 sps:$4 sm:$0xff]   ;;  %v12105_v47 = vld [vmem:[#allocation16 + $0x88] ss:$16 sps:$4 sm:$0xff]  }
 0xc17   :  { %13704 = vst [vmem:[#allocation89_spill] sm:$0xff] %v12099_v9  ;;  %13706 = vst [vmem:[#allocation91_spill] sm:$0xff] %v12105_v47 }
 0xc19   :  { %5639 = vmatpush1.bf16.msra.mxu0 %v12090_v49  ;;  %5680 = vmatpush1.bf16.msra.mxu1 %v12093_v45  ;;  %v12108_v49 = vld [vmem:[#allocation16 + $0xa4] ss:$16 sps:$4 sm:$0xff]   ;;  %v12111_v45 = vld [vmem:[#allocation16 + $0xac] ss:$16 sps:$4 sm:$0xff]  }
 0xc1a   :  { %5640 = vmatprep.subr.bf16.mxu0 %v12096_v29  ;;  %5681 = vmatprep.subr.bf16.mxu1 %v12099_v9  ;;  %13707 = vst [vmem:[#allocation92_spill] sm:$0xff] %v12108_v49  ;;  %13708 = vst [vmem:[#allocation93_spill] sm:$0xff] %v12111_v45  ;;  %v12114_v29 = vld [vmem:[#allocation16 + $0xa0] ss:$16 sps:$4 sm:$0xff]  }
 0xc1b   :  { %13709 = vst [vmem:[#allocation94_spill] sm:$0xff] %v12114_v29 }
 0xc1d   :  { %5641 = vmatpush1.bf16.msra.mxu0 %v12102_v38  ;;  %5682 = vmatpush1.bf16.msra.mxu1 %v12105_v47  ;;  %v12120_v38 = vld [vmem:[#allocation16 + $0xc4] ss:$16 sps:$4 sm:$0xff]   ;;  %v12123_v47 = vld [vmem:[#allocation16 + $0xcc] ss:$16 sps:$4 sm:$0xff]  }
 0xc1e   :  { %5642 = vmatprep.subr.bf16.mxu0 %v12108_v49  ;;  %5683 = vmatprep.subr.bf16.mxu1 %v12111_v45  ;;  %13711 = vst [vmem:[#allocation96_spill] sm:$0xff] %v12120_v38  ;;  %13712 = vst [vmem:[#allocation97_spill] sm:$0xff] %v12123_v47  ;;  %v7854_v49 = vpop.eup %7853  ;;  %v12129_v45 = vld [vmem:[#allocation16 + $0xc8] ss:$16 sps:$4 sm:$0xff]  }
 0xc1f   :  { %v7856_v9 = vpop.eup %7855  ;;  %13714 = vst [vmem:[#allocation46_spill] sm:$0xff] %v12129_v45 }
 0xc21   :  { %5643 = vmatpush1.bf16.msra.mxu0 %v12114_v29  ;;  %5684 = vmatpush1.bf16.msra.mxu1 %v12117_v10  ;;  %v12132_v29 = vld [vmem:[#allocation16 + $0xe4] ss:$16 sps:$4 sm:$0xff]   ;;  %v12135_v10 = vld [vmem:[#allocation16 + $0xec] ss:$16 sps:$4 sm:$0xff]  }
 0xc22   :  { %5644 = vmatprep.subr.bf16.mxu0 %v12120_v38  ;;  %5685 = vmatprep.subr.bf16.mxu1 %v12123_v47  ;;  %13715 = vst [vmem:[#allocation31_spill] sm:$0xff] %v12132_v29  ;;  %13716 = vst [vmem:[#allocation47_spill] sm:$0xff] %v12135_v10  ;;  %v12138_v38 = vmul.f32 %v7856_v9, %v7854_v49  ;;  %v12140_v47 = vld [vmem:[#allocation16 + $0xe0] ss:$16 sps:$4 sm:$0xff]   ;;  %v8404_v49 = vld [vmem:[#allocation10 + $0x8] ss:$16 sps:$4 sm:$0xff]  }
 0xc23   :  { %13718 = vst [vmem:[#allocation107_spill] sm:$0xff] %v12140_v47  ;;  %v8405_v9 = vld [vmem:[#allocation10 + $0x24] ss:$16 sps:$4 sm:$0xff]  }
 0xc24   :  { %13717 = vst [vmem:[#allocation106_spill] sm:$0xff] %v12138_v38 }
 0xc25   :  { %5645 = vmatpush1.bf16.msra.mxu0 %v12126_v44  ;;  %5686 = vmatpush1.bf16.msra.mxu1 %v12129_v45  ;;  %v5631_v45 = vpack.c.bf16 %v12138_v38, %v12138_v38  ;;  %v8401_v44 = vld [vmem:[#allocation10 + $0x4] ss:$16 sps:$4 sm:$0xff]   ;;  %v8408_v38 = vld [vmem:[#allocation10 + $0x28] ss:$16 sps:$4 sm:$0xff]  }
 0xc26   :  { %5646 = vmatprep.subr.bf16.mxu0 %v12132_v29  ;;  %5687 = vmatprep.subr.bf16.mxu1 %v12135_v10  ;;  %v8402_v29 = vld [vmem:[#allocation10 + $0xc] ss:$16 sps:$4 sm:$0xff]   ;;  %v8403_v10 = vld [vmem:[#allocation10] ss:$16 sps:$4 sm:$0xff]  }
 0xc29   :  { %5647 = vmatpush1.bf16.msra.mxu0 %v12140_v47  ;;  %5688 = vmatpush1.bf16.msra.mxu1 %v12143_v62  ;;  %v8406_v47 = vld [vmem:[#allocation10 + $0x2c] ss:$16 sps:$4 sm:$0xff]   ;;  %v8407_v62 = vld [vmem:[#allocation10 + $0x20] ss:$16 sps:$4 sm:$0xff]  }
 0xc2a   :  { %5749 = vmatprep.subr.bf16.mxu0 %v8401_v44  ;;  %5790 = vmatprep.subr.bf16.mxu1 %v8402_v29  ;;  %v8409_v44 = vld [vmem:[#allocation10 + $0x44] ss:$16 sps:$4 sm:$0xff]   ;;  %v8410_v29 = vld [vmem:[#allocation10 + $0x4c] ss:$16 sps:$4 sm:$0xff]  }
 0xc2c   :  { %5665 = vmatmul.mubr.bf16.vlgmr.msra.gmra.mrb[112].mxu0 %v5631_v45  ;;  %5706 = vmatmul.mubr.bf16.vlgmr.msra.gmra.mrb[128].mxu1 %v5631_v45  ;;  %v8411_v45 = vld [vmem:[#allocation10 + $0x40] ss:$16 sps:$4 sm:$0xff]  }
 0xc2d   :  { %5750 = vmatpush1.bf16.msra.mxu0 %v8403_v10  ;;  %5791 = vmatpush1.bf16.msra.mxu1 %v8404_v49  ;;  %v8412_v10 = vld [vmem:[#allocation10 + $0x48] ss:$16 sps:$4 sm:$0xff]   ;;  %v8413_v49 = vld [vmem:[#allocation10 + $0x64] ss:$16 sps:$4 sm:$0xff]  }
 0xc2e   :  { %5751 = vmatprep.subr.bf16.mxu0 %v8405_v9  ;;  %5792 = vmatprep.subr.bf16.mxu1 %v8406_v47  ;;  %v8414_v9 = vld [vmem:[#allocation10 + $0x6c] ss:$16 sps:$4 sm:$0xff]   ;;  %v8415_v47 = vld [vmem:[#allocation10 + $0x60] ss:$16 sps:$4 sm:$0xff]  }
 0xc2f   :  { %5781 = vmatprep.mubr.bf16.mxu0 %v12930_v46  ;;  %5822 = vmatprep.mubr.bf16.mxu1 %v12930_v46 }
 0xc31   :  { %5752 = vmatpush1.bf16.msra.mxu0 %v8407_v62  ;;  %5793 = vmatpush1.bf16.msra.mxu1 %v8408_v38  ;;  %v8418_v62 = vld [vmem:[#allocation10 + $0x8c] ss:$16 sps:$4 sm:$0xff]   ;;  %v8419_v38 = vld [vmem:[#allocation10 + $0x80] ss:$16 sps:$4 sm:$0xff]  }
 0xc32   :  { %5753 = vmatprep.subr.bf16.mxu0 %v8409_v44  ;;  %5794 = vmatprep.subr.bf16.mxu1 %v8410_v29  ;;  %v8420_v44 = vld [vmem:[#allocation10 + $0x88] ss:$16 sps:$4 sm:$0xff]   ;;  %v8421_v29 = vld [vmem:[#allocation10 + $0xa4] ss:$16 sps:$4 sm:$0xff]  }
 0xc35   :  { %5754 = vmatpush1.bf16.msra.mxu0 %v8411_v45  ;;  %5795 = vmatpush1.bf16.msra.mxu1 %v8412_v10  ;;  %v8422_v45 = vld [vmem:[#allocation10 + $0xac] ss:$16 sps:$4 sm:$0xff]   ;;  %v8423_v10 = vld [vmem:[#allocation10 + $0xa0] ss:$16 sps:$4 sm:$0xff]  }
 0xc36   :  { %5755 = vmatprep.subr.bf16.mxu0 %v8413_v49  ;;  %5796 = vmatprep.subr.bf16.mxu1 %v8414_v9  ;;  %v8424_v49 = vld [vmem:[#allocation10 + $0xa8] ss:$16 sps:$4 sm:$0xff]  }
 0xc39   :  { %5756 = vmatpush1.bf16.msra.mxu0 %v8415_v47  ;;  %5797 = vmatpush1.bf16.msra.mxu1 %v8416_v42 }
 0xc3a   :  { %5757 = vmatprep.subr.bf16.mxu0 %v8417_v32  ;;  %5798 = vmatprep.subr.bf16.mxu1 %v8418_v62  ;;  %v13757_v32 = vld [vmem:[#allocation56_spill] sm:$0xff]  ;;  %v13758_v62 = vld [vmem:[#allocation57_spill] sm:$0xff] }
 0xc3d   :  { %5758 = vmatpush1.bf16.msra.mxu0 %v8419_v38  ;;  %5799 = vmatpush1.bf16.msra.mxu1 %v8420_v44 }
 0xc3e   :  { %5759 = vmatprep.subr.bf16.mxu0 %v8421_v29  ;;  %5800 = vmatprep.subr.bf16.mxu1 %v8422_v45 }
 0xc41   :  { %5760 = vmatpush1.bf16.msra.mxu0 %v8423_v10  ;;  %5801 = vmatpush1.bf16.msra.mxu1 %v8424_v49 }
 0xc42   :  { %5761 = vmatprep.subr.bf16.mxu0 %v11689_v37  ;;  %5802 = vmatprep.subr.bf16.mxu1 %v11692_v40  ;;  %v13720_v37 = vld [vmem:[#allocation162_spill] sm:$0xff]  ;;  %v13721_v40 = vld [vmem:[#allocation163_spill] sm:$0xff] }
 0xc45   :  { %5762 = vmatpush1.bf16.msra.mxu0 %v11695_v51  ;;  %5803 = vmatpush1.bf16.msra.mxu1 %v11698_v30  ;;  %v13722_v51 = vld [vmem:[#allocation164_spill] sm:$0xff]  ;;  %v13723_v30 = vld [vmem:[#allocation165_spill] sm:$0xff] }
 0xc46   :  { %5763 = vmatprep.subr.bf16.mxu0 %v11701_v20  ;;  %5804 = vmatprep.subr.bf16.mxu1 %v11704_v41  ;;  %v13724_v20 = vld [vmem:[#allocation166_spill] sm:$0xff]  ;;  %v13725_v41 = vld [vmem:[#allocation167_spill] sm:$0xff] }
 0xc49   :  { %5764 = vmatpush1.bf16.msra.mxu0 %v11707_v27  ;;  %5805 = vmatpush1.bf16.msra.mxu1 %v11710_v18  ;;  %v13726_v27 = vld [vmem:[#allocation168_spill] sm:$0xff]  ;;  %v13727_v18 = vld [vmem:[#allocation169_spill] sm:$0xff] }
 0xc4a   :  { %5864 = vmatprep.subr.bf16.mxu0 %v11713_v23  ;;  %5905 = vmatprep.subr.bf16.mxu1 %v11716_v33  ;;  %v13728_v23 = vld [vmem:[#allocation170_spill] sm:$0xff]  ;;  %v13729_v33 = vld [vmem:[#allocation171_spill] sm:$0xff] }
 0xc4c   :  { %5782 = vmatmul.mubr.bf16.vlgmr.msra.gmra.mrb[116].mxu0 %v11939_v5  ;;  %5823 = vmatmul.mubr.bf16.vlgmr.msra.gmra.mrb[132].mxu1 %v11939_v5 }
 0xc4d   :  { %5865 = vmatpush1.bf16.msra.mxu0 %v11721_v58  ;;  %5906 = vmatpush1.bf16.msra.mxu1 %v11724_v28  ;;  %v13730_v58 = vld [vmem:[#allocation172_spill] sm:$0xff]  ;;  %v13731_v28 = vld [vmem:[#allocation173_spill] sm:$0xff] }
 0xc4e   :  { %5866 = vmatprep.subr.bf16.mxu0 %v11727_v57  ;;  %5907 = vmatprep.subr.bf16.mxu1 %v11730_v52  ;;  %v13732_v57 = vld [vmem:[#allocation174_spill] sm:$0xff]  ;;  %v13733_v52 = vld [vmem:[#allocation175_spill] sm:$0xff] }
 0xc4f   :  { %5896 = vmatprep.mubr.bf16.mxu0 %v12930_v46  ;;  %5937 = vmatprep.mubr.bf16.mxu1 %v12930_v46 }
 0xc51   :  { %5867 = vmatpush1.bf16.msra.mxu0 %v11735_v17  ;;  %5908 = vmatpush1.bf16.msra.mxu1 %v11738_v7  ;;  %v13734_v17 = vld [vmem:[#allocation176_spill] sm:$0xff]  ;;  %v13735_v7 = vld [vmem:[#allocation177_spill] sm:$0xff] }
 0xc52   :  { %5868 = vmatprep.subr.bf16.mxu0 %v11741_v2  ;;  %5909 = vmatprep.subr.bf16.mxu1 %v11744_v36  ;;  %v13736_v2 = vld [vmem:[#allocation178_spill] sm:$0xff]  ;;  %v13737_v36 = vld [vmem:[#allocation179_spill] sm:$0xff] }
 0xc55   :  { %5869 = vmatpush1.bf16.msra.mxu0 %v11747_v53  ;;  %5910 = vmatpush1.bf16.msra.mxu1 %v11750_v13  ;;  %v13738_v53 = vld [vmem:[#allocation32_spill] sm:$0xff] }
 0xc56   :  { %5870 = vmatprep.subr.bf16.mxu0 %v11753_v3  ;;  %5911 = vmatprep.subr.bf16.mxu1 %v11756_v39  ;;  %v13739_v13 = vld [vmem:[#allocation48_spill] sm:$0xff]  ;;  %v13740_v3 = vld [vmem:[#allocation33_spill] sm:$0xff] }
 0xc57   :  { %v13741_v39 = vld [vmem:[#allocation49_spill] sm:$0xff] }
 0xc59   :  { %5871 = vmatpush1.bf16.msra.mxu0 %v11759_v31  ;;  %5912 = vmatpush1.bf16.msra.mxu1 %v11762_v54  ;;  %v13742_v31 = vld [vmem:[#allocation110_spill] sm:$0xff]  ;;  %v13743_v54 = vld [vmem:[#allocation111_spill] sm:$0xff] }
 0xc5a   :  { %5872 = vmatprep.subr.bf16.mxu0 %v11765_v11  ;;  %5913 = vmatprep.subr.bf16.mxu1 %v11768_v1  ;;  %v13744_v11 = vld [vmem:[#allocation112_spill] sm:$0xff]  ;;  %v13745_v1 = vld [vmem:[#allocation113_spill] sm:$0xff] }
 0xc5d   :  { %5873 = vmatpush1.bf16.msra.mxu0 %v11771_v48  ;;  %5914 = vmatpush1.bf16.msra.mxu1 %v11774_v63  ;;  %v13746_v48 = vld [vmem:[#allocation181_spill] sm:$0xff]  ;;  %v13747_v63 = vld [vmem:[#allocation182_spill] sm:$0xff] }
 0xc5e   :  { %5874 = vmatprep.subr.bf16.mxu0 %v11777_v8  ;;  %5915 = vmatprep.subr.bf16.mxu1 %v11780_v43  ;;  %v13748_v8 = vld [vmem:[#allocation183_spill] sm:$0xff]  ;;  %v13749_v43 = vld [vmem:[#allocation184_spill] sm:$0xff] }
 0xc61   :  { %5875 = vmatpush1.bf16.msra.mxu0 %v11783_v15  ;;  %5916 = vmatpush1.bf16.msra.mxu1 %v11786_v4  ;;  %v13750_v15 = vld [vmem:[#allocation28_spill] sm:$0xff] }
 0xc62   :  { %5876 = vmatprep.subr.bf16.mxu0 %v11789_v56  ;;  %5917 = vmatprep.subr.bf16.mxu1 %v11792_v16  ;;  %v13751_v4 = vld [vmem:[#allocation44_spill] sm:$0xff]  ;;  %v13752_v56 = vld [vmem:[#allocation29_spill] sm:$0xff] }
 0xc63   :  { %v13753_v16 = vld [vmem:[#allocation45_spill] sm:$0xff] }
 0xc65   :  { %5877 = vmatpush1.bf16.msra.mxu0 %v11795_v14  ;;  %5918 = vmatpush1.bf16.msra.mxu1 %v11798_v6  ;;  %v13754_v14 = vld [vmem:[#allocation102_spill] sm:$0xff]  ;;  %v13755_v6 = vld [vmem:[#allocation103_spill] sm:$0xff] }
 0xc66   :  { %5878 = vmatprep.subr.bf16.mxu0 %v11801_v34  ;;  %5919 = vmatprep.subr.bf16.mxu1 %v13720_v37  ;;  %v13756_v34 = vld [vmem:[#allocation104_spill] sm:$0xff] }
 0xc69   :  { %5879 = vmatpush1.bf16.msra.mxu0 %v13721_v40  ;;  %5920 = vmatpush1.bf16.msra.mxu1 %v13722_v51  ;;  %v13759_v40 = vld [vmem:[#allocation58_spill] sm:$0xff] }
 0xc6a   :  { %5975 = vmatprep.subr.bf16.mxu0 %v13723_v30  ;;  %6016 = vmatprep.subr.bf16.mxu1 %v13724_v20 }
 0xc6c   :  { %5897 = vmatmul.mubr.bf16.vlgmr.msra.gmra.mrb[120].mxu0 %v12047_v61  ;;  %5938 = vmatmul.mubr.bf16.vlgmr.msra.gmra.mrb[136].mxu1 %v12047_v61 }
 0xc6d   :  { %5976 = vmatpush1.bf16.msra.mxu0 %v13725_v41  ;;  %6017 = vmatpush1.bf16.msra.mxu1 %v13726_v27 }
 0xc6e   :  { %5977 = vmatprep.subr.bf16.mxu0 %v13727_v18  ;;  %6018 = vmatprep.subr.bf16.mxu1 %v13728_v23 }
 0xc6f   :  { %6007 = vmatprep.mubr.bf16.mxu0 %v12930_v46  ;;  %6048 = vmatprep.mubr.bf16.mxu1 %v12930_v46 }
 0xc71   :  { %5978 = vmatpush1.bf16.msra.mxu0 %v13729_v33  ;;  %6019 = vmatpush1.bf16.msra.mxu1 %v13730_v58 }
 0xc72   :  { %5979 = vmatprep.subr.bf16.mxu0 %v13731_v28  ;;  %6020 = vmatprep.subr.bf16.mxu1 %v13732_v57 }
 0xc75   :  { %5980 = vmatpush1.bf16.msra.mxu0 %v13733_v52  ;;  %6021 = vmatpush1.bf16.msra.mxu1 %v13734_v17 }
 0xc76   :  { %5981 = vmatprep.subr.bf16.mxu0 %v13735_v7  ;;  %6022 = vmatprep.subr.bf16.mxu1 %v13736_v2  ;;  %v13760_v7 = vld [vmem:[#allocation38_spill] sm:$0xff] }
 0xc79   :  { %5982 = vmatpush1.bf16.msra.mxu0 %v13737_v36  ;;  %6023 = vmatpush1.bf16.msra.mxu1 %v13738_v53  ;;  %v13761_v36 = vld [vmem:[#allocation54_spill] sm:$0xff] }
 0xc7a   :  { %5983 = vmatprep.subr.bf16.mxu0 %v13739_v13  ;;  %6024 = vmatprep.subr.bf16.mxu1 %v13740_v3 }
 0xc7d   :  { %5984 = vmatpush1.bf16.msra.mxu0 %v13741_v39  ;;  %6025 = vmatpush1.bf16.msra.mxu1 %v13742_v31  ;;  %v13762_v39 = vld [vmem:[#allocation39_spill] sm:$0xff] }
 0xc7e   :  { %5985 = vmatprep.subr.bf16.mxu0 %v13743_v54  ;;  %6026 = vmatprep.subr.bf16.mxu1 %v13744_v11  ;;  %v13763_v54 = vld [vmem:[#allocation55_spill] sm:$0xff] }
 0xc81   :  { %5986 = vmatpush1.bf16.msra.mxu0 %v13745_v1  ;;  %6027 = vmatpush1.bf16.msra.mxu1 %v13746_v48 }
 0xc82   :  { %5987 = vmatprep.subr.bf16.mxu0 %v13747_v63  ;;  %6028 = vmatprep.subr.bf16.mxu1 %v13748_v8 }
 0xc85   :  { %5988 = vmatpush1.bf16.msra.mxu0 %v13749_v43  ;;  %6029 = vmatpush1.bf16.msra.mxu1 %v13750_v15 }
 0xc86   :  { %5989 = vmatprep.subr.bf16.mxu0 %v13751_v4  ;;  %6030 = vmatprep.subr.bf16.mxu1 %v13752_v56 }
 0xc89   :  { %5990 = vmatpush1.bf16.msra.mxu0 %v13753_v16  ;;  %6031 = vmatpush1.bf16.msra.mxu1 %v13754_v14 }
 0xc8a   :  { %6062 = vmatprep.subr.bf16.mxu0 %v13755_v6  ;;  %6103 = vmatprep.subr.bf16.mxu1 %v13756_v34 }
 0xcff   :  { %v5666_v5 = vpop.f32.mrb[112].mxu0  ;;  %v5707_v42 = vpop.f32.mrb[128].mxu1 }
 0xd00   :  { %v7146_v61 = vadd.f32 %v5666_v5, %v13757_v32  ;;  %v5668_v9 = vpop.f32.mrb[113].mxu0  ;;  %v12233_v47 = vpop.f32.mrb[129].mxu1  ;;  %v7148_v51 = vadd.f32 %v5707_v42, %v13759_v40 }
 0xd01   :  { %v7147_v38 = vadd.f32 %v5668_v9, %v13758_v62  ;;  %v5670_v44 = vpop.f32.mrb[114].mxu0  ;;  %v5711_v29 = vpop.f32.mrb[130].mxu1 }
 0xd02   :  { %v6833_v45 = vmul.f32 -1.442695, %v7146_v61  ;;  %v5671_v10 = vpop.f32.mrb[115].mxu0  ;;  %v5712_v49 = vpop.f32.mrb[131].mxu1 }
 0xd03   :  { %v6834_v37 = vmul.f32 -1.442695, %v7147_v38  ;;  %v13764_v10 = vld [vmem:[#allocation122_spill] sm:$0xff] }
 0xd04   :  { %7857 = vpow2.f32 %v6833_v45 }
 0xd05   :  { %7859 = vpow2.f32 %v6834_v37  ;;  %v13765_v37 = vld [vmem:[#allocation123_spill] sm:$0xff] }
 0xd06   :  { %7861 = vtanh.f32 %v7148_v51 }
 0xd0e   :  { %v7858_v30 = vpop.eup %7857 }
 0xd0f   :  { %v7860_v20 = vpop.eup %7859  ;;  %v5721_v41 = vadd.f32 1.0, %v7858_v30 }
 0xd10   :  { %v5727_v27 = vadd.f32 1.0, %v7860_v20  ;;  %v7862_v18 = vpop.eup %7861 }
 0xd11   :  { %7863 = vrcp.f32 %v5721_v41  ;;  %v13766_v41 = vld [vmem:[#allocation124_spill] sm:$0xff] }
 0xd12   :  { %7865 = vrcp.f32 %v5727_v27 }
 0xd1b   :  { %v7864_v23 = vpop.eup %7863 }
 0xd1c   :  { %v7866_v33 = vpop.eup %7865  ;;  %v5738_v58 = vmul.f32 %v7864_v23, %v7862_v18  ;;  %v13767_v18 = vld [vmem:[#allocation125_spill] sm:$0xff] }
 0xd1d   :  { %v5737_v28 = vmul.f32 %v7866_v33, %v11925_v60 }
 0xd1f   :  { %v12238_v57 = vadd.f32 %v5738_v58, %v5737_v28  ;;  %v5783_v52 = vpop.f32.mrb[116].mxu0  ;;  %v5824_v17 = vpop.f32.mrb[132].mxu1 }
 0xd20   :  { %v5831_v2 = vadd.f32 %v5783_v52, %v13760_v7  ;;  %v5833_v53 = vadd.f32 %v5824_v17, %v13761_v36  ;;  %v5785_v13 = vpop.f32.mrb[117].mxu0  ;;  %v5826_v3 = vpop.f32.mrb[133].mxu1 }
 0xd21   :  { %v5832_v31 = vadd.f32 %v5785_v13, %v13762_v39  ;;  %v5834_v11 = vadd.f32 %v5826_v3, %v13763_v54  ;;  %v5787_v1 = vpop.f32.mrb[118].mxu0  ;;  %v5828_v48 = vpop.f32.mrb[134].mxu1 }
 0xd22   :  { %v6836_v63 = vmul.f32 -1.442695, %v5831_v2  ;;  %v5788_v8 = vpop.f32.mrb[119].mxu0  ;;  %v5829_v43 = vpop.f32.mrb[135].mxu1  ;;  %v13770_v1 = vld [vmem:[#allocation62_spill] sm:$0xff] }
 0xd23   :  { %v6837_v60 = vmul.f32 -1.442695, %v5832_v31  ;;  %v6838_v15 = vmul.f32 -1.442695, %v5834_v11  ;;  %v13768_v11 = vld [vmem:[#allocation105_spill] sm:$0xff] }
 0xd24   :  { %7867 = vpow2.f32 %v6836_v63  ;;  %v13773_v8 = vld [vmem:[#allocation65_spill] sm:$0xff] }
 0xd25   :  { %7869 = vpow2.f32 %v6837_v60  ;;  %v13774_v60 = vld [vmem:[#allocation66_spill] sm:$0xff] }
 0xd26   :  { %7871 = vpow2.f32 %v6838_v15  ;;  %v13776_v15 = vld [vmem:[#allocation68_spill] sm:$0xff] }
 0xd27   :  { %7873 = vtanh.f32 %v5833_v53 }
 0xd2e   :  { %v7868_v4 = vpop.eup %7867 }
 0xd2f   :  { %v7870_v56 = vpop.eup %7869  ;;  %v5838_v16 = vadd.f32 1.0, %v7868_v4  ;;  %v13777_v4 = vld [vmem:[#allocation69_spill] sm:$0xff] }
 0xd30   :  { %v5844_v14 = vadd.f32 1.0, %v7870_v56  ;;  %v7872_v6 = vpop.eup %7871  ;;  %v13780_v56 = vld [vmem:[#allocation59_spill] sm:$0xff] }
 0xd31   :  { %7875 = vrcp.f32 %v5838_v16  ;;  %v7874_v34 = vpop.eup %7873  ;;  %v5851_v9 = vadd.f32 1.0, %v7872_v6  ;;  %v7149_v16 = vadd.f32 %v12233_v47, %v13780_v56  ;;  %v13782_v6 = vld [vmem:[#allocation73_spill] sm:$0xff]  ;;  %v13789_v47 = vld [vmem:[#allocation80_spill] sm:$0xff] }
 0xd32   :  { %7877 = vrcp.f32 %v5844_v14  ;;  %v13781_v14 = vld [vmem:[#allocation72_spill] sm:$0xff] }
 0xd33   :  { %7879 = vrcp.f32 %v5851_v9  ;;  %v13785_v9 = vld [vmem:[#allocation76_spill] sm:$0xff] }
 0xd3b   :  { %v7876_v5 = vpop.eup %7875 }
 0xd3c   :  { %v7878_v42 = vpop.eup %7877  ;;  %v5855_v61 = vmul.f32 %v7876_v5, %v7874_v34  ;;  %v13783_v34 = vld [vmem:[#allocation74_spill] sm:$0xff]  ;;  %v13784_v5 = vld [vmem:[#allocation75_spill] sm:$0xff] }
 0xd3d   :  { %v5854_v38 = vmul.f32 %v7878_v42, %v11932_v26  ;;  %v7880_v7 = vpop.eup %7879 }
 0xd3f   :  { %v5856_v44 = vadd.f32 %v5855_v61, %v5854_v38  ;;  %v5898_v29 = vpop.f32.mrb[120].mxu0  ;;  %v5939_v45 = vpop.f32.mrb[136].mxu1  ;;  %v6835_v61 = vmul.f32 -1.442695, %v7149_v16  ;;  %v13786_v38 = vld [vmem:[#allocation77_spill] sm:$0xff]  ;;  %v6274_v16 = vld [vmem:[%s12446_s16 + $0x28] sm:$0xff] }
 0xd40   :  { %v5946_v49 = vadd.f32 %v5898_v29, %v13764_v10  ;;  %v5948_v51 = vadd.f32 %v5939_v45, %v13765_v37  ;;  %v5900_v30 = vpop.f32.mrb[121].mxu0  ;;  %v5941_v20 = vpop.f32.mrb[137].mxu1  ;;  %v13787_v45 = vld [vmem:[#allocation78_spill] sm:$0xff]  ;;  %v13788_v10 = vld [vmem:[#allocation79_spill] sm:$0xff] }
 0xd41   :  { %7881 = vtanh.f32 %v5856_v44  ;;  %v5947_v27 = vadd.f32 %v5900_v30, %v13766_v41  ;;  %v5949_v23 = vadd.f32 %v5941_v20, %v13767_v18  ;;  %v5902_v33 = vpop.f32.mrb[122].mxu0  ;;  %v5943_v58 = vpop.f32.mrb[138].mxu1  ;;  %v13792_v30 = vld [vmem:[#allocation83_spill] sm:$0xff]  ;;  %v13793_v20 = vld [vmem:[#allocation84_spill] sm:$0xff]  ;;  %v13794_v41 = vld [vmem:[#allocation85_spill] sm:$0xff] }
 0xd42   :  { %v6839_v28 = vmul.f32 -1.442695, %v5946_v49  ;;  %v5903_v52 = vpop.f32.mrb[123].mxu0  ;;  %v5944_v26 = vpop.f32.mrb[139].mxu1  ;;  %v13790_v49 = vld [vmem:[#allocation81_spill] sm:$0xff]  ;;  %v13796_v18 = vld [vmem:[#allocation50_spill] sm:$0xff] }
 0xd43   :  { %v6840_v17 = vmul.f32 -1.442695, %v5947_v27  ;;  %v6841_v36 = vmul.f32 -1.442695, %v5949_v23  ;;  %v13795_v27 = vld [vmem:[#allocation34_spill] sm:$0xff]  ;;  %v13797_v23 = vld [vmem:[#allocation35_spill] sm:$0xff] }
 0xd44   :  { %7883 = vpow2.f32 %v6839_v28  ;;  %v13798_v33 = vld [vmem:[#allocation51_spill] sm:$0xff]  ;;  %v13799_v28 = vld [vmem:[#allocation114_spill] sm:$0xff]  ;;  %v13801_v26 = vld [vmem:[#allocation116_spill] sm:$0xff] }
 0xd45   :  { %7885 = vpow2.f32 %v6840_v17  ;;  %v13800_v52 = vld [vmem:[#allocation115_spill] sm:$0xff]  ;;  %v13802_v17 = vld [vmem:[#allocation117_spill] sm:$0xff] }
 0xd46   :  { %7887 = vpow2.f32 %v6841_v36  ;;  %v13805_v36 = vld [vmem:[#allocation88_spill] sm:$0xff] }
 0xd47   :  { %7889 = vtanh.f32 %v5948_v51  ;;  %v13791_v51 = vld [vmem:[#allocation82_spill] sm:$0xff] }
 0xd4b   :  { %v7882_v2 = vpop.eup %7881 }
 0xd4c   :  { %v5858_v53 = vmul.f32 %v7882_v2, %v7880_v7  ;;  %v13804_v2 = vld [vmem:[#allocation87_spill] sm:$0xff] }
 0xd4e   :  { %v7884_v13 = vpop.eup %7883  ;;  %v5974_v3 = vpack.c.bf16 %v5858_v53, %v5858_v53  ;;  %v13806_v53 = vld [vmem:[#allocation89_spill] sm:$0xff] }
 0xd4f   :  { %v7886_v39 = vpop.eup %7885  ;;  %v5953_v31 = vadd.f32 1.0, %v7884_v13  ;;  %v13807_v13 = vld [vmem:[#allocation90_spill] sm:$0xff] }
 0xd50   :  { %v5959_v54 = vadd.f32 1.0, %v7886_v39  ;;  %6008 = vmatmul.mubr.bf16.vlgmr.msra.gmra.mrb[124].mxu0 %v5974_v3  ;;  %6049 = vmatmul.mubr.bf16.vlgmr.msra.gmra.mrb[140].mxu1 %v5974_v3  ;;  %v13808_v3 = vld [vmem:[#allocation91_spill] sm:$0xff]  ;;  %v13809_v39 = vld [vmem:[#allocation92_spill] sm:$0xff] }
 0xd51   :  { %7891 = vrcp.f32 %v5953_v31  ;;  %6063 = vmatpush1.bf16.msra.mxu0 %v11943_v0  ;;  %6104 = vmatpush1.bf16.msra.mxu1 %v11946_v35  ;;  %v7888_v0 = vpop.eup %7887  ;;  %v13769_v35 = vld [vmem:[#allocation61_spill] sm:$0xff] }
 0xd52   :  { %7893 = vrcp.f32 %v5959_v54  ;;  %6064 = vmatprep.subr.bf16.mxu0 %v11949_v24  ;;  %6105 = vmatprep.subr.bf16.mxu1 %v11952_v12  ;;  %v7890_v24 = vpop.eup %7889  ;;  %v13810_v31 = vld [vmem:[#allocation93_spill] sm:$0xff]  ;;  %v13811_v54 = vld [vmem:[#allocation94_spill] sm:$0xff] }
 0xd53   :  { %6094 = vmatprep.mubr.bf16.mxu0 %v12930_v46  ;;  %6135 = vmatprep.mubr.bf16.mxu1 %v12930_v46 }
 0xd55   :  { %6065 = vmatpush1.bf16.msra.mxu0 %v11957_v25  ;;  %6106 = vmatpush1.bf16.msra.mxu1 %v11960_v22  ;;  %v5966_v25 = vadd.f32 1.0, %v7888_v0  ;;  %v13812_v0 = vld [vmem:[#allocation95_spill] sm:$0xff] }
 0xd56   :  { %6066 = vmatprep.subr.bf16.mxu0 %v11963_v55  ;;  %6107 = vmatprep.subr.bf16.mxu1 %v11966_v59  ;;  %v13771_v55 = vld [vmem:[#allocation63_spill] sm:$0xff]  ;;  %v13772_v59 = vld [vmem:[#allocation64_spill] sm:$0xff] }
 0xd57   :  { %7895 = vrcp.f32 %v5966_v25  ;;  %v13816_v25 = vld [vmem:[#allocation46_spill] sm:$0xff] }
 0xd59   :  { %6067 = vmatpush1.bf16.msra.mxu0 %v13768_v11  ;;  %6108 = vmatpush1.bf16.msra.mxu1 %v13769_v35  ;;  %v13813_v11 = vld [vmem:[#allocation96_spill] sm:$0xff]  ;;  %v13814_v35 = vld [vmem:[#allocation97_spill] sm:$0xff] }
 0xd5a   :  { %6068 = vmatprep.subr.bf16.mxu0 %v13770_v1  ;;  %6109 = vmatprep.subr.bf16.mxu1 %v11978_v21  ;;  %v13775_v21 = vld [vmem:[#allocation67_spill] sm:$0xff]  ;;  %v6269_v1 = vld [vmem:[%s12446_s16] sm:$0xff] }
 0xd5b   :  { %v7892_v12 = vpop.eup %7891 }
 0xd5c   :  { %v7894_v48 = vpop.eup %7893  ;;  %v5970_v63 = vmul.f32 %v7892_v12, %v7890_v24  ;;  %v6270_v12 = vld [vmem:[%s12446_s16 + $0x8] sm:$0xff] }
 0xd5d   :  { %v5969_v22 = vmul.f32 %v7894_v48, %v11994_v50  ;;  %6069 = vmatpush1.bf16.msra.mxu0 %v11982_v19  ;;  %6110 = vmatpush1.bf16.msra.mxu1 %v13771_v55  ;;  %v13778_v50 = vld [vmem:[#allocation70_spill] sm:$0xff]  ;;  %v13779_v19 = vld [vmem:[#allocation71_spill] sm:$0xff] }
 0xd5e   :  { %6070 = vmatprep.subr.bf16.mxu0 %v13772_v59  ;;  %6111 = vmatprep.subr.bf16.mxu1 %v13773_v8  ;;  %v13818_v55 = vld [vmem:[#allocation47_spill] sm:$0xff]  ;;  %v7084_v8 = vpack.c.bf16 %v6270_v12, %v6269_v1 }
 0xd5f   :  { %v5971_v43 = vadd.f32 %v5970_v63, %v5969_v22  ;;  %v13815_v63 = vld [vmem:[#allocation30_spill] sm:$0xff]  ;;  %v13817_v22 = vld [vmem:[#allocation31_spill] sm:$0xff] }
 0xd61   :  { %7897 = vtanh.f32 %v5971_v43  ;;  %6071 = vmatpush1.bf16.msra.mxu0 %v13774_v60  ;;  %6112 = vmatpush1.bf16.msra.mxu1 %v13775_v21  ;;  %v7896_v42 = vpop.eup %7895  ;;  %v6271_v43 = vld [vmem:[%s12446_s16 + $0x10] sm:$0xff]  ;;  %v6272_v60 = vld [vmem:[%s12446_s16 + $0x18] sm:$0xff]  ;;  %v13819_v21 = vld [vmem:[#allocation107_spill] sm:$0xff] }
 0xd62   :  { %6072 = vmatprep.subr.bf16.mxu0 %v13776_v15  ;;  %6113 = vmatprep.subr.bf16.mxu1 %v13777_v4  ;;  %7899 = vpow2.f32 %v6835_v61  ;;  %v13820_v15 = vld [vmem:[#allocation108_spill] sm:$0xff]  ;;  %v6277_v61 = vld [vmem:[%s12446_s16 + $0x40] sm:$0xff] }
 0xd63   :  { %7901 = vtanh.f32 %v12238_v57 }
 0xd65   :  { %6073 = vmatpush1.bf16.msra.mxu0 %v13778_v50  ;;  %6114 = vmatpush1.bf16.msra.mxu1 %v13779_v19  ;;  %v7088_v50 = vpack.c.bf16 %v6272_v60, %v6271_v43  ;;  %v6273_v19 = vld [vmem:[%s12446_s16 + $0x20] sm:$0xff] }
 0xd66   :  { %6074 = vmatprep.subr.bf16.mxu0 %v13781_v14  ;;  %6115 = vmatprep.subr.bf16.mxu1 %v13782_v6  ;;  %v13821_v14 = vld [vmem:[#allocation60_spill] sm:$0xff]  ;;  %v7092_v6 = vpack.c.bf16 %v6274_v16, %v6273_v19  ;;  %v6845_v60 = vld [vmem:[%s12447_s17] ss:$0 sm:$0xff] }
 0xd69   :  { %6075 = vmatpush1.bf16.msra.mxu0 %v13783_v34  ;;  %6116 = vmatpush1.bf16.msra.mxu1 %v13784_v5  ;;  %v6275_v34 = vld [vmem:[%s12446_s16 + $0x30] sm:$0xff]  ;;  %v6276_v5 = vld [vmem:[%s12446_s16 + $0x38] sm:$0xff] }
 0xd6a   :  { %6076 = vmatprep.subr.bf16.mxu0 %v13785_v9  ;;  %6117 = vmatprep.subr.bf16.mxu1 %v13786_v38  ;;  %v6278_v9 = vld [vmem:[%s12446_s16 + $0x48] sm:$0xff] }
 0xd6b   :  { %v7898_v44 = vpop.eup %7897  ;;  %v7100_v38 = vpack.c.bf16 %v6278_v9, %v6277_v61 }
 0xd6c   :  { %v5973_v29 = vmul.f32 %v7898_v44, %v7896_v42  ;;  %v7900_v58 = vpop.eup %7899  ;;  %v7096_v42 = vpack.c.bf16 %v6276_v5, %v6275_v34  ;;  %v6279_v44 = vld [vmem:[%s12446_s16 + $0x50] sm:$0xff] }
 0xd6d   :  { %6077 = vmatpush1.bf16.msra.mxu0 %v13787_v45  ;;  %6118 = vmatpush1.bf16.msra.mxu1 %v13788_v10  ;;  %v5734_v7 = vadd.f32 1.0, %v7900_v58  ;;  %v7902_v24 = vpop.eup %7901  ;;  %v6281_v10 = vld [vmem:[%s12446_s16 + $0x60] sm:$0xff]  ;;  %v6406_v58 = vld [vmem:[%s12448_s18 + $0x8] sm:$0xff] }
 0xd6e   :  { %6149 = vmatprep.subr.bf16.mxu0 %v13789_v47  ;;  %6190 = vmatprep.subr.bf16.mxu1 %v13790_v49  ;;  %v6061_v37 = vpack.c.bf16 %v5973_v29, %v5973_v29  ;;  %v6280_v29 = vld [vmem:[%s12446_s16 + $0x58] sm:$0xff]  ;;  %v6282_v47 = vld [vmem:[%s12446_s16 + $0x68] sm:$0xff] }
 0xd6f   :  { %7903 = vrcp.f32 %v5734_v7  ;;  %v7104_v45 = vpack.c.bf16 %v6280_v29, %v6279_v44  ;;  %v7108_v49 = vpack.c.bf16 %v6282_v47, %v6281_v10 }
 0xd70   :  { %6095 = vmatmul.mubr.bf16.vlgmr.msra.gmra.mrb[124].mxu0 %v6061_v37  ;;  %6136 = vmatmul.mubr.bf16.vlgmr.msra.gmra.mrb[140].mxu1 %v6061_v37  ;;  %v6283_v37 = vld [vmem:[%s12446_s16 + $0x70] sm:$0xff] }
 0xd71   :  { %6150 = vmatpush1.bf16.msra.mxu0 %v13791_v51  ;;  %6191 = vmatpush1.bf16.msra.mxu1 %v13792_v30  ;;  %v6284_v51 = vld [vmem:[%s12446_s16 + $0x78] sm:$0xff] }
 0xd72   :  { %6151 = vmatprep.subr.bf16.mxu0 %v13793_v20  ;;  %6192 = vmatprep.subr.bf16.mxu1 %v13794_v41  ;;  %v7112_v30 = vpack.c.bf16 %v6284_v51, %v6283_v37  ;;  %v13822_v20 = vld [vmem:[#allocation161_spill] sm:$0xff]  ;;  %v13823_v41 = vld [vmem:[#allocation180_spill] sm:$0xff] }
 0xd73   :  { %6181 = vmatprep.mubr.bf16.mxu0 %v12930_v46  ;;  %6222 = vmatprep.mubr.bf16.mxu1 %v12930_v46  ;;  %v13803_v46 = vld [vmem:[#allocation86_spill] sm:$0xff] }
 0xd75   :  { %6152 = vmatpush1.bf16.msra.mxu0 %v13795_v27  ;;  %6193 = vmatpush1.bf16.msra.mxu1 %v13796_v18  ;;  %v13824_v27 = vld [vmem:[#allocation141_spill] sm:$0xff]  ;;  %v13825_v18 = vld [vmem:[#allocation160_spill] sm:$0xff] }
 0xd76   :  { %6153 = vmatprep.subr.bf16.mxu0 %v13797_v23  ;;  %6194 = vmatprep.subr.bf16.mxu1 %v13798_v33  ;;  %v13826_v23 = vld [vmem:[#allocation106_spill] sm:$0xff] }
 0xd77   :  { %v6405_v33 = vld [vmem:[%s12448_s18] sm:$0xff] }
 0xd79   :  { %6154 = vmatpush1.bf16.msra.mxu0 %v13799_v28  ;;  %6195 = vmatpush1.bf16.msra.mxu1 %v13800_v52  ;;  %v7904_v48 = vpop.eup %7903  ;;  %v7116_v28 = vpack.c.bf16 %v6406_v58, %v6405_v33 }
 0xd7a   :  { %6155 = vmatprep.subr.bf16.mxu0 %v13801_v26  ;;  %6196 = vmatprep.subr.bf16.mxu1 %v13802_v17  ;;  %v5741_v59 = vmul.f32 %v7904_v48, %v7902_v24 }
 0xd7c   :  { %v6148_v4 = vpack.c.bf16 %v5741_v59, %v5741_v59 }
 0xd7d   :  { %6156 = vmatpush1.bf16.msra.mxu0 %v13803_v46  ;;  %6197 = vmatpush1.bf16.msra.mxu1 %v13804_v2 }
 0xd7e   :  { %6157 = vmatprep.subr.bf16.mxu0 %v13805_v36  ;;  %6198 = vmatprep.subr.bf16.mxu1 %v13806_v53 }
 0xd81   :  { %6158 = vmatpush1.bf16.msra.mxu0 %v13807_v13  ;;  %6199 = vmatpush1.bf16.msra.mxu1 %v13808_v3 }
 0xd82   :  { %6159 = vmatprep.subr.bf16.mxu0 %v13809_v39  ;;  %6200 = vmatprep.subr.bf16.mxu1 %v13810_v31 }
 0xd85   :  { %6160 = vmatpush1.bf16.msra.mxu0 %v13811_v54  ;;  %6201 = vmatpush1.bf16.msra.mxu1 %v13812_v0 }
 0xd86   :  { %6161 = vmatprep.subr.bf16.mxu0 %v13813_v11  ;;  %6202 = vmatprep.subr.bf16.mxu1 %v13814_v35 }
 0xd89   :  { %6162 = vmatpush1.bf16.msra.mxu0 %v13815_v63  ;;  %6203 = vmatpush1.bf16.msra.mxu1 %v13816_v25 }
 0xd8a   :  { %6163 = vmatprep.subr.bf16.mxu0 %v13817_v22  ;;  %6204 = vmatprep.subr.bf16.mxu1 %v13818_v55 }
 0xd8d   :  { %6164 = vmatpush1.bf16.msra.mxu0 %v13819_v21  ;;  %6205 = vmatpush1.bf16.msra.mxu1 %v13820_v15 }
 0xd8e   :  { %7085 = vmatprep.subr.bf16.mxu0 %v7084_v8  ;;  %7120 = vmatprep.subr.bf16.mxu1 %v7116_v28 }
 0xd90   :  { %6182 = vmatmul.mubr.bf16.vlgmr.msra.gmra.mrb[124].mxu0 %v6148_v4  ;;  %6223 = vmatmul.mubr.bf16.vlgmr.msra.gmra.mrb[140].mxu1 %v6148_v4 }
 0xd91   :  { %7087 = vmatpush3.bf16.msra.mxu0 %v7084_v8  ;;  %7000 = vmatprep.mubr.f32.mxu0 %v13821_v14 }
 0xd92   :  { %7089 = vmatprep.subr.bf16.mxu0 %v7088_v50  ;;  %7121 = vmatpush3.bf16.msra.mxu1 %v7116_v28 }
 0xd95   :  { %7091 = vmatpush3.bf16.msra.mxu0 %v7088_v50 }
 0xd96   :  { %7093 = vmatprep.subr.bf16.mxu0 %v7092_v6 }
 0xd99   :  { %7095 = vmatpush3.bf16.msra.mxu0 %v7092_v6 }
 0xd9a   :  { %7097 = vmatprep.subr.bf16.mxu0 %v7096_v42 }
 0xd9d   :  { %7099 = vmatpush3.bf16.msra.mxu0 %v7096_v42 }
 0xd9e   :  { %7101 = vmatprep.subr.bf16.mxu0 %v7100_v38 }
 0xda1   :  { %7103 = vmatpush3.bf16.msra.mxu0 %v7100_v38 }
 0xda2   :  { %7105 = vmatprep.subr.bf16.mxu0 %v7104_v45 }
 0xda5   :  { %7107 = vmatpush3.bf16.msra.mxu0 %v7104_v45  ;;  %v6846_v45 = vld [vmem:[%s12449_s19] ss:$0 sm:$0xff] }
 0xda6   :  { %7109 = vmatprep.subr.bf16.mxu0 %v7108_v49 }
 0xda9   :  { %7111 = vmatpush3.bf16.msra.mxu0 %v7108_v49 }
 0xdaa   :  { %7113 = vmatprep.subr.bf16.mxu0 %v7112_v30 }
 0xdad   :  { %7115 = vmatpush3.bf16.msra.mxu0 %v7112_v30 }
 0xdae   :  { %7117 = vmatprep.subr.bf16.mxu0 %v7116_v28 }
 0xdb0   :  { %7001 = vmatmul.mubr.f32.vlgmr.msra.gmra.mrb[128].mxu0 %v13822_v20 }
 0xdb1   :  { %7003 = vmatprep.mubr.f32.mxu0 %v13823_v41  ;;  %7119 = vmatpush3.bf16.msra.mxu0 %v7116_v28 }
 0xdb4   :  { %7004 = vmatmul.mubr.f32.gmra.mrb[130].mxu0 %v13824_v27 }
 0xdb5   :  { %7006 = vmatprep.mubr.f32.mxu0 %v13825_v18 }
 0xdb8   :  { %7007 = vmatmul.mubr.f32.gmra.mrb[132].mxu0 %v13826_v23 }
 0xdb9   :  { %7009 = vmatprep.mubr.f32.mxu0 %v5741_v59 }
 0xe63   :  { %v6183_v52 = vpop.f32.mrb[124].mxu0  ;;  %v6224_v26 = vpop.f32.mrb[140].mxu1 }
 0xe64   :  { %v7150_v17 = vadd.f32 %v6183_v52, %v13757_v32  ;;  %v6185_v7 = vpop.f32.mrb[125].mxu0  ;;  %v6226_v46 = vpop.f32.mrb[141].mxu1  ;;  %v7152_v11 = vadd.f32 %v6224_v26, %v13759_v40 }
 0xe65   :  { %v7151_v2 = vadd.f32 %v6185_v7, %v13758_v62  ;;  %v6187_v36 = vpop.f32.mrb[126].mxu0  ;;  %v6228_v53 = vpop.f32.mrb[142].mxu1  ;;  %v7153_v54 = vadd.f32 %v6226_v46, %v13780_v56 }
 0xe66   :  { %v6842_v13 = vmul.f32 -1.442695, %v7150_v17  ;;  %v6188_v3 = vpop.f32.mrb[127].mxu0  ;;  %v6229_v39 = vpop.f32.mrb[143].mxu1 }
 0xe67   :  { %v6843_v31 = vmul.f32 -1.442695, %v7151_v2  ;;  %v6844_v0 = vmul.f32 -1.442695, %v7153_v54 }
 0xe68   :  { %7905 = vpow2.f32 %v6842_v13 }
 0xe69   :  { %7907 = vpow2.f32 %v6843_v31 }
 0xe6a   :  { %7909 = vpow2.f32 %v6844_v0 }
 0xe6b   :  { %7911 = vtanh.f32 %v7152_v11 }
 0xe72   :  { %v7906_v35 = vpop.eup %7905 }
 0xe73   :  { %v7908_v24 = vpop.eup %7907  ;;  %v6238_v32 = vadd.f32 1.0, %v7906_v35 }
 0xe74   :  { %v6244_v1 = vadd.f32 1.0, %v7908_v24  ;;  %v7910_v62 = vpop.eup %7909 }
 0xe75   :  { %7913 = vrcp.f32 %v6238_v32  ;;  %v7912_v12 = vpop.eup %7911  ;;  %v6251_v22 = vadd.f32 1.0, %v7910_v62 }
 0xe76   :  { %7915 = vrcp.f32 %v6244_v1 }
 0xe77   :  { %7917 = vrcp.f32 %v6251_v22 }
 0xe7f   :  { %v7914_v48 = vpop.eup %7913 }
 0xe80   :  { %v7916_v63 = vpop.eup %7915  ;;  %v6255_v25 = vmul.f32 %v7914_v48, %v7912_v12 }
 0xe81   :  { %v6254_v55 = vmul.f32 %v7916_v63, %v12238_v57  ;;  %v7918_v16 = vpop.eup %7917 }
 0xe83   :  { %v7002_v56 = vpop.f32.mrb[128].mxu0  ;;  %v6256_v59 = vadd.f32 %v6255_v25, %v6254_v55 }
 0xe84   :  { %v6358_v40 = vpop.f32.mrb[129].mxu0  ;;  %v6364_v6 = vadd.f32 %v7002_v56, %v6845_v60 }
 0xe85   :  { %7919 = vtanh.f32 %v6256_v59  ;;  %v6359_v50 = vadd.f32 %v6845_v60, %v6358_v40 }
 0xe86   :  { %v6398_v9 = vmax.f32 %v6364_v6, 0.0 }
 0xe87   :  { %v7005_v8 = vpop.f32.mrb[130].mxu0  ;;  %v6397_v42 = vmax.f32 %v6359_v50, 0.0 }
 0xe88   :  { %v6368_v43 = vpop.f32.mrb[131].mxu0  ;;  %v6374_v38 = vadd.f32 %v7005_v8, %v6845_v60 }
 0xe89   :  { %v6369_v61 = vadd.f32 %v6845_v60, %v6368_v43 }
 0xe8a   :  { %v6400_v29 = vmax.f32 %v6374_v38, 0.0 }
 0xe8b   :  { %v7008_v21 = vpop.f32.mrb[132].mxu0  ;;  %v6399_v44 = vmax.f32 %v6369_v61, 0.0 }
 0xe8c   :  { %v6384_v15 = vadd.f32 %v7008_v21, %v6845_v60  ;;  %v6378_v4 = vpop.f32.mrb[133].mxu0 }
 0xe8d   :  { %v6379_v19 = vadd.f32 %v6845_v60, %v6378_v4 }
 0xe8e   :  { %v6402_v34 = vmax.f32 %v6384_v15, 0.0 }
 0xe8f   :  { %v7920_v14 = vpop.eup %7919  ;;  %v6401_v57 = vmax.f32 %v6379_v19, 0.0 }
 0xe90   :  { %v6258_v5 = vmul.f32 %v7920_v14, %v7918_v16 }
 0xe91   :  { %7022 = vmatprep.mubr.msk.f32.mxu1 %vm6414_vm5, %v6401_v57 }
 0xe92   :  { %7010 = vmatmul.mubr.f32.gmra.mrb[134].mxu0 %v6258_v5  ;;  %7023 = vmatmul.mubr.msk.f32.vlgmr.msra.gmra.mrb[144].mxu1 %vm6414_vm5, %v6402_v34 }
 0xe93   :  { %7016 = vmatprep.mubr.msk.f32.mxu0 %vm6414_vm5, %v6397_v42 }
 0xe96   :  { %7017 = vmatmul.mubr.msk.f32.vlgmr.msra.gmra.mrb[136].mxu0 %vm6414_vm5, %v6398_v9 }
 0xe97   :  { %7019 = vmatprep.mubr.msk.f32.mxu0 %vm6414_vm5, %v6399_v44 }
 0xe9a   :  { %7020 = vmatmul.mubr.msk.f32.gmra.mrb[138].mxu0 %vm6414_vm5, %v6400_v29 }
 0xf65   :  { %v7011_v10 = vpop.f32.mrb[134].mxu0  ;;  %v7024_v47 = vpop.f32.mrb[144].mxu1 }
 0xf66   :  { %v6394_v49 = vadd.f32 %v7011_v10, %v6845_v60  ;;  %v6531_v37 = vadd.f32 %v7024_v47, %v6846_v45  ;;  %v6388_v51 = vpop.f32.mrb[135].mxu0  ;;  %v6525_v30 = vpop.f32.mrb[145].mxu1 }
 0xf67   :  { %v6389_v20 = vadd.f32 %v6845_v60, %v6388_v51  ;;  %v6526_v41 = vadd.f32 %v6846_v45, %v6525_v30 }
 0xf68   :  { %6550 = vst.msk [vmem:[%s13827_s10 + $0x28] sm:$0xff] %vm6544_vm6, %v6531_v37  ;;  %v6404_v23 = vmax.f32 %v6394_v49, 0.0 }
 0xf69   :  { %v6403_v27 = vmax.f32 %v6389_v20, 0.0  ;;  %6549 = vst.msk [vmem:[%s13827_s10 + $0x20] sm:$0xff] %vm6544_vm6, %v6526_v41  ;;  %v7018_v18 = vpop.f32.mrb[136].mxu0 }
 0xf6a   :  { %v6511_v33 = vadd.f32 %v7018_v18, %v6846_v45  ;;  %v6505_v58 = vpop.f32.mrb[137].mxu0 }
 0xf6b   :  { %v6506_v28 = vadd.f32 %v6846_v45, %v6505_v58  ;;  %7025 = vmatprep.mubr.msk.f32.mxu1 %vm6414_vm5, %v6403_v27 }
 0xf6c   :  { %6546 = vst.msk [vmem:[%s13827_s10 + $0x8] sm:$0xff] %vm6544_vm6, %v6511_v33  ;;  %7026 = vmatmul.mubr.msk.f32.gmra.mrb[146].mxu1 %vm6414_vm5, %v6404_v23 }
 0xf6d   :  { %6545 = vst.msk [vmem:[%s13827_s10] sm:$0xff] %vm6544_vm6, %v6506_v28  ;;  %v7021_v52 = vpop.f32.mrb[138].mxu0 }
 0xf6e   :  { %v6521_v26 = vadd.f32 %v7021_v52, %v6846_v45  ;;  %v6515_v17 = vpop.f32.mrb[139].mxu0 }
 0xf6f   :  { %v6516_v7 = vadd.f32 %v6846_v45, %v6515_v17 }
 0xf70   :  { %6548 = vst.msk [vmem:[%s13827_s10 + $0x18] sm:$0xff] %vm6544_vm6, %v6521_v26 }
 0xf71   :  { %6547 = vst.msk [vmem:[%s13827_s10 + $0x10] sm:$0xff] %vm6544_vm6, %v6516_v7 }
0x103f   :  { %v7027_v46 = vpop.f32.mrb[146].mxu1 }
0x1040   :  { %v6541_v2 = vadd.f32 %v7027_v46, %v6846_v45  ;;  %v6535_v36 = vpop.f32.mrb[147].mxu1 }
0x1041   :  { %v6536_v53 = vadd.f32 %v6846_v45, %v6535_v36 }
0x1042   :  { %6552 = vst.msk [vmem:[%s13827_s10 + $0x38] sm:$0xff] %vm6544_vm6, %v6541_v2 }
0x1043   :  { %6551 = vst.msk [vmem:[%s13827_s10 + $0x30] sm:$0xff] %vm6544_vm6, %v6536_v53 }
0x1044   :  { %6557 = vsyncpa [#allocation6], 1 }
0x1045   :  { %6558 = vsyncpa [#allocation8], 1 }
0x1046   :  { %6559 = vsyncpa [#allocation11], 1 }
0x1047   :  { %6560 = vsyncpa [#allocation14], 1 }
0x1048   :  { %6561 = vsyncpa [#allocation17], 1 }

</bundles_post_ra>
